<compile_context>
chip_gen: v5e
topology: v5e:2x2
jax: 0.10.0
libtpu: 0.0.40
codegen_flags: <defaults>
</compile_context>

<pallas_src>
import jax
import jax.numpy as jnp
from jax.experimental import pallas as pl
from jax.experimental.pallas import tpu as pltpu

EMB_DIM = 300
HIDDEN = 150
HIDDEN_PAD = 256   # 150 lane-padded up to the next multiple of 128


def _rnn_mlp_kernel(
    emb_ref,     # (Tc*B, E)    embedding rows for this time chunk
    wih0_ref,    # (E, Hp)      layer-0 input weights (zero-padded cols)
    b0_ref,      # (1, Hp)      b_ih_l0 + b_hh_l0 (zero-padded)
    whh0_ref,    # (Hp, Hp)     layer-0 hidden weights (zero-padded)
    w1_ref,      # (2*Hp, Hp)   stacked [Wih1_pad ; Whh1_pad]
    b1_ref,      # (1, Hp)      b_ih_l1 + b_hh_l1 (zero-padded)
    fc1_w_ref,   # (Hp, Hp)
    fc1_b_ref,   # (1, Hp)
    fc2_w_ref,   # (1, Hp)      fc2 weight as a row (VPU multiply + lane reduce)
    fc2_b_ref,   # (1, 1)
    out_ref,     # (B, 1)
    xp_ref,      # scratch (Tc*B, Hp)  chunk's precomputed x_t @ Wih0 + b0
    h0_ref,      # scratch (B, Hp)     layer-0 hidden, persists across chunks
    h1_ref,      # scratch (B, Hp)     layer-1 hidden, persists across chunks
):
    chunk = pl.program_id(0)
    B, Hp = h0_ref.shape
    Tc = xp_ref.shape[0] // B

    @pl.when(chunk == 0)
    def _():
        h0_ref[...] = jnp.zeros_like(h0_ref)
        h1_ref[...] = jnp.zeros_like(h1_ref)

    # Chunk prologue: layer-0 input projection for every step of the chunk as ONE
    # big MXU matmul (fills MXU rows, off the serial recurrence chain).
    xp_ref[...] = (
        jnp.dot(emb_ref[...], wih0_ref[...], preferred_element_type=jnp.float32)
        + b0_ref[...]
    )

    # Hoist weight loads and the bias broadcast out of the recurrence loop
    # (JAX does not CSE broadcast_in_dim inside loops).
    whh0 = whh0_ref[...]
    w1 = w1_ref[...]
    b1 = jnp.broadcast_to(b1_ref[...], (B, Hp))

    def step(t, carry):
        h0, h1 = carry
        row = pl.multiple_of(t * B, B)
        # layer 0: input term is precomputed; only the hidden-hidden matmul is serial.
        h0 = jnp.tanh(
            xp_ref[pl.ds(row, B), :]
            + jnp.dot(h0, whh0, preferred_element_type=jnp.float32)
        )
        # layer 1 fused: [h0 | h1] @ [Wih1 ; Whh1] + b1.  Hp=256 keeps the lane
        # concat on a vreg boundary, so it is a placement, not a relayout.
        h1 = jnp.tanh(
            jnp.dot(
                jnp.concatenate([h0, h1], axis=-1),
                w1,
                preferred_element_type=jnp.float32,
            )
            + b1
        )
        return h0, h1

    # Chunked unroll: fully unrolled only over the small fixed chunk (Tc <= 8).
    h0, h1 = jax.lax.fori_loop(
        0, Tc, step, (h0_ref[...], h1_ref[...]), unroll=True
    )
    h0_ref[...] = h0
    h1_ref[...] = h1

    # Fused MLP head on the final hidden state, only on the last chunk.
    @pl.when(chunk == pl.num_programs(0) - 1)
    def _():
        z = jnp.maximum(
            jnp.dot(h1, fc1_w_ref[...], preferred_element_type=jnp.float32)
            + fc1_b_ref[...],
            0.0,
        )
        # fc2 (H -> 1) as a VPU multiply + lane reduction (avoids an N=1 MXU pass).
        out = jnp.sum(z * fc2_w_ref[...], axis=-1, keepdims=True) + fc2_b_ref[...]
        out_ref[...] = out.astype(out_ref.dtype)


def _pad2(w, rows, cols):
    """Zero-pad a 2-D array to (rows, cols)."""
    return jnp.zeros((rows, cols), w.dtype).at[: w.shape[0], : w.shape[1]].set(w)


def _pick_t_chunk(T, cap=8):
    for c in range(min(T, cap), 0, -1):
        if T % c == 0:
            return c
    return T


def recurrent_forward(tokens, params, *, max_t_chunk=8):
    """tokens: (T, B) int32 token ids -> (B, 1) float32."""
    # Embedding gather stays as wrapper glue (see TODO about pulling it in-kernel).
    emb = jnp.take(params["embedding"], tokens, axis=0)        # (T, B, E)
    T, B, E = emb.shape
    H, Hp = HIDDEN, HIDDEN_PAD

    # Pad batch up to full sublanes (8 f32 rows per vreg).
    B_pad = ((B + 7) // 8) * 8
    if B_pad != B:
        emb = jnp.pad(emb, ((0, 0), (0, B_pad - B), (0, 0)))

    t_chunk = _pick_t_chunk(T, max_t_chunk)
    num_chunks = T // t_chunk
    emb2d = emb.reshape(T * B_pad, E)

    # One-time weight prep (zero pad H -> Hp, stack layer-1 weights).  Cheap glue.
    wih0_p = _pad2(params["wih0"], E, Hp)
    b0_p = _pad2(params["b0"], 1, Hp)
    whh0_p = _pad2(params["whh0"], Hp, Hp)
    w1_p = jnp.concatenate(
        [_pad2(params["wih1"], Hp, Hp), _pad2(params["whh1"], Hp, Hp)], axis=0
    )                                                            # (2*Hp, Hp)
    b1_p = _pad2(params["b1"], 1, Hp)
    fc1_w_p = _pad2(params["fc1_w"], Hp, Hp)
    fc1_b_p = _pad2(params["fc1_b"], 1, Hp)
    fc2_w_row = _pad2(params["fc2_w"].T, 1, Hp)                  # (1, Hp)
    fc2_b = params["fc2_b"]                                      # (1, 1)

    grid_spec = pltpu.PrefetchScalarGridSpec(
        num_scalar_prefetch=0,
        grid=(num_chunks,),
        in_specs=[
            # Embedding slab streams in per-chunk (double-buffered by Pallas).
            pl.BlockSpec((t_chunk * B_pad, E), lambda c: (c, 0)),
            # Weights / biases: whole array, same block every chunk (stay resident).
            pl.BlockSpec((E, Hp), lambda c: (0, 0)),
            pl.BlockSpec((1, Hp), lambda c: (0, 0)),
            pl.BlockSpec((Hp, Hp), lambda c: (0, 0)),
            pl.BlockSpec((2 * Hp, Hp), lambda c: (0, 0)),
            pl.BlockSpec((1, Hp), lambda c: (0, 0)),
            pl.BlockSpec((Hp, Hp), lambda c: (0, 0)),
            pl.BlockSpec((1, Hp), lambda c: (0, 0)),
            pl.BlockSpec((1, Hp), lambda c: (0, 0)),
            pl.BlockSpec((1, 1), lambda c: (0, 0)),
        ],
        out_specs=pl.BlockSpec((B_pad, 1), lambda c: (0, 0)),
        scratch_shapes=[
            pltpu.VMEM((t_chunk * B_pad, Hp), jnp.float32),   # xp for current chunk
            pltpu.VMEM((B_pad, Hp), jnp.float32),             # h0 (persists over grid)
            pltpu.VMEM((B_pad, Hp), jnp.float32),             # h1 (persists over grid)
        ],
    )

    out = pl.pallas_call(
        _rnn_mlp_kernel,
        out_shape=jax.ShapeDtypeStruct((B_pad, 1), jnp.float32),
        grid_spec=grid_spec,
        compiler_params=pltpu.CompilerParams(
            # The T-chunk axis carries the recurrence -> sequential.
            dimension_semantics=("arbitrary",),
            # Explicit scoped-VMEM budget (raises v5e's 16 MiB default; well under
            # v7x's 64 MiB physical).
            vmem_limit_bytes=32 * 1024 * 1024,
        ),
    )(emb2d, wih0_p, b0_p, whh0_p, w1_p, b1_p, fc1_w_p, fc1_b_p, fc2_w_row, fc2_b)

    return out[:B]


def make_params(key, vocab_size):
    """Deterministic synthetic parameters matching nn.Embedding + nn.RNN(300,150,2) + MLP."""
    ks = jax.random.split(key, 13)
    H, E = HIDDEN, EMB_DIM
    s = 0.05
    # PyTorch stores W_ih as (H, in) and computes x @ W_ih.T -> we keep (in, H).
    # b0 / b1 fold PyTorch's (b_ih + b_hh) into a single (1, H) bias.
    return {
        "embedding": jax.random.normal(ks[0], (vocab_size, E), jnp.float32) * s,
        "wih0": jax.random.normal(ks[1], (E, H), jnp.float32) * s,
        "whh0": jax.random.normal(ks[2], (H, H), jnp.float32) * s,
        "b0": (jax.random.normal(ks[3], (1, H), jnp.float32)
               + jax.random.normal(ks[4], (1, H), jnp.float32)) * s,
        "wih1": jax.random.normal(ks[5], (H, H), jnp.float32) * s,
        "whh1": jax.random.normal(ks[6], (H, H), jnp.float32) * s,
        "b1": (jax.random.normal(ks[7], (1, H), jnp.float32)
               + jax.random.normal(ks[8], (1, H), jnp.float32)) * s,
        "fc1_w": jax.random.normal(ks[9], (H, H), jnp.float32) * s,
        "fc1_b": jax.random.normal(ks[10], (1, H), jnp.float32) * s,
        "fc2_w": jax.random.normal(ks[11], (H, 1), jnp.float32) * s,
        "fc2_b": jax.random.normal(ks[12], (1, 1), jnp.float32) * s,
    }


def reference_forward(tokens, p):
    """Pure-JAX reference replicating PyTorch nn.RNN(tanh, 2 layers) + MLP head."""
    emb = jnp.take(p["embedding"], tokens, axis=0)  # (T, B, E)
    B = emb.shape[1]
    h0 = jnp.zeros((B, HIDDEN), jnp.float32)
    h1 = jnp.zeros((B, HIDDEN), jnp.float32)

    def step(carry, x_t):
        h0, h1 = carry
        h0 = jnp.tanh(x_t @ p["wih0"] + h0 @ p["whh0"] + p["b0"])
        h1 = jnp.tanh(h0 @ p["wih1"] + h1 @ p["whh1"] + p["b1"])
        return (h0, h1), None

    (h0, h1), _ = jax.lax.scan(step, (h0, h1), emb)
    z = jnp.maximum(h1 @ p["fc1_w"] + p["fc1_b"], 0.0)
    return z @ p["fc2_w"] + p["fc2_b"]


if __name__ == "__main__":
    key = jax.random.PRNGKey(0)
    k_tok, k_par = jax.random.split(key)

    # Small demo shapes: T=16 exercises the 2-chunk streamed pipeline, B=8 fills
    # the f32 sublanes (per review: per-step latency is ~constant up to an MXU
    # tile height, so fuller batches are nearly free throughput).
    T, B, VOCAB = 16, 8, 50
    tokens = jax.random.randint(k_tok, (T, B), 0, VOCAB, dtype=jnp.int32)
    params = make_params(k_par, VOCAB)

    fwd = jax.jit(recurrent_forward)
    out = jax.block_until_ready(fwd(tokens, params))

    ref = reference_forward(tokens, params)
    assert out.shape == (B, 1), out.shape
    assert jnp.allclose(out, ref, atol=2e-5, rtol=1e-4), (out, ref)

    print("KERNEL_OK")
</pallas_src>

<mosaic_0001>
module attributes {stable_mosaic.version = 11 : i64} {
  func.func @_rnn_mlp_kernel(%arg0: i32, %arg1: memref<64x300xf32, #tpu.memory_space<vmem>>, %arg2: memref<300x256xf32, #tpu.memory_space<vmem>>, %arg3: memref<1x256xf32, #tpu.memory_space<vmem>>, %arg4: memref<256x256xf32, #tpu.memory_space<vmem>>, %arg5: memref<512x256xf32, #tpu.memory_space<vmem>>, %arg6: memref<1x256xf32, #tpu.memory_space<vmem>>, %arg7: memref<256x256xf32, #tpu.memory_space<vmem>>, %arg8: memref<1x256xf32, #tpu.memory_space<vmem>>, %arg9: memref<1x256xf32, #tpu.memory_space<vmem>>, %arg10: memref<1x1xf32, #tpu.memory_space<vmem>>, %arg11: memref<8x1xf32, #tpu.memory_space<vmem>>, %arg12: memref<64x256xf32, #tpu.memory_space<vmem>>, %arg13: memref<8x256xf32, #tpu.memory_space<vmem>>, %arg14: memref<8x256xf32, #tpu.memory_space<vmem>>) attributes {dimension_semantics = [#tpu.dimension_semantics<arbitrary>], iteration_bounds = array<i64: 2>, scalar_prefetch = 0 : i64, scratch_operands = 3 : i64, tpu.core_type = #tpu.core_type<tc>, window_params = [{transform_indices = @transform_0, window_bounds = array<i64: 64, 300>}, {pipeline_mode = #tpu.pipeline_mode<synchronous>, transform_indices = @transform_1, window_bounds = array<i64: 300, 256>}, {pipeline_mode = #tpu.pipeline_mode<synchronous>, transform_indices = @transform_2, window_bounds = array<i64: 1, 256>}, {pipeline_mode = #tpu.pipeline_mode<synchronous>, transform_indices = @transform_3, window_bounds = array<i64: 256, 256>}, {pipeline_mode = #tpu.pipeline_mode<synchronous>, transform_indices = @transform_4, window_bounds = array<i64: 512, 256>}, {pipeline_mode = #tpu.pipeline_mode<synchronous>, transform_indices = @transform_5, window_bounds = array<i64: 1, 256>}, {pipeline_mode = #tpu.pipeline_mode<synchronous>, transform_indices = @transform_6, window_bounds = array<i64: 256, 256>}, {pipeline_mode = #tpu.pipeline_mode<synchronous>, transform_indices = @transform_7, window_bounds = array<i64: 1, 256>}, {pipeline_mode = #tpu.pipeline_mode<synchronous>, transform_indices = @transform_8, window_bounds = array<i64: 1, 256>}, {pipeline_mode = #tpu.pipeline_mode<synchronous>, transform_indices = @transform_9, window_bounds = array<i64: 1, 1>}, {pipeline_mode = #tpu.pipeline_mode<synchronous>, transform_indices = @transform_10, window_bounds = array<i64: 8, 1>}]} {
    %c0_i32 = arith.constant 0 : i32
    %0 = arith.cmpi eq, %arg0, %c0_i32 : i32
    %1 = arith.extui %0 : i1 to i32
    %c0_i32_0 = arith.constant 0 : i32
    %2 = arith.cmpi ne, %1, %c0_i32_0 : i32
    scf.if %2 {
      %cst_57 = arith.constant 0.000000e+00 : f32
      %110 = vector.broadcast %cst_57 : f32 to vector<8x256xf32>
      %c0_58 = arith.constant 0 : index
      %c0_59 = arith.constant 0 : index
      %111 = vector.load %arg13[%c0_58, %c0_59] : memref<8x256xf32, #tpu.memory_space<vmem>>, vector<8x256xf32>
      tpu.vector_store %arg13[%c0_58, %c0_59], %110 {strides = array<i32>} : memref<8x256xf32, #tpu.memory_space<vmem>>, vector<8x256xf32>,
      %cst_60 = arith.constant 0.000000e+00 : f32
      %112 = vector.broadcast %cst_60 : f32 to vector<8x256xf32>
      %c0_61 = arith.constant 0 : index
      %c0_62 = arith.constant 0 : index
      %113 = vector.load %arg14[%c0_61, %c0_62] : memref<8x256xf32, #tpu.memory_space<vmem>>, vector<8x256xf32>
      tpu.vector_store %arg14[%c0_61, %c0_62], %112 {strides = array<i32>} : memref<8x256xf32, #tpu.memory_space<vmem>>, vector<8x256xf32>,
    } else {
    }
    %c0 = arith.constant 0 : index
    %c0_1 = arith.constant 0 : index
    %3 = vector.load %arg1[%c0, %c0_1] : memref<64x300xf32, #tpu.memory_space<vmem>>, vector<64x300xf32>
    %c0_2 = arith.constant 0 : index
    %c0_3 = arith.constant 0 : index
    %4 = vector.load %arg2[%c0_2, %c0_3] : memref<300x256xf32, #tpu.memory_space<vmem>>, vector<300x256xf32>
    %cst = arith.constant dense<0.000000e+00> : vector<64x256xf32>
    %5 = tpu.matmul %3, %4, %cst {dimension_numbers = #tpu.dot_dimension_numbers<[1], [0], [0], [1], [0, 0, 1, 1], [], []>} : vector<64x300xf32>, vector<300x256xf32>, vector<64x256xf32> -> vector<64x256xf32>
    %c0_4 = arith.constant 0 : index
    %c0_5 = arith.constant 0 : index
    %6 = vector.load %arg3[%c0_4, %c0_5] : memref<1x256xf32, #tpu.memory_space<vmem>>, vector<1x256xf32>
    %7 = vector.broadcast %6 : vector<1x256xf32> to vector<64x256xf32>
    %8 = arith.addf %5, %7 : vector<64x256xf32>
    %c0_6 = arith.constant 0 : index
    %c0_7 = arith.constant 0 : index
    %9 = vector.load %arg12[%c0_6, %c0_7] : memref<64x256xf32, #tpu.memory_space<vmem>>, vector<64x256xf32>
    tpu.vector_store %arg12[%c0_6, %c0_7], %8 {strides = array<i32>} : memref<64x256xf32, #tpu.memory_space<vmem>>, vector<64x256xf32>,
    %c0_8 = arith.constant 0 : index
    %c0_9 = arith.constant 0 : index
    %10 = vector.load %arg4[%c0_8, %c0_9] : memref<256x256xf32, #tpu.memory_space<vmem>>, vector<256x256xf32>
    %c0_10 = arith.constant 0 : index
    %c0_11 = arith.constant 0 : index
    %11 = vector.load %arg5[%c0_10, %c0_11] : memref<512x256xf32, #tpu.memory_space<vmem>>, vector<512x256xf32>
    %c0_12 = arith.constant 0 : index
    %c0_13 = arith.constant 0 : index
    %12 = vector.load %arg6[%c0_12, %c0_13] : memref<1x256xf32, #tpu.memory_space<vmem>>, vector<1x256xf32>
    %13 = vector.shape_cast %12 : vector<1x256xf32> to vector<1x256xf32>
    %14 = vector.broadcast %13 : vector<1x256xf32> to vector<8x256xf32>
    %c0_14 = arith.constant 0 : index
    %c0_15 = arith.constant 0 : index
    %15 = vector.load %arg13[%c0_14, %c0_15] : memref<8x256xf32, #tpu.memory_space<vmem>>, vector<8x256xf32>
    %c0_16 = arith.constant 0 : index
    %c0_17 = arith.constant 0 : index
    %16 = vector.load %arg14[%c0_16, %c0_17] : memref<8x256xf32, #tpu.memory_space<vmem>>, vector<8x256xf32>
    %c0_i32_18 = arith.constant 0 : i32
    %c8_i32 = arith.constant 8 : i32
    %17 = arith.muli %c0_i32_18, %c8_i32 : i32
    %18 = tpu.assume_multiple %17, 8 : i32
    %19 = arith.index_cast %18 : i32 to index
    %c0_19 = arith.constant 0 : index
    %20 = vector.load %arg12[%19, %c0_19] : memref<64x256xf32, #tpu.memory_space<vmem>>, vector<8x256xf32>
    %cst_20 = arith.constant dense<0.000000e+00> : vector<8x256xf32>
    %21 = tpu.matmul %15, %10, %cst_20 {dimension_numbers = #tpu.dot_dimension_numbers<[1], [0], [0], [1], [0, 0, 1, 1], [], []>} : vector<8x256xf32>, vector<256x256xf32>, vector<8x256xf32> -> vector<8x256xf32>
    %22 = arith.addf %20, %21 : vector<8x256xf32>
    %23 = math.tanh %22 : vector<8x256xf32>
    %24 = tpu.concatenate %23, %16 in 1 : vector<8x256xf32>, vector<8x256xf32> -> vector<8x512xf32>
    %cst_21 = arith.constant dense<0.000000e+00> : vector<8x256xf32>
    %25 = tpu.matmul %24, %11, %cst_21 {dimension_numbers = #tpu.dot_dimension_numbers<[1], [0], [0], [1], [0, 0, 1, 1], [], []>} : vector<8x512xf32>, vector<512x256xf32>, vector<8x256xf32> -> vector<8x256xf32>
    %26 = arith.addf %25, %14 : vector<8x256xf32>
    %27 = math.tanh %26 : vector<8x256xf32>
    %c1_i32 = arith.constant 1 : i32
    %c8_i32_22 = arith.constant 8 : i32
    %28 = arith.muli %c1_i32, %c8_i32_22 : i32
    %29 = tpu.assume_multiple %28, 8 : i32
    %30 = arith.index_cast %29 : i32 to index
    %c0_23 = arith.constant 0 : index
    %31 = vector.load %arg12[%30, %c0_23] : memref<64x256xf32, #tpu.memory_space<vmem>>, vector<8x256xf32>
    %cst_24 = arith.constant dense<0.000000e+00> : vector<8x256xf32>
    %32 = tpu.matmul %23, %10, %cst_24 {dimension_numbers = #tpu.dot_dimension_numbers<[1], [0], [0], [1], [0, 0, 1, 1], [], []>} : vector<8x256xf32>, vector<256x256xf32>, vector<8x256xf32> -> vector<8x256xf32>
    %33 = arith.addf %31, %32 : vector<8x256xf32>
    %34 = math.tanh %33 : vector<8x256xf32>
    %35 = tpu.concatenate %34, %27 in 1 : vector<8x256xf32>, vector<8x256xf32> -> vector<8x512xf32>
    %cst_25 = arith.constant dense<0.000000e+00> : vector<8x256xf32>
    %36 = tpu.matmul %35, %11, %cst_25 {dimension_numbers = #tpu.dot_dimension_numbers<[1], [0], [0], [1], [0, 0, 1, 1], [], []>} : vector<8x512xf32>, vector<512x256xf32>, vector<8x256xf32> -> vector<8x256xf32>
    %37 = arith.addf %36, %14 : vector<8x256xf32>
    %38 = math.tanh %37 : vector<8x256xf32>
    %c2_i32 = arith.constant 2 : i32
    %c8_i32_26 = arith.constant 8 : i32
    %39 = arith.muli %c2_i32, %c8_i32_26 : i32
    %40 = tpu.assume_multiple %39, 8 : i32
    %41 = arith.index_cast %40 : i32 to index
    %c0_27 = arith.constant 0 : index
    %42 = vector.load %arg12[%41, %c0_27] : memref<64x256xf32, #tpu.memory_space<vmem>>, vector<8x256xf32>
    %cst_28 = arith.constant dense<0.000000e+00> : vector<8x256xf32>
    %43 = tpu.matmul %34, %10, %cst_28 {dimension_numbers = #tpu.dot_dimension_numbers<[1], [0], [0], [1], [0, 0, 1, 1], [], []>} : vector<8x256xf32>, vector<256x256xf32>, vector<8x256xf32> -> vector<8x256xf32>
    %44 = arith.addf %42, %43 : vector<8x256xf32>
    %45 = math.tanh %44 : vector<8x256xf32>
    %46 = tpu.concatenate %45, %38 in 1 : vector<8x256xf32>, vector<8x256xf32> -> vector<8x512xf32>
    %cst_29 = arith.constant dense<0.000000e+00> : vector<8x256xf32>
    %47 = tpu.matmul %46, %11, %cst_29 {dimension_numbers = #tpu.dot_dimension_numbers<[1], [0], [0], [1], [0, 0, 1, 1], [], []>} : vector<8x512xf32>, vector<512x256xf32>, vector<8x256xf32> -> vector<8x256xf32>
    %48 = arith.addf %47, %14 : vector<8x256xf32>
    %49 = math.tanh %48 : vector<8x256xf32>
    %c3_i32 = arith.constant 3 : i32
    %c8_i32_30 = arith.constant 8 : i32
    %50 = arith.muli %c3_i32, %c8_i32_30 : i32
    %51 = tpu.assume_multiple %50, 8 : i32
    %52 = arith.index_cast %51 : i32 to index
    %c0_31 = arith.constant 0 : index
    %53 = vector.load %arg12[%52, %c0_31] : memref<64x256xf32, #tpu.memory_space<vmem>>, vector<8x256xf32>
    %cst_32 = arith.constant dense<0.000000e+00> : vector<8x256xf32>
    %54 = tpu.matmul %45, %10, %cst_32 {dimension_numbers = #tpu.dot_dimension_numbers<[1], [0], [0], [1], [0, 0, 1, 1], [], []>} : vector<8x256xf32>, vector<256x256xf32>, vector<8x256xf32> -> vector<8x256xf32>
    %55 = arith.addf %53, %54 : vector<8x256xf32>
    %56 = math.tanh %55 : vector<8x256xf32>
    %57 = tpu.concatenate %56, %49 in 1 : vector<8x256xf32>, vector<8x256xf32> -> vector<8x512xf32>
    %cst_33 = arith.constant dense<0.000000e+00> : vector<8x256xf32>
    %58 = tpu.matmul %57, %11, %cst_33 {dimension_numbers = #tpu.dot_dimension_numbers<[1], [0], [0], [1], [0, 0, 1, 1], [], []>} : vector<8x512xf32>, vector<512x256xf32>, vector<8x256xf32> -> vector<8x256xf32>
    %59 = arith.addf %58, %14 : vector<8x256xf32>
    %60 = math.tanh %59 : vector<8x256xf32>
    %c4_i32 = arith.constant 4 : i32
    %c8_i32_34 = arith.constant 8 : i32
    %61 = arith.muli %c4_i32, %c8_i32_34 : i32
    %62 = tpu.assume_multiple %61, 8 : i32
    %63 = arith.index_cast %62 : i32 to index
    %c0_35 = arith.constant 0 : index
    %64 = vector.load %arg12[%63, %c0_35] : memref<64x256xf32, #tpu.memory_space<vmem>>, vector<8x256xf32>
    %cst_36 = arith.constant dense<0.000000e+00> : vector<8x256xf32>
    %65 = tpu.matmul %56, %10, %cst_36 {dimension_numbers = #tpu.dot_dimension_numbers<[1], [0], [0], [1], [0, 0, 1, 1], [], []>} : vector<8x256xf32>, vector<256x256xf32>, vector<8x256xf32> -> vector<8x256xf32>
    %66 = arith.addf %64, %65 : vector<8x256xf32>
    %67 = math.tanh %66 : vector<8x256xf32>
    %68 = tpu.concatenate %67, %60 in 1 : vector<8x256xf32>, vector<8x256xf32> -> vector<8x512xf32>
    %cst_37 = arith.constant dense<0.000000e+00> : vector<8x256xf32>
    %69 = tpu.matmul %68, %11, %cst_37 {dimension_numbers = #tpu.dot_dimension_numbers<[1], [0], [0], [1], [0, 0, 1, 1], [], []>} : vector<8x512xf32>, vector<512x256xf32>, vector<8x256xf32> -> vector<8x256xf32>
    %70 = arith.addf %69, %14 : vector<8x256xf32>
    %71 = math.tanh %70 : vector<8x256xf32>
    %c5_i32 = arith.constant 5 : i32
    %c8_i32_38 = arith.constant 8 : i32
    %72 = arith.muli %c5_i32, %c8_i32_38 : i32
    %73 = tpu.assume_multiple %72, 8 : i32
    %74 = arith.index_cast %73 : i32 to index
    %c0_39 = arith.constant 0 : index
    %75 = vector.load %arg12[%74, %c0_39] : memref<64x256xf32, #tpu.memory_space<vmem>>, vector<8x256xf32>
    %cst_40 = arith.constant dense<0.000000e+00> : vector<8x256xf32>
    %76 = tpu.matmul %67, %10, %cst_40 {dimension_numbers = #tpu.dot_dimension_numbers<[1], [0], [0], [1], [0, 0, 1, 1], [], []>} : vector<8x256xf32>, vector<256x256xf32>, vector<8x256xf32> -> vector<8x256xf32>
    %77 = arith.addf %75, %76 : vector<8x256xf32>
    %78 = math.tanh %77 : vector<8x256xf32>
    %79 = tpu.concatenate %78, %71 in 1 : vector<8x256xf32>, vector<8x256xf32> -> vector<8x512xf32>
    %cst_41 = arith.constant dense<0.000000e+00> : vector<8x256xf32>
    %80 = tpu.matmul %79, %11, %cst_41 {dimension_numbers = #tpu.dot_dimension_numbers<[1], [0], [0], [1], [0, 0, 1, 1], [], []>} : vector<8x512xf32>, vector<512x256xf32>, vector<8x256xf32> -> vector<8x256xf32>
    %81 = arith.addf %80, %14 : vector<8x256xf32>
    %82 = math.tanh %81 : vector<8x256xf32>
    %c6_i32 = arith.constant 6 : i32
    %c8_i32_42 = arith.constant 8 : i32
    %83 = arith.muli %c6_i32, %c8_i32_42 : i32
    %84 = tpu.assume_multiple %83, 8 : i32
    %85 = arith.index_cast %84 : i32 to index
    %c0_43 = arith.constant 0 : index
    %86 = vector.load %arg12[%85, %c0_43] : memref<64x256xf32, #tpu.memory_space<vmem>>, vector<8x256xf32>
    %cst_44 = arith.constant dense<0.000000e+00> : vector<8x256xf32>
    %87 = tpu.matmul %78, %10, %cst_44 {dimension_numbers = #tpu.dot_dimension_numbers<[1], [0], [0], [1], [0, 0, 1, 1], [], []>} : vector<8x256xf32>, vector<256x256xf32>, vector<8x256xf32> -> vector<8x256xf32>
    %88 = arith.addf %86, %87 : vector<8x256xf32>
    %89 = math.tanh %88 : vector<8x256xf32>
    %90 = tpu.concatenate %89, %82 in 1 : vector<8x256xf32>, vector<8x256xf32> -> vector<8x512xf32>
    %cst_45 = arith.constant dense<0.000000e+00> : vector<8x256xf32>
    %91 = tpu.matmul %90, %11, %cst_45 {dimension_numbers = #tpu.dot_dimension_numbers<[1], [0], [0], [1], [0, 0, 1, 1], [], []>} : vector<8x512xf32>, vector<512x256xf32>, vector<8x256xf32> -> vector<8x256xf32>
    %92 = arith.addf %91, %14 : vector<8x256xf32>
    %93 = math.tanh %92 : vector<8x256xf32>
    %c7_i32 = arith.constant 7 : i32
    %c8_i32_46 = arith.constant 8 : i32
    %94 = arith.muli %c7_i32, %c8_i32_46 : i32
    %95 = tpu.assume_multiple %94, 8 : i32
    %96 = arith.index_cast %95 : i32 to index
    %c0_47 = arith.constant 0 : index
    %97 = vector.load %arg12[%96, %c0_47] : memref<64x256xf32, #tpu.memory_space<vmem>>, vector<8x256xf32>
    %cst_48 = arith.constant dense<0.000000e+00> : vector<8x256xf32>
    %98 = tpu.matmul %89, %10, %cst_48 {dimension_numbers = #tpu.dot_dimension_numbers<[1], [0], [0], [1], [0, 0, 1, 1], [], []>} : vector<8x256xf32>, vector<256x256xf32>, vector<8x256xf32> -> vector<8x256xf32>
    %99 = arith.addf %97, %98 : vector<8x256xf32>
    %100 = math.tanh %99 : vector<8x256xf32>
    %101 = tpu.concatenate %100, %93 in 1 : vector<8x256xf32>, vector<8x256xf32> -> vector<8x512xf32>
    %cst_49 = arith.constant dense<0.000000e+00> : vector<8x256xf32>
    %102 = tpu.matmul %101, %11, %cst_49 {dimension_numbers = #tpu.dot_dimension_numbers<[1], [0], [0], [1], [0, 0, 1, 1], [], []>} : vector<8x512xf32>, vector<512x256xf32>, vector<8x256xf32> -> vector<8x256xf32>
    %103 = arith.addf %102, %14 : vector<8x256xf32>
    %104 = math.tanh %103 : vector<8x256xf32>
    %c8_i32_50 = arith.constant 8 : i32
    %c0_51 = arith.constant 0 : index
    %c0_52 = arith.constant 0 : index
    %105 = vector.load %arg13[%c0_51, %c0_52] : memref<8x256xf32, #tpu.memory_space<vmem>>, vector<8x256xf32>
    tpu.vector_store %arg13[%c0_51, %c0_52], %100 {strides = array<i32>} : memref<8x256xf32, #tpu.memory_space<vmem>>, vector<8x256xf32>,
    %c0_53 = arith.constant 0 : index
    %c0_54 = arith.constant 0 : index
    %106 = vector.load %arg14[%c0_53, %c0_54] : memref<8x256xf32, #tpu.memory_space<vmem>>, vector<8x256xf32>
    tpu.vector_store %arg14[%c0_53, %c0_54], %104 {strides = array<i32>} : memref<8x256xf32, #tpu.memory_space<vmem>>, vector<8x256xf32>,
    %c1_i32_55 = arith.constant 1 : i32
    %107 = arith.cmpi eq, %arg0, %c1_i32_55 : i32
    %108 = arith.extui %107 : i1 to i32
    %c0_i32_56 = arith.constant 0 : i32
    %109 = arith.cmpi ne, %108, %c0_i32_56 : i32
    scf.if %109 {
      %c0_57 = arith.constant 0 : index
      %c0_58 = arith.constant 0 : index
      %110 = vector.load %arg7[%c0_57, %c0_58] : memref<256x256xf32, #tpu.memory_space<vmem>>, vector<256x256xf32>
      %cst_59 = arith.constant dense<0.000000e+00> : vector<8x256xf32>
      %111 = tpu.matmul %104, %110, %cst_59 {dimension_numbers = #tpu.dot_dimension_numbers<[1], [0], [0], [1], [0, 0, 1, 1], [], []>} : vector<8x256xf32>, vector<256x256xf32>, vector<8x256xf32> -> vector<8x256xf32>
      %c0_60 = arith.constant 0 : index
      %c0_61 = arith.constant 0 : index
      %112 = vector.load %arg8[%c0_60, %c0_61] : memref<1x256xf32, #tpu.memory_space<vmem>>, vector<1x256xf32>
      %113 = vector.broadcast %112 : vector<1x256xf32> to vector<8x256xf32>
      %114 = arith.addf %111, %113 : vector<8x256xf32>
      %cst_62 = arith.constant 0.000000e+00 : f32
      %115 = vector.broadcast %cst_62 : f32 to vector<8x256xf32>
      %116 = arith.maximumf %114, %115 : vector<8x256xf32>
      %c0_63 = arith.constant 0 : index
      %c0_64 = arith.constant 0 : index
      %117 = vector.load %arg9[%c0_63, %c0_64] : memref<1x256xf32, #tpu.memory_space<vmem>>, vector<1x256xf32>
      %118 = vector.broadcast %117 : vector<1x256xf32> to vector<8x256xf32>
      %119 = arith.mulf %116, %118 : vector<8x256xf32>
      %cst_65 = arith.constant dense<0.000000e+00> : vector<8xf32>
      %120 = vector.multi_reduction <add>, %119, %cst_65 [1] : vector<8x256xf32> to vector<8xf32>
      %121 = vector.shape_cast %120 : vector<8xf32> to vector<8x1xf32>
      %c0_66 = arith.constant 0 : index
      %c0_67 = arith.constant 0 : index
      %122 = vector.load %arg10[%c0_66, %c0_67] : memref<1x1xf32, #tpu.memory_space<vmem>>, vector<1x1xf32>
      %123 = vector.broadcast %122 : vector<1x1xf32> to vector<8x1xf32>
      %124 = arith.addf %121, %123 : vector<8x1xf32>
      %c0_68 = arith.constant 0 : index
      %c0_69 = arith.constant 0 : index
      %125 = vector.load %arg11[%c0_68, %c0_69] : memref<8x1xf32, #tpu.memory_space<vmem>>, vector<8x1xf32>
      tpu.vector_store %arg11[%c0_68, %c0_69], %124 {strides = array<i32>} : memref<8x1xf32, #tpu.memory_space<vmem>>, vector<8x1xf32>,
    } else {
    }
    return
  }
  func.func @transform_0(%arg0: i32) -> (i32, i32) {
    %c0_i32 = arith.constant 0 : i32
    %c0_i32_0 = arith.constant 0 : i32
    return %arg0, %c0_i32 : i32, i32
  }
  func.func @transform_1(%arg0: i32) -> (i32, i32) {
    %c0_i32 = arith.constant 0 : i32
    %c0_i32_0 = arith.constant 0 : i32
    %c0_i32_1 = arith.constant 0 : i32
    return %c0_i32, %c0_i32_0 : i32, i32
  }
  func.func @transform_2(%arg0: i32) -> (i32, i32) {
    %c0_i32 = arith.constant 0 : i32
    %c0_i32_0 = arith.constant 0 : i32
    %c0_i32_1 = arith.constant 0 : i32
    return %c0_i32, %c0_i32_0 : i32, i32
  }
  func.func @transform_3(%arg0: i32) -> (i32, i32) {
    %c0_i32 = arith.constant 0 : i32
    %c0_i32_0 = arith.constant 0 : i32
    %c0_i32_1 = arith.constant 0 : i32
    return %c0_i32, %c0_i32_0 : i32, i32
  }
  func.func @transform_4(%arg0: i32) -> (i32, i32) {
    %c0_i32 = arith.constant 0 : i32
    %c0_i32_0 = arith.constant 0 : i32
    %c0_i32_1 = arith.constant 0 : i32
    return %c0_i32, %c0_i32_0 : i32, i32
  }
  func.func @transform_5(%arg0: i32) -> (i32, i32) {
    %c0_i32 = arith.constant 0 : i32
    %c0_i32_0 = arith.constant 0 : i32
    %c0_i32_1 = arith.constant 0 : i32
    return %c0_i32, %c0_i32_0 : i32, i32
  }
  func.func @transform_6(%arg0: i32) -> (i32, i32) {
    %c0_i32 = arith.constant 0 : i32
    %c0_i32_0 = arith.constant 0 : i32
    %c0_i32_1 = arith.constant 0 : i32
    return %c0_i32, %c0_i32_0 : i32, i32
  }
  func.func @transform_7(%arg0: i32) -> (i32, i32) {
    %c0_i32 = arith.constant 0 : i32
    %c0_i32_0 = arith.constant 0 : i32
    %c0_i32_1 = arith.constant 0 : i32
    return %c0_i32, %c0_i32_0 : i32, i32
  }
  func.func @transform_8(%arg0: i32) -> (i32, i32) {
    %c0_i32 = arith.constant 0 : i32
    %c0_i32_0 = arith.constant 0 : i32
    %c0_i32_1 = arith.constant 0 : i32
    return %c0_i32, %c0_i32_0 : i32, i32
  }
  func.func @transform_9(%arg0: i32) -> (i32, i32) {
    %c0_i32 = arith.constant 0 : i32
    %c0_i32_0 = arith.constant 0 : i32
    %c0_i32_1 = arith.constant 0 : i32
    return %c0_i32, %c0_i32_0 : i32, i32
  }
  func.func @transform_10(%arg0: i32) -> (i32, i32) {
    %c0_i32 = arith.constant 0 : i32
    %c0_i32_0 = arith.constant 0 : i32
    %c0_i32_1 = arith.constant 0 : i32
    return %c0_i32, %c0_i32_0 : i32, i32
  }
}

</mosaic_0001>

<bundles_post_ra>
// kernel: recurrent_forward.1
= control target key start
LH: loop header
LB: loop body
LE: loop exit
PB: predicated region body
PF: predicated region fallthrough
CT: control target
= control target key end

     0   :  { %s3769_s15 = smov 0   ;;  %s8995_s0 = inlined_call_operand.vmem [shape: f32[128,300], index: 0, kind: input, shape index: {}]   ;;  %s8996_s1 = inlined_call_operand.vmem [shape: f32[300,256], index: 1, kind: input, shape index: {}]   ;;  %s8997_s2 = inlined_call_operand.vmem [shape: f32[1,256], index: 2, kind: input, shape index: {}]   ;;  %s8998_s3 = inlined_call_operand.vmem [shape: f32[256,256], index: 3, kind: input, shape index: {}]   ;;  %s8999_s4 = inlined_call_operand.vmem [shape: f32[512,256], index: 4, kind: input, shape index: {}]   ;;  %s9000_s5 = inlined_call_operand.vmem [shape: f32[1,256], index: 5, kind: input, shape index: {}]   ;;  %s9001_s6 = inlined_call_operand.vmem [shape: f32[256,256], index: 6, kind: input, shape index: {}]   ;;  %s9002_s7 = inlined_call_operand.vmem [shape: f32[1,256], index: 7, kind: input, shape index: {}]   ;;  %s9003_s8 = inlined_call_operand.vmem [shape: f32[1,256], index: 8, kind: input, shape index: {}]   ;;  %s9004_s9 = inlined_call_operand.<no memory space> [shape: f32[1,1], index: 9, kind: input, shape index: {}]   ;;  %s9005_s10 = inlined_call_operand.vmem [shape: f32[8,1], index: 10, kind: output, shape index: {}]  }
   0x1   :  { %v15_v0 = vstv %s9004_s9 }
   0x2   :  { %16 = vst [vmem:[#allocation5] sm:$0x1] %v15_v0 }
   0x3 LB: > { %s3775_s16 = sadd.s32 4294967295, %s3708_s15   ;;  %p3186_p0 = scmp.ge.s32.totalorder %s3708_s15, 1  ;;  %s3708_s15 = sphi %s3769_s15, %s22_s15  }
   0x4   : > { %p311_p1 = scmp.lt.s32.totalorder %s3708_s15, 3 }
   0x6   : > { %p312_p2 = pnand %p3186_p0, %p311_p1 }
   0x8   : > { %315 = sbr.rel (%p312_p2) target bundleno = 1977 (0x7b9), region = 60 }
   0xd   : > { %s3187_s17 = sshll.u32 %s3775_s16, 3  ;;  %p3189_p4 = scmp.ne.s32.totalorder %s3775_s16, 0 }
   0xe   : > { %p346_p3 = scmp.lt.s32.totalorder %s3187_s17, 15 }
   0xf   : > { %355 = sbr.rel (%p3189_p4) target bundleno = 25 (0x19), region = 64 }
  0x10   : > { %s10755_s17 = smov (!%p346_p3, %s3187_s17), 15 }
  0x11   : > { %s3211_s9 = smul.u32 24, %s10755_s17 }
  0x13   : > { %s3783_s20 = scalar_lea.vmem %s8995_s0, %s3211_s9 }
  0x14   : > { %v3710_v1 = vmov 0.0  }
  0x15   : > { %356 = vst [vmem:[#allocation3] sm:$0xff] %v3710_v1 }
  0x16   : > { %357 = vst [vmem:[#allocation3 + $0x8] sm:$0xff] %v3710_v1 }
  0x17   : > { %358 = vst [vmem:[#allocation4 + $0x8] sm:$0xff] %v3710_v1 }
  0x18   : > { %359 = vst [vmem:[#allocation4] sm:$0xff] %v3710_v1 }
  0x19 PF: > { %v414_v2 = vld [vmem:[%s8996_s1 + $0xf0] sm:$0xff]  ;;  %vm491_vm0 = vcmask 1043456   ;;  %v415_v4 = vld [vmem:[%s8996_s1 + $0xf8] sm:$0xff]  ;;  %v412_v5 = vld [vmem:[%s8996_s1 + $0xe0] sm:$0xff]  ;;  %vm466_vm1 = vcmask 359424   ;;  %p3208_p5 = scmp.ne.s32.totalorder %s3775_s16, 1 }
  0x1a   : > { %v458_v3 = vld [vmem:[%s8996_s1 + $0x250] sm:$0xf]  ;;  %498 = vmatpush.msra.mxu0 %v414_v2  ;;  %v456_v6 = vld [vmem:[%s8996_s1 + $0x240] sm:$0xff]  ;;  %v413_v7 = vld [vmem:[%s8996_s1 + $0xe8] sm:$0xff]  ;;  %621 = vmatpush.msra.mxu3 %v415_v4 }
  0x1b   : > { %3190 = vmatpush.msk.msra.mxu2 %vm491_vm0, %v458_v3  ;;  %v410_v8 = vld [vmem:[%s8996_s1 + $0xd0] sm:$0xff]  ;;  %v411_v10 = vld [vmem:[%s8996_s1 + $0xd8] sm:$0xff]  ;;  %v408_v12 = vld [vmem:[%s8996_s1 + $0xc0] sm:$0xff] }
  0x1c   : > { %v454_v9 = vld [vmem:[%s8996_s1 + $0x230] sm:$0xff]  ;;  %499 = vmatpush.msra.mxu0 %v412_v5  ;;  %622 = vmatpush.msra.mxu3 %v413_v7  ;;  %v452_v13 = vld [vmem:[%s8996_s1 + $0x220] sm:$0xff]  ;;  %v409_v15 = vld [vmem:[%s8996_s1 + $0xc8] sm:$0xff] }
  0x1d   : > { %591 = vmatpush.msra.mxu2 %v456_v6  ;;  %v446_v11 = vld [vmem:[%s8996_s1 + $0x1f0] sm:$0xff]  ;;  %v444_v14 = vld [vmem:[%s8996_s1 + $0x1e0] sm:$0xff]  ;;  %v407_v19 = vld [vmem:[%s8996_s1 + $0xb8] sm:$0xff] }
  0x1e   : > { %539 = vmatpush.msra.mxu1 %v446_v11  ;;  %500 = vmatpush.msra.mxu0 %v410_v8  ;;  %v406_v16 = vld [vmem:[%s8996_s1 + $0xb0] sm:$0xff]  ;;  %v440_v20 = vld [vmem:[%s8996_s1 + $0x1c0] sm:$0xff]  ;;  %v405_v23 = vld [vmem:[%s8996_s1 + $0xa8] sm:$0xff] }
  0x1f   : > { %592 = vmatpush.msra.mxu2 %v454_v9  ;;  %623 = vmatpush.msra.mxu3 %v411_v10  ;;  %v450_v17 = vld [vmem:[%s8996_s1 + $0x210] sm:$0xff]  ;;  %v404_v21 = vld [vmem:[%s8996_s1 + $0xa0] sm:$0xff]  ;;  %v403_v27 = vld [vmem:[%s8996_s1 + $0x98] sm:$0xff] }
  0x20   : > { %540 = vmatpush.msra.mxu1 %v444_v14  ;;  %v442_v18 = vld [vmem:[%s8996_s1 + $0x1d0] sm:$0xff]  ;;  %501 = vmatpush.msra.mxu0 %v408_v12  ;;  %v448_v22 = vld [vmem:[%s8996_s1 + $0x200] sm:$0xff]  ;;  %v401_v30 = vld [vmem:[%s8996_s1 + $0x88] sm:$0xff] }
  0x21   : > { %593 = vmatpush.msra.mxu2 %v452_v13  ;;  %624 = vmatpush.msra.mxu3 %v409_v15  ;;  %v3854_v24 = vld [vmem:[%s3783_s20 + $0x10] sm:$0xff]  ;;  %v400_v28 = vld [vmem:[%s8996_s1 + $0x80] sm:$0xff]  ;;  %v399_v33 = vld [vmem:[%s8996_s1 + $0x78] sm:$0xff] }
  0x22   : > { %541 = vmatpush.msra.mxu1 %v442_v18  ;;  %502 = vmatpush.msra.mxu0 %v406_v16  ;;  %v402_v25 = vld [vmem:[%s8996_s1 + $0x90] sm:$0xff]  ;;  %v436_v29 = vld [vmem:[%s8996_s1 + $0x1a0] sm:$0xff]  ;;  %v397_v36 = vld [vmem:[%s8996_s1 + $0x68] sm:$0xff] }
  0x23   : > { %594 = vmatpush.msra.mxu2 %v450_v17  ;;  %625 = vmatpush.msra.mxu3 %v407_v19  ;;  %v438_v26 = vld [vmem:[%s8996_s1 + $0x1b0] sm:$0xff]  ;;  %v396_v34 = vld [vmem:[%s8996_s1 + $0x60] sm:$0xff]  ;;  %v3895_v37 = vld [vmem:[%s3783_s20 + $0x28] sm:$0xff] }
  0x24   : > { %542 = vmatpush.msra.mxu1 %v440_v20  ;;  %503 = vmatpush.msra.mxu0 %v404_v21  ;;  %v398_v31 = vld [vmem:[%s8996_s1 + $0x70] sm:$0xff]  ;;  %v432_v35 = vld [vmem:[%s8996_s1 + $0x180] sm:$0xff]  ;;  %v395_v40 = vld [vmem:[%s8996_s1 + $0x58] sm:$0xff] }
  0x25   : > { %595 = vmatpush.msra.mxu2 %v448_v22  ;;  %626 = vmatpush.msra.mxu3 %v405_v23  ;;  %v434_v32 = vld [vmem:[%s8996_s1 + $0x190] sm:$0xff]  ;;  %v392_v41 = vld [vmem:[%s8996_s1 + $0x40] sm:$0xff]  ;;  %v447_v43 = vld [vmem:[%s8996_s1 + $0x1f8] sm:$0xff] }
  0x26   : > { %3191 = vmatmul.msk.f32.vlgmr.msra.gmra.mxu2 %vm466_vm1, %v3854_v24  ;;  %504 = vmatpush.msra.mxu0 %v402_v25  ;;  %v394_v38 = vld [vmem:[%s8996_s1 + $0x50] sm:$0xff]  ;;  %v428_v42 = vld [vmem:[%s8996_s1 + $0x160] sm:$0xff]  ;;  %v393_v44 = vld [vmem:[%s8996_s1 + $0x48] sm:$0xff] }
  0x27   : > { %543 = vmatpush.msra.mxu1 %v438_v26  ;;  %627 = vmatpush.msra.mxu3 %v403_v27  ;;  %v430_v39 = vld [vmem:[%s8996_s1 + $0x170] sm:$0xff]  ;;  %v445_v47 = vld [vmem:[%s8996_s1 + $0x1e8] sm:$0xff]  ;;  %v391_v48 = vld [vmem:[%s8996_s1 + $0x38] sm:$0xff] }
  0x28   : > { %505 = vmatpush.msra.mxu0 %v400_v28  ;;  %v390_v45 = vld [vmem:[%s8996_s1 + $0x30] sm:$0xff]  ;;  %662 = vmatpush.msrb.mxu2 %v447_v43  ;;  %v443_v49 = vld [vmem:[%s8996_s1 + $0x1d8] sm:$0xff]  ;;  %v388_v50 = vld [vmem:[%s8996_s1 + $0x20] sm:$0xff] }
  0x29   : > { %544 = vmatpush.msra.mxu1 %v436_v29  ;;  %628 = vmatpush.msra.mxu3 %v401_v30  ;;  %v426_v46 = vld [vmem:[%s8996_s1 + $0x150] sm:$0xff]  ;;  %v424_v51 = vld [vmem:[%s8996_s1 + $0x140] sm:$0xff]  ;;  %v389_v52 = vld [vmem:[%s8996_s1 + $0x28] sm:$0xff] }
  0x2a   : > { %506 = vmatpush.msra.mxu0 %v398_v31  ;;  %663 = vmatpush.msrb.mxu2 %v445_v47  ;;  %v3945_v53 = vld [vmem:[%s3783_s20 + $0x40] sm:$0xff]  ;;  %v386_v54 = vld [vmem:[%s8996_s1 + $0x10] sm:$0xff]  ;;  %v387_v56 = vld [vmem:[%s8996_s1 + $0x18] sm:$0xff] }
  0x2b   : > { %545 = vmatpush.msra.mxu1 %v434_v32  ;;  %629 = vmatpush.msra.mxu3 %v399_v33  ;;  %v422_v55 = vld [vmem:[%s8996_s1 + $0x130] sm:$0xff]  ;;  %v441_v57 = vld [vmem:[%s8996_s1 + $0x1c8] sm:$0xff]  ;;  %v384_v58 = vld [vmem:[%s8996_s1] sm:$0xff] }
  0x2c   : > { %507 = vmatpush.msra.mxu0 %v396_v34  ;;  %664 = vmatpush.msrb.mxu2 %v443_v49  ;;  %v420_v59 = vld [vmem:[%s8996_s1 + $0x120] sm:$0xff]  ;;  %v385_v60 = vld [vmem:[%s8996_s1 + $0x8] sm:$0xff]  ;;  %v418_v62 = vld [vmem:[%s8996_s1 + $0x110] sm:$0xff] }
  0x2d   : > { %546 = vmatpush.msra.mxu1 %v432_v35  ;;  %630 = vmatpush.msra.mxu3 %v397_v36  ;;  %v360_v61 = vld [vmem:[%s3783_s20] sm:$0xff]  ;;  %v822_v63 = vld [vmem:[%s8998_s3 + $0x1f0] sm:$0xff]  ;;  %v459_v0 = vld [vmem:[%s8996_s1 + $0x258] sm:$0xf] }
  0x2e   : > { %3192 = vmatmul.msk.f32.gmra.mxu2 %vm466_vm1, %v3895_v37  ;;  %508 = vmatpush.msra.mxu0 %v394_v38  ;;  %v416_v1 = vld [vmem:[%s8996_s1 + $0x100] sm:$0xff]  ;;  %v439_v2 = vld [vmem:[%s8996_s1 + $0x1b8] sm:$0xff]  ;;  %v3993_v5 = vld [vmem:[%s3783_s20 + $0x8] sm:$0xff] }
  0x2f   : > { %547 = vmatpush.msra.mxu1 %v430_v39  ;;  %631 = vmatpush.msra.mxu3 %v395_v40  ;;  %v3987_v3 = vld [vmem:[%s3783_s20 + $0x58] sm:$0xff]  ;;  %v820_v4 = vld [vmem:[%s8998_s3 + $0x1e0] sm:$0xff]  ;;  %v437_v6 = vld [vmem:[%s8996_s1 + $0x1a8] sm:$0xff] }
  0x30   : > { %509 = vmatpush.msra.mxu0 %v392_v41  ;;  %665 = vmatpush.msrb.mxu2 %v441_v57  ;;  %v790_v7 = vld [vmem:[%s8998_s3 + $0xf0] sm:$0xff]  ;;  %v435_v9 = vld [vmem:[%s8996_s1 + $0x198] sm:$0xff]  ;;  %v457_v10 = vld [vmem:[%s8996_s1 + $0x248] sm:$0xff] }
  0x31   : > { %548 = vmatpush.msra.mxu1 %v428_v42  ;;  %632 = vmatpush.msra.mxu3 %v393_v44  ;;  %v818_v8 = vld [vmem:[%s8998_s3 + $0x1d0] sm:$0xff]  ;;  %v363_v11 = vld [vmem:[%s3783_s20 + $0x18] sm:$0xff]  ;;  %v788_v12 = vld [vmem:[%s8998_s3 + $0xe0] sm:$0xff] }
  0x32   : > { %510 = vmatpush.msra.mxu0 %v390_v45  ;;  %666 = vmatpush.msrb.mxu2 %v439_v2  ;;  %v433_v13 = vld [vmem:[%s8996_s1 + $0x188] sm:$0xff]  ;;  %v816_v14 = vld [vmem:[%s8998_s3 + $0x1c0] sm:$0xff]  ;;  %v786_v15 = vld [vmem:[%s8998_s3 + $0xd0] sm:$0xff] }
  0x33   : > { %549 = vmatpush.msra.mxu1 %v426_v46  ;;  %633 = vmatpush.msra.mxu3 %v391_v48  ;;  %v431_v16 = vld [vmem:[%s8996_s1 + $0x178] sm:$0xff]  ;;  %v4034_v18 = vld [vmem:[%s3783_s20 + $0x70] sm:$0xff]  ;;  %v4040_v20 = vld [vmem:[%s3783_s20 + $0x20] sm:$0xff] }
  0x34   : > { %511 = vmatpush.msra.mxu0 %v388_v50  ;;  %667 = vmatpush.msrb.mxu2 %v437_v6  ;;  %v455_v17 = vld [vmem:[%s8996_s1 + $0x238] sm:$0xff]  ;;  %v814_v19 = vld [vmem:[%s8998_s3 + $0x1b0] sm:$0xff]  ;;  %v429_v21 = vld [vmem:[%s8996_s1 + $0x168] sm:$0xff] }
  0x35   : > { %550 = vmatpush.msra.mxu1 %v424_v51  ;;  %634 = vmatpush.msra.mxu3 %v389_v52  ;;  %v784_v22 = vld [vmem:[%s8998_s3 + $0xc0] sm:$0xff]  ;;  %v427_v25 = vld [vmem:[%s8996_s1 + $0x158] sm:$0xff]  ;;  %v366_v26 = vld [vmem:[%s3783_s20 + $0x30] sm:$0xff] }
  0x36   : > { %3193 = vmatmul.msk.f32.gmra.mxu2 %vm466_vm1, %v3945_v53  ;;  %512 = vmatpush.msra.mxu0 %v386_v54  ;;  %v812_v23 = vld [vmem:[%s8998_s3 + $0x1a0] sm:$0xff]  ;;  %v782_v27 = vld [vmem:[%s8998_s3 + $0xb0] sm:$0xff]  ;;  %v453_v28 = vld [vmem:[%s8996_s1 + $0x228] sm:$0xff] }
  0x37   : > { %551 = vmatpush.msra.mxu1 %v422_v55  ;;  %635 = vmatpush.msra.mxu3 %v387_v56  ;;  %v425_v29 = vld [vmem:[%s8996_s1 + $0x148] sm:$0xff]  ;;  %v810_v30 = vld [vmem:[%s8998_s3 + $0x190] sm:$0xff]  ;;  %v780_v31 = vld [vmem:[%s8998_s3 + $0xa0] sm:$0xff] }
  0x38   : > { %513 = vmatpush.msra.mxu0 %v384_v58  ;;  %668 = vmatpush.msrb.mxu2 %v435_v9  ;;  %v423_v32 = vld [vmem:[%s8996_s1 + $0x138] sm:$0xff]  ;;  %v4077_v33 = vld [vmem:[%s3783_s20 + $0x88] sm:$0xff]  ;;  %v808_v34 = vld [vmem:[%s8998_s3 + $0x180] sm:$0xff] }
  0x39   : > { %552 = vmatpush.msra.mxu1 %v420_v59  ;;  %636 = vmatpush.msra.mxu3 %v385_v60  ;;  %v4083_v35 = vld [vmem:[%s3783_s20 + $0x38] sm:$0xff]  ;;  %v421_v36 = vld [vmem:[%s8996_s1 + $0x128] sm:$0xff]  ;;  %v806_v38 = vld [vmem:[%s8998_s3 + $0x170] sm:$0xff] }
  0x3a   : > { %514 = vmatmul.f32.vlgmr.msra.gmra.mxu0 %v360_v61  ;;  %637 = vmatmul.f32.vlgmr.msra.gmra.mxu3 %v360_v61  ;;  %v778_v39 = vld [vmem:[%s8998_s3 + $0x90] sm:$0xff]  ;;  %v419_v40 = vld [vmem:[%s8996_s1 + $0x118] sm:$0xff]  ;;  %v369_v41 = vld [vmem:[%s3783_s20 + $0x48] sm:$0xff] }
  0x3b   : > { %553 = vmatpush.msra.mxu1 %v418_v62  ;;  %987 = vmatpush.msrb.mxu3 %v822_v63  ;;  %v804_v42 = vld [vmem:[%s8998_s3 + $0x160] sm:$0xff]  ;;  %v802_v44 = vld [vmem:[%s8998_s3 + $0x150] sm:$0xff]  ;;  %v417_v45 = vld [vmem:[%s8996_s1 + $0x108] sm:$0xff] }
  0x3c   : > { %3199 = vmatpush.msk.msrb.mxu0 %vm491_vm0, %v459_v0  ;;  %669 = vmatpush.msrb.mxu2 %v433_v13  ;;  %v776_v43 = vld [vmem:[%s8998_s3 + $0x80] sm:$0xff]  ;;  %v774_v46 = vld [vmem:[%s8998_s3 + $0x70] sm:$0xff]  ;;  %v451_v49 = vld [vmem:[%s8996_s1 + $0x218] sm:$0xff] }
  0x3d   : > { %554 = vmatpush.msra.mxu1 %v416_v1  ;;  %988 = vmatpush.msrb.mxu3 %v820_v4  ;;  %v4117_v47 = vld [vmem:[%s3783_s20 + $0xa0] sm:$0xff]  ;;  %v4126_v50 = vld [vmem:[%s3783_s20 + $0x50] sm:$0xff]  ;;  %v449_v56 = vld [vmem:[%s8996_s1 + $0x208] sm:$0xff] }
  0x3e   : > { %3194 = vmatmul.msk.f32.gmra.mxu2 %vm466_vm1, %v3987_v3  ;;  %555 = vmatmul.f32.vlgmr.msra.gmra.mxu1 %v3993_v5  ;;  %v800_v48 = vld [vmem:[%s8998_s3 + $0x140] sm:$0xff]  ;;  %v798_v52 = vld [vmem:[%s8998_s3 + $0x130] sm:$0xff]  ;;  %v4151_v59 = vld [vmem:[%s3783_s20 + $0xb8] sm:$0xff] }
  0x3f   : > { %967 = vmatpush.msrb.mxu1 %v790_v7  ;;  %989 = vmatpush.msrb.mxu3 %v818_v8  ;;  %v772_v51 = vld [vmem:[%s8998_s3 + $0x60] sm:$0xff]  ;;  %v770_v55 = vld [vmem:[%s8998_s3 + $0x50] sm:$0xff]  ;;  %v4157_v61 = vld [vmem:[%s3783_s20 + $0x68] sm:$0xff] }
  0x40   : > { %714 = vmatpush.msrb.mxu0 %v457_v10  ;;  %670 = vmatpush.msrb.mxu2 %v431_v16  ;;  %v372_v54 = vld [vmem:[%s3783_s20 + $0x60] sm:$0xff]  ;;  %v794_v60 = vld [vmem:[%s8998_s3 + $0x110] sm:$0xff]  ;;  %v4170_v0 = vld [vmem:[%s8998_s3 + $0x1f8] sm:$0xff] }
  0x41   : > { %968 = vmatpush.msrb.mxu1 %v788_v12  ;;  %990 = vmatpush.msrb.mxu3 %v816_v14  ;;  %v796_v57 = vld [vmem:[%s8998_s3 + $0x120] sm:$0xff]  ;;  %v766_v62 = vld [vmem:[%s8998_s3 + $0x30] sm:$0xff]  ;;  %v375_v1 = vld [vmem:[%s3783_s20 + $0x78] sm:$0xff] }
  0x42   : > { %517 = vmatmul.f32.gmra.mxu0 %v363_v11  ;;  %640 = vmatmul.f32.gmra.mxu3 %v363_v11  ;;  %v768_v58 = vld [vmem:[%s8998_s3 + $0x40] sm:$0xff]  ;;  %v4181_v4 = vld [vmem:[%s8998_s3 + $0x1e8] sm:$0xff]  ;;  %v762_v6 = vld [vmem:[%s8998_s3 + $0x10] sm:$0xff] }
  0x43   : > { %969 = vmatpush.msrb.mxu1 %v786_v15  ;;  %715 = vmatpush.msrb.mxu0 %v455_v17  ;;  %v792_v63 = vld [vmem:[%s8998_s3 + $0x100] sm:$0xff]  ;;  %v4189_v7 = vld [vmem:[%s8998_s3 + $0x1d8] sm:$0xff]  ;;  %v4201_v10 = vld [vmem:[%s8998_s3 + $0x1c8] sm:$0xff] }
  0x44   : > { %991 = vmatpush.msrb.mxu3 %v814_v19  ;;  %671 = vmatpush.msrb.mxu2 %v429_v21  ;;  %v764_v2 = vld [vmem:[%s8998_s3 + $0x20] sm:$0xff]  ;;  %v4208_v11 = vld [vmem:[%s8998_s3 + $0xf8] sm:$0xff]  ;;  %v378_v12 = vld [vmem:[%s3783_s20 + $0x90] sm:$0xff] }
  0x45   : > { %970 = vmatpush.msrb.mxu1 %v784_v22  ;;  %716 = vmatpush.msrb.mxu0 %v453_v28  ;;  %v4193_v8 = vld [vmem:[%s3783_s20 + $0x80] sm:$0xff]  ;;  %v4215_v13 = vld [vmem:[%s8998_s3 + $0x1b8] sm:$0xff]  ;;  %v4227_v14 = vld [vmem:[%s8998_s3 + $0x1a8] sm:$0xff] }
  0x46   : > { %3195 = vmatmul.msk.f32.gmra.mxu2 %vm466_vm1, %v4034_v18  ;;  %558 = vmatmul.f32.gmra.mxu1 %v4040_v20  ;;  %v760_v9 = vld [vmem:[%s8998_s3] sm:$0xff]  ;;  %v4233_v15 = vld [vmem:[%s8998_s3 + $0xd8] sm:$0xff]  ;;  %v4245_v17 = vld [vmem:[%s8998_s3 + $0xc8] sm:$0xff] }
  0x47   : > { %992 = vmatpush.msrb.mxu3 %v812_v23  ;;  %672 = vmatpush.msrb.mxu2 %v427_v25  ;;  %v4239_v16 = vld [vmem:[%s8998_s3 + $0x198] sm:$0xff]  ;;  %v4254_v21 = vld [vmem:[%s8998_s3 + $0x188] sm:$0xff] }
  0x48   : > { %971 = vmatpush.msrb.mxu1 %v782_v27  ;;  %717 = vmatpush.msrb.mxu0 %v451_v49  ;;  %v4249_v19 = vld [vmem:[%s3783_s20 + $0x98] sm:$0xff]  ;;  %v381_v23 = vld [vmem:[%s3783_s20 + $0xa8] sm:$0xff]  ;;  %v4409_v49 = vld [vmem:[%s8999_s4 + $0x2d0] sm:$0xff] }
  0x49   : > { %673 = vmatpush.msrb.mxu2 %v425_v29  ;;  %993 = vmatpush.msrb.mxu3 %v810_v30  ;;  %v4261_v22 = vld [vmem:[%s8998_s3 + $0xb8] sm:$0xff]  ;;  %v4299_v29 = vld [vmem:[%s8998_s3 + $0x88] sm:$0xff]  ;;  %v4303_v30 = vld [vmem:[%s3783_s20 + $0xb0] sm:$0xff] }
  0x4a   : > { %520 = vmatmul.f32.gmra.mxu0 %v366_v26  ;;  %643 = vmatmul.f32.gmra.mxu3 %v366_v26  ;;  %v4268_v25 = vld [vmem:[%s8998_s3 + $0x178] sm:$0xff]  ;;  %v4281_v26 = vld [vmem:[%s8998_s3 + $0x168] sm:$0xff] }
  0x4b   : > { %972 = vmatpush.msrb.mxu1 %v780_v31  ;;  %674 = vmatpush.msrb.mxu2 %v423_v32  ;;  %v4287_v27 = vld [vmem:[%s8998_s3 + $0x98] sm:$0xff]  ;;  %v4308_v31 = vld [vmem:[%s8998_s3 + $0x148] sm:$0xff] }
  0x4c   : > { %994 = vmatpush.msrb.mxu3 %v808_v34  ;;  %718 = vmatpush.msrb.mxu0 %v449_v56  ;;  %v4293_v28 = vld [vmem:[%s8998_s3 + $0x158] sm:$0xff]  ;;  %v4462_v56 = vld [vmem:[%s8999_s4 + $0x280] sm:$0xff] }
  0x4d   : > { %675 = vmatpush.msrb.mxu2 %v421_v36  ;;  %973 = vmatpush.msrb.mxu1 %v778_v39  ;;  %v4315_v32 = vld [vmem:[%s8998_s3 + $0x78] sm:$0xff]  ;;  %v959_v36 = vld [vmem:[#allocation3 + $0x8] sm:$0xff] }
  0x4e   : > { %3196 = vmatmul.msk.f32.gmra.mxu2 %vm466_vm1, %v4077_v33  ;;  %561 = vmatmul.f32.gmra.mxu1 %v4083_v35  ;;  %v4321_v34 = vld [vmem:[%s8998_s3 + $0x138] sm:$0xff] }
  0x4f   : > { %995 = vmatpush.msrb.mxu3 %v806_v38  ;;  %676 = vmatpush.msrb.mxu2 %v419_v40  ;;  %v4334_v38 = vld [vmem:[%s8998_s3 + $0x128] sm:$0xff]  ;;  %v4342_v39 = vld [vmem:[%s8998_s3 + $0x58] sm:$0xff] }
  0x50   : > { %974 = vmatpush.msrb.mxu1 %v776_v43  ;;  %v4348_v40 = vld [vmem:[%s8998_s3 + $0x118] sm:$0xff] }
  0x51   : > { %996 = vmatpush.msrb.mxu3 %v804_v42  ;;  %677 = vmatpush.msrb.mxu2 %v417_v45  ;;  %v4360_v42 = vld [vmem:[%s8998_s3 + $0x108] sm:$0xff]  ;;  %v4367_v43 = vld [vmem:[%s8998_s3 + $0x38] sm:$0xff] }
  0x52   : > { %523 = vmatmul.f32.gmra.mxu0 %v369_v41  ;;  %646 = vmatmul.f32.gmra.mxu3 %v369_v41  ;;  %v958_v41 = vld [vmem:[#allocation3] sm:$0xff]  ;;  %v4382_v45 = vld [vmem:[%s8998_s3 + $0x18] sm:$0xff] }
  0x53   : > { %997 = vmatpush.msrb.mxu3 %v802_v44  ;;  %975 = vmatpush.msrb.mxu1 %v774_v46  ;;  %v4374_v44 = vld [vmem:[%s8998_s3 + $0x28] sm:$0xff] }
  0x54   : > { %v4388_v46 = vld [vmem:[%s8998_s3 + $0x8] sm:$0xff] }
  0x55   : > { %998 = vmatpush.msrb.mxu3 %v800_v48  ;;  %976 = vmatpush.msrb.mxu1 %v772_v51  ;;  %v4403_v48 = vld [vmem:[%s8999_s4 + $0x2e0] sm:$0xff]  ;;  %v4429_v51 = vld [vmem:[%s8999_s4 + $0x3f0] sm:$0xff] }
  0x56   : > { %3197 = vmatmul.msk.f32.gmra.mxu2 %vm466_vm1, %v4117_v47  ;;  %564 = vmatmul.f32.gmra.mxu1 %v4126_v50 }
  0x57   : > { %999 = vmatpush.msrb.mxu3 %v798_v52  ;;  %977 = vmatpush.msrb.mxu1 %v770_v55  ;;  %v4441_v52 = vld [vmem:[%s8999_s4 + $0x2a0] sm:$0xff]  ;;  %v4455_v55 = vld [vmem:[%s8999_s4 + $0x3d0] sm:$0xff] }
  0x59   : > { %1000 = vmatpush.msrb.mxu3 %v796_v57  ;;  %978 = vmatpush.msrb.mxu1 %v768_v58  ;;  %v4467_v57 = vld [vmem:[%s8999_s4 + $0x3c0] sm:$0xff]  ;;  %v4474_v58 = vld [vmem:[%s8999_s4 + $0x270] sm:$0xff] }
  0x5a   : > { %526 = vmatmul.f32.gmra.mxu0 %v372_v54  ;;  %649 = vmatmul.f32.gmra.mxu3 %v372_v54  ;;  %v4450_v54 = vld [vmem:[%s8999_s4 + $0x290] sm:$0xff] }
  0x5b   : > { %1001 = vmatpush.msrb.mxu3 %v794_v60  ;;  %979 = vmatpush.msrb.mxu1 %v766_v62  ;;  %v4479_v60 = vld [vmem:[%s8999_s4 + $0x3b0] sm:$0xff] }
  0x5c   : > { %v4501_v62 = vld [vmem:[%s8999_s4 + $0x250] sm:$0xff] }
  0x5d   : > { %1002 = vmatpush.msrb.mxu3 %v792_v63  ;;  %980 = vmatpush.msrb.mxu1 %v764_v2  ;;  %v4506_v63 = vld [vmem:[%s8999_s4 + $0x390] sm:$0xff]  ;;  %v4518_v2 = vld [vmem:[%s8999_s4 + $0x380] sm:$0xff] }
  0x5e   : > { %3198 = vmatmul.msk.f32.gmra.mxu2 %vm466_vm1, %v4151_v59  ;;  %567 = vmatmul.f32.gmra.mxu1 %v4157_v61  ;;  %9660 = vst [vmem:[#allocation6_spill] sm:$0xff] %v4518_v2 }
  0x5f   : > { %1027 = vmatpush.msra.mxu3 %v4170_v0  ;;  %981 = vmatpush.msrb.mxu1 %v762_v6  ;;  %v4525_v6 = vld [vmem:[%s8999_s4 + $0x230] sm:$0xff] }
  0x60   : > { %9661 = vst [vmem:[#allocation7_spill] sm:$0xff] %v4525_v6 }
  0x61   : > { %1028 = vmatpush.msra.mxu3 %v4181_v4  ;;  %982 = vmatpush.msrb.mxu1 %v760_v9  ;;  %v4544_v9 = vld [vmem:[%s8999_s4 + $0x360] sm:$0xff] }
  0x62   : > { %529 = vmatmul.f32.gmra.mxu0 %v375_v1  ;;  %652 = vmatmul.f32.gmra.mxu3 %v375_v1  ;;  %v4513_v1 = vld [vmem:[%s8999_s4 + $0x240] sm:$0xff]  ;;  %9664 = vst [vmem:[#allocation10_spill] sm:$0xff] %v4544_v9 }
  0x63   : > { %1029 = vmatpush.msra.mxu3 %v4189_v7  ;;  %1007 = vmatpush.msra.mxu1 %v4208_v11 }
  0x65   : > { %1030 = vmatpush.msra.mxu3 %v4201_v10 }
  0x66   : > { %678 = vmatmul.f32.vlgmr.msrb.gmra.mxu2 %v3993_v5  ;;  %570 = vmatmul.f32.gmra.mxu1 %v4193_v8  ;;  %v4221_v5 = vld [vmem:[%s8998_s3 + $0xe8] sm:$0xff] }
  0x67   : > { %1031 = vmatpush.msra.mxu3 %v4215_v13  ;;  %1008 = vmatpush.msra.mxu1 %v4221_v5 }
  0x69   : > { %1032 = vmatpush.msra.mxu3 %v4227_v14  ;;  %1009 = vmatpush.msra.mxu1 %v4233_v15 }
  0x6a   : > { %532 = vmatmul.f32.gmra.mxu0 %v378_v12  ;;  %655 = vmatmul.f32.gmra.mxu3 %v378_v12  ;;  %v4551_v12 = vld [vmem:[%s8999_s4 + $0x210] sm:$0xff] }
  0x6b   : > { %1033 = vmatpush.msra.mxu3 %v4239_v16  ;;  %1010 = vmatpush.msra.mxu1 %v4245_v17  ;;  %9665 = vst [vmem:[#allocation11_spill] sm:$0xff] %v4551_v12 }
  0x6d   : > { %1034 = vmatpush.msra.mxu3 %v4254_v21  ;;  %1011 = vmatpush.msra.mxu1 %v4261_v22 }
  0x6e   : > { %681 = vmatmul.f32.gmra.mxu2 %v4040_v20  ;;  %573 = vmatmul.f32.gmra.mxu1 %v4249_v19  ;;  %v4275_v20 = vld [vmem:[%s8998_s3 + $0xa8] sm:$0xff] }
  0x6f   : > { %1035 = vmatpush.msra.mxu3 %v4268_v25  ;;  %1012 = vmatpush.msra.mxu1 %v4275_v20 }
  0x71   : > { %1036 = vmatpush.msra.mxu3 %v4281_v26  ;;  %1013 = vmatpush.msra.mxu1 %v4287_v27 }
  0x72   : > { %535 = vmatmul.f32.gmra.mxu0 %v381_v23  ;;  %658 = vmatmul.f32.gmra.mxu3 %v381_v23  ;;  %v4563_v23 = vld [vmem:[%s8999_s4 + $0x200] sm:$0xff] }
  0x73   : > { %1037 = vmatpush.msra.mxu3 %v4293_v28  ;;  %1014 = vmatpush.msra.mxu1 %v4299_v29  ;;  %9667 = vst [vmem:[#allocation13_spill] sm:$0xff] %v4563_v23 }
  0x75   : > { %1038 = vmatpush.msra.mxu3 %v4308_v31  ;;  %1015 = vmatpush.msra.mxu1 %v4315_v32 }
  0x76   : > { %684 = vmatmul.f32.gmra.mxu2 %v4083_v35  ;;  %576 = vmatmul.f32.gmra.mxu1 %v4303_v30  ;;  %v4328_v35 = vld [vmem:[%s8998_s3 + $0x68] sm:$0xff] }
  0x77   : > { %1039 = vmatpush.msra.mxu3 %v4321_v34  ;;  %1016 = vmatpush.msra.mxu1 %v4328_v35 }
  0x79   : > { %1040 = vmatpush.msra.mxu3 %v4334_v38  ;;  %1017 = vmatpush.msra.mxu1 %v4342_v39 }
  0x7a   : > { %3200 = vmatmul.msk.f32.vlgmr.msrb.gmra.mxu0 %vm466_vm1, %v3854_v24  ;;  %1003 = vmatmul.f32.vlgmr.msrb.gmra.mxu3 %v959_v36  ;;  %v4354_v24 = vld [vmem:[%s8998_s3 + $0x48] sm:$0xff] }
  0x7b   : > { %1041 = vmatpush.msra.mxu3 %v4348_v40  ;;  %1018 = vmatpush.msra.mxu1 %v4354_v24 }
  0x7d   : > { %1042 = vmatpush.msra.mxu3 %v4360_v42  ;;  %1019 = vmatpush.msra.mxu1 %v4367_v43 }
  0x7e   : > { %687 = vmatmul.f32.gmra.mxu2 %v4126_v50  ;;  %983 = vmatmul.f32.vlgmr.msrb.gmra.mxu1 %v958_v41  ;;  %v4424_v50 = vld [vmem:[%s8999_s4 + $0x2b0] sm:$0xff] }
  0x7f   : > { %1020 = vmatpush.msra.mxu1 %v4374_v44  ;;  %1111 = vmatpush.msrb.mxu3 %v4429_v51 }
  0x81   : > { %1021 = vmatpush.msra.mxu1 %v4382_v45 }
  0x82   : > { %3201 = vmatmul.msk.f32.gmra.mxu0 %vm466_vm1, %v3895_v37  ;;  %1043 = vmatmul.f32.vlgmr.msra.gmra.mxu3 %v959_v36  ;;  %v4398_v37 = vld [vmem:[%s8999_s4 + $0x2f0] sm:$0xff] }
  0x83   : > { %1022 = vmatpush.msra.mxu1 %v4388_v46  ;;  %v4573_v36 = vld [vmem:[%s8999_s4 + $0xf0] sm:$0xff] }
  0x84   : > { %9669 = vst [vmem:[#allocation15_spill] sm:$0xff] %v4573_v36  ;;  %1051 = vmatpush.msra.mxu2 %v4573_v36  ;;  %v4600_v36 = vld [vmem:[%s8999_s4 + $0x2e8] sm:$0xff] }
  0x85   : > { %1091 = vmatpush.msrb.mxu1 %v4398_v37  ;;  %9673 = vst [vmem:[#allocation19_spill] sm:$0xff] %v4600_v36 }
  0x86   : > { %690 = vmatmul.f32.gmra.mxu2 %v4157_v61  ;;  %1023 = vmatmul.f32.vlgmr.msra.gmra.mxu1 %v958_v41  ;;  %v4494_v61 = vld [vmem:[%s8999_s4 + $0x3a0] sm:$0xff]  ;;  %v4581_v41 = vld [vmem:[%s8999_s4 + $0x2f8] sm:$0xff] }
  0x87   : > { %1092 = vmatpush.msrb.mxu1 %v4403_v48  ;;  %9670 = vst [vmem:[#allocation16_spill] sm:$0xff] %v4581_v41 }
  0x89   : > { %1093 = vmatpush.msrb.mxu1 %v4409_v49 }
  0x8a   : > { %3202 = vmatmul.msk.f32.gmra.mxu0 %vm466_vm1, %v3945_v53  ;;  %v4419_v53 = vld [vmem:[%s8999_s4 + $0x2c0] sm:$0xff] }
  0x8b   : > { %1094 = vmatpush.msrb.mxu1 %v4419_v53 }
  0x8d   : > { %1095 = vmatpush.msrb.mxu1 %v4424_v50 }
  0x8e   : > { %693 = vmatmul.f32.gmra.mxu2 %v4193_v8  ;;  %v4530_v8 = vld [vmem:[%s8999_s4 + $0x370] sm:$0xff] }
  0x8f   : > { %1096 = vmatpush.msrb.mxu1 %v4441_v52  ;;  %9662 = vst [vmem:[#allocation8_spill] sm:$0xff] %v4530_v8 }
  0x91   : > { %1097 = vmatpush.msrb.mxu1 %v4450_v54 }
  0x92   : > { %3203 = vmatmul.msk.f32.gmra.mxu0 %vm466_vm1, %v3987_v3  ;;  %v4436_v3 = vld [vmem:[%s8999_s4 + $0x3e0] sm:$0xff] }
  0x93   : > { %1112 = vmatpush.msrb.mxu3 %v4436_v3  ;;  %1098 = vmatpush.msrb.mxu1 %v4462_v56 }
  0x95   : > { %1113 = vmatpush.msrb.mxu3 %v4455_v55  ;;  %1099 = vmatpush.msrb.mxu1 %v4474_v58 }
  0x96   : > { %696 = vmatmul.f32.gmra.mxu2 %v4249_v19  ;;  %v4556_v19 = vld [vmem:[%s8999_s4 + $0x350] sm:$0xff] }
  0x97   : > { %1114 = vmatpush.msrb.mxu3 %v4467_v57  ;;  %9666 = vst [vmem:[#allocation12_spill] sm:$0xff] %v4556_v19 }
  0x99   : > { %1115 = vmatpush.msrb.mxu3 %v4479_v60 }
  0x9a   : > { %3204 = vmatmul.msk.f32.gmra.mxu0 %vm466_vm1, %v4034_v18  ;;  %v4489_v18 = vld [vmem:[%s8999_s4 + $0x260] sm:$0xff] }
  0x9b   : > { %1100 = vmatpush.msrb.mxu1 %v4489_v18  ;;  %1116 = vmatpush.msrb.mxu3 %v4494_v61 }
  0x9d   : > { %1101 = vmatpush.msrb.mxu1 %v4501_v62  ;;  %1117 = vmatpush.msrb.mxu3 %v4506_v63 }
  0x9e   : > { %699 = vmatmul.f32.gmra.mxu2 %v4303_v30  ;;  %v4568_v30 = vld [vmem:[%s8999_s4 + $0x340] sm:$0xff] }
  0x9f   : > { %1102 = vmatpush.msrb.mxu1 %v4513_v1  ;;  %1118 = vmatpush.msrb.mxu3 %v4518_v2  ;;  %9668 = vst [vmem:[#allocation14_spill] sm:$0xff] %v4568_v30 }
  0xa1   : > { %1103 = vmatpush.msrb.mxu1 %v4525_v6  ;;  %1119 = vmatpush.msrb.mxu3 %v4530_v8 }
  0xa2   : > { %3205 = vmatmul.msk.f32.gmra.mxu0 %vm466_vm1, %v4077_v33  ;;  %v4539_v33 = vld [vmem:[%s8999_s4 + $0x220] sm:$0xff] }
  0xa3   : > { %9663 = vst [vmem:[#allocation9_spill] sm:$0xff] %v4539_v33  ;;  %1104 = vmatpush.msrb.mxu1 %v4539_v33  ;;  %1120 = vmatpush.msrb.mxu3 %v4544_v9 }
  0xa5   : > { %1105 = vmatpush.msrb.mxu1 %v4551_v12  ;;  %1121 = vmatpush.msrb.mxu3 %v4556_v19  ;;  %v4586_v19 = vld [vmem:[%s8999_s4 + $0x330] sm:$0xff]  ;;  %v4661_v12 = vld [vmem:[%s8999_s4 + $0x2b8] sm:$0xff] }
  0xa6   : > { %9671 = vst [vmem:[#allocation17_spill] sm:$0xff] %v4586_v19 }
  0xa7   : > { %1106 = vmatpush.msrb.mxu1 %v4563_v23  ;;  %1122 = vmatpush.msrb.mxu3 %v4568_v30  ;;  %v4618_v30 = vld [vmem:[%s8999_s4 + $0x2d8] sm:$0xff]  ;;  %v4656_v23 = vld [vmem:[%s8999_s4 + $0xb0] sm:$0xff]  ;;  %9683 = vst [vmem:[#allocation29_spill] sm:$0xff] %v4661_v12 }
  0xa8   : > { %9676 = vst [vmem:[#allocation22_spill] sm:$0xff] %v4618_v30 }
  0xa9   : > { %1171 = vmatpush.msra.mxu1 %v4581_v41  ;;  %1123 = vmatpush.msrb.mxu3 %v4586_v19  ;;  %v4607_v41 = vld [vmem:[%s8999_s4 + $0x320] sm:$0xff]  ;;  %v4613_v19 = vld [vmem:[%s8999_s4 + $0xd0] sm:$0xff]  ;;  %9682 = vst [vmem:[#allocation28_spill] sm:$0xff] %v4656_v23 }
  0xaa   : > { %3206 = vmatmul.msk.f32.gmra.mxu0 %vm466_vm1, %v4117_v47  ;;  %v4595_v47 = vld [vmem:[%s8999_s4 + $0xe0] sm:$0xff]  ;;  %9674 = vst [vmem:[#allocation20_spill] sm:$0xff] %v4607_v41 }
  0xab   : > { %9672 = vst [vmem:[#allocation18_spill] sm:$0xff] %v4595_v47  ;;  %1052 = vmatpush.msra.mxu2 %v4595_v47  ;;  %1172 = vmatpush.msra.mxu1 %v4600_v36  ;;  %v4625_v47 = vld [vmem:[%s8999_s4 + $0x310] sm:$0xff] }
  0xac   : > { %1124 = vmatpush.msrb.mxu3 %v4607_v41  ;;  %9675 = vst [vmem:[#allocation21_spill] sm:$0xff] %v4613_v19  ;;  %v4631_v41 = vld [vmem:[%s8999_s4 + $0xc0] sm:$0xff]  ;;  %v4636_v36 = vld [vmem:[%s8999_s4 + $0x1f0] sm:$0xff] }
  0xad   : > { %1053 = vmatpush.msra.mxu2 %v4613_v19  ;;  %1173 = vmatpush.msra.mxu1 %v4618_v30  ;;  %9677 = vst [vmem:[#allocation23_spill] sm:$0xff] %v4625_v47  ;;  %v4641_v19 = vld [vmem:[%s8999_s4 + $0x2c8] sm:$0xff]  ;;  %v4643_v30 = vpop.f32.mrf.mxu2 }
  0xae   : > { %1125 = vmatpush.msrb.mxu3 %v4625_v47  ;;  %9678 = vst [vmem:[#allocation24_spill] sm:$0xff] %v4631_v41  ;;  %v4651_v47 = vld [vmem:[%s8999_s4 + $0x300] sm:$0xff]  ;;  %1071 = vmatpush.msra.mxu0 %v4636_v36 }
  0xaf   : > { %9679 = vst [vmem:[#allocation25_spill] sm:$0xff] %v4636_v36  ;;  %1054 = vmatpush.msra.mxu2 %v4631_v41  ;;  %1174 = vmatpush.msra.mxu1 %v4641_v19  ;;  %v4677_v41 = vld [vmem:[%s8999_s4 + $0xa0] sm:$0xff] }
  0xb0   : > { %9680 = vst [vmem:[#allocation26_spill] sm:$0xff] %v4641_v19  ;;  %1126 = vmatpush.msrb.mxu3 %v4651_v47  ;;  %v4682_v36 = vld [vmem:[%s8999_s4 + $0x1e0] sm:$0xff]  ;;  %v4754_v19 = vld [vmem:[%s8999_s4 + $0x1b0] sm:$0xff] }
  0xb1   : > { %9681 = vst [vmem:[#allocation27_spill] sm:$0xff] %v4651_v47  ;;  %1055 = vmatpush.msra.mxu2 %v4656_v23  ;;  %1175 = vmatpush.msra.mxu1 %v4661_v12  ;;  %v4687_v47 = vld [vmem:[%s8999_s4 + $0x2a8] sm:$0xff]  ;;  %v4703_v12 = vld [vmem:[%s8999_s4 + $0x90] sm:$0xff] }
  0xb2   : > { %3207 = vmatmul.msk.f32.gmra.mxu0 %vm466_vm1, %v4151_v59  ;;  %v4668_v59 = vld [vmem:[%s8999_s4 + $0x3f8] sm:$0xff]  ;;  %9685 = vst [vmem:[#allocation31_spill] sm:$0xff] %v4677_v41  ;;  %v4694_v23 = vld [vmem:[%s8999_s4 + $0x3e8] sm:$0xff] }
  0xb3   : > { %9684 = vst [vmem:[#allocation30_spill] sm:$0xff] %v4668_v59  ;;  %1191 = vmatpush.msra.mxu3 %v4668_v59  ;;  %1056 = vmatpush.msra.mxu2 %v4677_v41  ;;  %v4708_v41 = vld [vmem:[%s8999_s4 + $0x1d0] sm:$0xff] }
  0xb4   : > { %9686 = vst [vmem:[#allocation32_spill] sm:$0xff] %v4682_v36  ;;  %1072 = vmatpush.msra.mxu0 %v4682_v36  ;;  %1176 = vmatpush.msra.mxu1 %v4687_v47  ;;  %v4713_v36 = vld [vmem:[%s8999_s4 + $0x298] sm:$0xff] }
  0xb5   : > { %9687 = vst [vmem:[#allocation33_spill] sm:$0xff] %v4687_v47  ;;  %1192 = vmatpush.msra.mxu3 %v4694_v23  ;;  %1057 = vmatpush.msra.mxu2 %v4703_v12  ;;  %v4727_v47 = vld [vmem:[%s8999_s4 + $0x80] sm:$0xff]  ;;  %v4768_v9 = vpop.f32.mrf.mxu2 }
  0xb6   : > { %9688 = vst [vmem:[#allocation34_spill] sm:$0xff] %v4694_v23  ;;  %1073 = vmatpush.msra.mxu0 %v4708_v41  ;;  %v4720_v23 = vld [vmem:[%s8999_s4 + $0x3d8] sm:$0xff]  ;;  %1177 = vmatpush.msra.mxu1 %v4713_v36 }
  0xb7   : > { %v4696_v59 = vpop.f32.mrf.mxu0  ;;  %9689 = vst [vmem:[#allocation35_spill] sm:$0xff] %v4703_v12  ;;  %1193 = vmatpush.msra.mxu3 %v4720_v23  ;;  %v4732_v12 = vld [vmem:[%s8999_s4 + $0x1c0] sm:$0xff]  ;;  %1058 = vmatpush.msra.mxu2 %v4727_v47 }
  0xb8   : > { %9690 = vst [vmem:[#allocation36_spill] sm:$0xff] %v4708_v41  ;;  %v4737_v41 = vld [vmem:[%s8999_s4 + $0x288] sm:$0xff]  ;;  %1074 = vmatpush.msra.mxu0 %v4732_v12 }
  0xb9   : > { %9691 = vst [vmem:[#allocation37_spill] sm:$0xff] %v4713_v36  ;;  %v4749_v36 = vld [vmem:[%s8999_s4 + $0x70] sm:$0xff]  ;;  %1178 = vmatpush.msra.mxu1 %v4737_v41 }
  0xba   : > { %9692 = vst [vmem:[#allocation38_spill] sm:$0xff] %v4720_v23  ;;  %v4744_v23 = vld [vmem:[%s8999_s4 + $0x3c8] sm:$0xff]  ;;  %1059 = vmatpush.msra.mxu2 %v4749_v36  ;;  %1075 = vmatpush.msra.mxu0 %v4754_v19 }
  0xbb   : > { %9693 = vst [vmem:[#allocation39_spill] sm:$0xff] %v4727_v47  ;;  %1194 = vmatpush.msra.mxu3 %v4744_v23  ;;  %v4761_v47 = vld [vmem:[%s8999_s4 + $0x278] sm:$0xff]  ;;  %v4770_v33 = vpop.f32.mrf.mxu1 }
  0xbc   : > { %9694 = vst [vmem:[#allocation40_spill] sm:$0xff] %v4732_v12  ;;  %v4766_v12 = vld [vmem:[%s8999_s4 + $0x3b8] sm:$0xff]  ;;  %1179 = vmatpush.msra.mxu1 %v4761_v47 }
  0xbd   : > { %9695 = vst [vmem:[#allocation41_spill] sm:$0xff] %v4737_v41  ;;  %1195 = vmatpush.msra.mxu3 %v4766_v12  ;;  %v4784_v41 = vld [vmem:[%s8999_s4 + $0x1a0] sm:$0xff] }
  0xbe   : > { %9696 = vst [vmem:[#allocation42_spill] sm:$0xff] %v4744_v23  ;;  %v4779_v23 = vld [vmem:[%s8999_s4 + $0x60] sm:$0xff]  ;;  %1076 = vmatpush.msra.mxu0 %v4784_v41 }
  0xbf   : > { %9697 = vst [vmem:[#allocation43_spill] sm:$0xff] %v4749_v36  ;;  %v4791_v36 = vpop.f32.mrf.mxu3  ;;  %1060 = vmatpush.msra.mxu2 %v4779_v23 }
  0xc0   : > { %9698 = vst [vmem:[#allocation44_spill] sm:$0xff] %v4754_v19  ;;  %v4798_v19 = vld [vmem:[%s8999_s4 + $0x3a8] sm:$0xff] }
  0xc1   : > { %9699 = vst [vmem:[#allocation45_spill] sm:$0xff] %v4761_v47  ;;  %1196 = vmatpush.msra.mxu3 %v4798_v19  ;;  %v4807_v47 = vld [vmem:[%s8999_s4 + $0x50] sm:$0xff] }
  0xc2   : > { %9700 = vst [vmem:[#allocation46_spill] sm:$0xff] %v4766_v12  ;;  %v4800_v12 = vpop.f32.mrf.mxu0  ;;  %1061 = vmatpush.msra.mxu2 %v4807_v47 }
  0xc3   : > { %9701 = vst [vmem:[#allocation47_spill] sm:$0xff] %v4768_v9  ;;  %v4789_v9 = vld [vmem:[%s8999_s4 + $0x268] sm:$0xff]  ;;  %v4872_v8 = vpop.f32.mrf.mxu1 }
  0xc4   : > { %9702 = vst [vmem:[#allocation48_spill] sm:$0xff] %v4779_v23  ;;  %1180 = vmatpush.msra.mxu1 %v4789_v9  ;;  %v4812_v23 = vld [vmem:[%s8999_s4 + $0x190] sm:$0xff] }
  0xc5   : > { %9703 = vst [vmem:[#allocation49_spill] sm:$0xff] %v4784_v41  ;;  %v4817_v41 = vld [vmem:[%s8999_s4 + $0x258] sm:$0xff]  ;;  %1077 = vmatpush.msra.mxu0 %v4812_v23 }
  0xc6   : > { %9704 = vst [vmem:[#allocation50_spill] sm:$0xff] %v4789_v9  ;;  %1181 = vmatpush.msra.mxu1 %v4817_v41  ;;  %v4858_v9 = vld [vmem:[%s8999_s4 + $0x170] sm:$0xff] }
  0xc7   : > { %9705 = vst [vmem:[#allocation51_spill] sm:$0xff] %v4798_v19  ;;  %v4831_v19 = vld [vmem:[%s8999_s4 + $0x40] sm:$0xff] }
  0xc8   : > { %9706 = vst [vmem:[#allocation52_spill] sm:$0xff] %v4800_v12  ;;  %v4824_v12 = vld [vmem:[%s8999_s4 + $0x398] sm:$0xff]  ;;  %1062 = vmatpush.msra.mxu2 %v4831_v19 }
  0xc9   : > { %9707 = vst [vmem:[#allocation53_spill] sm:$0xff] %v4807_v47  ;;  %1197 = vmatpush.msra.mxu3 %v4824_v12  ;;  %v4836_v47 = vld [vmem:[%s8999_s4 + $0x180] sm:$0xff] }
  0xca   : > { %9708 = vst [vmem:[#allocation54_spill] sm:$0xff] %v4812_v23  ;;  %v4841_v23 = vld [vmem:[%s8999_s4 + $0x248] sm:$0xff]  ;;  %1078 = vmatpush.msra.mxu0 %v4836_v47 }
  0xcb   : > { %9709 = vst [vmem:[#allocation55_spill] sm:$0xff] %v4817_v41  ;;  %v4853_v41 = vld [vmem:[%s8999_s4 + $0x30] sm:$0xff]  ;;  %1182 = vmatpush.msra.mxu1 %v4841_v23  ;;  %v4978_v6 = vpop.f32.mrf.mxu1 }
  0xcc   : > { %9710 = vst [vmem:[#allocation56_spill] sm:$0xff] %v4824_v12  ;;  %v4848_v12 = vld [vmem:[%s8999_s4 + $0x388] sm:$0xff]  ;;  %1063 = vmatpush.msra.mxu2 %v4853_v41  ;;  %1079 = vmatpush.msra.mxu0 %v4858_v9 }
  0xcd   : > { %9711 = vst [vmem:[#allocation57_spill] sm:$0xff] %v4831_v19  ;;  %1198 = vmatpush.msra.mxu3 %v4848_v12  ;;  %v4865_v19 = vld [vmem:[%s8999_s4 + $0x238] sm:$0xff] }
  0xce   : > { %9712 = vst [vmem:[#allocation58_spill] sm:$0xff] %v4836_v47  ;;  %v4870_v47 = vld [vmem:[%s8999_s4 + $0x378] sm:$0xff]  ;;  %1183 = vmatpush.msra.mxu1 %v4865_v19 }
  0xcf   : > { %9713 = vst [vmem:[#allocation59_spill] sm:$0xff] %v4841_v23  ;;  %1199 = vmatpush.msra.mxu3 %v4870_v47  ;;  %v4886_v23 = vld [vmem:[%s8999_s4 + $0x160] sm:$0xff] }
  0xd0   : > { %9714 = vst [vmem:[#allocation60_spill] sm:$0xff] %v4848_v12  ;;  %v4881_v12 = vld [vmem:[%s8999_s4 + $0x20] sm:$0xff]  ;;  %1080 = vmatpush.msra.mxu0 %v4886_v23 }
  0xd1   : > { %9715 = vst [vmem:[#allocation61_spill] sm:$0xff] %v4853_v41  ;;  %v4893_v41 = vpop.f32.mrf.mxu2  ;;  %1064 = vmatpush.msra.mxu2 %v4881_v12 }
  0xd2   : > { %9716 = vst [vmem:[#allocation62_spill] sm:$0xff] %v4858_v9  ;;  %v4895_v9 = vpop.f32.mrf.mxu3 }
  0xd3   : > { %9717 = vst [vmem:[#allocation63_spill] sm:$0xff] %v4865_v19  ;;  %v4909_v19 = vld [vmem:[%s8999_s4 + $0x10] sm:$0xff] }
  0xd4   : > { %9718 = vst [vmem:[#allocation64_spill] sm:$0xff] %v4870_v47  ;;  %v4902_v47 = vld [vmem:[%s8999_s4 + $0x368] sm:$0xff]  ;;  %1065 = vmatpush.msra.mxu2 %v4909_v19 }
  0xd5   : > { %9719 = vst [vmem:[#allocation65_spill] sm:$0xff] %v4872_v8  ;;  %v4891_v8 = vld [vmem:[%s8999_s4 + $0x228] sm:$0xff]  ;;  %1200 = vmatpush.msra.mxu3 %v4902_v47 }
  0xd6   : > { %9720 = vst [vmem:[#allocation66_spill] sm:$0xff] %v4881_v12  ;;  %1184 = vmatpush.msra.mxu1 %v4891_v8  ;;  %v4921_v12 = vpop.f32.mrf.mxu0 }
  0xd7   : > { %9721 = vst [vmem:[#allocation67_spill] sm:$0xff] %v4886_v23  ;;  %v4928_v23 = vld [vmem:[%s8999_s4 + $0x358] sm:$0xff] }
  0xd8   : > { %9722 = vst [vmem:[#allocation68_spill] sm:$0xff] %v4891_v8  ;;  %1201 = vmatpush.msra.mxu3 %v4928_v23  ;;  %v4976_v8 = vld [vmem:[%s8999_s4 + $0xe8] sm:$0xff] }
  0xd9   : > { %9723 = vst [vmem:[#allocation69_spill] sm:$0xff] %v4893_v41  ;;  %v4914_v41 = vld [vmem:[%s8999_s4 + $0x150] sm:$0xff] }
  0xda   : > { %9724 = vst [vmem:[#allocation70_spill] sm:$0xff] %v4895_v9  ;;  %v4919_v9 = vld [vmem:[%s8999_s4 + $0x218] sm:$0xff]  ;;  %1081 = vmatpush.msra.mxu0 %v4914_v41  ;;  %v4994_v2 = vpop.f32.mrf.mxu3 }
  0xdb   : > { %9725 = vst [vmem:[#allocation71_spill] sm:$0xff] %v4902_v47  ;;  %1185 = vmatpush.msra.mxu1 %v4919_v9  ;;  %v4935_v47 = vld [vmem:[%s8999_s4] sm:$0xff] }
  0xdc   : > { %9726 = vst [vmem:[#allocation72_spill] sm:$0xff] %v4909_v19  ;;  %v4945_v19 = vld [vmem:[%s8999_s4 + $0x208] sm:$0xff]  ;;  %1066 = vmatpush.msra.mxu2 %v4935_v47 }
  0xdd   : > { %9727 = vst [vmem:[#allocation73_spill] sm:$0xff] %v4914_v41  ;;  %v4952_v41 = vld [vmem:[%s8999_s4 + $0x348] sm:$0xff]  ;;  %1186 = vmatpush.msra.mxu1 %v4945_v19 }
  0xde   : > { %9728 = vst [vmem:[#allocation74_spill] sm:$0xff] %v4919_v9  ;;  %v4959_v9 = vld [vmem:[%s8999_s4 + $0xf8] sm:$0xff]  ;;  %1202 = vmatpush.msra.mxu3 %v4952_v41 }
  0xdf   : > { %9729 = vst [vmem:[#allocation75_spill] sm:$0xff] %v4921_v12  ;;  %v4940_v12 = vld [vmem:[%s8999_s4 + $0x140] sm:$0xff]  ;;  %1131 = vmatpush.msrb.mxu2 %v4959_v9 }
  0xe0   : > { %9730 = vst [vmem:[#allocation76_spill] sm:$0xff] %v4928_v23  ;;  %1082 = vmatpush.msra.mxu0 %v4940_v12  ;;  %v4954_v23 = vld [vmem:[#allocation4 + $0x8] sm:$0xff] }
  0xe1   : > { %9731 = vst [vmem:[#allocation77_spill] sm:$0xff] %v4935_v47  ;;  %v4966_v47 = vld [vmem:[%s8999_s4 + $0x130] sm:$0xff]  ;;  %1107 = vmatmul.f32.vlgmr.msrb.gmra.mxu1 %v4954_v23  ;;  %1132 = vmatpush.msrb.mxu2 %v4976_v8 }
  0xe2   : > { %9732 = vst [vmem:[#allocation78_spill] sm:$0xff] %v4940_v12  ;;  %v4971_v12 = vld [vmem:[%s8999_s4 + $0x338] sm:$0xff]  ;;  %1258 = vmatpush.msrb.mxu1 %v4208_v11  ;;  %1083 = vmatpush.msra.mxu0 %v4966_v47 }
  0xe3   : > { %9733 = vst [vmem:[#allocation79_spill] sm:$0xff] %v4945_v19  ;;  %v4992_v19 = vld [vmem:[%s8999_s4 + $0x328] sm:$0xff]  ;;  %1203 = vmatpush.msra.mxu3 %v4971_v12  ;;  %v5001_v11 = vld [vmem:[%s8999_s4 + $0xd8] sm:$0xff] }
  0xe4   : > { %9734 = vst [vmem:[#allocation80_spill] sm:$0xff] %v4952_v41  ;;  %v4987_v41 = vld [vmem:[%s8999_s4 + $0x120] sm:$0xff]  ;;  %1259 = vmatpush.msrb.mxu1 %v4221_v5  ;;  %1133 = vmatpush.msrb.mxu2 %v5001_v11  ;;  %v5022_v5 = vld [vmem:[%s8999_s4 + $0xc8] sm:$0xff] }
  0xe5   : > { %9735 = vst [vmem:[#allocation81_spill] sm:$0xff] %v4959_v9  ;;  %1084 = vmatpush.msra.mxu0 %v4987_v41  ;;  %1204 = vmatpush.msra.mxu3 %v4992_v19  ;;  %v5066_v9 = vld [vmem:[%s8999_s4 + $0x1e8] sm:$0xff] }
  0xe6   : > { %9736 = vst [vmem:[#allocation82_spill] sm:$0xff] %v4966_v47  ;;  %1260 = vmatpush.msrb.mxu1 %v4233_v15  ;;  %1134 = vmatpush.msrb.mxu2 %v5022_v5  ;;  %v5040_v47 = vld [vmem:[#allocation4] sm:$0xff]  ;;  %v5045_v15 = vld [vmem:[%s8999_s4 + $0xb8] sm:$0xff] }
  0xe7   : > { %9737 = vst [vmem:[#allocation83_spill] sm:$0xff] %v4976_v8  ;;  %v5015_v8 = vpop.f32.mrf.mxu2  ;;  %1127 = vmatmul.f32.vlgmr.msrb.gmra.mxu3 %v5040_v47 }
  0xe8   : > { %9738 = vst [vmem:[#allocation84_spill] sm:$0xff] %v4978_v6  ;;  %v5008_v6 = vld [vmem:[%s8999_s4 + $0x110] sm:$0xff]  ;;  %1261 = vmatpush.msrb.mxu1 %v4245_v17  ;;  %1135 = vmatpush.msrb.mxu2 %v5045_v15  ;;  %v5070_v17 = vpop.f32.mrf.mxu3 }
  0xe9   : > { %9739 = vst [vmem:[#allocation85_spill] sm:$0xff] %v4987_v41  ;;  %1085 = vmatpush.msra.mxu0 %v5008_v6  ;;  %v5029_v41 = vld [vmem:[%s8999_s4 + $0x100] sm:$0xff]  ;;  %1187 = vmatmul.f32.vlgmr.msra.gmra.mxu1 %v4954_v23 }
  0xea   : > { %9740 = vst [vmem:[#allocation86_spill] sm:$0xff] %v4994_v2  ;;  %v5013_v2 = vld [vmem:[%s8999_s4 + $0x318] sm:$0xff]  ;;  %1262 = vmatpush.msrb.mxu1 %v4261_v22  ;;  %v5096_v22 = vld [vmem:[%s8999_s4 + $0x1c8] sm:$0xff] }
  0xeb   : > { %9741 = vst [vmem:[#allocation87_spill] sm:$0xff] %v5001_v11  ;;  %v5036_v11 = vpop.f32.mrf.mxu0  ;;  %1205 = vmatpush.msra.mxu3 %v5013_v2  ;;  %1086 = vmatpush.msra.mxu0 %v5029_v41 }
  0xec   : > { %9742 = vst [vmem:[#allocation88_spill] sm:$0xff] %v5008_v6  ;;  %v5050_v6 = vld [vmem:[%s8999_s4 + $0x1f8] sm:$0xff]  ;;  %1263 = vmatpush.msrb.mxu1 %v4275_v20 }
  0xed   : > { %9743 = vst [vmem:[#allocation89_spill] sm:$0xff] %v5015_v8  ;;  %v5034_v8 = vld [vmem:[%s8999_s4 + $0x308] sm:$0xff]  ;;  %1151 = vmatpush.msrb.mxu0 %v5050_v6  ;;  %v5112_v20 = vld [vmem:[%s8999_s4 + $0x1b8] sm:$0xff] }
  0xee   : > { %9744 = vst [vmem:[#allocation90_spill] sm:$0xff] %v5022_v5  ;;  %1206 = vmatpush.msra.mxu3 %v5034_v8  ;;  %v5061_v5 = vld [vmem:[%s8999_s4 + $0xa8] sm:$0xff]  ;;  %1264 = vmatpush.msrb.mxu1 %v4287_v27 }
  0xef   : > { %9745 = vst [vmem:[#allocation91_spill] sm:$0xff] %v5036_v11  ;;  %v5054_v11 = vpop.f32.mrf.mxu1  ;;  %1136 = vmatpush.msrb.mxu2 %v5061_v5  ;;  %1152 = vmatpush.msrb.mxu0 %v5066_v9  ;;  %v5130_v27 = vld [vmem:[%s8999_s4 + $0x1a8] sm:$0xff] }
  0xf0   : > { %9746 = vst [vmem:[#allocation92_spill] sm:$0xff] %v5045_v15  ;;  %1278 = vmatpush.msrb.mxu3 %v4170_v0  ;;  %v5082_v15 = vld [vmem:[%s8999_s4 + $0x1d8] sm:$0xff]  ;;  %v5091_v0 = vld [vmem:[%s8999_s4 + $0x88] sm:$0xff]  ;;  %1265 = vmatpush.msrb.mxu1 %v4299_v29 }
  0xf1   : > { %9747 = vst [vmem:[#allocation93_spill] sm:$0xff] %v5054_v11  ;;  %v5077_v11 = vld [vmem:[%s8999_s4 + $0x98] sm:$0xff]  ;;  %1153 = vmatpush.msrb.mxu0 %v5082_v15  ;;  %1207 = vmatmul.f32.vlgmr.msra.gmra.mxu3 %v5040_v47 }
  0xf2   : > { %9748 = vst [vmem:[#allocation94_spill] sm:$0xff] %v5070_v17  ;;  %1279 = vmatpush.msrb.mxu3 %v4181_v4  ;;  %1137 = vmatpush.msrb.mxu2 %v5077_v11  ;;  %v5100_v17 = vpop.f32.mrf.mxu2  ;;  %v5107_v4 = vld [vmem:[%s8999_s4 + $0x78] sm:$0xff] }
  0xf3   : > { %9749 = vst [vmem:[#allocation95_spill] sm:$0xff] %v5077_v11  ;;  %1154 = vmatpush.msrb.mxu0 %v5096_v22  ;;  %v5116_v11 = vpop.f32.mrf.mxu0  ;;  %1266 = vmatpush.msrb.mxu1 %v4315_v32  ;;  %v5146_v29 = vld [vmem:[%s8999_s4 + $0x198] sm:$0xff]  ;;  %v5160_v32 = vld [vmem:[%s8999_s4 + $0x188] sm:$0xff] }
  0xf4   : > { %9750 = vst [vmem:[#allocation96_spill] sm:$0xff] %v5100_v17  ;;  %1280 = vmatpush.msrb.mxu3 %v4189_v7  ;;  %1138 = vmatpush.msrb.mxu2 %v5091_v0  ;;  %v5125_v7 = vld [vmem:[%s8999_s4 + $0x68] sm:$0xff] }
  0xf5   : > { %9751 = vst [vmem:[#allocation97_spill] sm:$0xff] %v5116_v11  ;;  %1155 = vmatpush.msrb.mxu0 %v5112_v20  ;;  %v5134_v11 = vpop.f32.mrf.mxu3  ;;  %1267 = vmatpush.msrb.mxu1 %v4328_v35  ;;  %v5176_v35 = vld [vmem:[%s8999_s4 + $0x178] sm:$0xff] }
  0xf6   : > { %1281 = vmatpush.msrb.mxu3 %v4201_v10  ;;  %1139 = vmatpush.msrb.mxu2 %v5107_v4  ;;  %9753 = vst [vmem:[#allocation99_spill] sm:$0xff] %v5134_v11  ;;  %v5141_v10 = vld [vmem:[%s8999_s4 + $0x58] sm:$0xff] }
  0xf7   : > { %v5118_v17 = vpop.f32.mrf.mxu1  ;;  %9754 = vst [vmem:[#allocation100_spill] sm:$0xff] %v5141_v10  ;;  %1156 = vmatpush.msrb.mxu0 %v5130_v27  ;;  %1268 = vmatpush.msrb.mxu1 %v4342_v39  ;;  %v5194_v39 = vld [vmem:[%s8999_s4 + $0x168] sm:$0xff] }
  0xf8   : > { %9752 = vst [vmem:[#allocation98_spill] sm:$0xff] %v5118_v17  ;;  %1282 = vmatpush.msrb.mxu3 %v4215_v13  ;;  %1140 = vmatpush.msrb.mxu2 %v5125_v7  ;;  %v5155_v13 = vld [vmem:[%s8999_s4 + $0x48] sm:$0xff] }
  0xf9   : > { %9755 = vst [vmem:[#allocation101_spill] sm:$0xff] %v5155_v13  ;;  %1157 = vmatpush.msrb.mxu0 %v5146_v29  ;;  %1269 = vmatpush.msrb.mxu1 %v4354_v24  ;;  %v5212_v24 = vld [vmem:[%s8999_s4 + $0x158] sm:$0xff] }
  0xfa   : > { %1283 = vmatpush.msrb.mxu3 %v4227_v14  ;;  %1141 = vmatpush.msrb.mxu2 %v5141_v10  ;;  %v5169_v14 = vld [vmem:[%s8999_s4 + $0x38] sm:$0xff]  ;;  %v5178_v17 = vpop.f32.mrf.mxu2 }
  0xfb   : > { %9756 = vst [vmem:[#allocation102_spill] sm:$0xff] %v5169_v14  ;;  %1158 = vmatpush.msrb.mxu0 %v5160_v32  ;;  %1270 = vmatpush.msrb.mxu1 %v4367_v43  ;;  %v5219_v43 = vld [vmem:[%s8999_s4 + $0x8] sm:$0xff] }
  0xfc   : > { %1284 = vmatpush.msrb.mxu3 %v4239_v16  ;;  %1142 = vmatpush.msrb.mxu2 %v5155_v13  ;;  %9757 = vst [vmem:[#allocation103_spill] sm:$0xff] %v5178_v17  ;;  %v5187_v16 = vld [vmem:[%s8999_s4 + $0x28] sm:$0xff]  ;;  %v5196_v17 = vpop.f32.mrf.mxu0 }
  0xfd   : > { %9759 = vst [vmem:[#allocation105_spill] sm:$0xff] %v5187_v16  ;;  %1159 = vmatpush.msrb.mxu0 %v5176_v35  ;;  %1271 = vmatpush.msrb.mxu1 %v4374_v44  ;;  %v5235_v44 = vld [vmem:[%s8999_s4 + $0x138] sm:$0xff] }
  0xfe   : > { %1285 = vmatpush.msrb.mxu3 %v4254_v21  ;;  %1143 = vmatpush.msrb.mxu2 %v5169_v14  ;;  %9760 = vst [vmem:[#allocation106_spill] sm:$0xff] %v5196_v17  ;;  %v5205_v21 = vld [vmem:[%s8999_s4 + $0x18] sm:$0xff] }
  0xff   : > { %v5180_v11 = vpop.f32.mrf.mxu1  ;;  %9762 = vst [vmem:[#allocation108_spill] sm:$0xff] %v5205_v21  ;;  %1160 = vmatpush.msrb.mxu0 %v5194_v39  ;;  %1272 = vmatpush.msrb.mxu1 %v4382_v45  ;;  %v5245_v45 = vld [vmem:[%s8999_s4 + $0x128] sm:$0xff]  ;;  %v9817_v17 = vld [vmem:[#allocation56_spill] sm:$0xff] }
 0x100   : > { %9758 = vst [vmem:[#allocation104_spill] sm:$0xff] %v5180_v11  ;;  %v5198_v11 = vpop.f32.mrf.mxu3  ;;  %1286 = vmatpush.msrb.mxu3 %v4268_v25  ;;  %1144 = vmatpush.msrb.mxu2 %v5187_v16  ;;  %v5226_v25 = vld [vmem:[%s8999_s4 + $0x148] sm:$0xff] }
 0x101   : > { %9761 = vst [vmem:[#allocation107_spill] sm:$0xff] %v5198_v11  ;;  %1161 = vmatpush.msrb.mxu0 %v5212_v24  ;;  %1273 = vmatpush.msrb.mxu1 %v4388_v46  ;;  %v460_v46 = vld [vmem:[%s8997_s2] sm:$0x3]  ;;  %v9820_v11 = vld [vmem:[#allocation59_spill] sm:$0xff] }
 0x102   : > { %9763 = vst [vmem:[#allocation109_spill] sm:$0xff] %v5219_v43  ;;  %1287 = vmatpush.msrb.mxu3 %v4281_v26  ;;  %1145 = vmatpush.msrb.mxu2 %v5205_v21 }
 0x103   : > { %9764 = vst [vmem:[#allocation110_spill] sm:$0xff] %v5226_v25  ;;  %1162 = vmatpush.msrb.mxu0 %v5226_v25  ;;  %1342 = vmatpush.msra.mxu1 %v4398_v37 }
 0x104   : > { %1288 = vmatpush.msrb.mxu3 %v4293_v28  ;;  %1146 = vmatpush.msrb.mxu2 %v5219_v43  ;;  %9765 = vst [vmem:[#allocation111_spill] sm:$0xff] %v5235_v44  ;;  %v5248_v28 = vpop.f32.mrf.mxu2  ;;  %v5264_v37 = vpop.f32.mrf.mxu0 }
 0x105   : > { %9767 = vst [vmem:[#allocation113_spill] sm:$0xff] %v5245_v45  ;;  %1163 = vmatpush.msrb.mxu0 %v5235_v44  ;;  %1343 = vmatpush.msra.mxu1 %v4403_v48  ;;  %v5275_v48 = vperm.slane %v460_v46, 0 }
 0x106   : > { %1289 = vmatpush.msrb.mxu3 %v4308_v31  ;;  %9768 = vst [vmem:[#allocation114_spill] sm:$0xff] %v5248_v28  ;;  %v5258_v31 = vld [vmem:[%s8999_s4 + $0x118] sm:$0xff]  ;;  %v9810_v28 = vld [vmem:[#allocation46_spill] sm:$0xff] }
 0x107   : > { %v5239_v26 = vpop.f32.mrf.mxu1  ;;  %9770 = vst [vmem:[#allocation116_spill] sm:$0xff] %v5258_v31  ;;  %1164 = vmatpush.msrb.mxu0 %v5245_v45  ;;  %1344 = vmatpush.msra.mxu1 %v4409_v49  ;;  %v516_v49 = vadd.f32 %v4696_v59, %v5275_v48  ;;  %v9779_v59 = vld [vmem:[#allocation8_spill] sm:$0xff] }
 0x108   : > { %9766 = vst [vmem:[#allocation112_spill] sm:$0xff] %v5239_v26  ;;  %v5250_v23 = vpop.f32.mrf.mxu3  ;;  %1290 = vmatpush.msrb.mxu3 %v4321_v34  ;;  %v5271_v34 = vld [vmem:[%s8999_s4 + $0x108] sm:$0xff] }
 0x109   : > { %9769 = vst [vmem:[#allocation115_spill] sm:$0xff] %v5250_v23  ;;  %1165 = vmatpush.msrb.mxu0 %v5258_v31  ;;  %1345 = vmatpush.msra.mxu1 %v4419_v53  ;;  %v9812_v26 = vld [vmem:[#allocation50_spill] sm:$0xff]  ;;  %v9816_v23 = vld [vmem:[#allocation55_spill] sm:$0xff] }
 0x10a   : > { %9771 = vst [vmem:[#allocation117_spill] sm:$0xff] %v5264_v37  ;;  %1291 = vmatpush.msrb.mxu3 %v4334_v38  ;;  %v9813_v37 = vld [vmem:[#allocation51_spill] sm:$0xff] }
 0x10b   : > { %9772 = vst [vmem:[#allocation118_spill] sm:$0xff] %v5271_v34  ;;  %1166 = vmatpush.msrb.mxu0 %v5271_v34  ;;  %1346 = vmatpush.msra.mxu1 %v4424_v50 }
 0x10c   : > { %1292 = vmatpush.msrb.mxu3 %v4348_v40  ;;  %v5290_v40 = vpop.f32.mrf.mxu2  ;;  %v5294_v53 = vpop.f32.mrf.mxu0 }
 0x10d   : > { %1347 = vmatpush.msra.mxu1 %v4441_v52  ;;  %9775 = vst [vmem:[#allocation121_spill] sm:$0xff] %v5290_v40  ;;  %v5303_v52 = vperm.slane %v460_v46, 1  ;;  %v9804_v40 = vld [vmem:[#allocation38_spill] sm:$0xff] }
 0x10e   : > { %1293 = vmatpush.msrb.mxu3 %v4360_v42  ;;  %9776 = vst [vmem:[#allocation122_spill] sm:$0xff] %v5294_v53  ;;  %v557_v42 = vadd.f32 %v4770_v33, %v516_v49  ;;  %v9780_v49 = vld [vmem:[#allocation9_spill] sm:$0xff]  ;;  %v9807_v53 = vld [vmem:[#allocation42_spill] sm:$0xff] }
 0x10f   : > { %v5280_v47 = vpop.f32.mrf.mxu1  ;;  %1348 = vmatpush.msra.mxu1 %v4450_v54 }
 0x110   : > { %9773 = vst [vmem:[#allocation119_spill] sm:$0xff] %v5280_v47  ;;  %v5284_v38 = vpop.f32.mrf.mxu3  ;;  %1362 = vmatpush.msra.mxu3 %v4429_v51  ;;  %v9806_v47 = vld [vmem:[#allocation41_spill] sm:$0xff] }
 0x111   : > { %9774 = vst [vmem:[#allocation120_spill] sm:$0xff] %v5284_v38  ;;  %1349 = vmatpush.msra.mxu1 %v4462_v56  ;;  %v9809_v38 = vld [vmem:[#allocation45_spill] sm:$0xff] }
 0x112   : > { %1363 = vmatpush.msra.mxu3 %v4436_v3  ;;  %v598_v3 = vadd.f32 %v4643_v30, %v557_v42 }
 0x113   : > { %1350 = vmatpush.msra.mxu1 %v4474_v58 }
 0x114   : > { %1364 = vmatpush.msra.mxu3 %v4455_v55  ;;  %v679_v56 = vpop.f32.mrf.mxu2  ;;  %v720_v58 = vpop.f32.mrf.mxu0 }
 0x115   : > { %1351 = vmatpush.msra.mxu1 %v4489_v18  ;;  %v9778_v18 = vld [vmem:[#allocation7_spill] sm:$0xff] }
 0x116   : > { %1365 = vmatpush.msra.mxu3 %v4467_v57  ;;  %v639_v57 = vadd.f32 %v4791_v36, %v5303_v52 }
 0x117   : > { %v984_v50 = vpop.f32.mrf.mxu1  ;;  %1352 = vmatpush.msra.mxu1 %v4501_v62 }
 0x118   : > { %v1004_v51 = vpop.f32.mrf.mxu3  ;;  %1366 = vmatpush.msra.mxu3 %v4479_v60  ;;  %v9777_v60 = vld [vmem:[#allocation6_spill] sm:$0xff]  ;;  %v680_v33 = vadd.f32 %v679_v56, %v639_v57  ;;  %v9786_v56 = vld [vmem:[#allocation16_spill] sm:$0xff] }
 0x119   : > { %v1005_v54 = vadd.f32 %v1004_v51, %v984_v50  ;;  %1353 = vmatpush.msra.mxu1 %v4513_v1  ;;  %v9782_v1 = vld [vmem:[#allocation11_spill] sm:$0xff]  ;;  %v9783_v51 = vld [vmem:[#allocation12_spill] sm:$0xff] }
 0x11a   : > { %1367 = vmatpush.msra.mxu3 %v4494_v61  ;;  %v721_v62 = vadd.f32 %v720_v58, %v680_v33  ;;  %v5325_v50 = vld [vmem:[%s8998_s3 + $0xf0] sm:$0xff]  ;;  %v9787_v58 = vld [vmem:[#allocation17_spill] sm:$0xff] }
 0x11b   : > { %v1047_v55 = vadd.f32 %v1005_v54, %v598_v3  ;;  %1354 = vmatpush.msra.mxu1 %v9778_v18  ;;  %v9784_v3 = vld [vmem:[#allocation13_spill] sm:$0xff]  ;;  %v5341_v57 = vld [vmem:[%s8998_s3 + $0xd0] sm:$0xff] }
 0x11c   : > { %1368 = vmatpush.msra.mxu3 %v4506_v63  ;;  %v9781_v63 = vld [vmem:[#allocation10_spill] sm:$0xff]  ;;  %v9789_v18 = vld [vmem:[#allocation20_spill] sm:$0xff] }
 0x11d   : > { %3221 = vtanh.f32 %v1047_v55  ;;  %1355 = vmatpush.msra.mxu1 %v9780_v49  ;;  %v5333_v54 = vld [vmem:[%s8998_s3 + $0xe0] sm:$0xff] }
 0x11e   : > { %1369 = vmatpush.msra.mxu3 %v9777_v60  ;;  %v9785_v55 = vld [vmem:[#allocation14_spill] sm:$0xff]  ;;  %v9788_v60 = vld [vmem:[#allocation19_spill] sm:$0xff] }
 0x11f   : > { %v1024_v30 = vpop.f32.mrf.mxu1  ;;  %1356 = vmatpush.msra.mxu1 %v9782_v1  ;;  %v5380_v49 = vld [vmem:[%s8998_s3 + $0x1e0] sm:$0xff]  ;;  %v5388_v1 = vld [vmem:[%s8998_s3 + $0x90] sm:$0xff] }
 0x120   : > { %v1044_v61 = vpop.f32.mrf.mxu3  ;;  %1370 = vmatpush.msra.mxu3 %v9779_v59  ;;  %v5366_v59 = vld [vmem:[%s8998_s3 + $0x1f0] sm:$0xff]  ;;  %9794 = vst [vmem:[#allocation7_spill] sm:$0xff] %v5388_v1 }
 0x121   : > { %v1045_v46 = vadd.f32 %v1044_v61, %v1024_v30  ;;  %1357 = vmatpush.msra.mxu1 %v9784_v3  ;;  %v5351_v30 = vld [vmem:[%s8998_s3 + $0xc0] sm:$0xff]  ;;  %v5360_v61 = vld [vmem:[%s8998_s3 + $0xb0] sm:$0xff] }
 0x122   : > { %1371 = vmatpush.msra.mxu3 %v9781_v63  ;;  %9790 = vst [vmem:[#allocation6_spill] sm:$0xff] %v5360_v61  ;;  %v9792_v63 = vld [vmem:[#allocation23_spill] sm:$0xff] }
 0x123   : > { %v5317_v36 = vpop.eup %3221  ;;  %v1048_v42 = vadd.f32 %v1045_v46, %v721_v62  ;;  %v9791_v62 = vld [vmem:[#allocation22_spill] sm:$0xff]  ;;  %v9795_v3 = vld [vmem:[#allocation27_spill] sm:$0xff] }
 0x124   : > { %1067 = vmatmul.f32.vlgmr.msra.gmra.mxu2 %v5317_v36  ;;  %1274 = vmatmul.f32.vlgmr.msrb.gmra.mxu1 %v5317_v36  ;;  %v5374_v46 = vld [vmem:[%s8998_s3 + $0xa0] sm:$0xff] }
 0x125   : > { %3223 = vtanh.f32 %v1048_v42  ;;  %1218 = vmatpush.msra.mxu2 %v5325_v50  ;;  %1372 = vmatpush.msra.mxu3 %v9783_v51  ;;  %v9793_v42 = vld [vmem:[#allocation26_spill] sm:$0xff]  ;;  %v5394_v51 = vld [vmem:[%s8998_s3 + $0x1d0] sm:$0xff] }
 0x126   : > { %1422 = vmatpush.msrb.mxu1 %v9786_v56  ;;  %v5402_v56 = vld [vmem:[%s8998_s3 + $0x80] sm:$0xff] }
 0x127   : > { %1219 = vmatpush.msra.mxu2 %v5333_v54  ;;  %1373 = vmatpush.msra.mxu3 %v9785_v55  ;;  %v9796_v55 = vld [vmem:[#allocation29_spill] sm:$0xff]  ;;  %9797 = vst [vmem:[#allocation8_spill] sm:$0xff] %v5402_v56 }
 0x128   : > { %1423 = vmatpush.msrb.mxu1 %v9788_v60  ;;  %v9798_v60 = vld [vmem:[#allocation30_spill] sm:$0xff] }
 0x129   : > { %1220 = vmatpush.msra.mxu2 %v5341_v57  ;;  %1374 = vmatpush.msra.mxu3 %v9787_v58  ;;  %v5408_v58 = vld [vmem:[%s8998_s3 + $0x1c0] sm:$0xff] }
 0x12a   : > { %1424 = vmatpush.msrb.mxu1 %v9791_v62  ;;  %v5422_v62 = vld [vmem:[%s8998_s3 + $0x1b0] sm:$0xff] }
 0x12b   : > { %v5346_v33 = vpop.eup %3223  ;;  %1221 = vmatpush.msra.mxu2 %v5351_v30  ;;  %1375 = vmatpush.msra.mxu3 %v9789_v18  ;;  %v5416_v18 = vld [vmem:[%s8998_s3 + $0x70] sm:$0xff] }
 0x12c   : > { %1087 = vmatmul.f32.vlgmr.msra.gmra.mxu0 %v5346_v33  ;;  %1147 = vmatmul.f32.vlgmr.msrb.gmra.mxu2 %v5317_v36  ;;  %9799 = vst [vmem:[#allocation9_spill] sm:$0xff] %v5416_v18 }
 0x12d   : > { %1222 = vmatpush.msra.mxu2 %v5360_v61  ;;  %1238 = vmatpush.msra.mxu0 %v5366_v59 }
 0x12e   : > { %1294 = vmatmul.f32.vlgmr.msrb.gmra.mxu3 %v5346_v33  ;;  %1425 = vmatpush.msrb.mxu1 %v9793_v42  ;;  %v9801_v42 = vld [vmem:[#allocation34_spill] sm:$0xff] }
 0x12f   : > { %1223 = vmatpush.msra.mxu2 %v5374_v46  ;;  %1239 = vmatpush.msra.mxu0 %v5380_v49 }
 0x130   : > { %1376 = vmatpush.msra.mxu3 %v9792_v63  ;;  %1426 = vmatpush.msrb.mxu1 %v9796_v55  ;;  %v9800_v63 = vld [vmem:[#allocation33_spill] sm:$0xff] }
 0x131   : > { %1224 = vmatpush.msra.mxu2 %v5388_v1  ;;  %1240 = vmatpush.msra.mxu0 %v5394_v51  ;;  %v5436_v55 = vld [vmem:[%s8998_s3 + $0x1a0] sm:$0xff]  ;;  %v9845_v1 = vld [vmem:[#allocation35_spill] sm:$0xff] }
 0x132   : > { %1377 = vmatpush.msra.mxu3 %v9795_v3  ;;  %1427 = vmatpush.msrb.mxu1 %v9800_v63  ;;  %v5430_v3 = vld [vmem:[%s8998_s3 + $0x60] sm:$0xff]  ;;  %v5444_v63 = vld [vmem:[%s8998_s3 + $0x50] sm:$0xff] }
 0x133   : > { %1225 = vmatpush.msra.mxu2 %v5402_v56  ;;  %1241 = vmatpush.msra.mxu0 %v5408_v58  ;;  %9802 = vst [vmem:[#allocation10_spill] sm:$0xff] %v5430_v3  ;;  %v9844_v56 = vld [vmem:[#allocation36_spill] sm:$0xff] }
 0x134   : > { %1167 = vmatmul.f32.vlgmr.msrb.gmra.mxu0 %v5346_v33  ;;  %1442 = vmatpush.msrb.mxu3 %v9798_v60  ;;  %v9803_v60 = vld [vmem:[#allocation37_spill] sm:$0xff]  ;;  %9805 = vst [vmem:[#allocation11_spill] sm:$0xff] %v5444_v63 }
 0x135   : > { %1226 = vmatpush.msra.mxu2 %v5416_v18  ;;  %1242 = vmatpush.msra.mxu0 %v5422_v62  ;;  %v9840_v18 = vld [vmem:[#allocation25_spill] sm:$0xff] }
 0x136   : > { %1443 = vmatpush.msrb.mxu3 %v9801_v42  ;;  %1428 = vmatpush.msrb.mxu1 %v9803_v60  ;;  %v5450_v42 = vld [vmem:[%s8998_s3 + $0x190] sm:$0xff]  ;;  %v5464_v60 = vld [vmem:[%s8998_s3 + $0x180] sm:$0xff] }
 0x137   : > { %1227 = vmatpush.msra.mxu2 %v5430_v3  ;;  %1243 = vmatpush.msra.mxu0 %v5436_v55  ;;  %v9836_v3 = vld [vmem:[#allocation79_spill] sm:$0xff] }
 0x138   : > { %1444 = vmatpush.msrb.mxu3 %v9804_v40  ;;  %1429 = vmatpush.msrb.mxu1 %v9806_v47  ;;  %v5458_v40 = vld [vmem:[%s8998_s3 + $0x40] sm:$0xff]  ;;  %v5472_v47 = vld [vmem:[%s8998_s3 + $0x30] sm:$0xff] }
 0x139   : > { %1228 = vmatpush.msra.mxu2 %v5444_v63  ;;  %1244 = vmatpush.msra.mxu0 %v5450_v42  ;;  %9808 = vst [vmem:[#allocation12_spill] sm:$0xff] %v5458_v40  ;;  %v9832_v63 = vld [vmem:[#allocation74_spill] sm:$0xff] }
 0x13a   : > { %1445 = vmatpush.msrb.mxu3 %v9807_v53  ;;  %1430 = vmatpush.msrb.mxu1 %v9809_v38  ;;  %9811 = vst [vmem:[#allocation13_spill] sm:$0xff] %v5472_v47  ;;  %v5478_v53 = vld [vmem:[%s8998_s3 + $0x170] sm:$0xff]  ;;  %v5492_v38 = vld [vmem:[%s8998_s3 + $0x160] sm:$0xff] }
 0x13b   : > { %1229 = vmatpush.msra.mxu2 %v5458_v40  ;;  %1245 = vmatpush.msra.mxu0 %v5464_v60  ;;  %9815 = vst [vmem:[#allocation16_spill] sm:$0xff] %v5492_v38  ;;  %v5537_v40 = vld [vmem:[%s8998_s3 + $0x120] sm:$0xff] }
 0x13c   : > { %1446 = vmatpush.msrb.mxu3 %v9810_v28  ;;  %1431 = vmatpush.msrb.mxu1 %v9812_v26  ;;  %v5486_v28 = vld [vmem:[%s8998_s3 + $0x20] sm:$0xff]  ;;  %v5500_v26 = vld [vmem:[%s8998_s3 + $0x10] sm:$0xff]  ;;  %9829 = vst [vmem:[#allocation26_spill] sm:$0xff] %v5537_v40 }
 0x13d   : > { %1230 = vmatpush.msra.mxu2 %v5472_v47  ;;  %1246 = vmatpush.msra.mxu0 %v5478_v53  ;;  %9814 = vst [vmem:[#allocation14_spill] sm:$0xff] %v5486_v28  ;;  %v9828_v47 = vld [vmem:[#allocation68_spill] sm:$0xff] }
 0x13e   : > { %1447 = vmatpush.msrb.mxu3 %v9813_v37  ;;  %1432 = vmatpush.msrb.mxu1 %v9816_v23  ;;  %9818 = vst [vmem:[#allocation17_spill] sm:$0xff] %v5500_v26  ;;  %v5506_v37 = vld [vmem:[%s8998_s3 + $0x150] sm:$0xff]  ;;  %v5520_v23 = vld [vmem:[%s8998_s3 + $0x140] sm:$0xff] }
 0x13f   : > { %1231 = vmatpush.msra.mxu2 %v5486_v28  ;;  %1247 = vmatpush.msra.mxu0 %v5492_v38  ;;  %9819 = vst [vmem:[#allocation19_spill] sm:$0xff] %v5506_v37  ;;  %v9821_v28 = vld [vmem:[#allocation60_spill] sm:$0xff] }
 0x140   : > { %1448 = vmatpush.msrb.mxu3 %v9817_v17  ;;  %1433 = vmatpush.msrb.mxu1 %v9820_v11  ;;  %v5514_v17 = vld [vmem:[%s8998_s3] sm:$0xff]  ;;  %9823 = vst [vmem:[#allocation22_spill] sm:$0xff] %v5520_v23  ;;  %v5528_v11 = vld [vmem:[%s8998_s3 + $0x130] sm:$0xff] }
 0x141   : > { %1232 = vmatpush.msra.mxu2 %v5500_v26  ;;  %1248 = vmatpush.msra.mxu0 %v5506_v37  ;;  %9822 = vst [vmem:[#allocation20_spill] sm:$0xff] %v5514_v17  ;;  %v9824_v26 = vld [vmem:[#allocation63_spill] sm:$0xff] }
 0x142   : > { %1449 = vmatpush.msrb.mxu3 %v9821_v28  ;;  %1434 = vmatpush.msrb.mxu1 %v9824_v26  ;;  %9825 = vst [vmem:[#allocation23_spill] sm:$0xff] %v5528_v11  ;;  %v9826_v28 = vld [vmem:[#allocation15_spill] sm:$0xff] }
 0x143   : > { %1233 = vmatpush.msra.mxu2 %v5514_v17  ;;  %1249 = vmatpush.msra.mxu0 %v5520_v23  ;;  %v9827_v17 = vld [vmem:[#allocation64_spill] sm:$0xff]  ;;  %v9831_v26 = vld [vmem:[#allocation71_spill] sm:$0xff] }
 0x144   : > { %1234 = vmatmul.f32.vlgmr.msra.gmra.mxu2 %v5317_v36  ;;  %1450 = vmatpush.msrb.mxu3 %v9827_v17  ;;  %v9830_v36 = vld [vmem:[#allocation18_spill] sm:$0xff]  ;;  %v9835_v17 = vld [vmem:[#allocation76_spill] sm:$0xff] }
 0x145   : > { %1250 = vmatpush.msra.mxu0 %v5528_v11  ;;  %1302 = vmatpush.msrb.mxu2 %v9826_v28  ;;  %v5546_v28 = vld [vmem:[%s8998_s3 + $0x110] sm:$0xff] }
 0x146   : > { %1435 = vmatpush.msrb.mxu1 %v9828_v47  ;;  %1451 = vmatpush.msrb.mxu3 %v9831_v26  ;;  %9833 = vst [vmem:[#allocation27_spill] sm:$0xff] %v5546_v28  ;;  %v9834_v47 = vld [vmem:[#allocation21_spill] sm:$0xff]  ;;  %v9839_v26 = vld [vmem:[#allocation80_spill] sm:$0xff] }
 0x147   : > { %1251 = vmatpush.msra.mxu0 %v5537_v40  ;;  %1303 = vmatpush.msrb.mxu2 %v9830_v36  ;;  %v5555_v36 = vld [vmem:[%s8998_s3 + $0x100] sm:$0xff] }
 0x148   : > { %1436 = vmatpush.msrb.mxu1 %v9832_v63  ;;  %1452 = vmatpush.msrb.mxu3 %v9835_v17  ;;  %9837 = vst [vmem:[#allocation29_spill] sm:$0xff] %v5555_v36  ;;  %v9838_v63 = vld [vmem:[#allocation24_spill] sm:$0xff]  ;;  %v9843_v17 = vld [vmem:[#allocation31_spill] sm:$0xff] }
 0x149   : > { %1252 = vmatpush.msra.mxu0 %v5546_v28  ;;  %1304 = vmatpush.msrb.mxu2 %v9834_v47  ;;  %v9841_v47 = vld [vmem:[#allocation28_spill] sm:$0xff] }
 0x14a   : > { %1437 = vmatpush.msrb.mxu1 %v9836_v3  ;;  %1453 = vmatpush.msrb.mxu3 %v9839_v26  ;;  %v9842_v3 = vld [vmem:[#allocation32_spill] sm:$0xff]  ;;  %v9850_v26 = vld [vmem:[#allocation49_spill] sm:$0xff] }
 0x14b   : > { %1253 = vmatpush.msra.mxu0 %v5555_v36  ;;  %1305 = vmatpush.msrb.mxu2 %v9838_v63  ;;  %v9847_v63 = vld [vmem:[#allocation39_spill] sm:$0xff] }
 0x14c   : > { %1254 = vmatmul.f32.vlgmr.msra.gmra.mxu0 %v5346_v33  ;;  %1454 = vmatpush.msrb.mxu3 %v4971_v12  ;;  %v9846_v33 = vld [vmem:[#allocation40_spill] sm:$0xff]  ;;  %v9849_v12 = vld [vmem:[#allocation43_spill] sm:$0xff] }
 0x14d   : > { %1322 = vmatpush.msrb.mxu0 %v9840_v18  ;;  %1306 = vmatpush.msrb.mxu2 %v9841_v47  ;;  %v9848_v18 = vld [vmem:[#allocation44_spill] sm:$0xff] }
 0x14e   : > { %1455 = vmatpush.msrb.mxu3 %v4992_v19  ;;  %v9851_v47 = vld [vmem:[#allocation48_spill] sm:$0xff]  ;;  %v9852_v19 = vld [vmem:[#allocation54_spill] sm:$0xff] }
 0x14f   : > { %1323 = vmatpush.msrb.mxu0 %v9842_v3  ;;  %1307 = vmatpush.msrb.mxu2 %v9843_v17  ;;  %v9856_v3 = vld [vmem:[#allocation62_spill] sm:$0xff]  ;;  %v9857_v17 = vld [vmem:[#allocation61_spill] sm:$0xff] }
 0x150   : > { %1456 = vmatpush.msrb.mxu3 %v5013_v2  ;;  %v9855_v2 = vld [vmem:[#allocation57_spill] sm:$0xff] }
 0x151   : > { %1324 = vmatpush.msrb.mxu0 %v9844_v56  ;;  %1308 = vmatpush.msrb.mxu2 %v9845_v1  ;;  %v9853_v56 = vld [vmem:[#allocation53_spill] sm:$0xff]  ;;  %v9854_v1 = vld [vmem:[#allocation58_spill] sm:$0xff] }
 0x152   : > { %1457 = vmatpush.msrb.mxu3 %v5034_v8  ;;  %v9858_v8 = vld [vmem:[#allocation67_spill] sm:$0xff] }
 0x153   : > { %1325 = vmatpush.msrb.mxu0 %v9846_v33  ;;  %1309 = vmatpush.msrb.mxu2 %v9847_v63  ;;  %v9859_v33 = vld [vmem:[#allocation66_spill] sm:$0xff]  ;;  %v9860_v63 = vld [vmem:[#allocation73_spill] sm:$0xff] }
 0x155   : > { %1326 = vmatpush.msrb.mxu0 %v9848_v18  ;;  %1310 = vmatpush.msrb.mxu2 %v9849_v12  ;;  %v9861_v18 = vld [vmem:[#allocation72_spill] sm:$0xff]  ;;  %v5587_v12 = vpop.f32.mrf.mxu2 }
 0x157   : > { %1327 = vmatpush.msrb.mxu0 %v9850_v26  ;;  %1311 = vmatpush.msrb.mxu2 %v9851_v47  ;;  %v9862_v26 = vld [vmem:[#allocation78_spill] sm:$0xff]  ;;  %v9863_v47 = vld [vmem:[#allocation77_spill] sm:$0xff] }
 0x159   : > { %1328 = vmatpush.msrb.mxu0 %v9852_v19  ;;  %1312 = vmatpush.msrb.mxu2 %v9853_v56  ;;  %v9864_v19 = vld [vmem:[#allocation81_spill] sm:$0xff]  ;;  %v5592_v56 = vpop.f32.mrf.mxu0 }
 0x15b   : > { %1329 = vmatpush.msrb.mxu0 %v9854_v1  ;;  %1313 = vmatpush.msrb.mxu2 %v9855_v2  ;;  %v9865_v1 = vld [vmem:[#allocation82_spill] sm:$0xff]  ;;  %v9866_v2 = vld [vmem:[#allocation83_spill] sm:$0xff] }
 0x15d   : > { %1330 = vmatpush.msrb.mxu0 %v9856_v3  ;;  %1314 = vmatpush.msrb.mxu2 %v9857_v17  ;;  %v9867_v3 = vld [vmem:[#allocation85_spill] sm:$0xff]  ;;  %v9868_v17 = vld [vmem:[#allocation87_spill] sm:$0xff] }
 0x15f   : > { %1331 = vmatpush.msrb.mxu0 %v9858_v8  ;;  %1315 = vmatpush.msrb.mxu2 %v9859_v33  ;;  %v9869_v8 = vld [vmem:[#allocation88_spill] sm:$0xff]  ;;  %v9870_v33 = vld [vmem:[#allocation90_spill] sm:$0xff] }
 0x161   : > { %1332 = vmatpush.msrb.mxu0 %v9860_v63  ;;  %1316 = vmatpush.msrb.mxu2 %v9861_v18  ;;  %v9871_v18 = vld [vmem:[#allocation92_spill] sm:$0xff] }
 0x163   : > { %1333 = vmatpush.msrb.mxu0 %v9862_v26  ;;  %1317 = vmatpush.msrb.mxu2 %v9863_v47  ;;  %v5603_v47 = vpop.f32.mrf.mxu2 }
 0x164   : > { %9872 = vst [vmem:[#allocation30_spill] sm:$0xff] %v5603_v47 }
 0x165   : > { %1382 = vmatpush.msra.mxu2 %v9864_v19  ;;  %1334 = vmatpush.msrb.mxu0 %v9865_v1  ;;  %v5607_v19 = vpop.f32.mrf.mxu0 }
 0x166   : > { %9873 = vst [vmem:[#allocation33_spill] sm:$0xff] %v5607_v19  ;;  %v952_v19 = vld [vmem:[%s9000_s5] sm:$0x3] }
 0x167   : > { %1383 = vmatpush.msra.mxu2 %v9866_v2  ;;  %1335 = vmatpush.msrb.mxu0 %v9867_v3  ;;  %v9874_v2 = vld [vmem:[#allocation95_spill] sm:$0xff]  ;;  %v5656_v47 = vperm.slane %v952_v19, 0 }
 0x169   : > { %1384 = vmatpush.msra.mxu2 %v9868_v17  ;;  %1336 = vmatpush.msrb.mxu0 %v9869_v8  ;;  %9885 = vst [vmem:[#allocation56_spill] sm:$0xff] %v5656_v47 }
 0x16b   : > { %1385 = vmatpush.msra.mxu2 %v9870_v33  ;;  %1337 = vmatpush.msrb.mxu0 %v5029_v41  ;;  %v5617_v17 = vpop.f32.mrf.mxu2 }
 0x16c   : > { %9875 = vst [vmem:[#allocation34_spill] sm:$0xff] %v5617_v17 }
 0x16d   : > { %1402 = vmatpush.msra.mxu0 %v5050_v6  ;;  %1386 = vmatpush.msra.mxu2 %v9871_v18 }
 0x16f   : > { %1403 = vmatpush.msra.mxu0 %v5066_v9  ;;  %1387 = vmatpush.msra.mxu2 %v5061_v5  ;;  %v5621_v5 = vpop.f32.mrf.mxu0 }
 0x170   : > { %9876 = vst [vmem:[#allocation37_spill] sm:$0xff] %v5621_v5  ;;  %v1128_v5 = vpop.f32.mrf.mxu3 }
 0x171   : > { %1404 = vmatpush.msra.mxu0 %v5082_v15  ;;  %1388 = vmatpush.msra.mxu2 %v9874_v2 }
 0x173   : > { %1405 = vmatpush.msra.mxu0 %v5096_v22  ;;  %1389 = vmatpush.msra.mxu2 %v5091_v0  ;;  %v5631_v0 = vpop.f32.mrf.mxu2 }
 0x174   : > { %9877 = vst [vmem:[#allocation38_spill] sm:$0xff] %v5631_v0  ;;  %v1108_v0 = vpop.f32.mrf.mxu1 }
 0x175   : > { %1406 = vmatpush.msra.mxu0 %v5112_v20  ;;  %1390 = vmatpush.msra.mxu2 %v5107_v4 }
 0x177   : > { %1407 = vmatpush.msra.mxu0 %v5130_v27  ;;  %1391 = vmatpush.msra.mxu2 %v5125_v7  ;;  %v5635_v4 = vpop.f32.mrf.mxu0 }
 0x178   : > { %9878 = vst [vmem:[#allocation41_spill] sm:$0xff] %v5635_v4 }
 0x179   : > { %1408 = vmatpush.msra.mxu0 %v5146_v29  ;;  %1392 = vmatpush.msra.mxu2 %v5141_v10 }
 0x17b   : > { %1409 = vmatpush.msra.mxu0 %v5160_v32  ;;  %1393 = vmatpush.msra.mxu2 %v5155_v13  ;;  %v5641_v7 = vpop.f32.mrf.mxu2 }
 0x17c   : > { %9879 = vst [vmem:[#allocation42_spill] sm:$0xff] %v5641_v7 }
 0x17d   : > { %1410 = vmatpush.msra.mxu0 %v5176_v35  ;;  %1394 = vmatpush.msra.mxu2 %v5169_v14  ;;  %v5659_v14 = vperm.slane %v952_v19, 1 }
 0x17f   : > { %1411 = vmatpush.msra.mxu0 %v5194_v39  ;;  %1395 = vmatpush.msra.mxu2 %v5187_v16  ;;  %v5643_v33 = vpop.f32.mrf.mxu0 }
 0x180   : > { %9880 = vst [vmem:[#allocation45_spill] sm:$0xff] %v5643_v33 }
 0x181   : > { %1412 = vmatpush.msra.mxu0 %v5212_v24  ;;  %1396 = vmatpush.msra.mxu2 %v5205_v21  ;;  %v1208_v21 = vpop.f32.mrf.mxu3 }
 0x183   : > { %1413 = vmatpush.msra.mxu0 %v5226_v25  ;;  %1397 = vmatpush.msra.mxu2 %v5219_v43  ;;  %v5645_v18 = vpop.f32.mrf.mxu2  ;;  %v1188_v43 = vpop.f32.mrf.mxu1 }
 0x184   : > { %9881 = vst [vmem:[#allocation46_spill] sm:$0xff] %v5645_v18 }
 0x185   : > { %1414 = vmatpush.msra.mxu0 %v5235_v44 }
 0x187   : > { %1415 = vmatpush.msra.mxu0 %v5245_v45  ;;  %v5647_v2 = vpop.f32.mrf.mxu0 }
 0x188   : > { %9882 = vst [vmem:[#allocation50_spill] sm:$0xff] %v5647_v2 }
 0x189   : > { %1416 = vmatpush.msra.mxu0 %v5258_v31 }
 0x18b   : > { %1417 = vmatpush.msra.mxu0 %v5271_v34  ;;  %v5649_v17 = vpop.f32.mrf.mxu2 }
 0x18c   : > { %9883 = vst [vmem:[#allocation51_spill] sm:$0xff] %v5649_v17  ;;  %v9886_v17 = vld [vmem:[#allocation70_spill] sm:$0xff] }
 0x18d   : > { %v642_v13 = vadd.f32 %v9886_v17, %v5303_v52  ;;  %v5726_v17 = vld [vmem:[%s8998_s3 + $0x98] sm:$0xff] }
 0x18f   : > { %v5651_v4 = vpop.f32.mrf.mxu0  ;;  %v683_v34 = vadd.f32 %v5587_v12, %v642_v13  ;;  %v5669_v13 = vld [vmem:[%s8998_s3 + $0xf8] sm:$0xff] }
 0x190   : > { %9884 = vst [vmem:[#allocation55_spill] sm:$0xff] %v5651_v4 }
 0x1a1   : > { %v1275_v31 = vpop.f32.mrf.mxu1 }
 0x1a7   : > { %v1068_v7 = vpop.f32.mrf.mxu2 }
 0x1a8   : > { %v1069_v33 = vadd.f32 %v1068_v7, %v5656_v47  ;;  %v724_v7 = vadd.f32 %v5592_v56, %v683_v34  ;;  %v9887_v34 = vld [vmem:[#allocation52_spill] sm:$0xff]  ;;  %v5713_v56 = vld [vmem:[%s8998_s3 + $0xa8] sm:$0xff] }
 0x1a9   : > { %v1088_v18 = vpop.f32.mrf.mxu0  ;;  %v519_v12 = vadd.f32 %v9887_v34, %v5275_v48  ;;  %v9891_v34 = vld [vmem:[#allocation47_spill] sm:$0xff] }
 0x1aa   : > { %v1089_v16 = vadd.f32 %v1088_v18, %v1069_v33 }
 0x1ac   : > { %v1109_v2 = vadd.f32 %v1108_v0, %v1089_v16 }
 0x1ae   : > { %v1129_v4 = vadd.f32 %v1128_v5, %v1109_v2  ;;  %v5733_v5 = vld [vmem:[%s8998_s3 + $0x1d8] sm:$0xff] }
 0x1af   : > { %v1148_v10 = vpop.f32.mrf.mxu2 }
 0x1b0   : > { %3225 = vtanh.f32 %v1129_v4  ;;  %v1149_v45 = vadd.f32 %v1148_v10, %v5659_v14  ;;  %v5675_v10 = vld [vmem:[%s8998_s3 + $0xe8] sm:$0xff]  ;;  %v9888_v4 = vld [vmem:[#allocation65_spill] sm:$0xff] }
 0x1b1   : > { %v1295_v44 = vpop.f32.mrf.mxu3  ;;  %v1168_v25 = vpop.f32.mrf.mxu0  ;;  %v560_v2 = vadd.f32 %v9888_v4, %v519_v12  ;;  %v5768_v4 = vld [vmem:[%s8998_s3 + $0x68] sm:$0xff] }
 0x1b2   : > { %v1296_v47 = vadd.f32 %v1295_v44, %v1275_v31  ;;  %v1169_v33 = vadd.f32 %v1168_v25, %v1149_v45  ;;  %v5691_v44 = vld [vmem:[%s8998_s3 + $0xc8] sm:$0xff]  ;;  %v5698_v45 = vld [vmem:[%s8998_s3 + $0xb8] sm:$0xff] }
 0x1b3   : > { %v5704_v31 = vld [vmem:[%s8998_s3 + $0x1f8] sm:$0xff]  ;;  %v601_v12 = vadd.f32 %v9891_v34, %v560_v2  ;;  %v5800_v34 = vld [vmem:[%s8998_s3 + $0x188] sm:$0xff] }
 0x1b4   : > { %v1299_v16 = vadd.f32 %v1296_v47, %v724_v7  ;;  %v1189_v19 = vadd.f32 %v1188_v43, %v1169_v33  ;;  %v5719_v47 = vld [vmem:[%s8998_s3 + $0x1e8] sm:$0xff]  ;;  %v5781_v2 = vld [vmem:[%s8998_s3 + $0x58] sm:$0xff] }
 0x1b5   : > { %v5741_v7 = vld [vmem:[%s8998_s3 + $0x88] sm:$0xff] }
 0x1b6   : > { %v3226_v0 = vpop.eup %3225  ;;  %3227 = vtanh.f32 %v1299_v16  ;;  %v1209_v18 = vadd.f32 %v1208_v21, %v1189_v19  ;;  %v5683_v21 = vld [vmem:[%s8998_s3 + $0xd8] sm:$0xff]  ;;  %v5747_v33 = vld [vmem:[%s8998_s3 + $0x1c8] sm:$0xff] }
 0x1b7   : > { %1358 = vmatmul.f32.vlgmr.msra.gmra.mxu1 %v3226_v0  ;;  %v5754_v19 = vld [vmem:[%s8998_s3 + $0x78] sm:$0xff] }
 0x1b8   : > { %3229 = vtanh.f32 %v1209_v18  ;;  %1509 = vmatpush.msra.mxu1 %v5669_v13  ;;  %9889 = vst [vmem:[#allocation59_spill] sm:$0xff] %v5754_v19 }
 0x1ba   : > { %1510 = vmatpush.msra.mxu1 %v5675_v10 }
 0x1bc   : > { %v5678_v43 = vpop.eup %3227  ;;  %1511 = vmatpush.msra.mxu1 %v5683_v21 }
 0x1bd   : > { %1338 = vmatmul.f32.vlgmr.msrb.gmra.mxu0 %v5678_v43 }
 0x1be   : > { %v3230_v25 = vpop.eup %3229  ;;  %1489 = vmatpush.msrb.mxu0 %v5366_v59  ;;  %1512 = vmatpush.msra.mxu1 %v5691_v44 }
 0x1bf   : > { %1378 = vmatmul.f32.vlgmr.msra.gmra.mxu3 %v3230_v25  ;;  %1438 = vmatmul.f32.vlgmr.msrb.gmra.mxu1 %v3226_v0  ;;  %v5760_v0 = vld [vmem:[%s8998_s3 + $0x1b8] sm:$0xff] }
 0x1c0   : > { %1490 = vmatpush.msrb.mxu0 %v5380_v49  ;;  %1513 = vmatpush.msra.mxu1 %v5698_v45  ;;  %9890 = vst [vmem:[#allocation60_spill] sm:$0xff] %v5760_v0 }
 0x1c1   : > { %1529 = vmatpush.msra.mxu3 %v5704_v31 }
 0x1c2   : > { %1491 = vmatpush.msrb.mxu0 %v5394_v51  ;;  %1514 = vmatpush.msra.mxu1 %v5713_v56 }
 0x1c3   : > { %1530 = vmatpush.msra.mxu3 %v5719_v47 }
 0x1c4   : > { %1492 = vmatpush.msrb.mxu0 %v5408_v58  ;;  %1515 = vmatpush.msra.mxu1 %v5726_v17 }
 0x1c5   : > { %1418 = vmatmul.f32.vlgmr.msra.gmra.mxu0 %v5678_v43  ;;  %1531 = vmatpush.msra.mxu3 %v5733_v5 }
 0x1c6   : > { %1493 = vmatpush.msrb.mxu0 %v5422_v62  ;;  %1516 = vmatpush.msra.mxu1 %v5741_v7 }
 0x1c7   : > { %1532 = vmatpush.msra.mxu3 %v5747_v33  ;;  %v1235_v16 = vpop.f32.mrf.mxu2 }
 0x1c8   : > { %1494 = vmatpush.msrb.mxu0 %v5436_v55  ;;  %1458 = vmatmul.f32.vlgmr.msrb.gmra.mxu3 %v3230_v25 }
 0x1c9   : > { %1517 = vmatpush.msra.mxu1 %v5754_v19  ;;  %1533 = vmatpush.msra.mxu3 %v5760_v0  ;;  %v1255_v18 = vpop.f32.mrf.mxu0  ;;  %v5774_v19 = vld [vmem:[%s8998_s3 + $0x1a8] sm:$0xff] }
 0x1ca   : > { %1495 = vmatpush.msrb.mxu0 %v5450_v42  ;;  %v1256_v25 = vadd.f32 %v1255_v18, %v1235_v16  ;;  %v5787_v16 = vld [vmem:[%s8998_s3 + $0x198] sm:$0xff]  ;;  %v5794_v18 = vld [vmem:[%s8998_s3 + $0x48] sm:$0xff] }
 0x1cb   : > { %1518 = vmatpush.msra.mxu1 %v5768_v4  ;;  %1534 = vmatpush.msra.mxu3 %v5774_v19 }
 0x1cc   : > { %v1298_v0 = vadd.f32 %v1256_v25, %v601_v12  ;;  %1496 = vmatpush.msrb.mxu0 %v5464_v60  ;;  %v5813_v12 = vld [vmem:[%s8998_s3 + $0x178] sm:$0xff]  ;;  %v5820_v25 = vld [vmem:[%s8998_s3 + $0x28] sm:$0xff] }
 0x1cd   : > { %1519 = vmatpush.msra.mxu1 %v5781_v2  ;;  %1535 = vmatpush.msra.mxu3 %v5787_v16  ;;  %9893 = vst [vmem:[#allocation15_spill] sm:$0xff] %v5820_v25 }
 0x1ce   : > { %3231 = vtanh.f32 %v1298_v0  ;;  %1497 = vmatpush.msrb.mxu0 %v5478_v53  ;;  %v5807_v0 = vld [vmem:[%s8998_s3 + $0x38] sm:$0xff] }
 0x1cf   : > { %1520 = vmatpush.msra.mxu1 %v5794_v18  ;;  %1536 = vmatpush.msra.mxu3 %v5800_v34  ;;  %9892 = vst [vmem:[#allocation63_spill] sm:$0xff] %v5807_v0 }
 0x1d0   : > { %1498 = vmatpush.msrb.mxu0 %v5492_v38 }
 0x1d1   : > { %1521 = vmatpush.msra.mxu1 %v5807_v0  ;;  %1537 = vmatpush.msra.mxu3 %v5813_v12  ;;  %v5826_v0 = vld [vmem:[%s8998_s3 + $0x168] sm:$0xff] }
 0x1d2   : > { %1499 = vmatpush.msrb.mxu0 %v5506_v37  ;;  %v5835_v37 = vld [vmem:[%s8998_s3 + $0x18] sm:$0xff] }
 0x1d3   : > { %1522 = vmatpush.msra.mxu1 %v5820_v25  ;;  %1538 = vmatpush.msra.mxu3 %v5826_v0  ;;  %9894 = vst [vmem:[#allocation64_spill] sm:$0xff] %v5835_v37  ;;  %v5841_v25 = vld [vmem:[%s8998_s3 + $0x158] sm:$0xff] }
 0x1d4   : > { %v5829_v38 = vpop.eup %3231  ;;  %1500 = vmatpush.msrb.mxu0 %v5520_v23  ;;  %v5850_v23 = vld [vmem:[%s8998_s3 + $0x8] sm:$0xff] }
 0x1d5   : > { %1523 = vmatpush.msra.mxu1 %v5835_v37  ;;  %1539 = vmatpush.msra.mxu3 %v5841_v25  ;;  %v5857_v37 = vld [vmem:[%s8998_s3 + $0x148] sm:$0xff] }
 0x1d6   : > { %1501 = vmatpush.msrb.mxu0 %v5528_v11  ;;  %1318 = vmatmul.f32.vlgmr.msrb.gmra.mxu2 %v5829_v38  ;;  %v5866_v11 = vld [vmem:[%s8998_s3 + $0x138] sm:$0xff] }
 0x1d7   : > { %1469 = vmatpush.msrb.mxu2 %v5325_v50  ;;  %1524 = vmatpush.msra.mxu1 %v5850_v23  ;;  %9895 = vst [vmem:[#allocation68_spill] sm:$0xff] %v5866_v11 }
 0x1d8   : > { %1502 = vmatpush.msrb.mxu0 %v5537_v40  ;;  %1540 = vmatpush.msra.mxu3 %v5857_v37  ;;  %v5873_v40 = vld [vmem:[%s8999_s4 + $0x2f0] sm:$0xff] }
 0x1d9   : > { %1470 = vmatpush.msrb.mxu2 %v5333_v54  ;;  %1525 = vmatmul.f32.vlgmr.msra.gmra.mxu1 %v5829_v38 }
 0x1da   : > { %1503 = vmatpush.msrb.mxu0 %v5546_v28  ;;  %1541 = vmatpush.msra.mxu3 %v5866_v11  ;;  %v5880_v28 = vld [vmem:[%s8998_s3 + $0x128] sm:$0xff]  ;;  %v5888_v11 = vld [vmem:[%s8998_s3 + $0x118] sm:$0xff] }
 0x1db   : > { %1471 = vmatpush.msrb.mxu2 %v5341_v57  ;;  %1593 = vmatpush.msrb.mxu1 %v5873_v40  ;;  %9896 = vst [vmem:[#allocation18_spill] sm:$0xff] %v5880_v28 }
 0x1dc   : > { %1504 = vmatpush.msrb.mxu0 %v5555_v36  ;;  %1542 = vmatpush.msra.mxu3 %v5880_v28  ;;  %9897 = vst [vmem:[#allocation71_spill] sm:$0xff] %v5888_v11  ;;  %v5896_v36 = vld [vmem:[%s8999_s4 + $0x2e0] sm:$0xff]  ;;  %v5902_v28 = vld [vmem:[%s8998_s3 + $0x108] sm:$0xff] }
 0x1dd   : > { %1472 = vmatpush.msrb.mxu2 %v5351_v30  ;;  %1505 = vmatmul.f32.vlgmr.msrb.gmra.mxu0 %v5678_v43  ;;  %9898 = vst [vmem:[#allocation74_spill] sm:$0xff] %v5896_v36 }
 0x1de   : > { %1543 = vmatpush.msra.mxu3 %v5888_v11  ;;  %1398 = vmatmul.f32.vlgmr.msra.gmra.mxu2 %v5829_v38  ;;  %9899 = vst [vmem:[#allocation21_spill] sm:$0xff] %v5902_v28  ;;  %v5908_v11 = vld [vmem:[%s8999_s4 + $0x1f0] sm:$0xff] }
 0x1df   : > { %1473 = vmatpush.msrb.mxu2 %v5360_v61  ;;  %1594 = vmatpush.msrb.mxu1 %v5896_v36  ;;  %9900 = vst [vmem:[#allocation76_spill] sm:$0xff] %v5908_v11  ;;  %v5916_v61 = vld [vmem:[%s8999_s4 + $0x2d0] sm:$0xff] }
 0x1e0   : > { %1544 = vmatpush.msra.mxu3 %v5902_v28  ;;  %1573 = vmatpush.msra.mxu0 %v5908_v11  ;;  %9901 = vst [vmem:[#allocation79_spill] sm:$0xff] %v5916_v61  ;;  %v5922_v28 = vld [vmem:[%s8999_s4 + $0x1e0] sm:$0xff]  ;;  %v9903_v36 = vld [vmem:[#allocation7_spill] sm:$0xff] }
 0x1e1   : > { %1474 = vmatpush.msrb.mxu2 %v5374_v46  ;;  %1545 = vmatmul.f32.vlgmr.msra.gmra.mxu3 %v5678_v43  ;;  %9902 = vst [vmem:[#allocation24_spill] sm:$0xff] %v5922_v28  ;;  %v5929_v43 = vld [vmem:[%s8999_s4 + $0x3f0] sm:$0xff]  ;;  %v5935_v11 = vld [vmem:[%s8999_s4 + $0x2c0] sm:$0xff] }
 0x1e2   : > { %1595 = vmatpush.msrb.mxu1 %v5916_v61  ;;  %1574 = vmatpush.msra.mxu0 %v5922_v28  ;;  %9904 = vst [vmem:[#allocation80_spill] sm:$0xff] %v5929_v43  ;;  %v5941_v28 = vld [vmem:[%s8999_s4 + $0x1d0] sm:$0xff] }
 0x1e3   : > { %1475 = vmatpush.msrb.mxu2 %v9903_v36  ;;  %1613 = vmatpush.msrb.mxu3 %v5929_v43  ;;  %9905 = vst [vmem:[#allocation25_spill] sm:$0xff] %v5935_v11  ;;  %v9907_v36 = vld [vmem:[#allocation8_spill] sm:$0xff]  ;;  %v5948_v43 = vld [vmem:[%s8999_s4 + $0x3e0] sm:$0xff] }
 0x1e4   : > { %1596 = vmatpush.msrb.mxu1 %v5935_v11  ;;  %9906 = vst [vmem:[#allocation28_spill] sm:$0xff] %v5941_v28  ;;  %1575 = vmatpush.msra.mxu0 %v5941_v28  ;;  %v5954_v11 = vld [vmem:[%s8999_s4 + $0x2b0] sm:$0xff]  ;;  %v5960_v28 = vld [vmem:[%s8999_s4 + $0x1c0] sm:$0xff] }
 0x1e5   : > { %1476 = vmatpush.msrb.mxu2 %v9907_v36  ;;  %9908 = vst [vmem:[#allocation32_spill] sm:$0xff] %v5948_v43  ;;  %1614 = vmatpush.msrb.mxu3 %v5948_v43  ;;  %v9911_v36 = vld [vmem:[#allocation9_spill] sm:$0xff]  ;;  %v5967_v43 = vld [vmem:[%s8999_s4 + $0x3d0] sm:$0xff] }
 0x1e6   : > { %9909 = vst [vmem:[#allocation31_spill] sm:$0xff] %v5954_v11  ;;  %1597 = vmatpush.msrb.mxu1 %v5954_v11  ;;  %1576 = vmatpush.msra.mxu0 %v5960_v28  ;;  %v5973_v11 = vld [vmem:[%s8999_s4 + $0x2a0] sm:$0xff]  ;;  %v9938_v61 = vld [vmem:[#allocation20_spill] sm:$0xff] }
 0x1e7   : > { %9910 = vst [vmem:[#allocation36_spill] sm:$0xff] %v5960_v28  ;;  %1477 = vmatpush.msrb.mxu2 %v9911_v36  ;;  %1615 = vmatpush.msrb.mxu3 %v5967_v43  ;;  %v5979_v28 = vld [vmem:[%s8999_s4 + $0x1b0] sm:$0xff]  ;;  %v9915_v36 = vld [vmem:[#allocation10_spill] sm:$0xff] }
 0x1e8   : > { %9912 = vst [vmem:[#allocation35_spill] sm:$0xff] %v5967_v43  ;;  %1598 = vmatpush.msrb.mxu1 %v5973_v11  ;;  %1577 = vmatpush.msra.mxu0 %v5979_v28  ;;  %v5986_v43 = vld [vmem:[%s8999_s4 + $0x3c0] sm:$0xff] }
 0x1e9   : > { %9913 = vst [vmem:[#allocation40_spill] sm:$0xff] %v5973_v11  ;;  %1478 = vmatpush.msrb.mxu2 %v9915_v36  ;;  %1616 = vmatpush.msrb.mxu3 %v5986_v43  ;;  %v5992_v11 = vld [vmem:[%s8999_s4 + $0x290] sm:$0xff] }
 0x1ea   : > { %9914 = vst [vmem:[#allocation39_spill] sm:$0xff] %v5979_v28  ;;  %1599 = vmatpush.msrb.mxu1 %v5992_v11  ;;  %v5998_v28 = vld [vmem:[%s8999_s4 + $0x1a0] sm:$0xff]  ;;  %v9919_v36 = vld [vmem:[#allocation11_spill] sm:$0xff] }
 0x1eb   : > { %9916 = vst [vmem:[#allocation44_spill] sm:$0xff] %v5986_v43  ;;  %1578 = vmatpush.msra.mxu0 %v5998_v28  ;;  %1479 = vmatpush.msrb.mxu2 %v9919_v36  ;;  %v6005_v43 = vld [vmem:[%s8999_s4 + $0x3b0] sm:$0xff] }
 0x1ec   : > { %9917 = vst [vmem:[#allocation43_spill] sm:$0xff] %v5992_v11  ;;  %1617 = vmatpush.msrb.mxu3 %v6005_v43  ;;  %v6011_v11 = vld [vmem:[%s8999_s4 + $0x280] sm:$0xff]  ;;  %v9923_v36 = vld [vmem:[#allocation12_spill] sm:$0xff] }
 0x1ed   : > { %9918 = vst [vmem:[#allocation49_spill] sm:$0xff] %v5998_v28  ;;  %1600 = vmatpush.msrb.mxu1 %v6011_v11  ;;  %v6017_v28 = vld [vmem:[%s8999_s4 + $0x190] sm:$0xff]  ;;  %1480 = vmatpush.msrb.mxu2 %v9923_v36  ;;  %v9927_v36 = vld [vmem:[#allocation13_spill] sm:$0xff] }
 0x1ee   : > { %9920 = vst [vmem:[#allocation48_spill] sm:$0xff] %v6005_v43  ;;  %1579 = vmatpush.msra.mxu0 %v6017_v28  ;;  %v6024_v43 = vld [vmem:[%s8999_s4 + $0x3a0] sm:$0xff] }
 0x1ef   : > { %9921 = vst [vmem:[#allocation54_spill] sm:$0xff] %v6011_v11  ;;  %1618 = vmatpush.msrb.mxu3 %v6024_v43  ;;  %v6030_v11 = vld [vmem:[%s8999_s4 + $0x270] sm:$0xff]  ;;  %1481 = vmatpush.msrb.mxu2 %v9927_v36  ;;  %v9931_v36 = vld [vmem:[#allocation14_spill] sm:$0xff] }
 0x1f0   : > { %9922 = vst [vmem:[#allocation53_spill] sm:$0xff] %v6017_v28  ;;  %1601 = vmatpush.msrb.mxu1 %v6030_v11  ;;  %v6036_v28 = vld [vmem:[%s8999_s4 + $0x180] sm:$0xff] }
 0x1f1   : > { %9924 = vst [vmem:[#allocation58_spill] sm:$0xff] %v6024_v43  ;;  %1580 = vmatpush.msra.mxu0 %v6036_v28  ;;  %v6043_v43 = vld [vmem:[%s8999_s4 + $0x390] sm:$0xff]  ;;  %1482 = vmatpush.msrb.mxu2 %v9931_v36  ;;  %v9935_v36 = vld [vmem:[#allocation17_spill] sm:$0xff] }
 0x1f2   : > { %9925 = vst [vmem:[#allocation57_spill] sm:$0xff] %v6030_v11  ;;  %1619 = vmatpush.msrb.mxu3 %v6043_v43  ;;  %v6049_v11 = vld [vmem:[%s8999_s4 + $0x260] sm:$0xff] }
 0x1f3   : > { %9926 = vst [vmem:[#allocation62_spill] sm:$0xff] %v6036_v28  ;;  %1602 = vmatpush.msrb.mxu1 %v6049_v11  ;;  %v6055_v28 = vld [vmem:[%s8999_s4 + $0x170] sm:$0xff]  ;;  %1483 = vmatpush.msrb.mxu2 %v9935_v36 }
 0x1f4   : > { %9928 = vst [vmem:[#allocation61_spill] sm:$0xff] %v6043_v43  ;;  %1581 = vmatpush.msra.mxu0 %v6055_v28  ;;  %v6062_v43 = vld [vmem:[%s8999_s4 + $0x380] sm:$0xff] }
 0x1f5   : > { %9929 = vst [vmem:[#allocation67_spill] sm:$0xff] %v6049_v11  ;;  %1620 = vmatpush.msrb.mxu3 %v6062_v43  ;;  %v6068_v11 = vld [vmem:[%s8999_s4 + $0x250] sm:$0xff]  ;;  %1484 = vmatpush.msrb.mxu2 %v9938_v61 }
 0x1f6   : > { %9930 = vst [vmem:[#allocation66_spill] sm:$0xff] %v6055_v28  ;;  %1603 = vmatpush.msrb.mxu1 %v6068_v11  ;;  %v6074_v28 = vld [vmem:[%s8999_s4 + $0x160] sm:$0xff]  ;;  %1485 = vmatmul.f32.vlgmr.msrb.gmra.mxu2 %v5829_v38 }
 0x1f7   : > { %9932 = vst [vmem:[#allocation73_spill] sm:$0xff] %v6062_v43  ;;  %1582 = vmatpush.msra.mxu0 %v6074_v28  ;;  %v6081_v43 = vld [vmem:[%s8999_s4 + $0x370] sm:$0xff]  ;;  %v6115_v38 = vld [vmem:[%s8999_s4 + $0x220] sm:$0xff] }
 0x1f8   : > { %9933 = vst [vmem:[#allocation72_spill] sm:$0xff] %v6068_v11  ;;  %1621 = vmatpush.msrb.mxu3 %v6081_v43  ;;  %v6087_v11 = vld [vmem:[%s8999_s4 + $0x240] sm:$0xff] }
 0x1f9   : > { %9934 = vst [vmem:[#allocation78_spill] sm:$0xff] %v6074_v28  ;;  %1604 = vmatpush.msrb.mxu1 %v6087_v11  ;;  %1583 = vmatpush.msra.mxu0 %v9860_v63  ;;  %v6095_v28 = vld [vmem:[%s8999_s4 + $0x360] sm:$0xff]  ;;  %v6108_v63 = vld [vmem:[%s8999_s4 + $0xf0] sm:$0xff] }
 0x1fa   : > { %9936 = vst [vmem:[#allocation77_spill] sm:$0xff] %v6081_v43  ;;  %1622 = vmatpush.msrb.mxu3 %v6095_v28  ;;  %v6102_v43 = vld [vmem:[%s8999_s4 + $0x230] sm:$0xff]  ;;  %1553 = vmatpush.msra.mxu2 %v6108_v63 }
 0x1fb   : > { %9937 = vst [vmem:[#allocation81_spill] sm:$0xff] %v6087_v11  ;;  %1605 = vmatpush.msrb.mxu1 %v6102_v43  ;;  %1584 = vmatpush.msra.mxu0 %v9862_v26  ;;  %v6134_v26 = vld [vmem:[%s8999_s4 + $0x210] sm:$0xff]  ;;  %v10022_v11 = vld [vmem:[#allocation33_spill] sm:$0xff] }
 0x1fc   : > { %9939 = vst [vmem:[#allocation82_spill] sm:$0xff] %v6095_v28  ;;  %v6121_v28 = vld [vmem:[%s8999_s4 + $0x350] sm:$0xff] }
 0x1fd   : > { %9940 = vst [vmem:[#allocation83_spill] sm:$0xff] %v6102_v43  ;;  %1606 = vmatpush.msrb.mxu1 %v6115_v38  ;;  %1623 = vmatpush.msrb.mxu3 %v6121_v28 }
 0x1fe   : > { %9941 = vst [vmem:[#allocation85_spill] sm:$0xff] %v6108_v63  ;;  %v6127_v63 = vld [vmem:[%s8999_s4 + $0xe0] sm:$0xff]  ;;  %1585 = vmatpush.msra.mxu0 %v9865_v1 }
 0x1ff   : > { %9942 = vst [vmem:[#allocation87_spill] sm:$0xff] %v6115_v38  ;;  %1554 = vmatpush.msra.mxu2 %v6127_v63  ;;  %1607 = vmatpush.msrb.mxu1 %v6134_v26  ;;  %v6153_v1 = vld [vmem:[%s8999_s4 + $0x200] sm:$0xff] }
 0x200   : > { %9943 = vst [vmem:[#allocation88_spill] sm:$0xff] %v6121_v28  ;;  %v6140_v28 = vld [vmem:[%s8999_s4 + $0x340] sm:$0xff]  ;;  %1586 = vmatpush.msra.mxu0 %v9867_v3 }
 0x201   : > { %9944 = vst [vmem:[#allocation90_spill] sm:$0xff] %v6127_v63  ;;  %1624 = vmatpush.msrb.mxu3 %v6140_v28  ;;  %v6146_v63 = vld [vmem:[%s8999_s4 + $0xd0] sm:$0xff]  ;;  %1608 = vmatpush.msrb.mxu1 %v6153_v1  ;;  %v6171_v3 = vld [vmem:[%s8999_s4 + $0xc0] sm:$0xff] }
 0x202   : > { %9945 = vst [vmem:[#allocation92_spill] sm:$0xff] %v6134_v26  ;;  %1555 = vmatpush.msra.mxu2 %v6146_v63  ;;  %1587 = vmatpush.msra.mxu0 %v9869_v8  ;;  %v6197_v8 = vld [vmem:[%s8999_s4 + $0x310] sm:$0xff] }
 0x203   : > { %9946 = vst [vmem:[#allocation95_spill] sm:$0xff] %v6140_v28  ;;  %v6159_v28 = vld [vmem:[%s8999_s4 + $0x330] sm:$0xff] }
 0x204   : > { %9947 = vst [vmem:[#allocation70_spill] sm:$0xff] %v6146_v63  ;;  %1625 = vmatpush.msrb.mxu3 %v6159_v28  ;;  %v6165_v63 = vld [vmem:[%s8999_s4 + $0x2f8] sm:$0xff]  ;;  %1556 = vmatpush.msra.mxu2 %v6171_v3 }
 0x205   : > { %9948 = vst [vmem:[#allocation52_spill] sm:$0xff] %v6153_v1  ;;  %1673 = vmatpush.msra.mxu1 %v6165_v63  ;;  %1588 = vmatpush.msra.mxu0 %v5029_v41  ;;  %v6216_v41 = vld [vmem:[%s8999_s4 + $0x300] sm:$0xff] }
 0x206   : > { %9949 = vst [vmem:[#allocation65_spill] sm:$0xff] %v6159_v28  ;;  %v6178_v28 = vld [vmem:[%s8999_s4 + $0x320] sm:$0xff] }
 0x207   : > { %9950 = vst [vmem:[#allocation47_spill] sm:$0xff] %v6165_v63  ;;  %1626 = vmatpush.msrb.mxu3 %v6178_v28  ;;  %v6184_v63 = vld [vmem:[%s8999_s4 + $0x2e8] sm:$0xff]  ;;  %1653 = vmatpush.msrb.mxu0 %v5050_v6  ;;  %v6235_v6 = vld [vmem:[%s8999_s4 + $0x3f8] sm:$0xff] }
 0x208   : > { %9951 = vst [vmem:[#allocation123_spill] sm:$0xff] %v6171_v3  ;;  %1674 = vmatpush.msra.mxu1 %v6184_v63  ;;  %v6190_v3 = vld [vmem:[%s8999_s4 + $0xb0] sm:$0xff] }
 0x209   : > { %9952 = vst [vmem:[#allocation124_spill] sm:$0xff] %v6178_v28  ;;  %1557 = vmatpush.msra.mxu2 %v6190_v3  ;;  %1627 = vmatpush.msrb.mxu3 %v6197_v8  ;;  %v6203_v28 = vld [vmem:[%s8999_s4 + $0x2d8] sm:$0xff] }
 0x20a   : > { %9953 = vst [vmem:[#allocation125_spill] sm:$0xff] %v6184_v63  ;;  %1675 = vmatpush.msra.mxu1 %v6203_v28  ;;  %1654 = vmatpush.msrb.mxu0 %v5066_v9  ;;  %v6254_v9 = vld [vmem:[%s8999_s4 + $0x3e8] sm:$0xff] }
 0x20b   : > { %9954 = vst [vmem:[#allocation126_spill] sm:$0xff] %v6190_v3  ;;  %v6209_v3 = vld [vmem:[%s8999_s4 + $0xa0] sm:$0xff]  ;;  %1628 = vmatpush.msrb.mxu3 %v6216_v41 }
 0x20c   : > { %9955 = vst [vmem:[#allocation127_spill] sm:$0xff] %v6197_v8  ;;  %1558 = vmatpush.msra.mxu2 %v6209_v3  ;;  %v6222_v8 = vld [vmem:[%s8999_s4 + $0x2c8] sm:$0xff]  ;;  %1655 = vmatpush.msrb.mxu0 %v5082_v15  ;;  %v6273_v15 = vld [vmem:[%s8999_s4 + $0x3d8] sm:$0xff] }
 0x20d   : > { %9956 = vst [vmem:[#allocation128_spill] sm:$0xff] %v6203_v28  ;;  %1676 = vmatpush.msra.mxu1 %v6222_v8  ;;  %1693 = vmatpush.msra.mxu3 %v6235_v6 }
 0x20e   : > { %9957 = vst [vmem:[#allocation129_spill] sm:$0xff] %v6209_v3  ;;  %v6228_v3 = vld [vmem:[%s8999_s4 + $0x90] sm:$0xff]  ;;  %1656 = vmatpush.msrb.mxu0 %v5096_v22  ;;  %v6292_v22 = vld [vmem:[%s8999_s4 + $0x3c8] sm:$0xff] }
 0x20f   : > { %9958 = vst [vmem:[#allocation130_spill] sm:$0xff] %v6216_v41  ;;  %1559 = vmatpush.msra.mxu2 %v6228_v3  ;;  %v6241_v41 = vld [vmem:[%s8999_s4 + $0x2b8] sm:$0xff]  ;;  %1694 = vmatpush.msra.mxu3 %v6254_v9 }
 0x210   : > { %9959 = vst [vmem:[#allocation131_spill] sm:$0xff] %v6222_v8  ;;  %1677 = vmatpush.msra.mxu1 %v6241_v41  ;;  %1657 = vmatpush.msrb.mxu0 %v5112_v20  ;;  %v6311_v20 = vld [vmem:[%s8999_s4 + $0x3b8] sm:$0xff] }
 0x211   : > { %9960 = vst [vmem:[#allocation132_spill] sm:$0xff] %v6228_v3  ;;  %v6247_v3 = vld [vmem:[%s8999_s4 + $0x80] sm:$0xff]  ;;  %1695 = vmatpush.msra.mxu3 %v6273_v15 }
 0x212   : > { %9961 = vst [vmem:[#allocation133_spill] sm:$0xff] %v6235_v6  ;;  %1560 = vmatpush.msra.mxu2 %v6247_v3  ;;  %v6260_v6 = vld [vmem:[%s8999_s4 + $0x2a8] sm:$0xff]  ;;  %1658 = vmatpush.msrb.mxu0 %v5130_v27 }
 0x213   : > { %9962 = vst [vmem:[#allocation134_spill] sm:$0xff] %v6241_v41  ;;  %1678 = vmatpush.msra.mxu1 %v6260_v6  ;;  %1696 = vmatpush.msra.mxu3 %v6292_v22  ;;  %v6330_v27 = vld [vmem:[%s8999_s4 + $0x3a8] sm:$0xff] }
 0x214   : > { %9963 = vst [vmem:[#allocation135_spill] sm:$0xff] %v6247_v3  ;;  %v6266_v3 = vld [vmem:[%s8999_s4 + $0x70] sm:$0xff]  ;;  %1659 = vmatpush.msrb.mxu0 %v5146_v29  ;;  %v6349_v29 = vld [vmem:[%s8999_s4 + $0x398] sm:$0xff] }
 0x215   : > { %9964 = vst [vmem:[#allocation136_spill] sm:$0xff] %v6254_v9  ;;  %1561 = vmatpush.msra.mxu2 %v6266_v3  ;;  %v6279_v9 = vld [vmem:[%s8999_s4 + $0x298] sm:$0xff]  ;;  %1697 = vmatpush.msra.mxu3 %v6311_v20 }
 0x216   : > { %9965 = vst [vmem:[#allocation137_spill] sm:$0xff] %v6260_v6  ;;  %1679 = vmatpush.msra.mxu1 %v6279_v9  ;;  %1660 = vmatpush.msrb.mxu0 %v5160_v32  ;;  %v6368_v32 = vld [vmem:[%s8999_s4 + $0x388] sm:$0xff]  ;;  %v10019_v6 = vld [vmem:[#allocation56_spill] sm:$0xff] }
 0x217   : > { %9966 = vst [vmem:[#allocation138_spill] sm:$0xff] %v6266_v3  ;;  %v6285_v3 = vld [vmem:[%s8999_s4 + $0x60] sm:$0xff]  ;;  %1698 = vmatpush.msra.mxu3 %v6330_v27 }
 0x218   : > { %9967 = vst [vmem:[#allocation139_spill] sm:$0xff] %v6273_v15  ;;  %1562 = vmatpush.msra.mxu2 %v6285_v3  ;;  %v6298_v15 = vld [vmem:[%s8999_s4 + $0x288] sm:$0xff]  ;;  %1661 = vmatpush.msrb.mxu0 %v5176_v35  ;;  %v6387_v35 = vld [vmem:[%s8999_s4 + $0x378] sm:$0xff] }
 0x219   : > { %9968 = vst [vmem:[#allocation140_spill] sm:$0xff] %v6279_v9  ;;  %1680 = vmatpush.msra.mxu1 %v6298_v15  ;;  %1699 = vmatpush.msra.mxu3 %v6349_v29 }
 0x21a   : > { %9969 = vst [vmem:[#allocation141_spill] sm:$0xff] %v6285_v3  ;;  %v6304_v3 = vld [vmem:[%s8999_s4 + $0x50] sm:$0xff]  ;;  %1662 = vmatpush.msrb.mxu0 %v5194_v39  ;;  %v6406_v39 = vld [vmem:[%s8999_s4 + $0x368] sm:$0xff] }
 0x21b   : > { %9970 = vst [vmem:[#allocation142_spill] sm:$0xff] %v6292_v22  ;;  %1563 = vmatpush.msra.mxu2 %v6304_v3  ;;  %v6317_v22 = vld [vmem:[%s8999_s4 + $0x278] sm:$0xff]  ;;  %1700 = vmatpush.msra.mxu3 %v6368_v32 }
 0x21c   : > { %9971 = vst [vmem:[#allocation143_spill] sm:$0xff] %v6298_v15  ;;  %1681 = vmatpush.msra.mxu1 %v6317_v22  ;;  %1663 = vmatpush.msrb.mxu0 %v5212_v24  ;;  %v9991_v24 = vld [vmem:[#allocation110_spill] sm:$0xff] }
 0x21d   : > { %9972 = vst [vmem:[#allocation144_spill] sm:$0xff] %v6304_v3  ;;  %v6323_v3 = vld [vmem:[%s8999_s4 + $0x40] sm:$0xff]  ;;  %1701 = vmatpush.msra.mxu3 %v6387_v35 }
 0x21e   : > { %9973 = vst [vmem:[#allocation145_spill] sm:$0xff] %v6311_v20  ;;  %1564 = vmatpush.msra.mxu2 %v6323_v3  ;;  %v6336_v20 = vld [vmem:[%s8999_s4 + $0x268] sm:$0xff]  ;;  %1664 = vmatpush.msrb.mxu0 %v9991_v24 }
 0x21f   : > { %9974 = vst [vmem:[#allocation146_spill] sm:$0xff] %v6317_v22  ;;  %1682 = vmatpush.msra.mxu1 %v6336_v20  ;;  %1702 = vmatpush.msra.mxu3 %v6406_v39  ;;  %v9995_v24 = vld [vmem:[#allocation111_spill] sm:$0xff] }
 0x220   : > { %9975 = vst [vmem:[#allocation147_spill] sm:$0xff] %v6323_v3  ;;  %v6342_v3 = vld [vmem:[%s8999_s4 + $0x30] sm:$0xff]  ;;  %1665 = vmatpush.msrb.mxu0 %v9995_v24  ;;  %v9999_v24 = vld [vmem:[#allocation113_spill] sm:$0xff] }
 0x221   : > { %9976 = vst [vmem:[#allocation148_spill] sm:$0xff] %v6330_v27  ;;  %1565 = vmatpush.msra.mxu2 %v6342_v3  ;;  %v6355_v27 = vld [vmem:[%s8999_s4 + $0x258] sm:$0xff] }
 0x222   : > { %9977 = vst [vmem:[#allocation149_spill] sm:$0xff] %v6336_v20  ;;  %1683 = vmatpush.msra.mxu1 %v6355_v27  ;;  %1666 = vmatpush.msrb.mxu0 %v9999_v24  ;;  %v6476_v24 = vld [vmem:[%s8999_s4 + $0x328] sm:$0xff]  ;;  %v10018_v20 = vld [vmem:[#allocation109_spill] sm:$0xff] }
 0x223   : > { %9978 = vst [vmem:[#allocation150_spill] sm:$0xff] %v6342_v3  ;;  %v6361_v3 = vld [vmem:[%s8999_s4 + $0x20] sm:$0xff] }
 0x224   : > { %9979 = vst [vmem:[#allocation151_spill] sm:$0xff] %v6349_v29  ;;  %1566 = vmatpush.msra.mxu2 %v6361_v3  ;;  %v6374_v29 = vld [vmem:[%s8999_s4 + $0x248] sm:$0xff] }
 0x225   : > { %9980 = vst [vmem:[#allocation152_spill] sm:$0xff] %v6355_v27  ;;  %1684 = vmatpush.msra.mxu1 %v6374_v29  ;;  %v10017_v27 = vld [vmem:[#allocation108_spill] sm:$0xff] }
 0x226   : > { %9981 = vst [vmem:[#allocation153_spill] sm:$0xff] %v6361_v3  ;;  %v6380_v3 = vld [vmem:[%s8999_s4 + $0x10] sm:$0xff] }
 0x227   : > { %9982 = vst [vmem:[#allocation154_spill] sm:$0xff] %v6368_v32  ;;  %1567 = vmatpush.msra.mxu2 %v6380_v3  ;;  %v6393_v32 = vld [vmem:[%s8999_s4 + $0x238] sm:$0xff] }
 0x228   : > { %9983 = vst [vmem:[#allocation155_spill] sm:$0xff] %v6374_v29  ;;  %1685 = vmatpush.msra.mxu1 %v6393_v32  ;;  %v10015_v29 = vld [vmem:[#allocation102_spill] sm:$0xff] }
 0x229   : > { %9984 = vst [vmem:[#allocation156_spill] sm:$0xff] %v6380_v3  ;;  %v6399_v3 = vld [vmem:[%s8999_s4] sm:$0xff] }
 0x22a   : > { %9985 = vst [vmem:[#allocation157_spill] sm:$0xff] %v6387_v35  ;;  %1568 = vmatpush.msra.mxu2 %v6399_v3  ;;  %v6412_v35 = vld [vmem:[%s8999_s4 + $0x228] sm:$0xff] }
 0x22b   : > { %9986 = vst [vmem:[#allocation158_spill] sm:$0xff] %v6393_v32  ;;  %1686 = vmatpush.msra.mxu1 %v6412_v35  ;;  %v10002_v32 = vld [vmem:[#allocation116_spill] sm:$0xff] }
 0x22c   : > { %9987 = vst [vmem:[#allocation159_spill] sm:$0xff] %v6399_v3  ;;  %v6418_v3 = vld [vmem:[%s8999_s4 + $0xf8] sm:$0xff]  ;;  %1667 = vmatpush.msrb.mxu0 %v10002_v32 }
 0x22d   : > { %9988 = vst [vmem:[#allocation160_spill] sm:$0xff] %v6406_v39  ;;  %1633 = vmatpush.msrb.mxu2 %v6418_v3  ;;  %v6425_v39 = vld [vmem:[%s8999_s4 + $0x358] sm:$0xff] }
 0x22e   : > { %9989 = vst [vmem:[#allocation161_spill] sm:$0xff] %v6412_v35  ;;  %1703 = vmatpush.msra.mxu3 %v6425_v39  ;;  %v6431_v35 = vld [vmem:[%s8999_s4 + $0x218] sm:$0xff] }
 0x22f   : > { %9990 = vst [vmem:[#allocation162_spill] sm:$0xff] %v6418_v3  ;;  %1687 = vmatpush.msra.mxu1 %v6431_v35  ;;  %v6437_v3 = vld [vmem:[%s8999_s4 + $0xe8] sm:$0xff]  ;;  %v6489_v32 = vld [vmem:[%s8999_s4 + $0x318] sm:$0xff] }
 0x230   : > { %9992 = vst [vmem:[#allocation110_spill] sm:$0xff] %v6425_v39  ;;  %1634 = vmatpush.msrb.mxu2 %v6437_v3  ;;  %v6444_v39 = vld [vmem:[%s8999_s4 + $0x348] sm:$0xff] }
 0x231   : > { %9993 = vst [vmem:[#allocation163_spill] sm:$0xff] %v6431_v35  ;;  %1704 = vmatpush.msra.mxu3 %v6444_v39  ;;  %v6450_v35 = vld [vmem:[%s8999_s4 + $0x208] sm:$0xff] }
 0x232   : > { %9994 = vst [vmem:[#allocation164_spill] sm:$0xff] %v6437_v3  ;;  %1688 = vmatpush.msra.mxu1 %v6450_v35  ;;  %v6456_v3 = vld [vmem:[%s8999_s4 + $0xd8] sm:$0xff] }
 0x233   : > { %9996 = vst [vmem:[#allocation111_spill] sm:$0xff] %v6444_v39  ;;  %1635 = vmatpush.msrb.mxu2 %v6456_v3  ;;  %v6463_v39 = vld [vmem:[%s8999_s4 + $0x338] sm:$0xff] }
 0x234   : > { %9997 = vst [vmem:[#allocation165_spill] sm:$0xff] %v6450_v35  ;;  %1705 = vmatpush.msra.mxu3 %v6463_v39  ;;  %v6469_v35 = vld [vmem:[%s8999_s4 + $0xc8] sm:$0xff] }
 0x235   : > { %9998 = vst [vmem:[#allocation166_spill] sm:$0xff] %v6456_v3  ;;  %1636 = vmatpush.msrb.mxu2 %v6469_v35  ;;  %v10005_v3 = vld [vmem:[#allocation118_spill] sm:$0xff] }
 0x236   : > { %10000 = vst [vmem:[#allocation113_spill] sm:$0xff] %v6463_v39  ;;  %1706 = vmatpush.msra.mxu3 %v6476_v24  ;;  %v6482_v39 = vld [vmem:[%s8999_s4 + $0xb8] sm:$0xff]  ;;  %1668 = vmatpush.msrb.mxu0 %v10005_v3 }
 0x237   : > { %10001 = vst [vmem:[#allocation167_spill] sm:$0xff] %v6469_v35  ;;  %1637 = vmatpush.msrb.mxu2 %v6482_v39  ;;  %v6507_v3 = vld [vmem:[%s8999_s4 + $0x98] sm:$0xff] }
 0x238   : > { %10003 = vst [vmem:[#allocation116_spill] sm:$0xff] %v6476_v24  ;;  %1707 = vmatpush.msra.mxu3 %v6489_v32  ;;  %v6495_v24 = vld [vmem:[%s8999_s4 + $0xa8] sm:$0xff]  ;;  %v10014_v35 = vld [vmem:[#allocation101_spill] sm:$0xff] }
 0x239   : > { %10004 = vst [vmem:[#allocation168_spill] sm:$0xff] %v6482_v39  ;;  %1638 = vmatpush.msrb.mxu2 %v6495_v24  ;;  %v6501_v39 = vld [vmem:[%s8999_s4 + $0x308] sm:$0xff] }
 0x23a   : > { %10006 = vst [vmem:[#allocation118_spill] sm:$0xff] %v6489_v32  ;;  %1708 = vmatpush.msra.mxu3 %v6501_v39  ;;  %v6513_v32 = vld [vmem:[%s8999_s4 + $0x88] sm:$0xff]  ;;  %v1339_v15 = vpop.f32.mrf.mxu0 }
 0x23b   : > { %10007 = vst [vmem:[#allocation169_spill] sm:$0xff] %v6495_v24  ;;  %1639 = vmatpush.msrb.mxu2 %v6507_v3  ;;  %v6519_v24 = vld [vmem:[%s8999_s4 + $0x78] sm:$0xff] }
 0x23c   : > { %10008 = vst [vmem:[#allocation170_spill] sm:$0xff] %v6501_v39  ;;  %v6525_v39 = vld [vmem:[%s8999_s4 + $0x68] sm:$0xff] }
 0x23d   : > { %10009 = vst [vmem:[#allocation171_spill] sm:$0xff] %v6507_v3  ;;  %1640 = vmatpush.msrb.mxu2 %v6513_v32  ;;  %v10013_v3 = vld [vmem:[#allocation100_spill] sm:$0xff] }
 0x23e   : > { %10010 = vst [vmem:[#allocation172_spill] sm:$0xff] %v6513_v32  ;;  %v10016_v32 = vld [vmem:[#allocation105_spill] sm:$0xff] }
 0x23f   : > { %10011 = vst [vmem:[#allocation173_spill] sm:$0xff] %v6519_v24  ;;  %1641 = vmatpush.msrb.mxu2 %v6519_v24  ;;  %v1359_v24 = vpop.f32.mrf.mxu1 }
 0x240   : > { %10012 = vst [vmem:[#allocation174_spill] sm:$0xff] %v6525_v39 }
 0x241   : > { %1642 = vmatpush.msrb.mxu2 %v6525_v39 }
 0x242   : > { %v1379_v22 = vpop.f32.mrf.mxu3  ;;  %v1419_v26 = vpop.f32.mrf.mxu0 }
 0x243   : > { %1643 = vmatpush.msrb.mxu2 %v10013_v3 }
 0x245   : > { %1644 = vmatpush.msrb.mxu2 %v10014_v35  ;;  %v10020_v35 = vld [vmem:[#allocation86_spill] sm:$0xff] }
 0x247   : > { %1645 = vmatpush.msrb.mxu2 %v10015_v29  ;;  %v1439_v8 = vpop.f32.mrf.mxu1  ;;  %v645_v29 = vadd.f32 %v10020_v35, %v5303_v52  ;;  %v10037_v35 = vld [vmem:[#allocation27_spill] sm:$0xff] }
 0x249   : > { %1646 = vmatpush.msrb.mxu2 %v10016_v32  ;;  %v10021_v32 = vld [vmem:[#allocation30_spill] sm:$0xff] }
 0x24b   : > { %1647 = vmatpush.msrb.mxu2 %v10017_v27  ;;  %v1459_v39 = vpop.f32.mrf.mxu3 }
 0x24d   : > { %1648 = vmatpush.msrb.mxu2 %v10018_v20  ;;  %v686_v20 = vadd.f32 %v10021_v32, %v645_v29  ;;  %v10039_v29 = vld [vmem:[#allocation74_spill] sm:$0xff]  ;;  %v10042_v32 = vld [vmem:[#allocation71_spill] sm:$0xff] }
 0x256   : > { %v1526_v38 = vpop.f32.mrf.mxu1 }
 0x259   : > { %v1319_v9 = vpop.f32.mrf.mxu2 }
 0x25a   : > { %v1320_v41 = vadd.f32 %v1319_v9, %v10019_v6  ;;  %v727_v9 = vadd.f32 %v10022_v11, %v686_v20  ;;  %v10044_v20 = vld [vmem:[#allocation21_spill] sm:$0xff] }
 0x25c   : > { %v1340_v28 = vadd.f32 %v1339_v15, %v1320_v41 }
 0x25e   : > { %v1360_v3 = vadd.f32 %v1359_v24, %v1340_v28  ;;  %v10034_v24 = vld [vmem:[#allocation23_spill] sm:$0xff] }
 0x260   : > { %v1380_v63 = vadd.f32 %v1379_v22, %v1360_v3  ;;  %v10030_v22 = vld [vmem:[#allocation19_spill] sm:$0xff]  ;;  %v10035_v3 = vld [vmem:[#allocation26_spill] sm:$0xff] }
 0x261   : > { %v1399_v1 = vpop.f32.mrf.mxu2 }
 0x262   : > { %3233 = vtanh.f32 %v1380_v63  ;;  %v1400_v27 = vadd.f32 %v1399_v1, %v5659_v14 }
 0x264   : > { %v1420_v43 = vadd.f32 %v1419_v26, %v1400_v27  ;;  %v1546_v61 = vpop.f32.mrf.mxu3  ;;  %v10040_v27 = vld [vmem:[#allocation6_spill] sm:$0xff] }
 0x265   : > { %v1547_v6 = vadd.f32 %v1546_v61, %v1526_v38  ;;  %v10023_v61 = vld [vmem:[#allocation75_spill] sm:$0xff] }
 0x266   : > { %v1440_v36 = vadd.f32 %v1439_v8, %v1420_v43  ;;  %v522_v11 = vadd.f32 %v10023_v61, %v5275_v48  ;;  %v10026_v8 = vld [vmem:[#allocation59_spill] sm:$0xff]  ;;  %v10050_v61 = vld [vmem:[#allocation24_spill] sm:$0xff] }
 0x267   : > { %v1550_v41 = vadd.f32 %v1547_v6, %v727_v9  ;;  %v10027_v6 = vld [vmem:[#allocation60_spill] sm:$0xff] }
 0x268   : > { %v3234_v28 = vpop.eup %3233  ;;  %v1460_v15 = vadd.f32 %v1459_v39, %v1440_v36  ;;  %v10024_v36 = vld [vmem:[#allocation84_spill] sm:$0xff] }
 0x269   : > { %3235 = vtanh.f32 %v1550_v41  ;;  %1609 = vmatmul.f32.vlgmr.msrb.gmra.mxu1 %v3234_v28  ;;  %v563_v43 = vadd.f32 %v10024_v36, %v522_v11  ;;  %v10033_v39 = vld [vmem:[#allocation64_spill] sm:$0xff]  ;;  %v10046_v41 = vld [vmem:[#allocation7_spill] sm:$0xff]  ;;  %v10053_v36 = vld [vmem:[#allocation9_spill] sm:$0xff] }
 0x26a   : > { %3237 = vtanh.f32 %v1460_v15  ;;  %1760 = vmatpush.msrb.mxu1 %v5669_v13  ;;  %v10045_v9 = vld [vmem:[#allocation76_spill] sm:$0xff]  ;;  %v10051_v11 = vld [vmem:[#allocation31_spill] sm:$0xff] }
 0x26b   : > { %v10048_v15 = vld [vmem:[#allocation80_spill] sm:$0xff] }
 0x26c   : > { %1761 = vmatpush.msrb.mxu1 %v5675_v10 }
 0x26e   : > { %1762 = vmatpush.msrb.mxu1 %v5683_v21 }
 0x26f   : > { %v6543_v63 = vpop.eup %3235 }
 0x270   : > { %v3238_v26 = vpop.eup %3237  ;;  %1589 = vmatmul.f32.vlgmr.msra.gmra.mxu0 %v6543_v63  ;;  %1763 = vmatpush.msrb.mxu1 %v5691_v44 }
 0x271   : > { %1740 = vmatpush.msra.mxu0 %v5366_v59  ;;  %1629 = vmatmul.f32.vlgmr.msrb.gmra.mxu3 %v3238_v26  ;;  %v1506_v59 = vpop.f32.mrf.mxu0 }
 0x272   : > { %1689 = vmatmul.f32.vlgmr.msra.gmra.mxu1 %v3234_v28  ;;  %1780 = vmatpush.msrb.mxu3 %v5704_v31  ;;  %v10047_v28 = vld [vmem:[#allocation25_spill] sm:$0xff] }
 0x273   : > { %1741 = vmatpush.msra.mxu0 %v5380_v49  ;;  %1764 = vmatpush.msrb.mxu1 %v5698_v45 }
 0x274   : > { %1781 = vmatpush.msrb.mxu3 %v5719_v47 }
 0x275   : > { %1742 = vmatpush.msra.mxu0 %v5394_v51  ;;  %1765 = vmatpush.msrb.mxu1 %v5713_v56  ;;  %v10025_v51 = vld [vmem:[#allocation69_spill] sm:$0xff] }
 0x276   : > { %1782 = vmatpush.msrb.mxu3 %v5733_v5  ;;  %v604_v38 = vadd.f32 %v10025_v51, %v563_v43  ;;  %v10054_v43 = vld [vmem:[#allocation28_spill] sm:$0xff] }
 0x277   : > { %1743 = vmatpush.msra.mxu0 %v5408_v58  ;;  %1766 = vmatpush.msrb.mxu1 %v5726_v17  ;;  %v10058_v51 = vld [vmem:[#allocation36_spill] sm:$0xff] }
 0x278   : > { %1669 = vmatmul.f32.vlgmr.msrb.gmra.mxu0 %v6543_v63  ;;  %1783 = vmatpush.msrb.mxu3 %v5747_v33 }
 0x279   : > { %1744 = vmatpush.msra.mxu0 %v5422_v62  ;;  %1767 = vmatpush.msrb.mxu1 %v5741_v7  ;;  %v1486_v49 = vpop.f32.mrf.mxu2  ;;  %v10028_v62 = vld [vmem:[#allocation16_spill] sm:$0xff] }
 0x27a   : > { %v1507_v1 = vadd.f32 %v1506_v59, %v1486_v49  ;;  %1709 = vmatmul.f32.vlgmr.msra.gmra.mxu3 %v3238_v26  ;;  %v10049_v26 = vld [vmem:[#allocation8_spill] sm:$0xff]  ;;  %v10056_v49 = vld [vmem:[#allocation35_spill] sm:$0xff] }
 0x27b   : > { %1745 = vmatpush.msra.mxu0 %v5436_v55  ;;  %1768 = vmatpush.msrb.mxu1 %v10026_v8  ;;  %v10029_v55 = vld [vmem:[#allocation63_spill] sm:$0xff]  ;;  %v10055_v59 = vld [vmem:[#allocation40_spill] sm:$0xff] }
 0x27c   : > { %v1549_v58 = vadd.f32 %v1507_v1, %v604_v38  ;;  %1784 = vmatpush.msrb.mxu3 %v10027_v6  ;;  %v10059_v38 = vld [vmem:[#allocation43_spill] sm:$0xff]  ;;  %v10060_v1 = vld [vmem:[#allocation44_spill] sm:$0xff] }
 0x27d   : > { %1746 = vmatpush.msra.mxu0 %v5450_v42  ;;  %1769 = vmatpush.msrb.mxu1 %v5768_v4 }
 0x27e   : > { %3239 = vtanh.f32 %v1549_v58  ;;  %1785 = vmatpush.msrb.mxu3 %v5774_v19  ;;  %v10061_v58 = vld [vmem:[#allocation11_spill] sm:$0xff] }
 0x27f   : > { %1747 = vmatpush.msra.mxu0 %v5464_v60  ;;  %1770 = vmatpush.msrb.mxu1 %v5781_v2  ;;  %v10031_v60 = vld [vmem:[#allocation15_spill] sm:$0xff] }
 0x280   : > { %1786 = vmatpush.msrb.mxu3 %v5787_v16 }
 0x281   : > { %1748 = vmatpush.msra.mxu0 %v5478_v53  ;;  %1771 = vmatpush.msrb.mxu1 %v5794_v18  ;;  %v10032_v53 = vld [vmem:[#allocation22_spill] sm:$0xff] }
 0x282   : > { %1787 = vmatpush.msrb.mxu3 %v5800_v34 }
 0x283   : > { %1749 = vmatpush.msra.mxu0 %v10028_v62  ;;  %1772 = vmatpush.msrb.mxu1 %v10029_v55  ;;  %v10062_v62 = vld [vmem:[#allocation39_spill] sm:$0xff] }
 0x284   : > { %v6579_v42 = vpop.eup %3239  ;;  %1788 = vmatpush.msrb.mxu3 %v5813_v12 }
 0x285   : > { %1750 = vmatpush.msra.mxu0 %v10030_v22  ;;  %1773 = vmatpush.msrb.mxu1 %v10031_v60  ;;  %v10063_v22 = vld [vmem:[#allocation54_spill] sm:$0xff] }
 0x286   : > { %1789 = vmatpush.msrb.mxu3 %v5826_v0  ;;  %1569 = vmatmul.f32.vlgmr.msra.gmra.mxu2 %v6579_v42 }
 0x287   : > { %1720 = vmatpush.msra.mxu2 %v5325_v50  ;;  %1751 = vmatpush.msra.mxu0 %v10032_v53  ;;  %v10036_v50 = vld [vmem:[#allocation68_spill] sm:$0xff] }
 0x288   : > { %1774 = vmatpush.msrb.mxu1 %v10033_v39  ;;  %1790 = vmatpush.msrb.mxu3 %v5841_v25  ;;  %v10064_v53 = vld [vmem:[#allocation48_spill] sm:$0xff] }
 0x289   : > { %1721 = vmatpush.msra.mxu2 %v5333_v54  ;;  %1752 = vmatpush.msra.mxu0 %v10034_v24  ;;  %v10038_v54 = vld [vmem:[#allocation18_spill] sm:$0xff]  ;;  %v10065_v24 = vld [vmem:[#allocation12_spill] sm:$0xff] }
 0x28a   : > { %1775 = vmatpush.msrb.mxu1 %v5850_v23  ;;  %1791 = vmatpush.msrb.mxu3 %v5857_v37 }
 0x28b   : > { %1722 = vmatpush.msra.mxu2 %v5341_v57  ;;  %1776 = vmatmul.f32.vlgmr.msrb.gmra.mxu1 %v6579_v42  ;;  %v10041_v57 = vld [vmem:[#allocation29_spill] sm:$0xff] }
 0x28c   : > { %1753 = vmatpush.msra.mxu0 %v10035_v3  ;;  %1792 = vmatpush.msrb.mxu3 %v10036_v50  ;;  %v10066_v3 = vld [vmem:[#allocation49_spill] sm:$0xff] }
 0x28d   : > { %1723 = vmatpush.msra.mxu2 %v5351_v30  ;;  %1844 = vmatpush.msra.mxu1 %v5873_v40  ;;  %v10043_v30 = vld [vmem:[#allocation79_spill] sm:$0xff] }
 0x28e   : > { %1754 = vmatpush.msra.mxu0 %v10037_v35  ;;  %1793 = vmatpush.msrb.mxu3 %v10038_v54  ;;  %v10067_v35 = vld [vmem:[#allocation57_spill] sm:$0xff] }
 0x28f   : > { %1649 = vmatmul.f32.vlgmr.msrb.gmra.mxu2 %v6579_v42  ;;  %1845 = vmatpush.msra.mxu1 %v10039_v29 }
 0x290   : > { %1724 = vmatpush.msra.mxu2 %v10040_v27  ;;  %1755 = vmatpush.msra.mxu0 %v10041_v57  ;;  %v10068_v27 = vld [vmem:[#allocation58_spill] sm:$0xff]  ;;  %v10069_v57 = vld [vmem:[#allocation13_spill] sm:$0xff] }
 0x291   : > { %1794 = vmatpush.msrb.mxu3 %v10042_v32  ;;  %1756 = vmatmul.f32.vlgmr.msra.gmra.mxu0 %v6543_v63 }
 0x292   : > { %1725 = vmatpush.msra.mxu2 %v5374_v46  ;;  %1846 = vmatpush.msra.mxu1 %v10043_v30  ;;  %v10052_v46 = vld [vmem:[#allocation32_spill] sm:$0xff] }
 0x293   : > { %1795 = vmatpush.msrb.mxu3 %v10044_v20  ;;  %1824 = vmatpush.msrb.mxu0 %v10045_v9 }
 0x294   : > { %1726 = vmatpush.msra.mxu2 %v10046_v41  ;;  %1796 = vmatmul.f32.vlgmr.msrb.gmra.mxu3 %v6543_v63  ;;  %v10057_v63 = vld [vmem:[#allocation10_spill] sm:$0xff]  ;;  %v10070_v41 = vld [vmem:[#allocation53_spill] sm:$0xff] }
 0x295   : > { %1847 = vmatpush.msra.mxu1 %v10047_v28  ;;  %1864 = vmatpush.msra.mxu3 %v10048_v15 }
 0x296   : > { %1727 = vmatpush.msra.mxu2 %v10049_v26  ;;  %1825 = vmatpush.msrb.mxu0 %v10050_v61  ;;  %v10071_v26 = vld [vmem:[#allocation67_spill] sm:$0xff] }
 0x297   : > { %1848 = vmatpush.msra.mxu1 %v10051_v11  ;;  %1865 = vmatpush.msra.mxu3 %v10052_v46 }
 0x298   : > { %1728 = vmatpush.msra.mxu2 %v10053_v36  ;;  %1826 = vmatpush.msrb.mxu0 %v10054_v43  ;;  %v10072_v36 = vld [vmem:[#allocation61_spill] sm:$0xff] }
 0x299   : > { %1849 = vmatpush.msra.mxu1 %v10055_v59  ;;  %1866 = vmatpush.msra.mxu3 %v10056_v49  ;;  %v10182_v59 = vld [vmem:[#allocation34_spill] sm:$0xff] }
 0x29a   : > { %1729 = vmatpush.msra.mxu2 %v10057_v63  ;;  %1827 = vmatpush.msrb.mxu0 %v10058_v51  ;;  %v10073_v63 = vld [vmem:[#allocation14_spill] sm:$0xff] }
 0x29b   : > { %1850 = vmatpush.msra.mxu1 %v10059_v38  ;;  %1867 = vmatpush.msra.mxu3 %v10060_v1  ;;  %v10181_v38 = vld [vmem:[#allocation94_spill] sm:$0xff] }
 0x29c   : > { %1730 = vmatpush.msra.mxu2 %v10061_v58  ;;  %1828 = vmatpush.msrb.mxu0 %v10062_v62  ;;  %v10074_v58 = vld [vmem:[#allocation62_spill] sm:$0xff]  ;;  %v648_v1 = vadd.f32 %v10181_v38, %v5303_v52  ;;  %v7113_v38 = vld [vmem:[%s8998_s3 + $0x50] sm:$0xff] }
 0x29d   : > { %1851 = vmatpush.msra.mxu1 %v10063_v22  ;;  %1868 = vmatpush.msra.mxu3 %v10064_v53  ;;  %v10075_v22 = vld [vmem:[#allocation72_spill] sm:$0xff] }
 0x29e   : > { %1731 = vmatpush.msra.mxu2 %v10065_v24  ;;  %1829 = vmatpush.msrb.mxu0 %v10066_v3  ;;  %v10076_v24 = vld [vmem:[#allocation73_spill] sm:$0xff]  ;;  %v689_v49 = vadd.f32 %v10182_v59, %v648_v1  ;;  %v10210_v1 = vld [vmem:[#allocation44_spill] sm:$0xff] }
 0x29f   : > { %1852 = vmatpush.msra.mxu1 %v10067_v35  ;;  %1869 = vmatpush.msra.mxu3 %v10068_v27  ;;  %v10077_v3 = vld [vmem:[#allocation17_spill] sm:$0xff]  ;;  %v10078_v35 = vld [vmem:[#allocation66_spill] sm:$0xff] }
 0x2a0   : > { %1732 = vmatpush.msra.mxu2 %v10069_v57  ;;  %1830 = vmatpush.msrb.mxu0 %v10070_v41  ;;  %v10079_v27 = vld [vmem:[#allocation81_spill] sm:$0xff]  ;;  %v10081_v41 = vld [vmem:[#allocation20_spill] sm:$0xff] }
 0x2a1   : > { %1853 = vmatpush.msra.mxu1 %v10071_v26  ;;  %1870 = vmatpush.msra.mxu3 %v10072_v36  ;;  %v10080_v57 = vld [vmem:[#allocation77_spill] sm:$0xff]  ;;  %v10082_v26 = vld [vmem:[#allocation78_spill] sm:$0xff]  ;;  %10209 = vst [vmem:[#allocation20_spill] sm:$0xff] %v7113_v38 }
 0x2a2   : > { %1733 = vmatpush.msra.mxu2 %v10073_v63  ;;  %1831 = vmatpush.msrb.mxu0 %v10074_v58  ;;  %v10083_v63 = vld [vmem:[#allocation83_spill] sm:$0xff]  ;;  %v10084_v58 = vld [vmem:[#allocation82_spill] sm:$0xff] }
 0x2a3   : > { %1854 = vmatpush.msra.mxu1 %v10075_v22  ;;  %1871 = vmatpush.msra.mxu3 %v10076_v24  ;;  %v10085_v22 = vld [vmem:[#allocation85_spill] sm:$0xff]  ;;  %v10086_v24 = vld [vmem:[#allocation87_spill] sm:$0xff] }
 0x2a4   : > { %1734 = vmatpush.msra.mxu2 %v10077_v3  ;;  %1832 = vmatpush.msrb.mxu0 %v10078_v35  ;;  %v6658_v3 = vld [vmem:[%s8999_s4 + $0x150] sm:$0xff] }
 0x2a5   : > { %1855 = vmatpush.msra.mxu1 %v10079_v27  ;;  %1872 = vmatpush.msra.mxu3 %v10080_v57  ;;  %10087 = vst [vmem:[#allocation100_spill] sm:$0xff] %v6658_v3 }
 0x2a6   : > { %1735 = vmatpush.msra.mxu2 %v10081_v41  ;;  %1833 = vmatpush.msrb.mxu0 %v10082_v26  ;;  %v10088_v41 = vld [vmem:[#allocation88_spill] sm:$0xff]  ;;  %v10089_v26 = vld [vmem:[#allocation90_spill] sm:$0xff] }
 0x2a7   : > { %1736 = vmatmul.f32.vlgmr.msra.gmra.mxu2 %v6579_v42  ;;  %1856 = vmatpush.msra.mxu1 %v10083_v63  ;;  %v10090_v42 = vld [vmem:[#allocation92_spill] sm:$0xff]  ;;  %v6667_v63 = vld [vmem:[%s8999_s4 + $0x140] sm:$0xff] }
 0x2a8   : > { %1873 = vmatpush.msra.mxu3 %v10084_v58  ;;  %1804 = vmatpush.msrb.mxu2 %v10085_v22  ;;  %10091 = vst [vmem:[#allocation101_spill] sm:$0xff] %v6667_v63  ;;  %v10093_v22 = vld [vmem:[#allocation70_spill] sm:$0xff]  ;;  %v10094_v58 = vld [vmem:[#allocation52_spill] sm:$0xff] }
 0x2a9   : > { %1857 = vmatpush.msra.mxu1 %v10086_v24  ;;  %1834 = vmatpush.msrb.mxu0 %v6658_v3  ;;  %v10092_v24 = vld [vmem:[#allocation95_spill] sm:$0xff] }
 0x2aa   : > { %1874 = vmatpush.msra.mxu3 %v10088_v41  ;;  %1805 = vmatpush.msrb.mxu2 %v10089_v26  ;;  %v6676_v41 = vld [vmem:[%s8999_s4 + $0x130] sm:$0xff]  ;;  %v10097_v26 = vld [vmem:[#allocation65_spill] sm:$0xff] }
 0x2ab   : > { %1858 = vmatpush.msra.mxu1 %v10090_v42  ;;  %1835 = vmatpush.msrb.mxu0 %v6667_v63  ;;  %10095 = vst [vmem:[#allocation102_spill] sm:$0xff] %v6676_v41  ;;  %v10096_v42 = vld [vmem:[#allocation47_spill] sm:$0xff]  ;;  %v10102_v63 = vld [vmem:[#allocation126_spill] sm:$0xff] }
 0x2ac   : > { %1875 = vmatpush.msra.mxu3 %v10092_v24  ;;  %1806 = vmatpush.msrb.mxu2 %v10093_v22  ;;  %v10098_v3 = vld [vmem:[#allocation123_spill] sm:$0xff]  ;;  %v6685_v24 = vld [vmem:[%s8999_s4 + $0x120] sm:$0xff]  ;;  %v10101_v22 = vld [vmem:[#allocation124_spill] sm:$0xff] }
 0x2ad   : > { %1859 = vmatpush.msra.mxu1 %v10094_v58  ;;  %1836 = vmatpush.msrb.mxu0 %v6676_v41  ;;  %10099 = vst [vmem:[#allocation105_spill] sm:$0xff] %v6685_v24  ;;  %v10100_v58 = vld [vmem:[#allocation125_spill] sm:$0xff] }
 0x2ae   : > { %1876 = vmatpush.msra.mxu3 %v10097_v26  ;;  %1807 = vmatpush.msrb.mxu2 %v10098_v3  ;;  %v10104_v3 = vld [vmem:[#allocation128_spill] sm:$0xff]  ;;  %v10105_v26 = vld [vmem:[#allocation127_spill] sm:$0xff]  ;;  %v10106_v41 = vld [vmem:[#allocation129_spill] sm:$0xff] }
 0x2af   : > { %1924 = vmatpush.msrb.mxu1 %v10096_v42  ;;  %1837 = vmatpush.msrb.mxu0 %v6685_v24  ;;  %v6694_v42 = vld [vmem:[%s8999_s4 + $0x110] sm:$0xff] }
 0x2b0   : > { %1877 = vmatpush.msra.mxu3 %v10101_v22  ;;  %1808 = vmatpush.msrb.mxu2 %v10102_v63  ;;  %10103 = vst [vmem:[#allocation108_spill] sm:$0xff] %v6694_v42  ;;  %v10108_v63 = vld [vmem:[#allocation131_spill] sm:$0xff]  ;;  %v10109_v22 = vld [vmem:[#allocation130_spill] sm:$0xff]  ;;  %v10110_v24 = vld [vmem:[#allocation132_spill] sm:$0xff] }
 0x2b1   : > { %1925 = vmatpush.msrb.mxu1 %v10100_v58  ;;  %1838 = vmatpush.msrb.mxu0 %v6694_v42  ;;  %v6703_v58 = vld [vmem:[%s8999_s4 + $0x100] sm:$0xff]  ;;  %v10114_v42 = vld [vmem:[#allocation135_spill] sm:$0xff] }
 0x2b2   : > { %1878 = vmatpush.msra.mxu3 %v10105_v26  ;;  %1809 = vmatpush.msrb.mxu2 %v10106_v41  ;;  %10107 = vst [vmem:[#allocation109_spill] sm:$0xff] %v6703_v58  ;;  %v10112_v41 = vld [vmem:[#allocation134_spill] sm:$0xff]  ;;  %v10113_v26 = vld [vmem:[#allocation133_spill] sm:$0xff] }
 0x2b3   : > { %1926 = vmatpush.msrb.mxu1 %v10104_v3  ;;  %1839 = vmatpush.msrb.mxu0 %v6703_v58  ;;  %v6712_v3 = vld [vmem:[%s8999_s4 + $0x1f8] sm:$0xff]  ;;  %v10118_v58 = vld [vmem:[#allocation138_spill] sm:$0xff] }
 0x2b4   : > { %1879 = vmatpush.msra.mxu3 %v10109_v22  ;;  %1810 = vmatpush.msrb.mxu2 %v10110_v24  ;;  %10111 = vst [vmem:[#allocation86_spill] sm:$0xff] %v6712_v3  ;;  %v10116_v24 = vld [vmem:[#allocation137_spill] sm:$0xff]  ;;  %v10117_v22 = vld [vmem:[#allocation136_spill] sm:$0xff] }
 0x2b5   : > { %1927 = vmatpush.msrb.mxu1 %v10108_v63  ;;  %1904 = vmatpush.msra.mxu0 %v6712_v3  ;;  %v6721_v63 = vld [vmem:[%s8999_s4 + $0x1e8] sm:$0xff]  ;;  %v10122_v3 = vld [vmem:[#allocation141_spill] sm:$0xff] }
 0x2b6   : > { %1944 = vmatpush.msrb.mxu3 %v10113_v26  ;;  %1811 = vmatpush.msrb.mxu2 %v10114_v42  ;;  %10115 = vst [vmem:[#allocation30_spill] sm:$0xff] %v6721_v63  ;;  %v10120_v42 = vld [vmem:[#allocation140_spill] sm:$0xff]  ;;  %v10121_v26 = vld [vmem:[#allocation139_spill] sm:$0xff] }
 0x2b7   : > { %1928 = vmatpush.msrb.mxu1 %v10112_v41  ;;  %1905 = vmatpush.msra.mxu0 %v6721_v63  ;;  %v6730_v41 = vld [vmem:[%s8999_s4 + $0x1d8] sm:$0xff] }
 0x2b8   : > { %1945 = vmatpush.msrb.mxu3 %v10117_v22  ;;  %1812 = vmatpush.msrb.mxu2 %v10118_v58  ;;  %10119 = vst [vmem:[#allocation33_spill] sm:$0xff] %v6730_v41  ;;  %v10124_v58 = vld [vmem:[#allocation143_spill] sm:$0xff]  ;;  %v10125_v22 = vld [vmem:[#allocation142_spill] sm:$0xff]  ;;  %v10126_v63 = vld [vmem:[#allocation144_spill] sm:$0xff] }
 0x2b9   : > { %1929 = vmatpush.msrb.mxu1 %v10116_v24  ;;  %1906 = vmatpush.msra.mxu0 %v6730_v41  ;;  %v6739_v24 = vld [vmem:[%s8999_s4 + $0x1c8] sm:$0xff] }
 0x2ba   : > { %1946 = vmatpush.msrb.mxu3 %v10121_v26  ;;  %1813 = vmatpush.msrb.mxu2 %v10122_v3  ;;  %10123 = vst [vmem:[#allocation75_spill] sm:$0xff] %v6739_v24  ;;  %v10128_v3 = vld [vmem:[#allocation146_spill] sm:$0xff]  ;;  %v10129_v26 = vld [vmem:[#allocation145_spill] sm:$0xff]  ;;  %v10130_v41 = vld [vmem:[#allocation147_spill] sm:$0xff] }
 0x2bb   : > { %1930 = vmatpush.msrb.mxu1 %v10120_v42  ;;  %1907 = vmatpush.msra.mxu0 %v6739_v24  ;;  %v6748_v42 = vld [vmem:[%s8999_s4 + $0x1b8] sm:$0xff]  ;;  %v10134_v24 = vld [vmem:[#allocation150_spill] sm:$0xff] }
 0x2bc   : > { %1947 = vmatpush.msrb.mxu3 %v10125_v22  ;;  %1814 = vmatpush.msrb.mxu2 %v10126_v63  ;;  %10127 = vst [vmem:[#allocation84_spill] sm:$0xff] %v6748_v42  ;;  %v10132_v63 = vld [vmem:[#allocation149_spill] sm:$0xff]  ;;  %v10133_v22 = vld [vmem:[#allocation148_spill] sm:$0xff] }
 0x2bd   : > { %1931 = vmatpush.msrb.mxu1 %v10124_v58  ;;  %1908 = vmatpush.msra.mxu0 %v6748_v42  ;;  %v6757_v58 = vld [vmem:[%s8999_s4 + $0x1a8] sm:$0xff]  ;;  %v10138_v42 = vld [vmem:[#allocation153_spill] sm:$0xff] }
 0x2be   : > { %1948 = vmatpush.msrb.mxu3 %v10129_v26  ;;  %1815 = vmatpush.msrb.mxu2 %v10130_v41  ;;  %10131 = vst [vmem:[#allocation69_spill] sm:$0xff] %v6757_v58  ;;  %v10136_v41 = vld [vmem:[#allocation152_spill] sm:$0xff]  ;;  %v10137_v26 = vld [vmem:[#allocation151_spill] sm:$0xff] }
 0x2bf   : > { %1932 = vmatpush.msrb.mxu1 %v10128_v3  ;;  %1909 = vmatpush.msra.mxu0 %v6757_v58  ;;  %v6766_v3 = vld [vmem:[%s8999_s4 + $0x198] sm:$0xff] }
 0x2c0   : > { %1949 = vmatpush.msrb.mxu3 %v10133_v22  ;;  %1816 = vmatpush.msrb.mxu2 %v10134_v24  ;;  %10135 = vst [vmem:[#allocation59_spill] sm:$0xff] %v6766_v3  ;;  %v10140_v24 = vld [vmem:[#allocation155_spill] sm:$0xff]  ;;  %v10141_v22 = vld [vmem:[#allocation154_spill] sm:$0xff]  ;;  %v10142_v58 = vld [vmem:[#allocation156_spill] sm:$0xff] }
 0x2c1   : > { %1933 = vmatpush.msrb.mxu1 %v10132_v63  ;;  %1910 = vmatpush.msra.mxu0 %v6766_v3  ;;  %v6775_v63 = vld [vmem:[%s8999_s4 + $0x188] sm:$0xff] }
 0x2c2   : > { %1950 = vmatpush.msrb.mxu3 %v10137_v26  ;;  %1817 = vmatpush.msrb.mxu2 %v10138_v42  ;;  %10139 = vst [vmem:[#allocation60_spill] sm:$0xff] %v6775_v63  ;;  %v10144_v42 = vld [vmem:[#allocation158_spill] sm:$0xff]  ;;  %v10145_v26 = vld [vmem:[#allocation157_spill] sm:$0xff]  ;;  %v10146_v3 = vld [vmem:[#allocation159_spill] sm:$0xff] }
 0x2c3   : > { %1934 = vmatpush.msrb.mxu1 %v10136_v41  ;;  %1911 = vmatpush.msra.mxu0 %v6775_v63  ;;  %v6784_v41 = vld [vmem:[%s8999_s4 + $0x178] sm:$0xff]  ;;  %v10150_v63 = vld [vmem:[#allocation162_spill] sm:$0xff] }
 0x2c4   : > { %1951 = vmatpush.msrb.mxu3 %v10141_v22  ;;  %1818 = vmatpush.msrb.mxu2 %v10142_v58  ;;  %10143 = vst [vmem:[#allocation16_spill] sm:$0xff] %v6784_v41  ;;  %v10148_v58 = vld [vmem:[#allocation161_spill] sm:$0xff]  ;;  %v10149_v22 = vld [vmem:[#allocation160_spill] sm:$0xff] }
 0x2c5   : > { %1935 = vmatpush.msrb.mxu1 %v10140_v24  ;;  %1912 = vmatpush.msra.mxu0 %v6784_v41  ;;  %v6793_v24 = vld [vmem:[%s8999_s4 + $0x168] sm:$0xff]  ;;  %v10154_v41 = vld [vmem:[#allocation164_spill] sm:$0xff] }
 0x2c6   : > { %1952 = vmatpush.msrb.mxu3 %v10145_v26  ;;  %1819 = vmatpush.msrb.mxu2 %v10146_v3  ;;  %10147 = vst [vmem:[#allocation63_spill] sm:$0xff] %v6793_v24  ;;  %v10152_v3 = vld [vmem:[#allocation163_spill] sm:$0xff]  ;;  %v10153_v26 = vld [vmem:[#allocation110_spill] sm:$0xff] }
 0x2c7   : > { %1936 = vmatpush.msrb.mxu1 %v10144_v42  ;;  %1913 = vmatpush.msra.mxu0 %v6793_v24  ;;  %v6802_v42 = vld [vmem:[%s8999_s4 + $0x158] sm:$0xff]  ;;  %v10158_v24 = vld [vmem:[#allocation166_spill] sm:$0xff] }
 0x2c8   : > { %1953 = vmatpush.msrb.mxu3 %v10149_v22  ;;  %1884 = vmatpush.msra.mxu2 %v10150_v63  ;;  %10151 = vst [vmem:[#allocation19_spill] sm:$0xff] %v6802_v42  ;;  %v10156_v63 = vld [vmem:[#allocation165_spill] sm:$0xff]  ;;  %v10157_v22 = vld [vmem:[#allocation111_spill] sm:$0xff] }
 0x2c9   : > { %1937 = vmatpush.msrb.mxu1 %v10148_v58  ;;  %1914 = vmatpush.msra.mxu0 %v6802_v42  ;;  %v6811_v58 = vld [vmem:[%s8999_s4 + $0x148] sm:$0xff]  ;;  %v10172_v42 = vld [vmem:[#allocation173_spill] sm:$0xff] }
 0x2ca   : > { %1954 = vmatpush.msrb.mxu3 %v10153_v26  ;;  %1885 = vmatpush.msra.mxu2 %v10154_v41  ;;  %10155 = vst [vmem:[#allocation15_spill] sm:$0xff] %v6811_v58  ;;  %v10160_v41 = vld [vmem:[#allocation113_spill] sm:$0xff]  ;;  %v10161_v26 = vld [vmem:[#allocation167_spill] sm:$0xff] }
 0x2cb   : > { %1938 = vmatpush.msrb.mxu1 %v10152_v3  ;;  %1915 = vmatpush.msra.mxu0 %v6811_v58  ;;  %v6820_v3 = vld [vmem:[%s8999_s4 + $0x138] sm:$0xff]  ;;  %v6828_v58 = vld [vmem:[%s8999_s4 + $0x128] sm:$0xff] }
 0x2cc   : > { %1955 = vmatpush.msrb.mxu3 %v10157_v22  ;;  %1886 = vmatpush.msra.mxu2 %v10158_v24  ;;  %10159 = vst [vmem:[#allocation22_spill] sm:$0xff] %v6820_v3  ;;  %v10164_v24 = vld [vmem:[#allocation168_spill] sm:$0xff] }
 0x2cd   : > { %1939 = vmatpush.msrb.mxu1 %v10156_v63  ;;  %1916 = vmatpush.msra.mxu0 %v6820_v3  ;;  %10162 = vst [vmem:[#allocation64_spill] sm:$0xff] %v6828_v58  ;;  %v10163_v63 = vld [vmem:[#allocation116_spill] sm:$0xff]  ;;  %v6844_v3 = vld [vmem:[%s8999_s4 + $0x108] sm:$0xff] }
 0x2ce   : > { %1956 = vmatpush.msrb.mxu3 %v10160_v41  ;;  %1887 = vmatpush.msra.mxu2 %v10161_v26  ;;  %v6836_v22 = vld [vmem:[%s8999_s4 + $0x118] sm:$0xff]  ;;  %v10166_v41 = vld [vmem:[#allocation118_spill] sm:$0xff]  ;;  %10168 = vst [vmem:[#allocation26_spill] sm:$0xff] %v6844_v3 }
 0x2cf   : > { %1917 = vmatpush.msra.mxu0 %v6828_v58  ;;  %10165 = vst [vmem:[#allocation23_spill] sm:$0xff] %v6836_v22  ;;  %v10167_v26 = vld [vmem:[#allocation169_spill] sm:$0xff]  ;;  %v10171_v58 = vld [vmem:[#allocation172_spill] sm:$0xff] }
 0x2d0   : > { %1957 = vmatpush.msrb.mxu3 %v10163_v63  ;;  %1888 = vmatpush.msra.mxu2 %v10164_v24  ;;  %v10169_v63 = vld [vmem:[#allocation170_spill] sm:$0xff]  ;;  %v10170_v24 = vld [vmem:[#allocation171_spill] sm:$0xff] }
 0x2d1   : > { %1918 = vmatpush.msra.mxu0 %v6836_v22  ;;  %v10173_v22 = vld [vmem:[#allocation174_spill] sm:$0xff] }
 0x2d2   : > { %1958 = vmatpush.msrb.mxu3 %v10166_v41  ;;  %1889 = vmatpush.msra.mxu2 %v10167_v26  ;;  %v6855_v26 = vld [vmem:[%s8999_s4 + $0x58] sm:$0xff] }
 0x2d3   : > { %1919 = vmatpush.msra.mxu0 %v6844_v3  ;;  %10174 = vst [vmem:[#allocation68_spill] sm:$0xff] %v6855_v26  ;;  %v6861_v3 = vld [vmem:[%s8999_s4 + $0x48] sm:$0xff]  ;;  %v10180_v41 = vld [vmem:[#allocation56_spill] sm:$0xff] }
 0x2d4   : > { %1959 = vmatpush.msrb.mxu3 %v10169_v63  ;;  %1890 = vmatpush.msra.mxu2 %v10170_v24  ;;  %10175 = vst [vmem:[#allocation27_spill] sm:$0xff] %v6861_v3 }
 0x2d6   : > { %1891 = vmatpush.msra.mxu2 %v10171_v58 }
 0x2d8   : > { %1892 = vmatpush.msra.mxu2 %v10172_v42  ;;  %v6867_v42 = vld [vmem:[%s8999_s4 + $0x38] sm:$0xff] }
 0x2d9   : > { %10176 = vst [vmem:[#allocation18_spill] sm:$0xff] %v6867_v42 }
 0x2da   : > { %1893 = vmatpush.msra.mxu2 %v10173_v22  ;;  %v6873_v22 = vld [vmem:[%s8999_s4 + $0x28] sm:$0xff] }
 0x2db   : > { %10177 = vst [vmem:[#allocation74_spill] sm:$0xff] %v6873_v22 }
 0x2dc   : > { %1894 = vmatpush.msra.mxu2 %v6855_v26  ;;  %v6879_v26 = vld [vmem:[%s8999_s4 + $0x18] sm:$0xff] }
 0x2dd   : > { %10178 = vst [vmem:[#allocation6_spill] sm:$0xff] %v6879_v26 }
 0x2de   : > { %1895 = vmatpush.msra.mxu2 %v6861_v3  ;;  %v6885_v3 = vld [vmem:[%s8999_s4 + $0x8] sm:$0xff] }
 0x2df   : > { %10179 = vst [vmem:[#allocation29_spill] sm:$0xff] %v6885_v3 }
 0x2e0   : > { %1896 = vmatpush.msra.mxu2 %v6867_v42 }
 0x2e2   : > { %1897 = vmatpush.msra.mxu2 %v6873_v22 }
 0x2e4   : > { %1898 = vmatpush.msra.mxu2 %v6879_v26 }
 0x2e6   : > { %1899 = vmatpush.msra.mxu2 %v6885_v3  ;;  %v1610_v42 = vpop.f32.mrf.mxu1 }
 0x2ed   : > { %v1590_v63 = vpop.f32.mrf.mxu0 }
 0x2ef   : > { %v1690_v35 = vpop.f32.mrf.mxu1 }
 0x2f4   : > { %v1630_v58 = vpop.f32.mrf.mxu3 }
 0x2f5   : > { %v1670_v51 = vpop.f32.mrf.mxu0 }
 0x2fd   : > { %v1710_v36 = vpop.f32.mrf.mxu3 }
 0x308   : > { %v1777_v43 = vpop.f32.mrf.mxu1 }
 0x309   : > { %v1570_v24 = vpop.f32.mrf.mxu2 }
 0x30a   : > { %v1571_v22 = vadd.f32 %v1570_v24, %v10180_v41 }
 0x30c   : > { %v1591_v27 = vadd.f32 %v1590_v63, %v1571_v22  ;;  %v10183_v22 = vld [vmem:[#allocation37_spill] sm:$0xff] }
 0x30e   : > { %v1611_v57 = vadd.f32 %v1610_v42, %v1591_v27  ;;  %v730_v27 = vadd.f32 %v10183_v22, %v689_v49  ;;  %v6950_v49 = vld [vmem:[%s8998_s3 + $0x1a0] sm:$0xff] }
 0x30f   : > { %v10219_v22 = vld [vmem:[#allocation57_spill] sm:$0xff] }
 0x310   : > { %v1631_v53 = vadd.f32 %v1630_v58, %v1611_v57  ;;  %v10215_v58 = vld [vmem:[#allocation54_spill] sm:$0xff]  ;;  %v10216_v57 = vld [vmem:[#allocation49_spill] sm:$0xff] }
 0x312   : > { %3241 = vtanh.f32 %v1631_v53  ;;  %v1650_v26 = vpop.f32.mrf.mxu2 }
 0x313   : > { %v1651_v62 = vadd.f32 %v1650_v26, %v5659_v14  ;;  %v7122_v26 = vld [vmem:[%s8998_s3 + $0x40] sm:$0xff] }
 0x314   : > { %10213 = vst [vmem:[#allocation94_spill] sm:$0xff] %v7122_v26 }
 0x315   : > { %v1671_v3 = vadd.f32 %v1670_v51, %v1651_v62  ;;  %v10211_v62 = vld [vmem:[#allocation43_spill] sm:$0xff] }
 0x317   : > { %v1691_v11 = vadd.f32 %v1690_v35, %v1671_v3  ;;  %v1797_v46 = vpop.f32.mrf.mxu3  ;;  %v10212_v35 = vld [vmem:[#allocation39_spill] sm:$0xff] }
 0x318   : > { %v3242_v24 = vpop.eup %3241  ;;  %v1798_v63 = vadd.f32 %v1797_v46, %v1777_v43  ;;  %v7131_v3 = vld [vmem:[%s8998_s3 + $0x30] sm:$0xff] }
 0x319   : > { %v1711_v42 = vadd.f32 %v1710_v36, %v1691_v11  ;;  %1860 = vmatmul.f32.vlgmr.msra.gmra.mxu1 %v3242_v24  ;;  %v10184_v11 = vld [vmem:[#allocation91_spill] sm:$0xff]  ;;  %v10214_v36 = vld [vmem:[#allocation48_spill] sm:$0xff]  ;;  %10217 = vst [vmem:[#allocation34_spill] sm:$0xff] %v7131_v3 }
 0x31a   : > { %v1801_v53 = vadd.f32 %v1798_v63, %v730_v27  ;;  %2011 = vmatpush.msra.mxu1 %v5669_v13  ;;  %v525_v46 = vadd.f32 %v10184_v11, %v5275_v48  ;;  %v6908_v13 = vld [vmem:[%s8998_s3 + $0x1f0] sm:$0xff]  ;;  %v10220_v27 = vld [vmem:[#allocation53_spill] sm:$0xff] }
 0x31b   : > { %3243 = vtanh.f32 %v1711_v42  ;;  %v7140_v63 = vld [vmem:[%s8998_s3 + $0x20] sm:$0xff] }
 0x31c   : > { %3245 = vtanh.f32 %v1801_v53  ;;  %2012 = vmatpush.msra.mxu1 %v5675_v10  ;;  %v6916_v10 = vld [vmem:[%s8998_s3 + $0x1e0] sm:$0xff]  ;;  %10221 = vst [vmem:[#allocation37_spill] sm:$0xff] %v7140_v63  ;;  %v10223_v53 = vld [vmem:[#allocation67_spill] sm:$0xff] }
 0x31d   : > { %v10222_v42 = vld [vmem:[#allocation61_spill] sm:$0xff] }
 0x31e   : > { %2013 = vmatpush.msra.mxu1 %v5683_v21  ;;  %v10185_v21 = vld [vmem:[#allocation93_spill] sm:$0xff] }
 0x31f   : > { %v10226_v11 = vld [vmem:[#allocation73_spill] sm:$0xff] }
 0x320   : > { %2014 = vmatpush.msra.mxu1 %v5691_v44  ;;  %v566_v44 = vadd.f32 %v10185_v21, %v525_v46  ;;  %v10227_v46 = vld [vmem:[#allocation72_spill] sm:$0xff]  ;;  %v10228_v21 = vld [vmem:[#allocation66_spill] sm:$0xff] }
 0x321   : > { %v3244_v59 = vpop.eup %3243  ;;  %1940 = vmatmul.f32.vlgmr.msrb.gmra.mxu1 %v3242_v24  ;;  %v10218_v24 = vld [vmem:[#allocation58_spill] sm:$0xff] }
 0x322   : > { %v6898_v51 = vpop.eup %3245  ;;  %1880 = vmatmul.f32.vlgmr.msra.gmra.mxu3 %v3244_v59  ;;  %2015 = vmatpush.msra.mxu1 %v5698_v45  ;;  %v6925_v45 = vld [vmem:[%s8998_s3 + $0x1d0] sm:$0xff] }
 0x323   : > { %1840 = vmatmul.f32.vlgmr.msrb.gmra.mxu0 %v6898_v51  ;;  %2031 = vmatpush.msra.mxu3 %v5704_v31  ;;  %v1757_v31 = vpop.f32.mrf.mxu0 }
 0x324   : > { %1991 = vmatpush.msrb.mxu0 %v6908_v13  ;;  %2016 = vmatpush.msra.mxu1 %v5713_v56  ;;  %v6933_v56 = vld [vmem:[%s8998_s3 + $0x1c0] sm:$0xff] }
 0x325   : > { %2032 = vmatpush.msra.mxu3 %v5719_v47  ;;  %10186 = vst [vmem:[#allocation71_spill] sm:$0xff] %v6933_v56 }
 0x326   : > { %1992 = vmatpush.msrb.mxu0 %v6916_v10  ;;  %2017 = vmatpush.msra.mxu1 %v5726_v17  ;;  %v10187_v17 = vld [vmem:[#allocation89_spill] sm:$0xff] }
 0x327   : > { %2033 = vmatpush.msra.mxu3 %v5733_v5  ;;  %v607_v5 = vadd.f32 %v10187_v17, %v566_v44  ;;  %v7158_v44 = vld [vmem:[%s8998_s3] sm:$0xff] }
 0x328   : > { %1993 = vmatpush.msrb.mxu0 %v6925_v45  ;;  %2018 = vmatpush.msra.mxu1 %v5741_v7  ;;  %v6942_v7 = vld [vmem:[%s8998_s3 + $0x1b0] sm:$0xff]  ;;  %10229 = vst [vmem:[#allocation93_spill] sm:$0xff] %v7158_v44  ;;  %v10232_v17 = vld [vmem:[#allocation78_spill] sm:$0xff] }
 0x329   : > { %2034 = vmatpush.msra.mxu3 %v5747_v33 }
 0x32a   : > { %1994 = vmatpush.msrb.mxu0 %v6933_v56  ;;  %v1737_v47 = vpop.f32.mrf.mxu2  ;;  %1960 = vmatmul.f32.vlgmr.msrb.gmra.mxu3 %v3244_v59  ;;  %v10224_v59 = vld [vmem:[#allocation62_spill] sm:$0xff] }
 0x32b   : > { %v1758_v43 = vadd.f32 %v1757_v31, %v1737_v47  ;;  %1920 = vmatmul.f32.vlgmr.msra.gmra.mxu0 %v6898_v51  ;;  %2019 = vmatpush.msra.mxu1 %v10026_v8  ;;  %v6958_v8 = vld [vmem:[%s8998_s3 + $0x190] sm:$0xff]  ;;  %v10230_v31 = vld [vmem:[#allocation77_spill] sm:$0xff] }
 0x32c   : > { %1995 = vmatpush.msrb.mxu0 %v6942_v7  ;;  %2035 = vmatpush.msra.mxu3 %v10027_v6  ;;  %v7041_v6 = vld [vmem:[%s8998_s3 + $0x120] sm:$0xff] }
 0x32d   : > { %v1800_v33 = vadd.f32 %v1758_v43, %v607_v5  ;;  %2020 = vmatpush.msra.mxu1 %v5768_v4  ;;  %v6966_v4 = vld [vmem:[%s8998_s3 + $0x180] sm:$0xff]  ;;  %10197 = vst [vmem:[#allocation10_spill] sm:$0xff] %v7041_v6  ;;  %v10234_v43 = vld [vmem:[#allocation83_spill] sm:$0xff] }
 0x32e   : > { %1996 = vmatpush.msrb.mxu0 %v6950_v49  ;;  %2036 = vmatpush.msra.mxu3 %v5774_v19  ;;  %10188 = vst [vmem:[#allocation79_spill] sm:$0xff] %v6966_v4  ;;  %v6974_v19 = vld [vmem:[%s8998_s3 + $0x170] sm:$0xff]  ;;  %v10231_v47 = vld [vmem:[#allocation81_spill] sm:$0xff]  ;;  %v10233_v5 = vld [vmem:[#allocation82_spill] sm:$0xff] }
 0x32f   : > { %3247 = vtanh.f32 %v1800_v33  ;;  %2021 = vmatpush.msra.mxu1 %v5781_v2  ;;  %10189 = vst [vmem:[#allocation21_spill] sm:$0xff] %v6974_v19  ;;  %v10235_v33 = vld [vmem:[#allocation85_spill] sm:$0xff] }
 0x330   : > { %1997 = vmatpush.msrb.mxu0 %v6958_v8  ;;  %2037 = vmatpush.msra.mxu3 %v5787_v16  ;;  %v6984_v16 = vld [vmem:[%s8998_s3 + $0x160] sm:$0xff] }
 0x331   : > { %2022 = vmatpush.msra.mxu1 %v5794_v18  ;;  %10190 = vst [vmem:[#allocation76_spill] sm:$0xff] %v6984_v16  ;;  %v6993_v18 = vld [vmem:[%s8998_s3 + $0xf0] sm:$0xff] }
 0x332   : > { %1998 = vmatpush.msrb.mxu0 %v6966_v4  ;;  %2038 = vmatpush.msra.mxu3 %v5800_v34  ;;  %10191 = vst [vmem:[#allocation7_spill] sm:$0xff] %v6993_v18  ;;  %v6999_v34 = vld [vmem:[%s8998_s3 + $0x150] sm:$0xff] }
 0x333   : > { %2023 = vmatpush.msra.mxu1 %v10029_v55  ;;  %10192 = vst [vmem:[#allocation25_spill] sm:$0xff] %v6999_v34  ;;  %v7055_v55 = vld [vmem:[%s8998_s3 + $0x110] sm:$0xff] }
 0x334   : > { %1999 = vmatpush.msrb.mxu0 %v6974_v19  ;;  %2039 = vmatpush.msra.mxu3 %v5813_v12  ;;  %v7013_v12 = vld [vmem:[%s8998_s3 + $0x140] sm:$0xff] }
 0x335   : > { %v6978_v2 = vpop.eup %3247  ;;  %2024 = vmatpush.msra.mxu1 %v10031_v60  ;;  %10194 = vst [vmem:[#allocation8_spill] sm:$0xff] %v7013_v12  ;;  %v7063_v60 = vld [vmem:[%s8998_s3 + $0xa0] sm:$0xff] }
 0x336   : > { %2000 = vmatpush.msrb.mxu0 %v6984_v16  ;;  %2040 = vmatpush.msra.mxu3 %v5826_v0  ;;  %v7007_v0 = vld [vmem:[%s8998_s3 + $0xe0] sm:$0xff] }
 0x337   : > { %1820 = vmatmul.f32.vlgmr.msrb.gmra.mxu2 %v6978_v2  ;;  %2025 = vmatpush.msra.mxu1 %v10033_v39  ;;  %10193 = vst [vmem:[#allocation80_spill] sm:$0xff] %v7007_v0  ;;  %v7069_v39 = vld [vmem:[%s8998_s3 + $0x100] sm:$0xff] }
 0x338   : > { %1971 = vmatpush.msrb.mxu2 %v6993_v18  ;;  %2001 = vmatpush.msrb.mxu0 %v6999_v34  ;;  %10198 = vst [vmem:[#allocation11_spill] sm:$0xff] %v7069_v39 }
 0x339   : > { %2041 = vmatpush.msra.mxu3 %v5841_v25  ;;  %2026 = vmatpush.msra.mxu1 %v5850_v23  ;;  %v7021_v23 = vld [vmem:[%s8998_s3 + $0xd0] sm:$0xff] }
 0x33a   : > { %1972 = vmatpush.msrb.mxu2 %v7007_v0  ;;  %2002 = vmatpush.msrb.mxu0 %v7013_v12  ;;  %v7027_v25 = vld [vmem:[%s8998_s3 + $0x130] sm:$0xff] }
 0x33b   : > { %2042 = vmatpush.msra.mxu3 %v5857_v37  ;;  %2027 = vmatmul.f32.vlgmr.msra.gmra.mxu1 %v6978_v2  ;;  %10195 = vst [vmem:[#allocation24_spill] sm:$0xff] %v7027_v25  ;;  %v7035_v37 = vld [vmem:[%s8998_s3 + $0xc0] sm:$0xff] }
 0x33c   : > { %1973 = vmatpush.msrb.mxu2 %v7021_v23  ;;  %2003 = vmatpush.msrb.mxu0 %v7027_v25  ;;  %10196 = vst [vmem:[#allocation9_spill] sm:$0xff] %v7035_v37 }
 0x33d   : > { %2043 = vmatpush.msra.mxu3 %v10036_v50  ;;  %2095 = vmatpush.msrb.mxu1 %v5873_v40  ;;  %v7049_v40 = vld [vmem:[%s8998_s3 + $0xb0] sm:$0xff] }
 0x33e   : > { %1974 = vmatpush.msrb.mxu2 %v7035_v37  ;;  %2004 = vmatpush.msrb.mxu0 %v7041_v6  ;;  %v7077_v50 = vld [vmem:[%s8998_s3 + $0x90] sm:$0xff] }
 0x33f   : > { %2044 = vmatpush.msra.mxu3 %v10038_v54  ;;  %1900 = vmatmul.f32.vlgmr.msra.gmra.mxu2 %v6978_v2  ;;  %10199 = vst [vmem:[#allocation12_spill] sm:$0xff] %v7077_v50  ;;  %v7086_v54 = vld [vmem:[%s8998_s3 + $0x80] sm:$0xff] }
 0x340   : > { %1975 = vmatpush.msrb.mxu2 %v7049_v40  ;;  %2005 = vmatpush.msrb.mxu0 %v7055_v55  ;;  %10200 = vst [vmem:[#allocation13_spill] sm:$0xff] %v7086_v54 }
 0x341   : > { %2045 = vmatpush.msra.mxu3 %v10042_v32  ;;  %2096 = vmatpush.msrb.mxu1 %v10039_v29  ;;  %v7095_v29 = vld [vmem:[%s8998_s3 + $0x70] sm:$0xff] }
 0x342   : > { %1976 = vmatpush.msrb.mxu2 %v7063_v60  ;;  %2006 = vmatpush.msrb.mxu0 %v7069_v39  ;;  %10201 = vst [vmem:[#allocation14_spill] sm:$0xff] %v7095_v29  ;;  %v10202_v32 = vld [vmem:[#allocation32_spill] sm:$0xff] }
 0x343   : > { %2046 = vmatpush.msra.mxu3 %v10044_v20  ;;  %2007 = vmatmul.f32.vlgmr.msrb.gmra.mxu0 %v6898_v51  ;;  %v10204_v20 = vld [vmem:[#allocation28_spill] sm:$0xff] }
 0x344   : > { %1977 = vmatpush.msrb.mxu2 %v7077_v50  ;;  %2047 = vmatmul.f32.vlgmr.msra.gmra.mxu3 %v6898_v51  ;;  %v7149_v51 = vld [vmem:[%s8998_s3 + $0x10] sm:$0xff] }
 0x345   : > { %2097 = vmatpush.msrb.mxu1 %v10043_v30  ;;  %2075 = vmatpush.msra.mxu0 %v10045_v9  ;;  %v10203_v30 = vld [vmem:[#allocation31_spill] sm:$0xff]  ;;  %v7104_v9 = vld [vmem:[%s8998_s3 + $0x60] sm:$0xff]  ;;  %10225 = vst [vmem:[#allocation91_spill] sm:$0xff] %v7149_v51 }
 0x346   : > { %1978 = vmatpush.msrb.mxu2 %v7086_v54  ;;  %2115 = vmatpush.msrb.mxu3 %v10048_v15  ;;  %10205 = vst [vmem:[#allocation17_spill] sm:$0xff] %v7104_v9  ;;  %v10207_v15 = vld [vmem:[#allocation40_spill] sm:$0xff] }
 0x347   : > { %2098 = vmatpush.msrb.mxu1 %v10047_v28  ;;  %2076 = vmatpush.msra.mxu0 %v10050_v61  ;;  %v10206_v28 = vld [vmem:[#allocation35_spill] sm:$0xff]  ;;  %v10208_v61 = vld [vmem:[#allocation36_spill] sm:$0xff] }
 0x348   : > { %1979 = vmatpush.msrb.mxu2 %v7095_v29  ;;  %2116 = vmatpush.msrb.mxu3 %v10202_v32  ;;  %v10236_v32 = vld [vmem:[#allocation100_spill] sm:$0xff] }
 0x349   : > { %2099 = vmatpush.msrb.mxu1 %v10203_v30  ;;  %2077 = vmatpush.msra.mxu0 %v10204_v20  ;;  %v10237_v30 = vld [vmem:[#allocation88_spill] sm:$0xff]  ;;  %v10238_v20 = vld [vmem:[#allocation87_spill] sm:$0xff] }
 0x34a   : > { %1980 = vmatpush.msrb.mxu2 %v7104_v9  ;;  %2117 = vmatpush.msrb.mxu3 %v10206_v28  ;;  %v10239_v28 = vld [vmem:[#allocation90_spill] sm:$0xff] }
 0x34b   : > { %2100 = vmatpush.msrb.mxu1 %v10207_v15  ;;  %2078 = vmatpush.msra.mxu0 %v10208_v61  ;;  %v10240_v15 = vld [vmem:[#allocation101_spill] sm:$0xff]  ;;  %v10242_v61 = vld [vmem:[#allocation92_spill] sm:$0xff] }
 0x34c   : > { %1981 = vmatpush.msrb.mxu2 %v7113_v38  ;;  %2118 = vmatpush.msrb.mxu3 %v10210_v1  ;;  %v10243_v1 = vld [vmem:[#allocation70_spill] sm:$0xff] }
 0x34d   : > { %2101 = vmatpush.msrb.mxu1 %v10211_v62  ;;  %2079 = vmatpush.msra.mxu0 %v10212_v35  ;;  %v10244_v62 = vld [vmem:[#allocation102_spill] sm:$0xff]  ;;  %v10245_v35 = vld [vmem:[#allocation65_spill] sm:$0xff] }
 0x34e   : > { %1982 = vmatpush.msrb.mxu2 %v7122_v26  ;;  %2119 = vmatpush.msrb.mxu3 %v10214_v36  ;;  %v10246_v36 = vld [vmem:[#allocation52_spill] sm:$0xff] }
 0x34f   : > { %2102 = vmatpush.msrb.mxu1 %v10215_v58  ;;  %2080 = vmatpush.msra.mxu0 %v10216_v57  ;;  %v10247_v58 = vld [vmem:[#allocation123_spill] sm:$0xff] }
 0x350   : > { %1983 = vmatpush.msrb.mxu2 %v7131_v3  ;;  %2120 = vmatpush.msrb.mxu3 %v10218_v24  ;;  %v10248_v57 = vld [vmem:[#allocation47_spill] sm:$0xff]  ;;  %v10249_v24 = vld [vmem:[#allocation105_spill] sm:$0xff] }
 0x351   : > { %2103 = vmatpush.msrb.mxu1 %v10219_v22  ;;  %2081 = vmatpush.msra.mxu0 %v10220_v27  ;;  %v10250_v22 = vld [vmem:[#allocation124_spill] sm:$0xff]  ;;  %v10251_v27 = vld [vmem:[#allocation126_spill] sm:$0xff] }
 0x352   : > { %1984 = vmatpush.msrb.mxu2 %v7140_v63  ;;  %2121 = vmatpush.msrb.mxu3 %v10222_v42  ;;  %v10252_v42 = vld [vmem:[#allocation125_spill] sm:$0xff] }
 0x353   : > { %2104 = vmatpush.msrb.mxu1 %v10223_v53  ;;  %2082 = vmatpush.msra.mxu0 %v10224_v59  ;;  %v10253_v53 = vld [vmem:[#allocation108_spill] sm:$0xff]  ;;  %v10254_v59 = vld [vmem:[#allocation127_spill] sm:$0xff] }
 0x354   : > { %1985 = vmatpush.msrb.mxu2 %v7149_v51  ;;  %2122 = vmatpush.msrb.mxu3 %v10226_v11  ;;  %v10255_v11 = vld [vmem:[#allocation129_spill] sm:$0xff] }
 0x355   : > { %2105 = vmatpush.msrb.mxu1 %v10227_v46  ;;  %2083 = vmatpush.msra.mxu0 %v10228_v21  ;;  %v10256_v46 = vld [vmem:[#allocation128_spill] sm:$0xff]  ;;  %v10257_v21 = vld [vmem:[#allocation109_spill] sm:$0xff] }
 0x356   : > { %1986 = vmatpush.msrb.mxu2 %v7158_v44  ;;  %2123 = vmatpush.msrb.mxu3 %v10230_v31  ;;  %v10258_v31 = vld [vmem:[#allocation130_spill] sm:$0xff] }
 0x357   : > { %1987 = vmatmul.f32.vlgmr.msrb.gmra.mxu2 %v6978_v2  ;;  %2106 = vmatpush.msrb.mxu1 %v10231_v47  ;;  %v10241_v2 = vld [vmem:[#allocation95_spill] sm:$0xff]  ;;  %v10259_v47 = vld [vmem:[#allocation132_spill] sm:$0xff] }
 0x358   : > { %2084 = vmatpush.msra.mxu0 %v10232_v17  ;;  %2124 = vmatpush.msrb.mxu3 %v10233_v5  ;;  %v10260_v17 = vld [vmem:[#allocation131_spill] sm:$0xff]  ;;  %v10261_v5 = vld [vmem:[#allocation86_spill] sm:$0xff] }
 0x359   : > { %2107 = vmatpush.msrb.mxu1 %v10234_v43  ;;  %2055 = vmatpush.msra.mxu2 %v10235_v33  ;;  %v10262_v43 = vld [vmem:[#allocation133_spill] sm:$0xff]  ;;  %v10263_v33 = vld [vmem:[#allocation135_spill] sm:$0xff] }
 0x35a   : > { %2085 = vmatpush.msra.mxu0 %v10236_v32  ;;  %2125 = vmatpush.msrb.mxu3 %v10237_v30  ;;  %v10264_v30 = vld [vmem:[#allocation134_spill] sm:$0xff] }
 0x35b   : > { %2108 = vmatpush.msrb.mxu1 %v10238_v20  ;;  %2056 = vmatpush.msra.mxu2 %v10239_v28  ;;  %v10265_v20 = vld [vmem:[#allocation30_spill] sm:$0xff]  ;;  %v10266_v28 = vld [vmem:[#allocation136_spill] sm:$0xff] }
 0x35c   : > { %2086 = vmatpush.msra.mxu0 %v10240_v15  ;;  %2126 = vmatpush.msrb.mxu3 %v10241_v2  ;;  %v10267_v2 = vld [vmem:[#allocation138_spill] sm:$0xff] }
 0x35d   : > { %2109 = vmatpush.msrb.mxu1 %v10242_v61  ;;  %2057 = vmatpush.msra.mxu2 %v10243_v1  ;;  %v10268_v61 = vld [vmem:[#allocation137_spill] sm:$0xff] }
 0x35e   : > { %2087 = vmatpush.msra.mxu0 %v10244_v62  ;;  %2127 = vmatpush.msrb.mxu3 %v10245_v35  ;;  %v10269_v1 = vld [vmem:[#allocation33_spill] sm:$0xff]  ;;  %v10270_v35 = vld [vmem:[#allocation139_spill] sm:$0xff] }
 0x35f   : > { %2110 = vmatpush.msrb.mxu1 %v10246_v36  ;;  %2058 = vmatpush.msra.mxu2 %v10247_v58  ;;  %v10271_v36 = vld [vmem:[#allocation141_spill] sm:$0xff]  ;;  %v10272_v58 = vld [vmem:[#allocation140_spill] sm:$0xff] }
 0x360   : > { %2088 = vmatpush.msra.mxu0 %v10249_v24  ;;  %2128 = vmatpush.msrb.mxu3 %v10250_v22  ;;  %v10274_v22 = vld [vmem:[#allocation142_spill] sm:$0xff] }
 0x361   : > { %2175 = vmatpush.msra.mxu1 %v10248_v57  ;;  %2059 = vmatpush.msra.mxu2 %v10251_v27  ;;  %v10273_v57 = vld [vmem:[#allocation75_spill] sm:$0xff]  ;;  %v10275_v27 = vld [vmem:[#allocation144_spill] sm:$0xff] }
 0x362   : > { %2089 = vmatpush.msra.mxu0 %v10253_v53  ;;  %2129 = vmatpush.msrb.mxu3 %v10254_v59  ;;  %v10277_v59 = vld [vmem:[#allocation84_spill] sm:$0xff] }
 0x363   : > { %2176 = vmatpush.msra.mxu1 %v10252_v42  ;;  %2060 = vmatpush.msra.mxu2 %v10255_v11  ;;  %v10276_v42 = vld [vmem:[#allocation143_spill] sm:$0xff]  ;;  %v10278_v11 = vld [vmem:[#allocation145_spill] sm:$0xff] }
 0x364   : > { %2090 = vmatpush.msra.mxu0 %v10257_v21  ;;  %2130 = vmatpush.msrb.mxu3 %v10258_v31  ;;  %v10280_v31 = vld [vmem:[#allocation146_spill] sm:$0xff] }
 0x365   : > { %2177 = vmatpush.msra.mxu1 %v10256_v46  ;;  %2061 = vmatpush.msra.mxu2 %v10259_v47  ;;  %v10279_v46 = vld [vmem:[#allocation147_spill] sm:$0xff]  ;;  %v10281_v47 = vld [vmem:[#allocation69_spill] sm:$0xff] }
 0x366   : > { %2155 = vmatpush.msrb.mxu0 %v10261_v5  ;;  %2195 = vmatpush.msra.mxu3 %v10262_v43  ;;  %v10283_v43 = vld [vmem:[#allocation150_spill] sm:$0xff] }
 0x367   : > { %2178 = vmatpush.msra.mxu1 %v10260_v17  ;;  %2062 = vmatpush.msra.mxu2 %v10263_v33  ;;  %v10282_v17 = vld [vmem:[#allocation148_spill] sm:$0xff]  ;;  %v10284_v33 = vld [vmem:[#allocation149_spill] sm:$0xff] }
 0x368   : > { %2156 = vmatpush.msrb.mxu0 %v10265_v20  ;;  %2196 = vmatpush.msra.mxu3 %v10266_v28  ;;  %v10286_v28 = vld [vmem:[#allocation151_spill] sm:$0xff] }
 0x369   : > { %2179 = vmatpush.msra.mxu1 %v10264_v30  ;;  %2063 = vmatpush.msra.mxu2 %v10267_v2  ;;  %v10285_v30 = vld [vmem:[#allocation59_spill] sm:$0xff]  ;;  %v10287_v2 = vld [vmem:[#allocation153_spill] sm:$0xff] }
 0x36a   : > { %2157 = vmatpush.msrb.mxu0 %v10269_v1  ;;  %2197 = vmatpush.msra.mxu3 %v10270_v35  ;;  %v10289_v35 = vld [vmem:[#allocation60_spill] sm:$0xff] }
 0x36b   : > { %2180 = vmatpush.msra.mxu1 %v10268_v61  ;;  %2064 = vmatpush.msra.mxu2 %v10271_v36  ;;  %v10288_v61 = vld [vmem:[#allocation152_spill] sm:$0xff]  ;;  %v10290_v36 = vld [vmem:[#allocation154_spill] sm:$0xff] }
 0x36c   : > { %2158 = vmatpush.msrb.mxu0 %v10273_v57  ;;  %2198 = vmatpush.msra.mxu3 %v10274_v22  ;;  %v10292_v22 = vld [vmem:[#allocation155_spill] sm:$0xff] }
 0x36d   : > { %2181 = vmatpush.msra.mxu1 %v10272_v58  ;;  %2065 = vmatpush.msra.mxu2 %v10275_v27  ;;  %v10291_v58 = vld [vmem:[#allocation156_spill] sm:$0xff] }
 0x36e   : > { %2159 = vmatpush.msrb.mxu0 %v10277_v59  ;;  %2199 = vmatpush.msra.mxu3 %v10278_v11  ;;  %v10293_v27 = vld [vmem:[#allocation16_spill] sm:$0xff]  ;;  %v10295_v11 = vld [vmem:[#allocation159_spill] sm:$0xff] }
 0x36f   : > { %2182 = vmatpush.msra.mxu1 %v10276_v42  ;;  %2066 = vmatpush.msra.mxu2 %v10279_v46  ;;  %v10294_v42 = vld [vmem:[#allocation157_spill] sm:$0xff]  ;;  %v10296_v46 = vld [vmem:[#allocation158_spill] sm:$0xff] }
 0x370   : > { %2160 = vmatpush.msrb.mxu0 %v10281_v47  ;;  %2200 = vmatpush.msra.mxu3 %v10282_v17  ;;  %v10298_v17 = vld [vmem:[#allocation160_spill] sm:$0xff]  ;;  %v10331_v47 = vld [vmem:[#allocation38_spill] sm:$0xff] }
 0x371   : > { %2183 = vmatpush.msra.mxu1 %v10280_v31  ;;  %2067 = vmatpush.msra.mxu2 %v10283_v43  ;;  %v10297_v31 = vld [vmem:[#allocation63_spill] sm:$0xff]  ;;  %v10299_v43 = vld [vmem:[#allocation162_spill] sm:$0xff] }
 0x372   : > { %2161 = vmatpush.msrb.mxu0 %v10285_v30  ;;  %2201 = vmatpush.msra.mxu3 %v10286_v28  ;;  %v10301_v28 = vld [vmem:[#allocation19_spill] sm:$0xff] }
 0x373   : > { %2184 = vmatpush.msra.mxu1 %v10284_v33  ;;  %2068 = vmatpush.msra.mxu2 %v10287_v2  ;;  %v10300_v33 = vld [vmem:[#allocation161_spill] sm:$0xff]  ;;  %v10302_v2 = vld [vmem:[#allocation110_spill] sm:$0xff] }
 0x374   : > { %2162 = vmatpush.msrb.mxu0 %v10289_v35  ;;  %2202 = vmatpush.msra.mxu3 %v10290_v36  ;;  %v10304_v36 = vld [vmem:[#allocation163_spill] sm:$0xff] }
 0x375   : > { %2185 = vmatpush.msra.mxu1 %v10288_v61  ;;  %2069 = vmatpush.msra.mxu2 %v10291_v58  ;;  %v10303_v61 = vld [vmem:[#allocation164_spill] sm:$0xff]  ;;  %v10305_v58 = vld [vmem:[#allocation15_spill] sm:$0xff] }
 0x376   : > { %2163 = vmatpush.msrb.mxu0 %v10293_v27  ;;  %2203 = vmatpush.msra.mxu3 %v10294_v42  ;;  %v10307_v42 = vld [vmem:[#allocation166_spill] sm:$0xff] }
 0x377   : > { %2186 = vmatpush.msra.mxu1 %v10292_v22  ;;  %2070 = vmatpush.msra.mxu2 %v10295_v11  ;;  %v10306_v22 = vld [vmem:[#allocation111_spill] sm:$0xff]  ;;  %v10308_v11 = vld [vmem:[#allocation165_spill] sm:$0xff] }
 0x378   : > { %2164 = vmatpush.msrb.mxu0 %v10297_v31  ;;  %2204 = vmatpush.msra.mxu3 %v10298_v17  ;;  %v10310_v17 = vld [vmem:[#allocation113_spill] sm:$0xff] }
 0x379   : > { %2187 = vmatpush.msra.mxu1 %v10296_v46  ;;  %2135 = vmatpush.msrb.mxu2 %v10299_v43  ;;  %v10309_v46 = vld [vmem:[#allocation22_spill] sm:$0xff]  ;;  %v10311_v43 = vld [vmem:[#allocation167_spill] sm:$0xff] }
 0x37a   : > { %2165 = vmatpush.msrb.mxu0 %v10301_v28  ;;  %2205 = vmatpush.msra.mxu3 %v10302_v2  ;;  %v10313_v2 = vld [vmem:[#allocation116_spill] sm:$0xff] }
 0x37b   : > { %2188 = vmatpush.msra.mxu1 %v10300_v33  ;;  %2136 = vmatpush.msrb.mxu2 %v10303_v61  ;;  %v10312_v33 = vld [vmem:[#allocation64_spill] sm:$0xff] }
 0x37c   : > { %2166 = vmatpush.msrb.mxu0 %v10305_v58  ;;  %2206 = vmatpush.msra.mxu3 %v10306_v22  ;;  %v10314_v61 = vld [vmem:[#allocation168_spill] sm:$0xff]  ;;  %v10316_v58 = vld [vmem:[#allocation118_spill] sm:$0xff]  ;;  %v10317_v22 = vld [vmem:[#allocation169_spill] sm:$0xff] }
 0x37d   : > { %2189 = vmatpush.msra.mxu1 %v10304_v36  ;;  %2137 = vmatpush.msrb.mxu2 %v10307_v42  ;;  %v10315_v36 = vld [vmem:[#allocation23_spill] sm:$0xff]  ;;  %v10318_v42 = vld [vmem:[#allocation26_spill] sm:$0xff] }
 0x37e   : > { %2167 = vmatpush.msrb.mxu0 %v10309_v46  ;;  %2207 = vmatpush.msra.mxu3 %v10310_v17  ;;  %v10320_v46 = vld [vmem:[#allocation171_spill] sm:$0xff]  ;;  %v10321_v17 = vld [vmem:[#allocation172_spill] sm:$0xff] }
 0x37f   : > { %2190 = vmatpush.msra.mxu1 %v10308_v11  ;;  %2138 = vmatpush.msrb.mxu2 %v10311_v43  ;;  %v10319_v11 = vld [vmem:[#allocation170_spill] sm:$0xff]  ;;  %v10322_v43 = vld [vmem:[#allocation173_spill] sm:$0xff] }
 0x380   : > { %2168 = vmatpush.msrb.mxu0 %v10312_v33  ;;  %2208 = vmatpush.msra.mxu3 %v10313_v2  ;;  %v10323_v33 = vld [vmem:[#allocation174_spill] sm:$0xff]  ;;  %v10324_v2 = vld [vmem:[#allocation68_spill] sm:$0xff] }
 0x381   : > { %2139 = vmatpush.msrb.mxu2 %v10314_v61  ;;  %v10325_v61 = vld [vmem:[#allocation27_spill] sm:$0xff] }
 0x382   : > { %2169 = vmatpush.msrb.mxu0 %v10315_v36  ;;  %2209 = vmatpush.msra.mxu3 %v10316_v58  ;;  %v10326_v36 = vld [vmem:[#allocation18_spill] sm:$0xff] }
 0x383   : > { %2140 = vmatpush.msrb.mxu2 %v10317_v22  ;;  %v10327_v58 = vld [vmem:[#allocation74_spill] sm:$0xff] }
 0x384   : > { %2170 = vmatpush.msrb.mxu0 %v10318_v42  ;;  %2210 = vmatpush.msra.mxu3 %v10319_v11  ;;  %v10328_v22 = vld [vmem:[#allocation6_spill] sm:$0xff]  ;;  %v10329_v42 = vld [vmem:[#allocation29_spill] sm:$0xff] }
 0x385   : > { %2141 = vmatpush.msrb.mxu2 %v10320_v46 }
 0x387   : > { %2142 = vmatpush.msrb.mxu2 %v10321_v17 }
 0x389   : > { %2143 = vmatpush.msrb.mxu2 %v10322_v43 }
 0x38b   : > { %2144 = vmatpush.msrb.mxu2 %v10323_v33 }
 0x38d   : > { %2145 = vmatpush.msrb.mxu2 %v10324_v2 }
 0x38f   : > { %2146 = vmatpush.msrb.mxu2 %v10325_v61 }
 0x391   : > { %2147 = vmatpush.msrb.mxu2 %v10326_v36 }
 0x393   : > { %2148 = vmatpush.msrb.mxu2 %v10327_v58  ;;  %v10330_v58 = vld [vmem:[#allocation99_spill] sm:$0xff] }
 0x395   : > { %2149 = vmatpush.msrb.mxu2 %v10328_v22  ;;  %v651_v22 = vadd.f32 %v10330_v58, %v5303_v52  ;;  %v10334_v58 = vld [vmem:[#allocation98_spill] sm:$0xff] }
 0x396   : > { %v1861_v11 = vpop.f32.mrf.mxu1 }
 0x397   : > { %2150 = vmatpush.msrb.mxu2 %v10329_v42  ;;  %v692_v59 = vadd.f32 %v10331_v47, %v651_v22  ;;  %v7277_v47 = vld [vmem:[%s8998_s3 + $0xe8] sm:$0xff] }
 0x39e   : > { %v1941_v33 = vpop.f32.mrf.mxu1 }
 0x3a0   : > { %v1841_v28 = vpop.f32.mrf.mxu0 }
 0x3a5   : > { %v1881_v46 = vpop.f32.mrf.mxu3 }
 0x3a8   : > { %v1921_v30 = vpop.f32.mrf.mxu0 }
 0x3ad   : > { %v1961_v27 = vpop.f32.mrf.mxu3 }
 0x3b8   : > { %v2028_v57 = vpop.f32.mrf.mxu1 }
 0x3ba   : > { %v1821_v17 = vpop.f32.mrf.mxu2 }
 0x3bb   : > { %v1822_v43 = vadd.f32 %v1821_v17, %v10180_v41  ;;  %v10332_v17 = vld [vmem:[#allocation41_spill] sm:$0xff] }
 0x3bd   : > { %v1842_v31 = vadd.f32 %v1841_v28, %v1822_v43  ;;  %v733_v28 = vadd.f32 %v10332_v17, %v692_v59 }
 0x3bf   : > { %v1862_v2 = vadd.f32 %v1861_v11, %v1842_v31  ;;  %v7327_v11 = vld [vmem:[%s8998_s3 + $0x98] sm:$0xff] }
 0x3c0   : > { %v2008_v17 = vpop.f32.mrf.mxu0 }
 0x3c1   : > { %v1882_v35 = vadd.f32 %v1881_v46, %v1862_v2  ;;  %v7334_v46 = vld [vmem:[%s8998_s3 + $0x1d8] sm:$0xff] }
 0x3c2   : > { %v1901_v61 = vpop.f32.mrf.mxu2 }
 0x3c3   : > { %3249 = vtanh.f32 %v1882_v35  ;;  %v1902_v36 = vadd.f32 %v1901_v61, %v5659_v14  ;;  %v7271_v35 = vld [vmem:[%s8998_s3 + $0xf8] sm:$0xff]  ;;  %v7320_v61 = vld [vmem:[%s8998_s3 + $0x1e8] sm:$0xff] }
 0x3c5   : > { %v1922_v42 = vadd.f32 %v1921_v30, %v1902_v36  ;;  %v10333_v30 = vld [vmem:[#allocation97_spill] sm:$0xff] }
 0x3c6   : > { %v7300_v36 = vld [vmem:[%s8998_s3 + $0xb8] sm:$0xff] }
 0x3c7   : > { %v1942_v1 = vadd.f32 %v1941_v33, %v1922_v42  ;;  %v2048_v20 = vpop.f32.mrf.mxu3  ;;  %v7307_v42 = vld [vmem:[%s8998_s3 + $0x1f8] sm:$0xff]  ;;  %v7340_v33 = vld [vmem:[%s8998_s3 + $0x88] sm:$0xff] }
 0x3c8   : > { %v2049_v43 = vadd.f32 %v2048_v20, %v2028_v57  ;;  %v7283_v20 = vld [vmem:[%s8998_s3 + $0xd8] sm:$0xff]  ;;  %v7289_v57 = vld [vmem:[%s8998_s3 + $0xc8] sm:$0xff] }
 0x3c9   : > { %v3250_v41 = vpop.eup %3249  ;;  %v1962_v31 = vadd.f32 %v1961_v27, %v1942_v1  ;;  %v528_v27 = vadd.f32 %v10333_v30, %v5275_v48 }
 0x3ca   : > { %v2052_v2 = vadd.f32 %v2049_v43, %v733_v28  ;;  %2111 = vmatmul.f32.vlgmr.msrb.gmra.mxu1 %v3250_v41  ;;  %v7347_v28 = vld [vmem:[%s8998_s3 + $0x1c8] sm:$0xff] }
 0x3cb   : > { %3251 = vtanh.f32 %v1962_v31  ;;  %2262 = vmatpush.msrb.mxu1 %v7271_v35  ;;  %v569_v22 = vadd.f32 %v10334_v58, %v528_v27  ;;  %v10335_v31 = vld [vmem:[#allocation96_spill] sm:$0xff] }
 0x3cc   : > { %3253 = vtanh.f32 %v2052_v2  ;;  %v7356_v27 = vld [vmem:[%s8998_s3 + $0x78] sm:$0xff] }
 0x3cd   : > { %2263 = vmatpush.msrb.mxu1 %v7277_v47  ;;  %v610_v2 = vadd.f32 %v10335_v31, %v569_v22  ;;  %v7375_v22 = vld [vmem:[%s8998_s3 + $0x1a8] sm:$0xff] }
 0x3ce   : > { %v7395_v31 = vld [vmem:[%s8998_s3 + $0x48] sm:$0xff] }
 0x3cf   : > { %2264 = vmatpush.msrb.mxu1 %v7283_v20 }
 0x3d1   : > { %v3252_v1 = vpop.eup %3251  ;;  %2265 = vmatpush.msrb.mxu1 %v7289_v57 }
 0x3d2   : > { %v7292_v59 = vpop.eup %3253  ;;  %2131 = vmatmul.f32.vlgmr.msrb.gmra.mxu3 %v3252_v1  ;;  %2191 = vmatmul.f32.vlgmr.msra.gmra.mxu1 %v3250_v41  ;;  %v7313_v41 = vld [vmem:[%s8998_s3 + $0xa8] sm:$0xff] }
 0x3d3   : > { %2091 = vmatmul.f32.vlgmr.msra.gmra.mxu0 %v7292_v59  ;;  %2266 = vmatpush.msrb.mxu1 %v7300_v36 }
 0x3d4   : > { %2242 = vmatpush.msra.mxu0 %v6908_v13  ;;  %2282 = vmatpush.msrb.mxu3 %v7307_v42 }
 0x3d5   : > { %2267 = vmatpush.msrb.mxu1 %v7313_v41 }
 0x3d6   : > { %2243 = vmatpush.msra.mxu0 %v6916_v10  ;;  %2283 = vmatpush.msrb.mxu3 %v7320_v61 }
 0x3d7   : > { %2268 = vmatpush.msrb.mxu1 %v7327_v11 }
 0x3d8   : > { %2244 = vmatpush.msra.mxu0 %v6925_v45  ;;  %2284 = vmatpush.msrb.mxu3 %v7334_v46 }
 0x3d9   : > { %2269 = vmatpush.msrb.mxu1 %v7340_v33 }
 0x3da   : > { %2245 = vmatpush.msra.mxu0 %v6933_v56  ;;  %2285 = vmatpush.msrb.mxu3 %v7347_v28  ;;  %v1988_v43 = vpop.f32.mrf.mxu2  ;;  %v7362_v56 = vld [vmem:[%s8998_s3 + $0x1b8] sm:$0xff] }
 0x3db   : > { %v2009_v30 = vadd.f32 %v2008_v17, %v1988_v43  ;;  %2171 = vmatmul.f32.vlgmr.msrb.gmra.mxu0 %v7292_v59  ;;  %2211 = vmatmul.f32.vlgmr.msra.gmra.mxu3 %v3252_v1  ;;  %v7369_v1 = vld [vmem:[%s8998_s3 + $0x68] sm:$0xff]  ;;  %v7382_v17 = vld [vmem:[%s8998_s3 + $0x58] sm:$0xff] }
 0x3dc   : > { %2246 = vmatpush.msra.mxu0 %v6942_v7  ;;  %2270 = vmatpush.msrb.mxu1 %v7356_v27  ;;  %v7388_v43 = vld [vmem:[%s8998_s3 + $0x198] sm:$0xff] }
 0x3dd   : > { %v2051_v58 = vadd.f32 %v2009_v30, %v610_v2  ;;  %2286 = vmatpush.msrb.mxu3 %v7362_v56  ;;  %v7401_v2 = vld [vmem:[%s8998_s3 + $0x188] sm:$0xff]  ;;  %v7408_v30 = vld [vmem:[%s8998_s3 + $0x38] sm:$0xff] }
 0x3de   : > { %2247 = vmatpush.msra.mxu0 %v6950_v49  ;;  %2271 = vmatpush.msrb.mxu1 %v7369_v1  ;;  %10336 = vst [vmem:[#allocation89_spill] sm:$0xff] %v7408_v30 }
 0x3df   : > { %3255 = vtanh.f32 %v2051_v58  ;;  %2287 = vmatpush.msrb.mxu3 %v7375_v22 }
 0x3e0   : > { %2248 = vmatpush.msra.mxu0 %v6958_v8  ;;  %2272 = vmatpush.msrb.mxu1 %v7382_v17 }
 0x3e1   : > { %2288 = vmatpush.msrb.mxu3 %v7388_v43 }
 0x3e2   : > { %2249 = vmatpush.msra.mxu0 %v6966_v4  ;;  %2273 = vmatpush.msrb.mxu1 %v7395_v31  ;;  %v7416_v4 = vld [vmem:[%s8998_s3 + $0x178] sm:$0xff] }
 0x3e3   : > { %2289 = vmatpush.msrb.mxu3 %v7401_v2 }
 0x3e4   : > { %2250 = vmatpush.msra.mxu0 %v6974_v19  ;;  %2274 = vmatpush.msrb.mxu1 %v7408_v30  ;;  %v7423_v19 = vld [vmem:[%s8998_s3 + $0x28] sm:$0xff] }
 0x3e5   : > { %v7411_v58 = vpop.eup %3255  ;;  %2290 = vmatpush.msrb.mxu3 %v7416_v4  ;;  %10337 = vst [vmem:[#allocation32_spill] sm:$0xff] %v7423_v19  ;;  %v7429_v30 = vld [vmem:[%s8998_s3 + $0x168] sm:$0xff] }
 0x3e6   : > { %2251 = vmatpush.msra.mxu0 %v6984_v16  ;;  %2275 = vmatpush.msrb.mxu1 %v7423_v19  ;;  %v7438_v16 = vld [vmem:[%s8998_s3 + $0x18] sm:$0xff] }
 0x3e7   : > { %2291 = vmatpush.msrb.mxu3 %v7429_v30  ;;  %2071 = vmatmul.f32.vlgmr.msra.gmra.mxu2 %v7411_v58  ;;  %v7444_v19 = vld [vmem:[%s8998_s3 + $0x158] sm:$0xff] }
 0x3e8   : > { %2222 = vmatpush.msra.mxu2 %v6993_v18  ;;  %2252 = vmatpush.msra.mxu0 %v6999_v34  ;;  %v7452_v34 = vld [vmem:[%s8998_s3 + $0x8] sm:$0xff] }
 0x3e9   : > { %2276 = vmatpush.msrb.mxu1 %v7438_v16  ;;  %2292 = vmatpush.msrb.mxu3 %v7444_v19  ;;  %v7458_v18 = vld [vmem:[%s8998_s3 + $0x148] sm:$0xff] }
 0x3ea   : > { %2223 = vmatpush.msra.mxu2 %v7007_v0  ;;  %2253 = vmatpush.msra.mxu0 %v7013_v12  ;;  %v7467_v12 = vld [vmem:[%s8998_s3 + $0x138] sm:$0xff]  ;;  %v7474_v0 = vld [vmem:[%s8999_s4 + $0x2f0] sm:$0xff] }
 0x3eb   : > { %2277 = vmatpush.msrb.mxu1 %v7452_v34  ;;  %2293 = vmatpush.msrb.mxu3 %v7458_v18 }
 0x3ec   : > { %2224 = vmatpush.msra.mxu2 %v7021_v23  ;;  %2278 = vmatmul.f32.vlgmr.msrb.gmra.mxu1 %v7411_v58 }
 0x3ed   : > { %2254 = vmatpush.msra.mxu0 %v7027_v25  ;;  %2294 = vmatpush.msrb.mxu3 %v7467_v12  ;;  %v7481_v25 = vld [vmem:[%s8998_s3 + $0x128] sm:$0xff] }
 0x3ee   : > { %2225 = vmatpush.msra.mxu2 %v7035_v37  ;;  %2346 = vmatpush.msra.mxu1 %v7474_v0  ;;  %10338 = vst [vmem:[#allocation31_spill] sm:$0xff] %v7481_v25  ;;  %v7488_v37 = vld [vmem:[%s8999_s4 + $0x2e0] sm:$0xff] }
 0x3ef   : > { %2255 = vmatpush.msra.mxu0 %v7041_v6  ;;  %2295 = vmatpush.msrb.mxu3 %v7481_v25  ;;  %10339 = vst [vmem:[#allocation28_spill] sm:$0xff] %v7488_v37  ;;  %v7496_v6 = vld [vmem:[%s8998_s3 + $0x118] sm:$0xff]  ;;  %v7502_v25 = vld [vmem:[%s8999_s4 + $0x2d0] sm:$0xff] }
 0x3f0   : > { %2151 = vmatmul.f32.vlgmr.msrb.gmra.mxu2 %v7411_v58  ;;  %2347 = vmatpush.msra.mxu1 %v7488_v37  ;;  %10340 = vst [vmem:[#allocation35_spill] sm:$0xff] %v7502_v25  ;;  %v7510_v37 = vld [vmem:[%s8998_s3 + $0x108] sm:$0xff] }
 0x3f1   : > { %2226 = vmatpush.msra.mxu2 %v7049_v40  ;;  %2256 = vmatpush.msra.mxu0 %v7055_v55  ;;  %10341 = vst [vmem:[#allocation40_spill] sm:$0xff] %v7510_v37 }
 0x3f2   : > { %2296 = vmatpush.msrb.mxu3 %v7496_v6  ;;  %2348 = vmatpush.msra.mxu1 %v7502_v25  ;;  %v7519_v25 = vld [vmem:[%s8999_s4 + $0x2c0] sm:$0xff] }
 0x3f3   : > { %2227 = vmatpush.msra.mxu2 %v7063_v60  ;;  %2257 = vmatpush.msra.mxu0 %v7069_v39  ;;  %10342 = vst [vmem:[#allocation36_spill] sm:$0xff] %v7519_v25  ;;  %v7525_v39 = vld [vmem:[%s8999_s4 + $0x1f0] sm:$0xff] }
 0x3f4   : > { %2297 = vmatpush.msrb.mxu3 %v7510_v37  ;;  %2258 = vmatmul.f32.vlgmr.msra.gmra.mxu0 %v7292_v59  ;;  %10343 = vst [vmem:[#allocation44_spill] sm:$0xff] %v7525_v39 }
 0x3f5   : > { %2228 = vmatpush.msra.mxu2 %v7077_v50  ;;  %2298 = vmatmul.f32.vlgmr.msrb.gmra.mxu3 %v7292_v59  ;;  %v7532_v59 = vld [vmem:[%s8999_s4 + $0x3f0] sm:$0xff] }
 0x3f6   : > { %2349 = vmatpush.msra.mxu1 %v7519_v25  ;;  %2326 = vmatpush.msrb.mxu0 %v7525_v39  ;;  %10344 = vst [vmem:[#allocation43_spill] sm:$0xff] %v7532_v59  ;;  %v7538_v25 = vld [vmem:[%s8999_s4 + $0x2b0] sm:$0xff]  ;;  %v7544_v39 = vld [vmem:[%s8999_s4 + $0x1e0] sm:$0xff] }
 0x3f7   : > { %2229 = vmatpush.msra.mxu2 %v7086_v54  ;;  %2366 = vmatpush.msra.mxu3 %v7532_v59  ;;  %10345 = vst [vmem:[#allocation39_spill] sm:$0xff] %v7538_v25  ;;  %v7551_v59 = vld [vmem:[%s8999_s4 + $0x3e0] sm:$0xff] }
 0x3f8   : > { %2350 = vmatpush.msra.mxu1 %v7538_v25  ;;  %10346 = vst [vmem:[#allocation48_spill] sm:$0xff] %v7544_v39  ;;  %2327 = vmatpush.msrb.mxu0 %v7544_v39  ;;  %v7557_v25 = vld [vmem:[%s8999_s4 + $0x2a0] sm:$0xff]  ;;  %v7563_v39 = vld [vmem:[%s8999_s4 + $0x1d0] sm:$0xff] }
 0x3f9   : > { %2230 = vmatpush.msra.mxu2 %v7095_v29  ;;  %10347 = vst [vmem:[#allocation54_spill] sm:$0xff] %v7551_v59  ;;  %2367 = vmatpush.msra.mxu3 %v7551_v59  ;;  %v7570_v59 = vld [vmem:[%s8999_s4 + $0x3d0] sm:$0xff] }
 0x3fa   : > { %10348 = vst [vmem:[#allocation49_spill] sm:$0xff] %v7557_v25  ;;  %2351 = vmatpush.msra.mxu1 %v7557_v25  ;;  %2328 = vmatpush.msrb.mxu0 %v7563_v39  ;;  %v7576_v25 = vld [vmem:[%s8999_s4 + $0x290] sm:$0xff] }
 0x3fb   : > { %10349 = vst [vmem:[#allocation58_spill] sm:$0xff] %v7563_v39  ;;  %2231 = vmatpush.msra.mxu2 %v7104_v9  ;;  %2368 = vmatpush.msra.mxu3 %v7570_v59  ;;  %v7582_v39 = vld [vmem:[%s8999_s4 + $0x1c0] sm:$0xff] }
 0x3fc   : > { %10350 = vst [vmem:[#allocation57_spill] sm:$0xff] %v7570_v59  ;;  %2352 = vmatpush.msra.mxu1 %v7576_v25  ;;  %2329 = vmatpush.msrb.mxu0 %v7582_v39  ;;  %v7589_v59 = vld [vmem:[%s8999_s4 + $0x3c0] sm:$0xff] }
 0x3fd   : > { %10351 = vst [vmem:[#allocation53_spill] sm:$0xff] %v7576_v25  ;;  %2232 = vmatpush.msra.mxu2 %v7113_v38  ;;  %2369 = vmatpush.msra.mxu3 %v7589_v59  ;;  %v7595_v25 = vld [vmem:[%s8999_s4 + $0x280] sm:$0xff] }
 0x3fe   : > { %10352 = vst [vmem:[#allocation61_spill] sm:$0xff] %v7582_v39  ;;  %2353 = vmatpush.msra.mxu1 %v7595_v25  ;;  %v7601_v39 = vld [vmem:[%s8999_s4 + $0x1b0] sm:$0xff]  ;;  %v10462_v9 = vld [vmem:[#allocation42_spill] sm:$0xff] }
 0x3ff   : > { %10353 = vst [vmem:[#allocation67_spill] sm:$0xff] %v7589_v59  ;;  %2330 = vmatpush.msrb.mxu0 %v7601_v39  ;;  %2233 = vmatpush.msra.mxu2 %v7122_v26  ;;  %v7608_v59 = vld [vmem:[%s8999_s4 + $0x3b0] sm:$0xff] }
 0x400   : > { %10354 = vst [vmem:[#allocation62_spill] sm:$0xff] %v7595_v25  ;;  %2370 = vmatpush.msra.mxu3 %v7608_v59  ;;  %v7614_v25 = vld [vmem:[%s8999_s4 + $0x270] sm:$0xff] }
 0x401   : > { %10355 = vst [vmem:[#allocation73_spill] sm:$0xff] %v7601_v39  ;;  %2354 = vmatpush.msra.mxu1 %v7614_v25  ;;  %v7620_v39 = vld [vmem:[%s8999_s4 + $0x1a0] sm:$0xff]  ;;  %2234 = vmatpush.msra.mxu2 %v7131_v3 }
 0x402   : > { %10356 = vst [vmem:[#allocation72_spill] sm:$0xff] %v7608_v59  ;;  %2331 = vmatpush.msrb.mxu0 %v7620_v39  ;;  %v7627_v59 = vld [vmem:[%s8999_s4 + $0x3a0] sm:$0xff] }
 0x403   : > { %10357 = vst [vmem:[#allocation66_spill] sm:$0xff] %v7614_v25  ;;  %2371 = vmatpush.msra.mxu3 %v7627_v59  ;;  %v7633_v25 = vld [vmem:[%s8999_s4 + $0x260] sm:$0xff]  ;;  %2235 = vmatpush.msra.mxu2 %v7140_v63 }
 0x404   : > { %10358 = vst [vmem:[#allocation77_spill] sm:$0xff] %v7620_v39  ;;  %2355 = vmatpush.msra.mxu1 %v7633_v25  ;;  %v7639_v39 = vld [vmem:[%s8999_s4 + $0x190] sm:$0xff] }
 0x405   : > { %10359 = vst [vmem:[#allocation81_spill] sm:$0xff] %v7627_v59  ;;  %2332 = vmatpush.msrb.mxu0 %v7639_v39  ;;  %v7646_v59 = vld [vmem:[%s8999_s4 + $0x390] sm:$0xff]  ;;  %2236 = vmatpush.msra.mxu2 %v7149_v51 }
 0x406   : > { %10360 = vst [vmem:[#allocation78_spill] sm:$0xff] %v7633_v25  ;;  %2372 = vmatpush.msra.mxu3 %v7646_v59  ;;  %v7652_v25 = vld [vmem:[%s8999_s4 + $0x250] sm:$0xff] }
 0x407   : > { %10361 = vst [vmem:[#allocation82_spill] sm:$0xff] %v7639_v39  ;;  %2356 = vmatpush.msra.mxu1 %v7652_v25  ;;  %v7658_v39 = vld [vmem:[%s8999_s4 + $0x180] sm:$0xff]  ;;  %2237 = vmatpush.msra.mxu2 %v7158_v44 }
 0x408   : > { %10362 = vst [vmem:[#allocation83_spill] sm:$0xff] %v7646_v59  ;;  %2333 = vmatpush.msrb.mxu0 %v7658_v39  ;;  %v7665_v59 = vld [vmem:[%s8999_s4 + $0x380] sm:$0xff]  ;;  %2238 = vmatmul.f32.vlgmr.msra.gmra.mxu2 %v7411_v58 }
 0x409   : > { %10363 = vst [vmem:[#allocation85_spill] sm:$0xff] %v7652_v25  ;;  %2373 = vmatpush.msra.mxu3 %v7665_v59  ;;  %v7671_v25 = vld [vmem:[%s8999_s4 + $0x240] sm:$0xff] }
 0x40a   : > { %10364 = vst [vmem:[#allocation100_spill] sm:$0xff] %v7658_v39  ;;  %2357 = vmatpush.msra.mxu1 %v7671_v25  ;;  %v7677_v39 = vld [vmem:[%s8999_s4 + $0x170] sm:$0xff]  ;;  %v7697_v44 = vld [vmem:[%s8999_s4 + $0x160] sm:$0xff] }
 0x40b   : > { %10365 = vst [vmem:[#allocation88_spill] sm:$0xff] %v7665_v59  ;;  %2334 = vmatpush.msrb.mxu0 %v7677_v39  ;;  %v7684_v59 = vld [vmem:[%s8999_s4 + $0x370] sm:$0xff]  ;;  %v7709_v58 = vld [vmem:[%s8999_s4 + $0x220] sm:$0xff] }
 0x40c   : > { %10366 = vst [vmem:[#allocation87_spill] sm:$0xff] %v7671_v25  ;;  %2374 = vmatpush.msra.mxu3 %v7684_v59  ;;  %v7691_v25 = vld [vmem:[%s8999_s4 + $0x230] sm:$0xff] }
 0x40d   : > { %10367 = vst [vmem:[#allocation90_spill] sm:$0xff] %v7677_v39  ;;  %2358 = vmatpush.msra.mxu1 %v7691_v25  ;;  %2335 = vmatpush.msrb.mxu0 %v7697_v44  ;;  %v10460_v39 = vld [vmem:[#allocation56_spill] sm:$0xff] }
 0x40e   : > { %10368 = vst [vmem:[#allocation101_spill] sm:$0xff] %v7684_v59  ;;  %v7703_v59 = vld [vmem:[%s8999_s4 + $0x360] sm:$0xff] }
 0x40f   : > { %10369 = vst [vmem:[#allocation95_spill] sm:$0xff] %v7691_v25  ;;  %2375 = vmatpush.msra.mxu3 %v7703_v59  ;;  %2359 = vmatpush.msra.mxu1 %v7709_v58  ;;  %v7715_v25 = vld [vmem:[%s8999_s4 + $0xf0] sm:$0xff] }
 0x410   : > { %10370 = vst [vmem:[#allocation92_spill] sm:$0xff] %v7697_v44  ;;  %2306 = vmatpush.msrb.mxu2 %v7715_v25  ;;  %2336 = vmatpush.msrb.mxu0 %v10236_v32  ;;  %v7741_v32 = vld [vmem:[%s8999_s4 + $0x340] sm:$0xff] }
 0x411   : > { %10371 = vst [vmem:[#allocation70_spill] sm:$0xff] %v7703_v59  ;;  %v7722_v59 = vld [vmem:[%s8999_s4 + $0x350] sm:$0xff] }
 0x412   : > { %10372 = vst [vmem:[#allocation102_spill] sm:$0xff] %v7709_v58  ;;  %2376 = vmatpush.msra.mxu3 %v7722_v59  ;;  %v7728_v58 = vld [vmem:[%s8999_s4 + $0x210] sm:$0xff]  ;;  %2337 = vmatpush.msrb.mxu0 %v10240_v15  ;;  %v7759_v15 = vld [vmem:[%s8999_s4 + $0x2f8] sm:$0xff] }
 0x413   : > { %10373 = vst [vmem:[#allocation65_spill] sm:$0xff] %v7715_v25  ;;  %2360 = vmatpush.msra.mxu1 %v7728_v58  ;;  %v7734_v25 = vld [vmem:[%s8999_s4 + $0xe0] sm:$0xff] }
 0x414   : > { %10374 = vst [vmem:[#allocation52_spill] sm:$0xff] %v7722_v59  ;;  %2307 = vmatpush.msrb.mxu2 %v7734_v25  ;;  %2377 = vmatpush.msra.mxu3 %v7741_v32 }
 0x415   : > { %10375 = vst [vmem:[#allocation123_spill] sm:$0xff] %v7728_v58  ;;  %v7747_v58 = vld [vmem:[%s8999_s4 + $0x200] sm:$0xff]  ;;  %2338 = vmatpush.msrb.mxu0 %v10244_v62 }
 0x416   : > { %10376 = vst [vmem:[#allocation47_spill] sm:$0xff] %v7734_v25  ;;  %2361 = vmatpush.msra.mxu1 %v7747_v58  ;;  %v7753_v25 = vld [vmem:[%s8999_s4 + $0xd0] sm:$0xff]  ;;  %v7785_v62 = vld [vmem:[%s8999_s4 + $0x320] sm:$0xff] }
 0x417   : > { %10377 = vst [vmem:[#allocation105_spill] sm:$0xff] %v7741_v32  ;;  %2308 = vmatpush.msrb.mxu2 %v7753_v25  ;;  %2339 = vmatpush.msrb.mxu0 %v10249_v24  ;;  %v7804_v24 = vld [vmem:[%s8999_s4 + $0x310] sm:$0xff] }
 0x418   : > { %10378 = vst [vmem:[#allocation124_spill] sm:$0xff] %v7747_v58  ;;  %2426 = vmatpush.msrb.mxu1 %v7759_v15  ;;  %v7766_v58 = vld [vmem:[%s8999_s4 + $0x330] sm:$0xff] }
 0x419   : > { %10379 = vst [vmem:[#allocation126_spill] sm:$0xff] %v7753_v25  ;;  %2378 = vmatpush.msra.mxu3 %v7766_v58  ;;  %v7772_v25 = vld [vmem:[%s8999_s4 + $0xc0] sm:$0xff]  ;;  %2340 = vmatpush.msrb.mxu0 %v10253_v53 }
 0x41a   : > { %10380 = vst [vmem:[#allocation125_spill] sm:$0xff] %v7759_v15  ;;  %2309 = vmatpush.msrb.mxu2 %v7772_v25  ;;  %v7778_v15 = vld [vmem:[%s8999_s4 + $0x2e8] sm:$0xff]  ;;  %v7823_v53 = vld [vmem:[%s8999_s4 + $0x300] sm:$0xff] }
 0x41b   : > { %10381 = vst [vmem:[#allocation108_spill] sm:$0xff] %v7766_v58  ;;  %2427 = vmatpush.msrb.mxu1 %v7778_v15  ;;  %2379 = vmatpush.msra.mxu3 %v7785_v62  ;;  %v10459_v58 = vld [vmem:[#allocation29_spill] sm:$0xff] }
 0x41c   : > { %10382 = vst [vmem:[#allocation127_spill] sm:$0xff] %v7772_v25  ;;  %v7791_v25 = vld [vmem:[%s8999_s4 + $0xb0] sm:$0xff]  ;;  %2341 = vmatpush.msrb.mxu0 %v10257_v21  ;;  %v7836_v21 = vld [vmem:[%s8999_s4 + $0x2b8] sm:$0xff] }
 0x41d   : > { %10383 = vst [vmem:[#allocation129_spill] sm:$0xff] %v7778_v15  ;;  %2310 = vmatpush.msrb.mxu2 %v7791_v25  ;;  %v7797_v15 = vld [vmem:[%s8999_s4 + $0x2d8] sm:$0xff]  ;;  %2380 = vmatpush.msra.mxu3 %v7804_v24 }
 0x41e   : > { %10384 = vst [vmem:[#allocation128_spill] sm:$0xff] %v7785_v62  ;;  %2428 = vmatpush.msrb.mxu1 %v7797_v15  ;;  %2406 = vmatpush.msra.mxu0 %v10261_v5  ;;  %v10395_v5 = vld [vmem:[#allocation30_spill] sm:$0xff] }
 0x41f   : > { %10385 = vst [vmem:[#allocation109_spill] sm:$0xff] %v7791_v25  ;;  %v7810_v25 = vld [vmem:[%s8999_s4 + $0xa0] sm:$0xff]  ;;  %2381 = vmatpush.msra.mxu3 %v7823_v53 }
 0x420   : > { %10386 = vst [vmem:[#allocation130_spill] sm:$0xff] %v7797_v15  ;;  %2311 = vmatpush.msrb.mxu2 %v7810_v25  ;;  %v7816_v15 = vld [vmem:[%s8999_s4 + $0x2c8] sm:$0xff]  ;;  %2407 = vmatpush.msra.mxu0 %v10395_v5  ;;  %v10399_v5 = vld [vmem:[#allocation33_spill] sm:$0xff] }
 0x421   : > { %10387 = vst [vmem:[#allocation132_spill] sm:$0xff] %v7804_v24  ;;  %2429 = vmatpush.msrb.mxu1 %v7816_v15  ;;  %v10456_v24 = vld [vmem:[#allocation18_spill] sm:$0xff] }
 0x422   : > { %10388 = vst [vmem:[#allocation131_spill] sm:$0xff] %v7810_v25  ;;  %v7829_v25 = vld [vmem:[%s8999_s4 + $0x90] sm:$0xff]  ;;  %2408 = vmatpush.msra.mxu0 %v10399_v5  ;;  %v10458_v62 = vld [vmem:[#allocation6_spill] sm:$0xff] }
 0x423   : > { %10389 = vst [vmem:[#allocation86_spill] sm:$0xff] %v7816_v15  ;;  %2312 = vmatpush.msrb.mxu2 %v7829_v25  ;;  %2430 = vmatpush.msrb.mxu1 %v7836_v21  ;;  %v7842_v15 = vld [vmem:[%s8999_s4 + $0x3f8] sm:$0xff]  ;;  %v10403_v5 = vld [vmem:[#allocation75_spill] sm:$0xff] }
 0x424   : > { %10390 = vst [vmem:[#allocation133_spill] sm:$0xff] %v7823_v53  ;;  %2446 = vmatpush.msrb.mxu3 %v7842_v15  ;;  %2409 = vmatpush.msra.mxu0 %v10403_v5  ;;  %v10407_v5 = vld [vmem:[#allocation84_spill] sm:$0xff] }
 0x425   : > { %10391 = vst [vmem:[#allocation135_spill] sm:$0xff] %v7829_v25  ;;  %v7848_v25 = vld [vmem:[%s8999_s4 + $0x80] sm:$0xff]  ;;  %v10442_v53 = vld [vmem:[#allocation64_spill] sm:$0xff] }
 0x426   : > { %10392 = vst [vmem:[#allocation134_spill] sm:$0xff] %v7836_v21  ;;  %2313 = vmatpush.msrb.mxu2 %v7848_v25  ;;  %v7855_v21 = vld [vmem:[%s8999_s4 + $0x2a8] sm:$0xff]  ;;  %2410 = vmatpush.msra.mxu0 %v10407_v5  ;;  %v10411_v5 = vld [vmem:[#allocation69_spill] sm:$0xff] }
 0x427   : > { %10393 = vst [vmem:[#allocation136_spill] sm:$0xff] %v7842_v15  ;;  %2431 = vmatpush.msrb.mxu1 %v7855_v21  ;;  %v7861_v15 = vld [vmem:[%s8999_s4 + $0x3e8] sm:$0xff] }
 0x428   : > { %10394 = vst [vmem:[#allocation138_spill] sm:$0xff] %v7848_v25  ;;  %2447 = vmatpush.msrb.mxu3 %v7861_v15  ;;  %v7867_v25 = vld [vmem:[%s8999_s4 + $0x70] sm:$0xff]  ;;  %2411 = vmatpush.msra.mxu0 %v10411_v5 }
 0x429   : > { %10396 = vst [vmem:[#allocation137_spill] sm:$0xff] %v7855_v21  ;;  %2314 = vmatpush.msrb.mxu2 %v7867_v25  ;;  %v7874_v21 = vld [vmem:[%s8999_s4 + $0x298] sm:$0xff]  ;;  %v10415_v5 = vld [vmem:[#allocation59_spill] sm:$0xff] }
 0x42a   : > { %10397 = vst [vmem:[#allocation139_spill] sm:$0xff] %v7861_v15  ;;  %2432 = vmatpush.msrb.mxu1 %v7874_v21  ;;  %v7880_v15 = vld [vmem:[%s8999_s4 + $0x3d8] sm:$0xff]  ;;  %2412 = vmatpush.msra.mxu0 %v10415_v5 }
 0x42b   : > { %10398 = vst [vmem:[#allocation141_spill] sm:$0xff] %v7867_v25  ;;  %2448 = vmatpush.msrb.mxu3 %v7880_v15  ;;  %v7886_v25 = vld [vmem:[%s8999_s4 + $0x60] sm:$0xff]  ;;  %v10419_v5 = vld [vmem:[#allocation60_spill] sm:$0xff] }
 0x42c   : > { %10400 = vst [vmem:[#allocation140_spill] sm:$0xff] %v7874_v21  ;;  %2315 = vmatpush.msrb.mxu2 %v7886_v25  ;;  %v7893_v21 = vld [vmem:[%s8999_s4 + $0x288] sm:$0xff]  ;;  %2413 = vmatpush.msra.mxu0 %v10419_v5  ;;  %v10423_v5 = vld [vmem:[#allocation16_spill] sm:$0xff] }
 0x42d   : > { %10401 = vst [vmem:[#allocation142_spill] sm:$0xff] %v7880_v15  ;;  %2433 = vmatpush.msrb.mxu1 %v7893_v21  ;;  %v7899_v15 = vld [vmem:[%s8999_s4 + $0x3c8] sm:$0xff] }
 0x42e   : > { %10402 = vst [vmem:[#allocation144_spill] sm:$0xff] %v7886_v25  ;;  %2449 = vmatpush.msrb.mxu3 %v7899_v15  ;;  %v7905_v25 = vld [vmem:[%s8999_s4 + $0x50] sm:$0xff]  ;;  %2414 = vmatpush.msra.mxu0 %v10423_v5 }
 0x42f   : > { %10404 = vst [vmem:[#allocation143_spill] sm:$0xff] %v7893_v21  ;;  %2316 = vmatpush.msrb.mxu2 %v7905_v25  ;;  %v7912_v21 = vld [vmem:[%s8999_s4 + $0x278] sm:$0xff]  ;;  %v10427_v5 = vld [vmem:[#allocation63_spill] sm:$0xff] }
 0x430   : > { %10405 = vst [vmem:[#allocation145_spill] sm:$0xff] %v7899_v15  ;;  %2434 = vmatpush.msrb.mxu1 %v7912_v21  ;;  %v7918_v15 = vld [vmem:[%s8999_s4 + $0x3b8] sm:$0xff]  ;;  %2415 = vmatpush.msra.mxu0 %v10427_v5  ;;  %v10431_v5 = vld [vmem:[#allocation19_spill] sm:$0xff] }
 0x431   : > { %10406 = vst [vmem:[#allocation147_spill] sm:$0xff] %v7905_v25  ;;  %2450 = vmatpush.msrb.mxu3 %v7918_v15  ;;  %v7924_v25 = vld [vmem:[%s8999_s4 + $0x40] sm:$0xff] }
 0x432   : > { %10408 = vst [vmem:[#allocation146_spill] sm:$0xff] %v7912_v21  ;;  %2317 = vmatpush.msrb.mxu2 %v7924_v25  ;;  %v7931_v21 = vld [vmem:[%s8999_s4 + $0x268] sm:$0xff]  ;;  %2416 = vmatpush.msra.mxu0 %v10431_v5 }
 0x433   : > { %10409 = vst [vmem:[#allocation148_spill] sm:$0xff] %v7918_v15  ;;  %2435 = vmatpush.msrb.mxu1 %v7931_v21  ;;  %v7937_v15 = vld [vmem:[%s8999_s4 + $0x3a8] sm:$0xff] }
 0x434   : > { %10410 = vst [vmem:[#allocation150_spill] sm:$0xff] %v7924_v25  ;;  %2451 = vmatpush.msrb.mxu3 %v7937_v15  ;;  %v7943_v25 = vld [vmem:[%s8999_s4 + $0x30] sm:$0xff] }
 0x435   : > { %10412 = vst [vmem:[#allocation149_spill] sm:$0xff] %v7931_v21  ;;  %2318 = vmatpush.msrb.mxu2 %v7943_v25  ;;  %v7950_v21 = vld [vmem:[%s8999_s4 + $0x258] sm:$0xff]  ;;  %v10435_v5 = vld [vmem:[#allocation15_spill] sm:$0xff] }
 0x436   : > { %10413 = vst [vmem:[#allocation151_spill] sm:$0xff] %v7937_v15  ;;  %2436 = vmatpush.msrb.mxu1 %v7950_v21  ;;  %v7956_v15 = vld [vmem:[%s8999_s4 + $0x398] sm:$0xff]  ;;  %2417 = vmatpush.msra.mxu0 %v10435_v5  ;;  %v10439_v5 = vld [vmem:[#allocation22_spill] sm:$0xff] }
 0x437   : > { %10414 = vst [vmem:[#allocation153_spill] sm:$0xff] %v7943_v25  ;;  %2452 = vmatpush.msrb.mxu3 %v7956_v15  ;;  %v7962_v25 = vld [vmem:[%s8999_s4 + $0x20] sm:$0xff] }
 0x438   : > { %10416 = vst [vmem:[#allocation152_spill] sm:$0xff] %v7950_v21  ;;  %2319 = vmatpush.msrb.mxu2 %v7962_v25  ;;  %v7969_v21 = vld [vmem:[%s8999_s4 + $0x248] sm:$0xff]  ;;  %2418 = vmatpush.msra.mxu0 %v10439_v5 }
 0x439   : > { %10417 = vst [vmem:[#allocation154_spill] sm:$0xff] %v7956_v15  ;;  %2437 = vmatpush.msrb.mxu1 %v7969_v21  ;;  %v7975_v15 = vld [vmem:[%s8999_s4 + $0x388] sm:$0xff] }
 0x43a   : > { %10418 = vst [vmem:[#allocation156_spill] sm:$0xff] %v7962_v25  ;;  %2453 = vmatpush.msrb.mxu3 %v7975_v15  ;;  %v7981_v25 = vld [vmem:[%s8999_s4 + $0x10] sm:$0xff]  ;;  %2419 = vmatpush.msra.mxu0 %v10442_v53  ;;  %v8077_v5 = vld [vmem:[%s8999_s4 + $0x328] sm:$0xff]  ;;  %v8090_v53 = vld [vmem:[%s8999_s4 + $0x318] sm:$0xff] }
 0x43b   : > { %10420 = vst [vmem:[#allocation155_spill] sm:$0xff] %v7969_v21  ;;  %2320 = vmatpush.msrb.mxu2 %v7981_v25  ;;  %v7988_v21 = vld [vmem:[%s8999_s4 + $0x238] sm:$0xff] }
 0x43c   : > { %10421 = vst [vmem:[#allocation157_spill] sm:$0xff] %v7975_v15  ;;  %2438 = vmatpush.msrb.mxu1 %v7988_v21  ;;  %v7994_v15 = vld [vmem:[%s8999_s4 + $0x378] sm:$0xff] }
 0x43d   : > { %10422 = vst [vmem:[#allocation159_spill] sm:$0xff] %v7981_v25  ;;  %2454 = vmatpush.msrb.mxu3 %v7994_v15  ;;  %v8000_v25 = vld [vmem:[%s8999_s4] sm:$0xff] }
 0x43e   : > { %10424 = vst [vmem:[#allocation158_spill] sm:$0xff] %v7988_v21  ;;  %2321 = vmatpush.msrb.mxu2 %v8000_v25  ;;  %v8007_v21 = vld [vmem:[%s8999_s4 + $0x228] sm:$0xff] }
 0x43f   : > { %10425 = vst [vmem:[#allocation160_spill] sm:$0xff] %v7994_v15  ;;  %2439 = vmatpush.msrb.mxu1 %v8007_v21  ;;  %v8013_v15 = vld [vmem:[%s8999_s4 + $0x368] sm:$0xff] }
 0x440   : > { %10426 = vst [vmem:[#allocation162_spill] sm:$0xff] %v8000_v25  ;;  %2455 = vmatpush.msrb.mxu3 %v8013_v15  ;;  %v8019_v25 = vld [vmem:[%s8999_s4 + $0xf8] sm:$0xff] }
 0x441   : > { %10428 = vst [vmem:[#allocation161_spill] sm:$0xff] %v8007_v21  ;;  %2386 = vmatpush.msra.mxu2 %v8019_v25  ;;  %v8026_v21 = vld [vmem:[%s8999_s4 + $0x218] sm:$0xff] }
 0x442   : > { %10429 = vst [vmem:[#allocation110_spill] sm:$0xff] %v8013_v15  ;;  %2440 = vmatpush.msrb.mxu1 %v8026_v21  ;;  %v8032_v15 = vld [vmem:[%s8999_s4 + $0x358] sm:$0xff] }
 0x443   : > { %10430 = vst [vmem:[#allocation164_spill] sm:$0xff] %v8019_v25  ;;  %2456 = vmatpush.msrb.mxu3 %v8032_v15  ;;  %v8038_v25 = vld [vmem:[%s8999_s4 + $0xe8] sm:$0xff] }
 0x444   : > { %10432 = vst [vmem:[#allocation163_spill] sm:$0xff] %v8026_v21  ;;  %2387 = vmatpush.msra.mxu2 %v8038_v25  ;;  %v8045_v21 = vld [vmem:[%s8999_s4 + $0x208] sm:$0xff] }
 0x445   : > { %10433 = vst [vmem:[#allocation111_spill] sm:$0xff] %v8032_v15  ;;  %2441 = vmatpush.msrb.mxu1 %v8045_v21  ;;  %v8051_v15 = vld [vmem:[%s8999_s4 + $0x348] sm:$0xff] }
 0x446   : > { %10434 = vst [vmem:[#allocation166_spill] sm:$0xff] %v8038_v25  ;;  %2457 = vmatpush.msrb.mxu3 %v8051_v15  ;;  %v8057_v25 = vld [vmem:[%s8999_s4 + $0xd8] sm:$0xff] }
 0x447   : > { %10436 = vst [vmem:[#allocation165_spill] sm:$0xff] %v8045_v21  ;;  %2388 = vmatpush.msra.mxu2 %v8057_v25  ;;  %v8064_v21 = vld [vmem:[%s8999_s4 + $0x338] sm:$0xff] }
 0x448   : > { %10437 = vst [vmem:[#allocation113_spill] sm:$0xff] %v8051_v15  ;;  %2458 = vmatpush.msrb.mxu3 %v8064_v21  ;;  %v8070_v15 = vld [vmem:[%s8999_s4 + $0xc8] sm:$0xff] }
 0x449   : > { %10438 = vst [vmem:[#allocation167_spill] sm:$0xff] %v8057_v25  ;;  %2389 = vmatpush.msra.mxu2 %v8070_v15  ;;  %v10445_v25 = vld [vmem:[#allocation23_spill] sm:$0xff] }
 0x44a   : > { %10440 = vst [vmem:[#allocation116_spill] sm:$0xff] %v8064_v21  ;;  %2459 = vmatpush.msrb.mxu3 %v8077_v5  ;;  %v8083_v21 = vld [vmem:[%s8999_s4 + $0xb8] sm:$0xff]  ;;  %2420 = vmatpush.msra.mxu0 %v10445_v25  ;;  %v8103_v25 = vld [vmem:[%s8999_s4 + $0x308] sm:$0xff] }
 0x44b   : > { %10441 = vst [vmem:[#allocation168_spill] sm:$0xff] %v8070_v15  ;;  %2390 = vmatpush.msra.mxu2 %v8083_v21  ;;  %v10448_v15 = vld [vmem:[#allocation26_spill] sm:$0xff] }
 0x44c   : > { %10443 = vst [vmem:[#allocation118_spill] sm:$0xff] %v8077_v5  ;;  %2460 = vmatpush.msrb.mxu3 %v8090_v53  ;;  %v8096_v5 = vld [vmem:[%s8999_s4 + $0xa8] sm:$0xff]  ;;  %2421 = vmatpush.msra.mxu0 %v10448_v15  ;;  %v8121_v15 = vld [vmem:[%s8999_s4 + $0x78] sm:$0xff] }
 0x44d   : > { %10444 = vst [vmem:[#allocation169_spill] sm:$0xff] %v8083_v21  ;;  %2391 = vmatpush.msra.mxu2 %v8096_v5  ;;  %v10455_v21 = vld [vmem:[#allocation27_spill] sm:$0xff] }
 0x44e   : > { %10446 = vst [vmem:[#allocation170_spill] sm:$0xff] %v8090_v53  ;;  %2461 = vmatpush.msrb.mxu3 %v8103_v25  ;;  %v8109_v53 = vld [vmem:[%s8999_s4 + $0x98] sm:$0xff] }
 0x44f   : > { %10447 = vst [vmem:[#allocation171_spill] sm:$0xff] %v8096_v5  ;;  %2392 = vmatpush.msra.mxu2 %v8109_v53  ;;  %v8115_v5 = vld [vmem:[%s8999_s4 + $0x88] sm:$0xff] }
 0x450   : > { %10449 = vst [vmem:[#allocation172_spill] sm:$0xff] %v8103_v25  ;;  %v8127_v25 = vld [vmem:[%s8999_s4 + $0x68] sm:$0xff]  ;;  %v2092_v44 = vpop.f32.mrf.mxu0 }
 0x451   : > { %10450 = vst [vmem:[#allocation173_spill] sm:$0xff] %v8109_v53  ;;  %2393 = vmatpush.msra.mxu2 %v8115_v5  ;;  %v10454_v53 = vld [vmem:[#allocation68_spill] sm:$0xff] }
 0x452   : > { %10451 = vst [vmem:[#allocation174_spill] sm:$0xff] %v8115_v5  ;;  %v10457_v5 = vld [vmem:[#allocation74_spill] sm:$0xff] }
 0x453   : > { %10452 = vst [vmem:[#allocation99_spill] sm:$0xff] %v8121_v15  ;;  %2394 = vmatpush.msra.mxu2 %v8121_v15  ;;  %v2112_v15 = vpop.f32.mrf.mxu1 }
 0x454   : > { %10453 = vst [vmem:[#allocation38_spill] sm:$0xff] %v8127_v25 }
 0x455   : > { %2395 = vmatpush.msra.mxu2 %v8127_v25  ;;  %v2132_v32 = vpop.f32.mrf.mxu3 }
 0x457   : > { %2396 = vmatpush.msra.mxu2 %v10454_v53 }
 0x458   : > { %v2172_v38 = vpop.f32.mrf.mxu0 }
 0x459   : > { %2397 = vmatpush.msra.mxu2 %v10455_v21 }
 0x45b   : > { %2398 = vmatpush.msra.mxu2 %v10456_v24  ;;  %v2192_v3 = vpop.f32.mrf.mxu1 }
 0x45d   : > { %2399 = vmatpush.msra.mxu2 %v10457_v5  ;;  %v10461_v5 = vld [vmem:[#allocation107_spill] sm:$0xff] }
 0x45e   : > { %v2212_v53 = vpop.f32.mrf.mxu3 }
 0x45f   : > { %2400 = vmatpush.msra.mxu2 %v10458_v62  ;;  %v654_v62 = vadd.f32 %v10461_v5, %v5303_v52  ;;  %v10471_v5 = vld [vmem:[#allocation32_spill] sm:$0xff] }
 0x461   : > { %2401 = vmatpush.msra.mxu2 %v10459_v58  ;;  %v695_v29 = vadd.f32 %v10462_v9, %v654_v62  ;;  %v10472_v62 = vld [vmem:[#allocation76_spill] sm:$0xff] }
 0x469   : > { %v2279_v54 = vpop.f32.mrf.mxu1 }
 0x46a   : > { %v2072_v59 = vpop.f32.mrf.mxu2 }
 0x46b   : > { %v2073_v51 = vadd.f32 %v2072_v59, %v10460_v39 }
 0x46d   : > { %v2093_v63 = vadd.f32 %v2092_v44, %v2073_v51  ;;  %v10463_v51 = vld [vmem:[#allocation45_spill] sm:$0xff] }
 0x46f   : > { %v2113_v25 = vadd.f32 %v2112_v15, %v2093_v63  ;;  %v736_v63 = vadd.f32 %v10463_v51, %v695_v29  ;;  %v10476_v51 = vld [vmem:[#allocation8_spill] sm:$0xff] }
 0x471   : > { %v2133_v26 = vadd.f32 %v2132_v32, %v2113_v25  ;;  %v10467_v25 = vld [vmem:[#allocation103_spill] sm:$0xff] }
 0x473   : > { %3257 = vtanh.f32 %v2133_v26  ;;  %v2152_v21 = vpop.f32.mrf.mxu2 }
 0x474   : > { %v2153_v24 = vadd.f32 %v2152_v21, %v5659_v14  ;;  %v10468_v21 = vld [vmem:[#allocation79_spill] sm:$0xff] }
 0x476   : > { %v2173_v58 = vadd.f32 %v2172_v38, %v2153_v24  ;;  %v10470_v24 = vld [vmem:[#allocation21_spill] sm:$0xff] }
 0x478   : > { %v2193_v50 = vadd.f32 %v2192_v3, %v2173_v58  ;;  %v2299_v37 = vpop.f32.mrf.mxu3  ;;  %v2259_v3 = vpop.f32.mrf.mxu0  ;;  %v10474_v58 = vld [vmem:[#allocation25_spill] sm:$0xff] }
 0x479   : > { %v3258_v59 = vpop.eup %3257  ;;  %v2300_v44 = vadd.f32 %v2299_v37, %v2279_v54  ;;  %v10464_v37 = vld [vmem:[#allocation106_spill] sm:$0xff]  ;;  %v10465_v54 = vld [vmem:[#allocation104_spill] sm:$0xff] }
 0x47a   : > { %v2213_v15 = vadd.f32 %v2212_v53, %v2193_v50  ;;  %2362 = vmatmul.f32.vlgmr.msra.gmra.mxu1 %v3258_v59  ;;  %v531_v50 = vadd.f32 %v10464_v37, %v5275_v48  ;;  %v10483_v37 = vld [vmem:[#allocation40_spill] sm:$0xff] }
 0x47b   : > { %v2303_v26 = vadd.f32 %v2300_v44, %v736_v63  ;;  %2513 = vmatpush.msra.mxu1 %v7271_v35  ;;  %v10477_v63 = vld [vmem:[#allocation24_spill] sm:$0xff]  ;;  %v10478_v44 = vld [vmem:[#allocation9_spill] sm:$0xff] }
 0x47c   : > { %3259 = vtanh.f32 %v2213_v15  ;;  %v572_v29 = vadd.f32 %v10465_v54, %v531_v50  ;;  %v10479_v15 = vld [vmem:[#allocation10_spill] sm:$0xff]  ;;  %v10484_v50 = vld [vmem:[#allocation12_spill] sm:$0xff]  ;;  %v10485_v54 = vld [vmem:[#allocation35_spill] sm:$0xff] }
 0x47d   : > { %3261 = vtanh.f32 %v2303_v26  ;;  %2514 = vmatpush.msra.mxu1 %v7277_v47  ;;  %v10480_v26 = vld [vmem:[#allocation31_spill] sm:$0xff] }
 0x47e   : > { %v613_v53 = vadd.f32 %v10467_v25, %v572_v29  ;;  %v10488_v29 = vld [vmem:[#allocation43_spill] sm:$0xff] }
 0x47f   : > { %2515 = vmatpush.msra.mxu1 %v7283_v20  ;;  %v10493_v25 = vld [vmem:[#allocation39_spill] sm:$0xff] }
 0x481   : > { %2516 = vmatpush.msra.mxu1 %v7289_v57 }
 0x482   : > { %v3260_v9 = vpop.eup %3259  ;;  %2442 = vmatmul.f32.vlgmr.msrb.gmra.mxu1 %v3258_v59  ;;  %v10475_v59 = vld [vmem:[#allocation80_spill] sm:$0xff] }
 0x483   : > { %v8146_v38 = vpop.eup %3261  ;;  %2382 = vmatmul.f32.vlgmr.msra.gmra.mxu3 %v3260_v9  ;;  %2517 = vmatpush.msra.mxu1 %v7300_v36 }
 0x484   : > { %2342 = vmatmul.f32.vlgmr.msrb.gmra.mxu0 %v8146_v38  ;;  %2533 = vmatpush.msra.mxu3 %v7307_v42 }
 0x485   : > { %2493 = vmatpush.msrb.mxu0 %v6908_v13  ;;  %2518 = vmatpush.msra.mxu1 %v7313_v41  ;;  %v10466_v13 = vld [vmem:[#allocation71_spill] sm:$0xff] }
 0x486   : > { %2534 = vmatpush.msra.mxu3 %v7320_v61 }
 0x487   : > { %2494 = vmatpush.msrb.mxu0 %v6916_v10  ;;  %2519 = vmatpush.msra.mxu1 %v7327_v11 }
 0x488   : > { %2535 = vmatpush.msra.mxu3 %v7334_v46 }
 0x489   : > { %2495 = vmatpush.msrb.mxu0 %v6925_v45  ;;  %2520 = vmatpush.msra.mxu1 %v7340_v33 }
 0x48a   : > { %2536 = vmatpush.msra.mxu3 %v7347_v28 }
 0x48b   : > { %2496 = vmatpush.msrb.mxu0 %v10466_v13  ;;  %v2239_v32 = vpop.f32.mrf.mxu2  ;;  %2462 = vmatmul.f32.vlgmr.msrb.gmra.mxu3 %v3260_v9  ;;  %v10482_v9 = vld [vmem:[#allocation11_spill] sm:$0xff]  ;;  %v10491_v13 = vld [vmem:[#allocation14_spill] sm:$0xff] }
 0x48c   : > { %v2260_v10 = vadd.f32 %v2259_v3, %v2239_v32  ;;  %2422 = vmatmul.f32.vlgmr.msra.gmra.mxu0 %v8146_v38  ;;  %2521 = vmatpush.msra.mxu1 %v7356_v27  ;;  %v10489_v3 = vld [vmem:[#allocation36_spill] sm:$0xff]  ;;  %v10492_v32 = vld [vmem:[#allocation54_spill] sm:$0xff] }
 0x48d   : > { %2497 = vmatpush.msrb.mxu0 %v6942_v7  ;;  %2537 = vmatpush.msra.mxu3 %v7362_v56  ;;  %v10469_v7 = vld [vmem:[#allocation89_spill] sm:$0xff] }
 0x48e   : > { %v2302_v45 = vadd.f32 %v2260_v10, %v613_v53  ;;  %2522 = vmatpush.msra.mxu1 %v7369_v1  ;;  %v10494_v53 = vld [vmem:[#allocation58_spill] sm:$0xff]  ;;  %v10496_v10 = vld [vmem:[#allocation57_spill] sm:$0xff] }
 0x48f   : > { %2498 = vmatpush.msrb.mxu0 %v6950_v49  ;;  %2538 = vmatpush.msra.mxu3 %v7375_v22 }
 0x490   : > { %3263 = vtanh.f32 %v2302_v45  ;;  %2523 = vmatpush.msra.mxu1 %v7382_v17  ;;  %v10497_v45 = vld [vmem:[#allocation49_spill] sm:$0xff] }
 0x491   : > { %2499 = vmatpush.msrb.mxu0 %v6958_v8  ;;  %2539 = vmatpush.msra.mxu3 %v7388_v43  ;;  %v10473_v8 = vld [vmem:[#allocation7_spill] sm:$0xff] }
 0x492   : > { %2524 = vmatpush.msra.mxu1 %v7395_v31 }
 0x493   : > { %2500 = vmatpush.msrb.mxu0 %v10468_v21  ;;  %2540 = vmatpush.msra.mxu3 %v7401_v2  ;;  %v10498_v21 = vld [vmem:[#allocation61_spill] sm:$0xff] }
 0x494   : > { %2525 = vmatpush.msra.mxu1 %v10469_v7 }
 0x495   : > { %2501 = vmatpush.msrb.mxu0 %v10470_v24  ;;  %2541 = vmatpush.msra.mxu3 %v7416_v4  ;;  %v10499_v24 = vld [vmem:[#allocation20_spill] sm:$0xff] }
 0x496   : > { %v8181_v49 = vpop.eup %3263  ;;  %2526 = vmatpush.msra.mxu1 %v10471_v5 }
 0x497   : > { %2502 = vmatpush.msrb.mxu0 %v10472_v62  ;;  %2542 = vmatpush.msra.mxu3 %v7429_v30  ;;  %v10500_v62 = vld [vmem:[#allocation67_spill] sm:$0xff] }
 0x498   : > { %2322 = vmatmul.f32.vlgmr.msrb.gmra.mxu2 %v8181_v49  ;;  %2527 = vmatpush.msra.mxu1 %v7438_v16 }
 0x499   : > { %2473 = vmatpush.msrb.mxu2 %v10473_v8  ;;  %2503 = vmatpush.msrb.mxu0 %v10474_v58  ;;  %v10501_v8 = vld [vmem:[#allocation53_spill] sm:$0xff] }
 0x49a   : > { %2543 = vmatpush.msra.mxu3 %v7444_v19  ;;  %2528 = vmatpush.msra.mxu1 %v7452_v34  ;;  %v10502_v58 = vld [vmem:[#allocation73_spill] sm:$0xff] }
 0x49b   : > { %2474 = vmatpush.msrb.mxu2 %v10475_v59  ;;  %2504 = vmatpush.msrb.mxu0 %v10476_v51  ;;  %v10503_v59 = vld [vmem:[#allocation94_spill] sm:$0xff]  ;;  %v10504_v51 = vld [vmem:[#allocation72_spill] sm:$0xff] }
 0x49c   : > { %2544 = vmatpush.msra.mxu3 %v7458_v18  ;;  %2529 = vmatmul.f32.vlgmr.msra.gmra.mxu1 %v8181_v49 }
 0x49d   : > { %2475 = vmatpush.msrb.mxu2 %v7021_v23  ;;  %2505 = vmatpush.msrb.mxu0 %v10477_v63  ;;  %v10481_v23 = vld [vmem:[#allocation28_spill] sm:$0xff]  ;;  %v10505_v63 = vld [vmem:[#allocation62_spill] sm:$0xff] }
 0x49e   : > { %2545 = vmatpush.msra.mxu3 %v7467_v12  ;;  %2597 = vmatpush.msrb.mxu1 %v7474_v0 }
 0x49f   : > { %2476 = vmatpush.msrb.mxu2 %v10478_v44  ;;  %2506 = vmatpush.msrb.mxu0 %v10479_v15  ;;  %v10506_v44 = vld [vmem:[#allocation77_spill] sm:$0xff]  ;;  %v10507_v15 = vld [vmem:[#allocation34_spill] sm:$0xff] }
 0x4a0   : > { %2546 = vmatpush.msra.mxu3 %v10480_v26  ;;  %2402 = vmatmul.f32.vlgmr.msra.gmra.mxu2 %v8181_v49 }
 0x4a1   : > { %2477 = vmatpush.msrb.mxu2 %v7049_v40  ;;  %2507 = vmatpush.msrb.mxu0 %v7055_v55  ;;  %v10486_v40 = vld [vmem:[#allocation44_spill] sm:$0xff]  ;;  %v10487_v55 = vld [vmem:[#allocation13_spill] sm:$0xff] }
 0x4a2   : > { %2547 = vmatpush.msra.mxu3 %v7496_v6  ;;  %2598 = vmatpush.msrb.mxu1 %v10481_v23 }
 0x4a3   : > { %2478 = vmatpush.msrb.mxu2 %v7063_v60  ;;  %2508 = vmatpush.msrb.mxu0 %v10482_v9  ;;  %v10490_v60 = vld [vmem:[#allocation48_spill] sm:$0xff]  ;;  %v10508_v9 = vld [vmem:[#allocation81_spill] sm:$0xff] }
 0x4a4   : > { %2548 = vmatpush.msra.mxu3 %v10483_v37  ;;  %2509 = vmatmul.f32.vlgmr.msrb.gmra.mxu0 %v8146_v38 }
 0x4a5   : > { %2479 = vmatpush.msrb.mxu2 %v10484_v50  ;;  %2549 = vmatmul.f32.vlgmr.msra.gmra.mxu3 %v8146_v38  ;;  %v10495_v38 = vld [vmem:[#allocation17_spill] sm:$0xff]  ;;  %v10509_v50 = vld [vmem:[#allocation66_spill] sm:$0xff] }
 0x4a6   : > { %2599 = vmatpush.msrb.mxu1 %v10485_v54  ;;  %2577 = vmatpush.msra.mxu0 %v10486_v40 }
 0x4a7   : > { %2480 = vmatpush.msrb.mxu2 %v10487_v55  ;;  %2617 = vmatpush.msrb.mxu3 %v10488_v29  ;;  %v10510_v55 = vld [vmem:[#allocation82_spill] sm:$0xff] }
 0x4a8   : > { %2600 = vmatpush.msrb.mxu1 %v10489_v3  ;;  %2578 = vmatpush.msra.mxu0 %v10490_v60 }
 0x4a9   : > { %2481 = vmatpush.msrb.mxu2 %v10491_v13  ;;  %2618 = vmatpush.msrb.mxu3 %v10492_v32  ;;  %v10511_v13 = vld [vmem:[#allocation37_spill] sm:$0xff] }
 0x4aa   : > { %2601 = vmatpush.msrb.mxu1 %v10493_v25  ;;  %2579 = vmatpush.msra.mxu0 %v10494_v53 }
 0x4ab   : > { %2482 = vmatpush.msrb.mxu2 %v10495_v38  ;;  %2619 = vmatpush.msrb.mxu3 %v10496_v10  ;;  %v10512_v38 = vld [vmem:[#allocation83_spill] sm:$0xff]  ;;  %v10621_v10 = vld [vmem:[#allocation46_spill] sm:$0xff] }
 0x4ac   : > { %2602 = vmatpush.msrb.mxu1 %v10497_v45  ;;  %2580 = vmatpush.msra.mxu0 %v10498_v21 }
 0x4ad   : > { %2483 = vmatpush.msrb.mxu2 %v10499_v24  ;;  %2620 = vmatpush.msrb.mxu3 %v10500_v62  ;;  %v10513_v24 = vld [vmem:[#allocation78_spill] sm:$0xff]  ;;  %v10620_v62 = vld [vmem:[#allocation115_spill] sm:$0xff] }
 0x4ae   : > { %2603 = vmatpush.msrb.mxu1 %v10501_v8  ;;  %2581 = vmatpush.msra.mxu0 %v10502_v58  ;;  %v10516_v58 = vld [vmem:[#allocation88_spill] sm:$0xff]  ;;  %v657_v21 = vadd.f32 %v10620_v62, %v5303_v52 }
 0x4af   : > { %2484 = vmatpush.msrb.mxu2 %v10503_v59  ;;  %2621 = vmatpush.msrb.mxu3 %v10504_v51  ;;  %v10514_v59 = vld [vmem:[#allocation100_spill] sm:$0xff]  ;;  %v10515_v51 = vld [vmem:[#allocation91_spill] sm:$0xff] }
 0x4b0   : > { %2604 = vmatpush.msrb.mxu1 %v10505_v63  ;;  %2582 = vmatpush.msra.mxu0 %v10506_v44  ;;  %v10517_v44 = vld [vmem:[#allocation85_spill] sm:$0xff]  ;;  %v698_v53 = vadd.f32 %v10621_v10, %v657_v21  ;;  %v3695_v21 = vld [vmem:[%s8998_s3 + $0x50] sm:$0xff] }
 0x4b1   : > { %2485 = vmatpush.msrb.mxu2 %v10507_v15  ;;  %2622 = vmatpush.msrb.mxu3 %v10508_v9  ;;  %v10518_v15 = vld [vmem:[#allocation90_spill] sm:$0xff]  ;;  %v10519_v9 = vld [vmem:[#allocation93_spill] sm:$0xff] }
 0x4b2   : > { %2605 = vmatpush.msrb.mxu1 %v10509_v50  ;;  %2583 = vmatpush.msra.mxu0 %v10510_v55  ;;  %v10520_v50 = vld [vmem:[#allocation101_spill] sm:$0xff]  ;;  %v10523_v55 = vld [vmem:[#allocation70_spill] sm:$0xff] }
 0x4b3   : > { %2486 = vmatpush.msrb.mxu2 %v10511_v13  ;;  %2623 = vmatpush.msrb.mxu3 %v10512_v38  ;;  %v10521_v13 = vld [vmem:[#allocation87_spill] sm:$0xff]  ;;  %v10522_v38 = vld [vmem:[#allocation92_spill] sm:$0xff] }
 0x4b4   : > { %2606 = vmatpush.msrb.mxu1 %v10513_v24  ;;  %2584 = vmatpush.msra.mxu0 %v10514_v59  ;;  %v10524_v59 = vld [vmem:[#allocation95_spill] sm:$0xff] }
 0x4b5   : > { %2487 = vmatpush.msrb.mxu2 %v10515_v51  ;;  %2624 = vmatpush.msrb.mxu3 %v10516_v58  ;;  %v10525_v51 = vld [vmem:[#allocation65_spill] sm:$0xff] }
 0x4b6   : > { %2607 = vmatpush.msrb.mxu1 %v10517_v44  ;;  %2585 = vmatpush.msra.mxu0 %v10518_v15  ;;  %v8259_v15 = vld [vmem:[%s8999_s4 + $0x150] sm:$0xff] }
 0x4b7   : > { %2488 = vmatpush.msrb.mxu2 %v10519_v9  ;;  %2625 = vmatpush.msrb.mxu3 %v10520_v50  ;;  %10526 = vst [vmem:[#allocation41_spill] sm:$0xff] %v8259_v15  ;;  %v10527_v9 = vld [vmem:[#allocation52_spill] sm:$0xff]  ;;  %v10529_v50 = vld [vmem:[#allocation47_spill] sm:$0xff] }
 0x4b8   : > { %2489 = vmatmul.f32.vlgmr.msrb.gmra.mxu2 %v8181_v49  ;;  %2608 = vmatpush.msrb.mxu1 %v10521_v13  ;;  %v10528_v49 = vld [vmem:[#allocation102_spill] sm:$0xff] }
 0x4b9   : > { %2586 = vmatpush.msra.mxu0 %v10522_v38  ;;  %2626 = vmatpush.msrb.mxu3 %v10523_v55  ;;  %v8268_v55 = vld [vmem:[%s8999_s4 + $0x140] sm:$0xff]  ;;  %v10532_v38 = vld [vmem:[#allocation123_spill] sm:$0xff] }
 0x4ba   : > { %2609 = vmatpush.msrb.mxu1 %v10524_v59  ;;  %2557 = vmatpush.msra.mxu2 %v10525_v51  ;;  %10530 = vst [vmem:[#allocation97_spill] sm:$0xff] %v8268_v55  ;;  %v10531_v51 = vld [vmem:[#allocation105_spill] sm:$0xff]  ;;  %v10533_v59 = vld [vmem:[#allocation126_spill] sm:$0xff] }
 0x4bb   : > { %2587 = vmatpush.msra.mxu0 %v8259_v15  ;;  %2627 = vmatpush.msrb.mxu3 %v10527_v9  ;;  %v8277_v9 = vld [vmem:[%s8999_s4 + $0x130] sm:$0xff] }
 0x4bc   : > { %2610 = vmatpush.msrb.mxu1 %v10528_v49  ;;  %2558 = vmatpush.msra.mxu2 %v10529_v50  ;;  %10534 = vst [vmem:[#allocation98_spill] sm:$0xff] %v8277_v9  ;;  %v10535_v50 = vld [vmem:[#allocation108_spill] sm:$0xff]  ;;  %v10537_v49 = vld [vmem:[#allocation127_spill] sm:$0xff] }
 0x4bd   : > { %2588 = vmatpush.msra.mxu0 %v8268_v55  ;;  %2628 = vmatpush.msrb.mxu3 %v10531_v51  ;;  %v10536_v15 = vld [vmem:[#allocation124_spill] sm:$0xff]  ;;  %v10538_v55 = vld [vmem:[#allocation125_spill] sm:$0xff] }
 0x4be   : > { %2611 = vmatpush.msrb.mxu1 %v10532_v38  ;;  %2559 = vmatpush.msra.mxu2 %v10533_v59  ;;  %v8287_v51 = vld [vmem:[%s8999_s4 + $0x120] sm:$0xff]  ;;  %v10540_v59 = vld [vmem:[#allocation128_spill] sm:$0xff] }
 0x4bf   : > { %2589 = vmatpush.msra.mxu0 %v8277_v9  ;;  %2629 = vmatpush.msrb.mxu3 %v10535_v50  ;;  %10539 = vst [vmem:[#allocation96_spill] sm:$0xff] %v8287_v51  ;;  %v10541_v38 = vld [vmem:[#allocation109_spill] sm:$0xff]  ;;  %v8296_v50 = vld [vmem:[%s8999_s4 + $0x110] sm:$0xff] }
 0x4c0   : > { %2612 = vmatpush.msrb.mxu1 %v10536_v15  ;;  %2560 = vmatpush.msra.mxu2 %v10537_v49  ;;  %v10542_v9 = vld [vmem:[#allocation129_spill] sm:$0xff]  ;;  %10543 = vst [vmem:[#allocation30_spill] sm:$0xff] %v8296_v50  ;;  %v10544_v49 = vld [vmem:[#allocation132_spill] sm:$0xff]  ;;  %v10546_v15 = vld [vmem:[#allocation130_spill] sm:$0xff] }
 0x4c1   : > { %2590 = vmatpush.msra.mxu0 %v8287_v51  ;;  %2630 = vmatpush.msrb.mxu3 %v10540_v59  ;;  %v8305_v59 = vld [vmem:[%s8999_s4 + $0x100] sm:$0xff]  ;;  %v10549_v51 = vld [vmem:[#allocation135_spill] sm:$0xff] }
 0x4c2   : > { %2677 = vmatpush.msra.mxu1 %v10538_v55  ;;  %2561 = vmatpush.msra.mxu2 %v10541_v38  ;;  %v10545_v55 = vld [vmem:[#allocation131_spill] sm:$0xff]  ;;  %10547 = vst [vmem:[#allocation33_spill] sm:$0xff] %v8305_v59  ;;  %v10548_v38 = vld [vmem:[#allocation133_spill] sm:$0xff] }
 0x4c3   : > { %2591 = vmatpush.msra.mxu0 %v8296_v50  ;;  %2631 = vmatpush.msrb.mxu3 %v10544_v49  ;;  %v8314_v49 = vld [vmem:[%s8999_s4 + $0x1f8] sm:$0xff]  ;;  %v10553_v50 = vld [vmem:[#allocation138_spill] sm:$0xff] }
 0x4c4   : > { %2678 = vmatpush.msra.mxu1 %v10542_v9  ;;  %2562 = vmatpush.msra.mxu2 %v10545_v55  ;;  %v10550_v9 = vld [vmem:[#allocation86_spill] sm:$0xff]  ;;  %10551 = vst [vmem:[#allocation75_spill] sm:$0xff] %v8314_v49  ;;  %v10552_v55 = vld [vmem:[#allocation136_spill] sm:$0xff] }
 0x4c5   : > { %2592 = vmatpush.msra.mxu0 %v8305_v59  ;;  %2632 = vmatpush.msrb.mxu3 %v10548_v38  ;;  %v8323_v38 = vld [vmem:[%s8999_s4 + $0x1e8] sm:$0xff]  ;;  %v10557_v59 = vld [vmem:[#allocation141_spill] sm:$0xff] }
 0x4c6   : > { %2679 = vmatpush.msra.mxu1 %v10546_v15  ;;  %2563 = vmatpush.msra.mxu2 %v10549_v51  ;;  %v10554_v15 = vld [vmem:[#allocation134_spill] sm:$0xff]  ;;  %10555 = vst [vmem:[#allocation84_spill] sm:$0xff] %v8323_v38  ;;  %v10556_v51 = vld [vmem:[#allocation139_spill] sm:$0xff] }
 0x4c7   : > { %2657 = vmatpush.msrb.mxu0 %v8314_v49  ;;  %2697 = vmatpush.msra.mxu3 %v10552_v55  ;;  %v8332_v55 = vld [vmem:[%s8999_s4 + $0x1d8] sm:$0xff] }
 0x4c8   : > { %2680 = vmatpush.msra.mxu1 %v10550_v9  ;;  %2564 = vmatpush.msra.mxu2 %v10553_v50  ;;  %v10558_v9 = vld [vmem:[#allocation137_spill] sm:$0xff]  ;;  %10559 = vst [vmem:[#allocation69_spill] sm:$0xff] %v8332_v55  ;;  %v10560_v50 = vld [vmem:[#allocation142_spill] sm:$0xff]  ;;  %v10562_v49 = vld [vmem:[#allocation140_spill] sm:$0xff] }
 0x4c9   : > { %2658 = vmatpush.msrb.mxu0 %v8323_v38  ;;  %2698 = vmatpush.msra.mxu3 %v10556_v51  ;;  %v8341_v51 = vld [vmem:[%s8999_s4 + $0x1c8] sm:$0xff] }
 0x4ca   : > { %2681 = vmatpush.msra.mxu1 %v10554_v15  ;;  %2565 = vmatpush.msra.mxu2 %v10557_v59  ;;  %v10561_v15 = vld [vmem:[#allocation144_spill] sm:$0xff]  ;;  %10563 = vst [vmem:[#allocation59_spill] sm:$0xff] %v8341_v51  ;;  %v10564_v59 = vld [vmem:[#allocation145_spill] sm:$0xff]  ;;  %v10566_v38 = vld [vmem:[#allocation143_spill] sm:$0xff] }
 0x4cb   : > { %2659 = vmatpush.msrb.mxu0 %v8332_v55  ;;  %2699 = vmatpush.msra.mxu3 %v10560_v50  ;;  %v8350_v50 = vld [vmem:[%s8999_s4 + $0x1b8] sm:$0xff]  ;;  %v10570_v55 = vld [vmem:[#allocation146_spill] sm:$0xff] }
 0x4cc   : > { %2682 = vmatpush.msra.mxu1 %v10558_v9  ;;  %2566 = vmatpush.msra.mxu2 %v10561_v15  ;;  %v10565_v9 = vld [vmem:[#allocation147_spill] sm:$0xff]  ;;  %10567 = vst [vmem:[#allocation60_spill] sm:$0xff] %v8350_v50  ;;  %v10568_v15 = vld [vmem:[#allocation148_spill] sm:$0xff] }
 0x4cd   : > { %2660 = vmatpush.msrb.mxu0 %v8341_v51  ;;  %2700 = vmatpush.msra.mxu3 %v10564_v59  ;;  %v8359_v59 = vld [vmem:[%s8999_s4 + $0x1a8] sm:$0xff]  ;;  %v10574_v51 = vld [vmem:[#allocation149_spill] sm:$0xff] }
 0x4ce   : > { %2683 = vmatpush.msra.mxu1 %v10562_v49  ;;  %2567 = vmatpush.msra.mxu2 %v10565_v9  ;;  %v10569_v49 = vld [vmem:[#allocation150_spill] sm:$0xff]  ;;  %10571 = vst [vmem:[#allocation16_spill] sm:$0xff] %v8359_v59  ;;  %v10572_v9 = vld [vmem:[#allocation151_spill] sm:$0xff] }
 0x4cf   : > { %2661 = vmatpush.msrb.mxu0 %v8350_v50  ;;  %2701 = vmatpush.msra.mxu3 %v10568_v15  ;;  %v8368_v15 = vld [vmem:[%s8999_s4 + $0x198] sm:$0xff] }
 0x4d0   : > { %2684 = vmatpush.msra.mxu1 %v10566_v38  ;;  %2568 = vmatpush.msra.mxu2 %v10569_v49  ;;  %v10573_v38 = vld [vmem:[#allocation153_spill] sm:$0xff]  ;;  %10575 = vst [vmem:[#allocation63_spill] sm:$0xff] %v8368_v15  ;;  %v10576_v49 = vld [vmem:[#allocation154_spill] sm:$0xff]  ;;  %v10578_v50 = vld [vmem:[#allocation152_spill] sm:$0xff] }
 0x4d1   : > { %2662 = vmatpush.msrb.mxu0 %v8359_v59  ;;  %2702 = vmatpush.msra.mxu3 %v10572_v9  ;;  %v8377_v9 = vld [vmem:[%s8999_s4 + $0x188] sm:$0xff] }
 0x4d2   : > { %2685 = vmatpush.msra.mxu1 %v10570_v55  ;;  %2569 = vmatpush.msra.mxu2 %v10573_v38  ;;  %v10577_v55 = vld [vmem:[#allocation156_spill] sm:$0xff]  ;;  %10579 = vst [vmem:[#allocation19_spill] sm:$0xff] %v8377_v9  ;;  %v10580_v38 = vld [vmem:[#allocation157_spill] sm:$0xff]  ;;  %v10582_v59 = vld [vmem:[#allocation155_spill] sm:$0xff] }
 0x4d3   : > { %2663 = vmatpush.msrb.mxu0 %v8368_v15  ;;  %2703 = vmatpush.msra.mxu3 %v10576_v49  ;;  %v8386_v49 = vld [vmem:[%s8999_s4 + $0x178] sm:$0xff]  ;;  %v10586_v15 = vld [vmem:[#allocation158_spill] sm:$0xff] }
 0x4d4   : > { %2686 = vmatpush.msra.mxu1 %v10574_v51  ;;  %2570 = vmatpush.msra.mxu2 %v10577_v55  ;;  %v10581_v51 = vld [vmem:[#allocation159_spill] sm:$0xff]  ;;  %10583 = vst [vmem:[#allocation15_spill] sm:$0xff] %v8386_v49  ;;  %v10584_v55 = vld [vmem:[#allocation160_spill] sm:$0xff] }
 0x4d5   : > { %2664 = vmatpush.msrb.mxu0 %v8377_v9  ;;  %2704 = vmatpush.msra.mxu3 %v10580_v38  ;;  %v8395_v38 = vld [vmem:[%s8999_s4 + $0x168] sm:$0xff]  ;;  %v10590_v9 = vld [vmem:[#allocation161_spill] sm:$0xff] }
 0x4d6   : > { %2687 = vmatpush.msra.mxu1 %v10578_v50  ;;  %2571 = vmatpush.msra.mxu2 %v10581_v51  ;;  %v10585_v50 = vld [vmem:[#allocation162_spill] sm:$0xff]  ;;  %10587 = vst [vmem:[#allocation22_spill] sm:$0xff] %v8395_v38 }
 0x4d7   : > { %2665 = vmatpush.msrb.mxu0 %v8386_v49  ;;  %2705 = vmatpush.msra.mxu3 %v10584_v55  ;;  %v10588_v51 = vld [vmem:[#allocation110_spill] sm:$0xff]  ;;  %v8404_v55 = vld [vmem:[%s8999_s4 + $0x158] sm:$0xff]  ;;  %v10594_v49 = vld [vmem:[#allocation163_spill] sm:$0xff] }
 0x4d8   : > { %2688 = vmatpush.msra.mxu1 %v10582_v59  ;;  %2572 = vmatpush.msra.mxu2 %v10585_v50  ;;  %v10589_v59 = vld [vmem:[#allocation164_spill] sm:$0xff]  ;;  %10591 = vst [vmem:[#allocation64_spill] sm:$0xff] %v8404_v55  ;;  %v10592_v50 = vld [vmem:[#allocation111_spill] sm:$0xff] }
 0x4d9   : > { %2666 = vmatpush.msrb.mxu0 %v8395_v38  ;;  %2706 = vmatpush.msra.mxu3 %v10588_v51  ;;  %v8413_v51 = vld [vmem:[%s8999_s4 + $0x148] sm:$0xff]  ;;  %v10598_v38 = vld [vmem:[#allocation165_spill] sm:$0xff] }
 0x4da   : > { %2689 = vmatpush.msra.mxu1 %v10586_v15  ;;  %2637 = vmatpush.msrb.mxu2 %v10589_v59  ;;  %v10593_v15 = vld [vmem:[#allocation166_spill] sm:$0xff]  ;;  %10595 = vst [vmem:[#allocation23_spill] sm:$0xff] %v8413_v51  ;;  %v10596_v59 = vld [vmem:[#allocation113_spill] sm:$0xff] }
 0x4db   : > { %2667 = vmatpush.msrb.mxu0 %v8404_v55  ;;  %2707 = vmatpush.msra.mxu3 %v10592_v50  ;;  %v8422_v50 = vld [vmem:[%s8999_s4 + $0x138] sm:$0xff]  ;;  %v10612_v55 = vld [vmem:[#allocation99_spill] sm:$0xff] }
 0x4dc   : > { %2690 = vmatpush.msra.mxu1 %v10590_v9  ;;  %2638 = vmatpush.msrb.mxu2 %v10593_v15  ;;  %v10597_v9 = vld [vmem:[#allocation167_spill] sm:$0xff]  ;;  %10599 = vst [vmem:[#allocation26_spill] sm:$0xff] %v8422_v50  ;;  %v10600_v15 = vld [vmem:[#allocation116_spill] sm:$0xff] }
 0x4dd   : > { %2668 = vmatpush.msrb.mxu0 %v8413_v51  ;;  %2708 = vmatpush.msra.mxu3 %v10596_v59  ;;  %v8430_v51 = vld [vmem:[%s8999_s4 + $0x128] sm:$0xff]  ;;  %v10604_v59 = vld [vmem:[#allocation169_spill] sm:$0xff] }
 0x4de   : > { %2691 = vmatpush.msra.mxu1 %v10594_v49  ;;  %2639 = vmatpush.msrb.mxu2 %v10597_v9  ;;  %v10601_v49 = vld [vmem:[#allocation168_spill] sm:$0xff]  ;;  %10602 = vst [vmem:[#allocation68_spill] sm:$0xff] %v8430_v51  ;;  %v10603_v9 = vld [vmem:[#allocation118_spill] sm:$0xff] }
 0x4df   : > { %2669 = vmatpush.msrb.mxu0 %v8422_v50  ;;  %2709 = vmatpush.msra.mxu3 %v10600_v15  ;;  %v10606_v15 = vld [vmem:[#allocation170_spill] sm:$0xff] }
 0x4e0   : > { %2692 = vmatpush.msra.mxu1 %v10598_v38  ;;  %2640 = vmatpush.msrb.mxu2 %v10601_v49  ;;  %v8438_v38 = vld [vmem:[%s8999_s4 + $0x118] sm:$0xff]  ;;  %v10607_v49 = vld [vmem:[#allocation171_spill] sm:$0xff] }
 0x4e1   : > { %2670 = vmatpush.msrb.mxu0 %v8430_v51  ;;  %2710 = vmatpush.msra.mxu3 %v10603_v9  ;;  %10605 = vst [vmem:[#allocation27_spill] sm:$0xff] %v8438_v38  ;;  %v8446_v50 = vld [vmem:[%s8999_s4 + $0x108] sm:$0xff]  ;;  %v10609_v9 = vld [vmem:[#allocation172_spill] sm:$0xff] }
 0x4e2   : > { %2641 = vmatpush.msrb.mxu2 %v10604_v59  ;;  %10608 = vst [vmem:[#allocation18_spill] sm:$0xff] %v8446_v50  ;;  %v10610_v59 = vld [vmem:[#allocation173_spill] sm:$0xff]  ;;  %v10611_v51 = vld [vmem:[#allocation174_spill] sm:$0xff] }
 0x4e3   : > { %2671 = vmatpush.msrb.mxu0 %v8438_v38  ;;  %2711 = vmatpush.msra.mxu3 %v10606_v15  ;;  %v10613_v38 = vld [vmem:[#allocation38_spill] sm:$0xff] }
 0x4e4   : > { %2642 = vmatpush.msrb.mxu2 %v10607_v49  ;;  %v8457_v49 = vld [vmem:[%s8999_s4 + $0x58] sm:$0xff] }
 0x4e5   : > { %2672 = vmatpush.msrb.mxu0 %v8446_v50  ;;  %2712 = vmatpush.msra.mxu3 %v10609_v9  ;;  %10614 = vst [vmem:[#allocation74_spill] sm:$0xff] %v8457_v49  ;;  %v8463_v50 = vld [vmem:[%s8999_s4 + $0x48] sm:$0xff] }
 0x4e6   : > { %2643 = vmatpush.msrb.mxu2 %v10610_v59  ;;  %10615 = vst [vmem:[#allocation6_spill] sm:$0xff] %v8463_v50 }
 0x4e8   : > { %2644 = vmatpush.msrb.mxu2 %v10611_v51 }
 0x4ea   : > { %2645 = vmatpush.msrb.mxu2 %v10612_v55  ;;  %v8469_v55 = vld [vmem:[%s8999_s4 + $0x38] sm:$0xff] }
 0x4eb   : > { %10616 = vst [vmem:[#allocation29_spill] sm:$0xff] %v8469_v55 }
 0x4ec   : > { %2646 = vmatpush.msrb.mxu2 %v10613_v38  ;;  %v8475_v38 = vld [vmem:[%s8999_s4 + $0x28] sm:$0xff] }
 0x4ed   : > { %10617 = vst [vmem:[#allocation107_spill] sm:$0xff] %v8475_v38 }
 0x4ee   : > { %2647 = vmatpush.msrb.mxu2 %v8457_v49  ;;  %v8481_v49 = vld [vmem:[%s8999_s4 + $0x18] sm:$0xff] }
 0x4ef   : > { %10618 = vst [vmem:[#allocation42_spill] sm:$0xff] %v8481_v49 }
 0x4f0   : > { %2648 = vmatpush.msrb.mxu2 %v8463_v50  ;;  %v8487_v50 = vld [vmem:[%s8999_s4 + $0x8] sm:$0xff] }
 0x4f1   : > { %10619 = vst [vmem:[#allocation45_spill] sm:$0xff] %v8487_v50 }
 0x4f2   : > { %2649 = vmatpush.msrb.mxu2 %v8469_v55 }
 0x4f4   : > { %2650 = vmatpush.msrb.mxu2 %v8475_v38 }
 0x4f6   : > { %2651 = vmatpush.msrb.mxu2 %v8481_v49 }
 0x4f7   : > { %v2363_v55 = vpop.f32.mrf.mxu1 }
 0x4f8   : > { %2652 = vmatpush.msrb.mxu2 %v8487_v50 }
 0x4ff   : > { %v2443_v13 = vpop.f32.mrf.mxu1 }
 0x501   : > { %v2343_v59 = vpop.f32.mrf.mxu0 }
 0x506   : > { %v2383_v51 = vpop.f32.mrf.mxu3 }
 0x509   : > { %v2423_v8 = vpop.f32.mrf.mxu0 }
 0x50e   : > { %v2463_v58 = vpop.f32.mrf.mxu3 }
 0x519   : > { %v2530_v45 = vpop.f32.mrf.mxu1 }
 0x51b   : > { %v2323_v9 = vpop.f32.mrf.mxu2 }
 0x51c   : > { %v2324_v38 = vadd.f32 %v2323_v9, %v10460_v39  ;;  %v10622_v9 = vld [vmem:[#allocation50_spill] sm:$0xff] }
 0x51e   : > { %v2344_v15 = vadd.f32 %v2343_v59, %v2324_v38  ;;  %v739_v38 = vadd.f32 %v10622_v9, %v698_v53  ;;  %v10640_v9 = vld [vmem:[#allocation78_spill] sm:$0xff] }
 0x520   : > { %v2364_v44 = vadd.f32 %v2363_v55, %v2344_v15  ;;  %v10637_v15 = vld [vmem:[#allocation66_spill] sm:$0xff] }
 0x522   : > { %v2384_v24 = vadd.f32 %v2383_v51, %v2364_v44  ;;  %v3697_v51 = vld [vmem:[%s8998_s3 + $0x30] sm:$0xff] }
 0x523   : > { %v2403_v63 = vpop.f32.mrf.mxu2 }
 0x524   : > { %3265 = vtanh.f32 %v2384_v24  ;;  %v2404_v49 = vadd.f32 %v2403_v63, %v5659_v14  ;;  %v10635_v63 = vld [vmem:[#allocation73_spill] sm:$0xff]  ;;  %v10636_v24 = vld [vmem:[#allocation72_spill] sm:$0xff] }
 0x526   : > { %v2424_v50 = vadd.f32 %v2423_v8, %v2404_v49  ;;  %v10633_v8 = vld [vmem:[#allocation67_spill] sm:$0xff]  ;;  %v10639_v49 = vld [vmem:[#allocation81_spill] sm:$0xff] }
 0x528   : > { %v2444_v32 = vadd.f32 %v2443_v13, %v2424_v50  ;;  %v2550_v60 = vpop.f32.mrf.mxu3  ;;  %v3696_v50 = vld [vmem:[%s8998_s3 + $0x40] sm:$0xff] }
 0x529   : > { %v2551_v59 = vadd.f32 %v2550_v60, %v2530_v45  ;;  %v10623_v60 = vld [vmem:[#allocation117_spill] sm:$0xff]  ;;  %v3675_v45 = vld [vmem:[%s8998_s3 + $0x190] sm:$0xff] }
 0x52a   : > { %v3266_v39 = vpop.eup %3265  ;;  %v2464_v55 = vadd.f32 %v2463_v58, %v2444_v32  ;;  %v534_v32 = vadd.f32 %v10623_v60, %v5275_v48  ;;  %v10634_v58 = vld [vmem:[#allocation62_spill] sm:$0xff]  ;;  %v10638_v13 = vld [vmem:[#allocation77_spill] sm:$0xff]  ;;  %v10645_v60 = vld [vmem:[#allocation88_spill] sm:$0xff] }
 0x52b   : > { %v2554_v44 = vadd.f32 %v2551_v59, %v739_v38  ;;  %2613 = vmatmul.f32.vlgmr.msrb.gmra.mxu1 %v3266_v39  ;;  %v10641_v38 = vld [vmem:[#allocation82_spill] sm:$0xff] }
 0x52c   : > { %3267 = vtanh.f32 %v2464_v55  ;;  %2764 = vmatpush.msrb.mxu1 %v7271_v35  ;;  %v3669_v35 = vld [vmem:[%s8998_s3 + $0x1f0] sm:$0xff]  ;;  %v3698_v59 = vld [vmem:[%s8998_s3 + $0x20] sm:$0xff] }
 0x52d   : > { %3269 = vtanh.f32 %v2554_v44  ;;  %v10642_v55 = vld [vmem:[#allocation83_spill] sm:$0xff]  ;;  %v10643_v44 = vld [vmem:[#allocation85_spill] sm:$0xff] }
 0x52e   : > { %2765 = vmatpush.msrb.mxu1 %v7277_v47  ;;  %v10624_v47 = vld [vmem:[#allocation112_spill] sm:$0xff] }
 0x530   : > { %2766 = vmatpush.msrb.mxu1 %v7283_v20  ;;  %v575_v20 = vadd.f32 %v10624_v47, %v534_v32  ;;  %v10646_v32 = vld [vmem:[#allocation87_spill] sm:$0xff]  ;;  %v10648_v47 = vld [vmem:[#allocation101_spill] sm:$0xff] }
 0x532   : > { %v3268_v62 = vpop.eup %3267  ;;  %2767 = vmatpush.msrb.mxu1 %v7289_v57  ;;  %v3671_v57 = vld [vmem:[%s8998_s3 + $0x1d0] sm:$0xff] }
 0x533   : > { %v8500_v10 = vpop.eup %3269  ;;  %2633 = vmatmul.f32.vlgmr.msrb.gmra.mxu3 %v3268_v62  ;;  %2693 = vmatmul.f32.vlgmr.msra.gmra.mxu1 %v3266_v39  ;;  %v3670_v39 = vld [vmem:[%s8998_s3 + $0x1e0] sm:$0xff] }
 0x534   : > { %2593 = vmatmul.f32.vlgmr.msra.gmra.mxu0 %v8500_v10  ;;  %2768 = vmatpush.msrb.mxu1 %v7300_v36  ;;  %v2510_v36 = vpop.f32.mrf.mxu0 }
 0x535   : > { %2744 = vmatpush.msra.mxu0 %v3669_v35  ;;  %2784 = vmatpush.msrb.mxu3 %v7307_v42  ;;  %v3672_v42 = vld [vmem:[%s8998_s3 + $0x1c0] sm:$0xff] }
 0x536   : > { %2769 = vmatpush.msrb.mxu1 %v7313_v41  ;;  %v10647_v35 = vld [vmem:[#allocation90_spill] sm:$0xff] }
 0x537   : > { %2745 = vmatpush.msra.mxu0 %v3670_v39  ;;  %2785 = vmatpush.msrb.mxu3 %v7320_v61  ;;  %v10625_v61 = vld [vmem:[#allocation114_spill] sm:$0xff] }
 0x538   : > { %2770 = vmatpush.msrb.mxu1 %v7327_v11  ;;  %v616_v11 = vadd.f32 %v10625_v61, %v575_v20  ;;  %v3700_v39 = vld [vmem:[%s8998_s3] sm:$0xff]  ;;  %v10649_v20 = vld [vmem:[#allocation95_spill] sm:$0xff] }
 0x539   : > { %2746 = vmatpush.msra.mxu0 %v3671_v57  ;;  %2786 = vmatpush.msrb.mxu3 %v7334_v46  ;;  %v3673_v46 = vld [vmem:[%s8998_s3 + $0x1b0] sm:$0xff]  ;;  %v10654_v61 = vld [vmem:[#allocation41_spill] sm:$0xff] }
 0x53a   : > { %2771 = vmatpush.msrb.mxu1 %v7340_v33  ;;  %v10650_v57 = vld [vmem:[#allocation92_spill] sm:$0xff] }
 0x53b   : > { %2747 = vmatpush.msra.mxu0 %v3672_v42  ;;  %2787 = vmatpush.msrb.mxu3 %v7347_v28  ;;  %v2490_v41 = vpop.f32.mrf.mxu2  ;;  %v3674_v28 = vld [vmem:[%s8998_s3 + $0x1a0] sm:$0xff] }
 0x53c   : > { %v2511_v53 = vadd.f32 %v2510_v36, %v2490_v41  ;;  %2673 = vmatmul.f32.vlgmr.msrb.gmra.mxu0 %v8500_v10  ;;  %2713 = vmatmul.f32.vlgmr.msra.gmra.mxu3 %v3268_v62  ;;  %v10644_v62 = vld [vmem:[#allocation100_spill] sm:$0xff]  ;;  %v10651_v36 = vld [vmem:[#allocation70_spill] sm:$0xff]  ;;  %v10653_v41 = vld [vmem:[#allocation65_spill] sm:$0xff] }
 0x53d   : > { %2748 = vmatpush.msra.mxu0 %v3673_v46  ;;  %2772 = vmatpush.msrb.mxu1 %v7356_v27  ;;  %v3677_v27 = vld [vmem:[%s8998_s3 + $0x170] sm:$0xff]  ;;  %v10652_v42 = vld [vmem:[#allocation102_spill] sm:$0xff] }
 0x53e   : > { %v2553_v33 = vadd.f32 %v2511_v53, %v616_v11  ;;  %2788 = vmatpush.msrb.mxu3 %v7362_v56  ;;  %v3676_v56 = vld [vmem:[%s8998_s3 + $0x180] sm:$0xff]  ;;  %v10655_v11 = vld [vmem:[#allocation52_spill] sm:$0xff]  ;;  %v10656_v53 = vld [vmem:[#allocation123_spill] sm:$0xff] }
 0x53f   : > { %2749 = vmatpush.msra.mxu0 %v3674_v28  ;;  %2773 = vmatpush.msrb.mxu1 %v7369_v1  ;;  %v10657_v46 = vld [vmem:[#allocation47_spill] sm:$0xff]  ;;  %v10659_v28 = vld [vmem:[#allocation105_spill] sm:$0xff] }
 0x540   : > { %3271 = vtanh.f32 %v2553_v33  ;;  %2789 = vmatpush.msrb.mxu3 %v7375_v22  ;;  %v3678_v22 = vld [vmem:[%s8998_s3 + $0x160] sm:$0xff] }
 0x541   : > { %2750 = vmatpush.msra.mxu0 %v3675_v45  ;;  %2774 = vmatpush.msrb.mxu1 %v7382_v17  ;;  %v3679_v17 = vld [vmem:[%s8998_s3 + $0xf0] sm:$0xff]  ;;  %v10658_v33 = vld [vmem:[#allocation97_spill] sm:$0xff] }
 0x542   : > { %2790 = vmatpush.msrb.mxu3 %v7388_v43  ;;  %v3681_v43 = vld [vmem:[%s8998_s3 + $0xe0] sm:$0xff]  ;;  %v10660_v45 = vld [vmem:[#allocation124_spill] sm:$0xff] }
 0x543   : > { %2751 = vmatpush.msra.mxu0 %v3676_v56  ;;  %2775 = vmatpush.msrb.mxu1 %v7395_v31  ;;  %v3682_v31 = vld [vmem:[%s8998_s3 + $0x140] sm:$0xff] }
 0x544   : > { %2791 = vmatpush.msrb.mxu3 %v7401_v2  ;;  %v3689_v2 = vld [vmem:[%s8998_s3 + $0xa0] sm:$0xff] }
 0x545   : > { %2752 = vmatpush.msra.mxu0 %v3677_v27  ;;  %2776 = vmatpush.msrb.mxu1 %v10469_v7  ;;  %v3692_v7 = vld [vmem:[%s8998_s3 + $0x80] sm:$0xff] }
 0x546   : > { %v8552_v1 = vpop.eup %3271  ;;  %2792 = vmatpush.msrb.mxu3 %v7416_v4  ;;  %v3680_v4 = vld [vmem:[%s8998_s3 + $0x150] sm:$0xff]  ;;  %v10661_v56 = vld [vmem:[#allocation126_spill] sm:$0xff]  ;;  %v10662_v27 = vld [vmem:[#allocation125_spill] sm:$0xff] }
 0x547   : > { %2753 = vmatpush.msra.mxu0 %v3678_v22  ;;  %2777 = vmatpush.msrb.mxu1 %v10471_v5  ;;  %v10626_v5 = vld [vmem:[#allocation48_spill] sm:$0xff] }
 0x548   : > { %2793 = vmatpush.msrb.mxu3 %v7429_v30  ;;  %2573 = vmatmul.f32.vlgmr.msra.gmra.mxu2 %v8552_v1  ;;  %v3690_v30 = vld [vmem:[%s8998_s3 + $0x100] sm:$0xff]  ;;  %v10664_v22 = vld [vmem:[#allocation108_spill] sm:$0xff] }
 0x549   : > { %2724 = vmatpush.msra.mxu2 %v3679_v17  ;;  %2754 = vmatpush.msra.mxu0 %v3680_v4  ;;  %v10665_v17 = vld [vmem:[#allocation127_spill] sm:$0xff]  ;;  %v10666_v4 = vld [vmem:[#allocation129_spill] sm:$0xff] }
 0x54a   : > { %2778 = vmatpush.msrb.mxu1 %v7438_v16  ;;  %2794 = vmatpush.msrb.mxu3 %v7444_v19  ;;  %v3683_v16 = vld [vmem:[%s8998_s3 + $0xd0] sm:$0xff] }
 0x54b   : > { %2725 = vmatpush.msra.mxu2 %v3681_v43  ;;  %2755 = vmatpush.msra.mxu0 %v3682_v31  ;;  %v3684_v19 = vld [vmem:[%s8998_s3 + $0x130] sm:$0xff] }
 0x54c   : > { %2779 = vmatpush.msrb.mxu1 %v7452_v34  ;;  %2795 = vmatpush.msrb.mxu3 %v7458_v18  ;;  %v3685_v34 = vld [vmem:[%s8998_s3 + $0xc0] sm:$0xff]  ;;  %v10667_v43 = vld [vmem:[#allocation96_spill] sm:$0xff] }
 0x54d   : > { %2726 = vmatpush.msra.mxu2 %v3683_v16  ;;  %2780 = vmatmul.f32.vlgmr.msrb.gmra.mxu1 %v8552_v1  ;;  %v3686_v18 = vld [vmem:[%s8998_s3 + $0x120] sm:$0xff]  ;;  %v10668_v31 = vld [vmem:[#allocation128_spill] sm:$0xff] }
 0x54e   : > { %2756 = vmatpush.msra.mxu0 %v3684_v19  ;;  %2796 = vmatpush.msrb.mxu3 %v7467_v12  ;;  %v3687_v12 = vld [vmem:[%s8998_s3 + $0xb0] sm:$0xff]  ;;  %v10669_v16 = vld [vmem:[#allocation109_spill] sm:$0xff]  ;;  %v10670_v19 = vld [vmem:[#allocation130_spill] sm:$0xff] }
 0x54f   : > { %2727 = vmatpush.msra.mxu2 %v3685_v34  ;;  %2848 = vmatpush.msra.mxu1 %v7474_v0  ;;  %v3688_v0 = vld [vmem:[%s8998_s3 + $0x110] sm:$0xff]  ;;  %v10671_v34 = vld [vmem:[#allocation30_spill] sm:$0xff] }
 0x550   : > { %2757 = vmatpush.msra.mxu0 %v3686_v18  ;;  %2797 = vmatpush.msrb.mxu3 %v10480_v26  ;;  %v3693_v26 = vld [vmem:[%s8998_s3 + $0x70] sm:$0xff] }
 0x551   : > { %2653 = vmatmul.f32.vlgmr.msrb.gmra.mxu2 %v8552_v1  ;;  %2849 = vmatpush.msra.mxu1 %v10481_v23  ;;  %v10627_v23 = vld [vmem:[#allocation54_spill] sm:$0xff]  ;;  %v10672_v18 = vld [vmem:[#allocation132_spill] sm:$0xff] }
 0x552   : > { %2728 = vmatpush.msra.mxu2 %v3687_v12  ;;  %2758 = vmatpush.msra.mxu0 %v3688_v0  ;;  %v10673_v12 = vld [vmem:[#allocation131_spill] sm:$0xff]  ;;  %v10674_v0 = vld [vmem:[#allocation86_spill] sm:$0xff] }
 0x553   : > { %2798 = vmatpush.msrb.mxu3 %v7496_v6  ;;  %2850 = vmatpush.msra.mxu1 %v10485_v54  ;;  %v3691_v6 = vld [vmem:[%s8998_s3 + $0x90] sm:$0xff]  ;;  %v10629_v54 = vld [vmem:[#allocation58_spill] sm:$0xff] }
 0x554   : > { %2729 = vmatpush.msra.mxu2 %v3689_v2  ;;  %2759 = vmatpush.msra.mxu0 %v3690_v30  ;;  %v10675_v2 = vld [vmem:[#allocation33_spill] sm:$0xff] }
 0x555   : > { %2799 = vmatpush.msrb.mxu3 %v10483_v37  ;;  %2760 = vmatmul.f32.vlgmr.msra.gmra.mxu0 %v8500_v10  ;;  %v10628_v37 = vld [vmem:[#allocation49_spill] sm:$0xff] }
 0x556   : > { %2730 = vmatpush.msra.mxu2 %v3691_v6  ;;  %2800 = vmatmul.f32.vlgmr.msrb.gmra.mxu3 %v8500_v10  ;;  %v3699_v10 = vld [vmem:[%s8998_s3 + $0x10] sm:$0xff]  ;;  %v10676_v30 = vld [vmem:[#allocation133_spill] sm:$0xff] }
 0x557   : > { %2851 = vmatpush.msra.mxu1 %v10489_v3  ;;  %2828 = vmatpush.msrb.mxu0 %v10486_v40  ;;  %v3694_v40 = vld [vmem:[%s8998_s3 + $0x60] sm:$0xff]  ;;  %v10677_v6 = vld [vmem:[#allocation135_spill] sm:$0xff] }
 0x558   : > { %2731 = vmatpush.msra.mxu2 %v3692_v7  ;;  %2868 = vmatpush.msra.mxu3 %v10488_v29  ;;  %v10630_v29 = vld [vmem:[#allocation57_spill] sm:$0xff]  ;;  %v10678_v7 = vld [vmem:[#allocation75_spill] sm:$0xff] }
 0x559   : > { %2852 = vmatpush.msra.mxu1 %v10493_v25  ;;  %2829 = vmatpush.msrb.mxu0 %v10626_v5  ;;  %v10631_v3 = vld [vmem:[#allocation53_spill] sm:$0xff]  ;;  %v10679_v5 = vld [vmem:[#allocation134_spill] sm:$0xff] }
 0x55a   : > { %2732 = vmatpush.msra.mxu2 %v3693_v26  ;;  %2869 = vmatpush.msra.mxu3 %v10627_v23  ;;  %v10632_v25 = vld [vmem:[#allocation61_spill] sm:$0xff]  ;;  %v10680_v26 = vld [vmem:[#allocation136_spill] sm:$0xff]  ;;  %v10681_v23 = vld [vmem:[#allocation138_spill] sm:$0xff] }
 0x55b   : > { %2853 = vmatpush.msra.mxu1 %v10628_v37  ;;  %2830 = vmatpush.msrb.mxu0 %v10629_v54  ;;  %v10682_v37 = vld [vmem:[#allocation84_spill] sm:$0xff]  ;;  %v10683_v54 = vld [vmem:[#allocation137_spill] sm:$0xff] }
 0x55c   : > { %2733 = vmatpush.msra.mxu2 %v3694_v40  ;;  %2870 = vmatpush.msra.mxu3 %v10630_v29  ;;  %v10684_v40 = vld [vmem:[#allocation139_spill] sm:$0xff]  ;;  %v10685_v29 = vld [vmem:[#allocation141_spill] sm:$0xff] }
 0x55d   : > { %2854 = vmatpush.msra.mxu1 %v10631_v3  ;;  %2831 = vmatpush.msrb.mxu0 %v10632_v25  ;;  %v10686_v3 = vld [vmem:[#allocation69_spill] sm:$0xff]  ;;  %v10687_v25 = vld [vmem:[#allocation140_spill] sm:$0xff] }
 0x55e   : > { %2734 = vmatpush.msra.mxu2 %v3695_v21  ;;  %2871 = vmatpush.msra.mxu3 %v10633_v8  ;;  %v10688_v21 = vld [vmem:[#allocation142_spill] sm:$0xff]  ;;  %v10689_v8 = vld [vmem:[#allocation144_spill] sm:$0xff] }
 0x55f   : > { %2855 = vmatpush.msra.mxu1 %v10634_v58  ;;  %2832 = vmatpush.msrb.mxu0 %v10635_v63  ;;  %v10690_v58 = vld [vmem:[#allocation59_spill] sm:$0xff] }
 0x560   : > { %2735 = vmatpush.msra.mxu2 %v3696_v50  ;;  %2872 = vmatpush.msra.mxu3 %v10636_v24  ;;  %v10691_v63 = vld [vmem:[#allocation143_spill] sm:$0xff]  ;;  %v10692_v50 = vld [vmem:[#allocation145_spill] sm:$0xff] }
 0x561   : > { %2856 = vmatpush.msra.mxu1 %v10637_v15  ;;  %2833 = vmatpush.msrb.mxu0 %v10638_v13  ;;  %v10693_v24 = vld [vmem:[#allocation147_spill] sm:$0xff]  ;;  %v10694_v15 = vld [vmem:[#allocation60_spill] sm:$0xff]  ;;  %v10695_v13 = vld [vmem:[#allocation146_spill] sm:$0xff] }
 0x562   : > { %2736 = vmatpush.msra.mxu2 %v3697_v51  ;;  %2873 = vmatpush.msra.mxu3 %v10639_v49  ;;  %v10696_v51 = vld [vmem:[#allocation148_spill] sm:$0xff]  ;;  %v10697_v49 = vld [vmem:[#allocation150_spill] sm:$0xff] }
 0x563   : > { %2857 = vmatpush.msra.mxu1 %v10640_v9  ;;  %2834 = vmatpush.msrb.mxu0 %v10641_v38  ;;  %v10698_v9 = vld [vmem:[#allocation16_spill] sm:$0xff]  ;;  %v10699_v38 = vld [vmem:[#allocation149_spill] sm:$0xff] }
 0x564   : > { %2737 = vmatpush.msra.mxu2 %v3698_v59  ;;  %2874 = vmatpush.msra.mxu3 %v10642_v55  ;;  %v10700_v59 = vld [vmem:[#allocation151_spill] sm:$0xff]  ;;  %v10701_v55 = vld [vmem:[#allocation153_spill] sm:$0xff] }
 0x565   : > { %2858 = vmatpush.msra.mxu1 %v10643_v44  ;;  %2835 = vmatpush.msrb.mxu0 %v10644_v62  ;;  %v10702_v44 = vld [vmem:[#allocation63_spill] sm:$0xff]  ;;  %v10703_v62 = vld [vmem:[#allocation152_spill] sm:$0xff] }
 0x566   : > { %2738 = vmatpush.msra.mxu2 %v3699_v10  ;;  %2875 = vmatpush.msra.mxu3 %v10645_v60  ;;  %v10704_v10 = vld [vmem:[#allocation154_spill] sm:$0xff]  ;;  %v10705_v60 = vld [vmem:[#allocation156_spill] sm:$0xff] }
 0x567   : > { %2859 = vmatpush.msra.mxu1 %v10646_v32  ;;  %2836 = vmatpush.msrb.mxu0 %v10647_v35  ;;  %v10706_v32 = vld [vmem:[#allocation19_spill] sm:$0xff] }
 0x568   : > { %2739 = vmatpush.msra.mxu2 %v3700_v39  ;;  %2876 = vmatpush.msra.mxu3 %v10648_v47  ;;  %v10707_v35 = vld [vmem:[#allocation155_spill] sm:$0xff]  ;;  %v10708_v39 = vld [vmem:[#allocation157_spill] sm:$0xff] }
 0x569   : > { %2740 = vmatmul.f32.vlgmr.msra.gmra.mxu2 %v8552_v1  ;;  %2860 = vmatpush.msra.mxu1 %v10649_v20  ;;  %v10663_v1 = vld [vmem:[#allocation98_spill] sm:$0xff]  ;;  %v10709_v47 = vld [vmem:[#allocation159_spill] sm:$0xff] }
 0x56a   : > { %2837 = vmatpush.msrb.mxu0 %v10650_v57  ;;  %2877 = vmatpush.msra.mxu3 %v10651_v36  ;;  %v10710_v20 = vld [vmem:[#allocation15_spill] sm:$0xff]  ;;  %v10711_v57 = vld [vmem:[#allocation158_spill] sm:$0xff]  ;;  %v10712_v36 = vld [vmem:[#allocation160_spill] sm:$0xff] }
 0x56b   : > { %2861 = vmatpush.msra.mxu1 %v10652_v42  ;;  %2808 = vmatpush.msrb.mxu2 %v10653_v41  ;;  %v10713_v42 = vld [vmem:[#allocation162_spill] sm:$0xff] }
 0x56c   : > { %2838 = vmatpush.msrb.mxu0 %v10654_v61  ;;  %2878 = vmatpush.msra.mxu3 %v10655_v11  ;;  %v10714_v41 = vld [vmem:[#allocation22_spill] sm:$0xff]  ;;  %v10715_v61 = vld [vmem:[#allocation161_spill] sm:$0xff] }
 0x56d   : > { %2862 = vmatpush.msra.mxu1 %v10656_v53  ;;  %2809 = vmatpush.msrb.mxu2 %v10657_v46  ;;  %v10716_v11 = vld [vmem:[#allocation110_spill] sm:$0xff]  ;;  %v10717_v53 = vld [vmem:[#allocation164_spill] sm:$0xff] }
 0x56e   : > { %2839 = vmatpush.msrb.mxu0 %v10658_v33  ;;  %2879 = vmatpush.msra.mxu3 %v10659_v28  ;;  %v10718_v46 = vld [vmem:[#allocation64_spill] sm:$0xff]  ;;  %v10719_v33 = vld [vmem:[#allocation163_spill] sm:$0xff] }
 0x56f   : > { %2863 = vmatpush.msra.mxu1 %v10660_v45  ;;  %2810 = vmatpush.msrb.mxu2 %v10661_v56  ;;  %v10720_v28 = vld [vmem:[#allocation111_spill] sm:$0xff]  ;;  %v10721_v45 = vld [vmem:[#allocation166_spill] sm:$0xff] }
 0x570   : > { %2840 = vmatpush.msrb.mxu0 %v10663_v1  ;;  %2880 = vmatpush.msra.mxu3 %v10664_v22  ;;  %v10722_v56 = vld [vmem:[#allocation23_spill] sm:$0xff]  ;;  %v10724_v1 = vld [vmem:[#allocation113_spill] sm:$0xff] }
 0x571   : > { %2928 = vmatpush.msrb.mxu1 %v10662_v27  ;;  %2811 = vmatpush.msrb.mxu2 %v10665_v17  ;;  %v10723_v27 = vld [vmem:[#allocation165_spill] sm:$0xff]  ;;  %v10725_v22 = vld [vmem:[#allocation167_spill] sm:$0xff]  ;;  %v10726_v17 = vld [vmem:[#allocation26_spill] sm:$0xff] }
 0x572   : > { %2841 = vmatpush.msrb.mxu0 %v10667_v43  ;;  %2881 = vmatpush.msra.mxu3 %v10668_v31  ;;  %v10728_v43 = vld [vmem:[#allocation168_spill] sm:$0xff] }
 0x573   : > { %2929 = vmatpush.msrb.mxu1 %v10666_v4  ;;  %2812 = vmatpush.msrb.mxu2 %v10669_v16  ;;  %v10727_v4 = vld [vmem:[#allocation116_spill] sm:$0xff]  ;;  %v10730_v16 = vld [vmem:[#allocation118_spill] sm:$0xff] }
 0x574   : > { %2842 = vmatpush.msrb.mxu0 %v10671_v34  ;;  %2882 = vmatpush.msra.mxu3 %v10672_v18  ;;  %v10729_v31 = vld [vmem:[#allocation68_spill] sm:$0xff]  ;;  %v10732_v34 = vld [vmem:[#allocation27_spill] sm:$0xff]  ;;  %v10733_v18 = vld [vmem:[#allocation170_spill] sm:$0xff] }
 0x575   : > { %2930 = vmatpush.msrb.mxu1 %v10670_v19  ;;  %2813 = vmatpush.msrb.mxu2 %v10673_v12  ;;  %v10731_v19 = vld [vmem:[#allocation169_spill] sm:$0xff]  ;;  %v10734_v12 = vld [vmem:[#allocation171_spill] sm:$0xff] }
 0x576   : > { %2843 = vmatpush.msrb.mxu0 %v10675_v2  ;;  %2883 = vmatpush.msra.mxu3 %v10676_v30  ;;  %v10736_v2 = vld [vmem:[#allocation172_spill] sm:$0xff]  ;;  %v10737_v30 = vld [vmem:[#allocation173_spill] sm:$0xff] }
 0x577   : > { %2931 = vmatpush.msrb.mxu1 %v10674_v0  ;;  %2814 = vmatpush.msrb.mxu2 %v10677_v6  ;;  %v10735_v0 = vld [vmem:[#allocation18_spill] sm:$0xff] }
 0x578   : > { %2908 = vmatpush.msra.mxu0 %v10678_v7  ;;  %2948 = vmatpush.msrb.mxu3 %v10680_v26  ;;  %v10738_v6 = vld [vmem:[#allocation174_spill] sm:$0xff]  ;;  %v10739_v7 = vld [vmem:[#allocation99_spill] sm:$0xff] }
 0x579   : > { %2932 = vmatpush.msrb.mxu1 %v10679_v5  ;;  %2815 = vmatpush.msrb.mxu2 %v10681_v23  ;;  %v10740_v5 = vld [vmem:[#allocation38_spill] sm:$0xff] }
 0x57a   : > { %2909 = vmatpush.msra.mxu0 %v10682_v37  ;;  %2949 = vmatpush.msrb.mxu3 %v10684_v40  ;;  %v10741_v26 = vld [vmem:[#allocation74_spill] sm:$0xff]  ;;  %v10743_v37 = vld [vmem:[#allocation29_spill] sm:$0xff] }
 0x57b   : > { %2933 = vmatpush.msrb.mxu1 %v10683_v54  ;;  %2816 = vmatpush.msrb.mxu2 %v10685_v29  ;;  %v10742_v23 = vld [vmem:[#allocation6_spill] sm:$0xff]  ;;  %v10744_v54 = vld [vmem:[#allocation107_spill] sm:$0xff]  ;;  %v10746_v29 = vld [vmem:[#allocation45_spill] sm:$0xff] }
 0x57c   : > { %2910 = vmatpush.msra.mxu0 %v10686_v3  ;;  %2950 = vmatpush.msrb.mxu3 %v10688_v21  ;;  %v10745_v40 = vld [vmem:[#allocation42_spill] sm:$0xff] }
 0x57d   : > { %2934 = vmatpush.msrb.mxu1 %v10687_v25  ;;  %2817 = vmatpush.msrb.mxu2 %v10689_v8 }
 0x57e   : > { %2911 = vmatpush.msra.mxu0 %v10690_v58  ;;  %2951 = vmatpush.msrb.mxu3 %v10692_v50  ;;  %v10747_v58 = vld [vmem:[#allocation56_spill] sm:$0xff] }
 0x57f   : > { %2935 = vmatpush.msrb.mxu1 %v10691_v63  ;;  %2818 = vmatpush.msrb.mxu2 %v10693_v24 }
 0x580   : > { %2912 = vmatpush.msra.mxu0 %v10694_v15  ;;  %2952 = vmatpush.msrb.mxu3 %v10696_v51 }
 0x581   : > { %2936 = vmatpush.msrb.mxu1 %v10695_v13  ;;  %2819 = vmatpush.msrb.mxu2 %v10697_v49 }
 0x582   : > { %2913 = vmatpush.msra.mxu0 %v10698_v9  ;;  %2953 = vmatpush.msrb.mxu3 %v10700_v59 }
 0x583   : > { %2937 = vmatpush.msrb.mxu1 %v10699_v38  ;;  %2820 = vmatpush.msrb.mxu2 %v10701_v55  ;;  %v10748_v38 = vld [vmem:[#allocation120_spill] sm:$0xff] }
 0x584   : > { %2914 = vmatpush.msra.mxu0 %v10702_v44  ;;  %2954 = vmatpush.msrb.mxu3 %v10704_v10  ;;  %v660_v59 = vadd.f32 %v10748_v38, %v5303_v52  ;;  %v10751_v52 = vld [vmem:[#allocation122_spill] sm:$0xff] }
 0x585   : > { %2938 = vmatpush.msrb.mxu1 %v10703_v62  ;;  %2821 = vmatpush.msrb.mxu2 %v10705_v60  ;;  %v10749_v62 = vld [vmem:[#allocation51_spill] sm:$0xff] }
 0x586   : > { %2915 = vmatpush.msra.mxu0 %v10706_v32  ;;  %2955 = vmatpush.msrb.mxu3 %v10708_v39  ;;  %v701_v10 = vadd.f32 %v10749_v62, %v660_v59 }
 0x587   : > { %2939 = vmatpush.msrb.mxu1 %v10707_v35  ;;  %2822 = vmatpush.msrb.mxu2 %v10709_v47  ;;  %v10750_v47 = vld [vmem:[#allocation55_spill] sm:$0xff] }
 0x588   : > { %2916 = vmatpush.msra.mxu0 %v10710_v20  ;;  %2956 = vmatpush.msrb.mxu3 %v10712_v36  ;;  %v742_v20 = vadd.f32 %v10750_v47, %v701_v10 }
 0x589   : > { %2940 = vmatpush.msrb.mxu1 %v10711_v57  ;;  %2823 = vmatpush.msrb.mxu2 %v10713_v42 }
 0x58a   : > { %2917 = vmatpush.msra.mxu0 %v10714_v41  ;;  %2957 = vmatpush.msrb.mxu3 %v10716_v11  ;;  %v537_v11 = vadd.f32 %v10751_v52, %v5275_v48 }
 0x58b   : > { %2941 = vmatpush.msrb.mxu1 %v10715_v61  ;;  %2888 = vmatpush.msra.mxu2 %v10717_v53  ;;  %v10752_v53 = vld [vmem:[#allocation119_spill] sm:$0xff] }
 0x58c   : > { %2918 = vmatpush.msra.mxu0 %v10718_v46  ;;  %2958 = vmatpush.msrb.mxu3 %v10720_v28  ;;  %v578_v46 = vadd.f32 %v10752_v53, %v537_v11 }
 0x58d   : > { %2942 = vmatpush.msrb.mxu1 %v10719_v33  ;;  %2889 = vmatpush.msra.mxu2 %v10721_v45  ;;  %v10753_v45 = vld [vmem:[#allocation121_spill] sm:$0xff] }
 0x58e   : > { %2919 = vmatpush.msra.mxu0 %v10722_v56  ;;  %2959 = vmatpush.msrb.mxu3 %v10724_v1  ;;  %v619_v56 = vadd.f32 %v10753_v45, %v578_v46 }
 0x58f   : > { %2943 = vmatpush.msrb.mxu1 %v10723_v27  ;;  %2890 = vmatpush.msra.mxu2 %v10725_v22 }
 0x590   : > { %2920 = vmatpush.msra.mxu0 %v10726_v17  ;;  %2960 = vmatpush.msrb.mxu3 %v10727_v4 }
 0x591   : > { %2891 = vmatpush.msra.mxu2 %v10728_v43 }
 0x592   : > { %2921 = vmatpush.msra.mxu0 %v10729_v31  ;;  %2961 = vmatpush.msrb.mxu3 %v10730_v16 }
 0x593   : > { %2892 = vmatpush.msra.mxu2 %v10731_v19 }
 0x594   : > { %2922 = vmatpush.msra.mxu0 %v10732_v34  ;;  %2962 = vmatpush.msrb.mxu3 %v10733_v18 }
 0x595   : > { %2893 = vmatpush.msra.mxu2 %v10734_v12 }
 0x596   : > { %2923 = vmatpush.msra.mxu0 %v10735_v0  ;;  %2963 = vmatpush.msrb.mxu3 %v10736_v2 }
 0x597   : > { %2894 = vmatpush.msra.mxu2 %v10737_v30 }
 0x599   : > { %2895 = vmatpush.msra.mxu2 %v10738_v6 }
 0x59b   : > { %2896 = vmatpush.msra.mxu2 %v10739_v7 }
 0x59d   : > { %2897 = vmatpush.msra.mxu2 %v10740_v5 }
 0x59f   : > { %2898 = vmatpush.msra.mxu2 %v10741_v26 }
 0x5a1   : > { %2899 = vmatpush.msra.mxu2 %v10742_v23 }
 0x5a3   : > { %2900 = vmatpush.msra.mxu2 %v10743_v37 }
 0x5a5   : > { %2901 = vmatpush.msra.mxu2 %v10744_v54 }
 0x5a7   : > { %2902 = vmatpush.msra.mxu2 %v10745_v40 }
 0x5a8   : > { %v2614_v3 = vpop.f32.mrf.mxu1 }
 0x5a9   : > { %2903 = vmatpush.msra.mxu2 %v10746_v29 }
 0x5b0   : > { %v2694_v15 = vpop.f32.mrf.mxu1 }
 0x5b1   : > { %v2594_v8 = vpop.f32.mrf.mxu0 }
 0x5b6   : > { %v2634_v25 = vpop.f32.mrf.mxu3 }
 0x5b9   : > { %v2674_v55 = vpop.f32.mrf.mxu0 }
 0x5bf   : > { %v2714_v13 = vpop.f32.mrf.mxu3 }
 0x5ca   : > { %v2781_v60 = vpop.f32.mrf.mxu1 }
 0x5cb   : > { %v2574_v21 = vpop.f32.mrf.mxu2 }
 0x5cc   : > { %v2575_v63 = vadd.f32 %v2574_v21, %v10747_v58 }
 0x5ce   : > { %v2595_v50 = vadd.f32 %v2594_v8, %v2575_v63 }
 0x5d0   : > { %v2615_v24 = vadd.f32 %v2614_v3, %v2595_v50 }
 0x5d2   : > { %v2635_v51 = vadd.f32 %v2634_v25, %v2615_v24  ;;  %v2761_v33 = vpop.f32.mrf.mxu0 }
 0x5d4   : > { %3273 = vtanh.f32 %v2635_v51  ;;  %v2654_v49 = vpop.f32.mrf.mxu2 }
 0x5d5   : > { %v2655_v9 = vadd.f32 %v2654_v49, %v5659_v14 }
 0x5d7   : > { %v2675_v44 = vadd.f32 %v2674_v55, %v2655_v9 }
 0x5d9   : > { %v2695_v32 = vadd.f32 %v2694_v15, %v2675_v44  ;;  %v2801_v35 = vpop.f32.mrf.mxu3 }
 0x5da   : > { %v3274_v39 = vpop.eup %3273  ;;  %v2802_v57 = vadd.f32 %v2801_v35, %v2781_v60 }
 0x5db   : > { %v2715_v36 = vadd.f32 %v2714_v13, %v2695_v32  ;;  %2864 = vmatmul.f32.vlgmr.msra.gmra.mxu1 %v3274_v39 }
 0x5dc   : > { %v2805_v42 = vadd.f32 %v2802_v57, %v742_v20 }
 0x5dd   : > { %3275 = vtanh.f32 %v2715_v36 }
 0x5de   : > { %3277 = vtanh.f32 %v2805_v42 }
 0x5e3   : > { %v3276_v41 = vpop.eup %3275  ;;  %2944 = vmatmul.f32.vlgmr.msrb.gmra.mxu1 %v3274_v39 }
 0x5e4   : > { %v3278_v61 = vpop.eup %3277  ;;  %2884 = vmatmul.f32.vlgmr.msra.gmra.mxu3 %v3276_v41 }
 0x5e5   : > { %2971 = vst [vmem:[#allocation3 + $0x8] sm:$0xff] %v3278_v61  ;;  %2844 = vmatmul.f32.vlgmr.msrb.gmra.mxu0 %v3278_v61 }
 0x5ec   : > { %v2741_v28 = vpop.f32.mrf.mxu2  ;;  %2964 = vmatmul.f32.vlgmr.msrb.gmra.mxu3 %v3276_v41 }
 0x5ed   : > { %v2762_v27 = vadd.f32 %v2761_v33, %v2741_v28  ;;  %2924 = vmatmul.f32.vlgmr.msra.gmra.mxu0 %v3278_v61 }
 0x5ef   : > { %v2804_v1 = vadd.f32 %v2762_v27, %v619_v56 }
 0x5f1   : > { %3279 = vtanh.f32 %v2804_v1 }
 0x5f7   : > { %v3280_v22 = vpop.eup %3279 }
 0x5f8   : > { %2970 = vst [vmem:[#allocation3] sm:$0xff] %v3280_v22  ;;  %2824 = vmatmul.f32.vlgmr.msrb.gmra.mxu2 %v3280_v22 }
 0x600   : > { %2904 = vmatmul.f32.vlgmr.msra.gmra.mxu2 %v3280_v22 }
 0x658   : > { %v2865_v43 = vpop.f32.mrf.mxu1 }
 0x660   : > { %v2945_v30 = vpop.f32.mrf.mxu1 }
 0x662   : > { %v2845_v17 = vpop.f32.mrf.mxu0 }
 0x667   : > { %v2885_v16 = vpop.f32.mrf.mxu3 }
 0x66a   : > { %v2925_v0 = vpop.f32.mrf.mxu0 }
 0x66f   : > { %v2965_v7 = vpop.f32.mrf.mxu3 }
 0x67b   : > { %v2825_v4 = vpop.f32.mrf.mxu2 }
 0x67c   : > { %v2826_v48 = vadd.f32 %v2825_v4, %v10747_v58 }
 0x67e   : > { %v2846_v31 = vadd.f32 %v2845_v17, %v2826_v48 }
 0x680   : > { %v2866_v19 = vadd.f32 %v2865_v43, %v2846_v31 }
 0x682   : > { %v2886_v34 = vadd.f32 %v2885_v16, %v2866_v19 }
 0x683   : > { %v2905_v18 = vpop.f32.mrf.mxu2 }
 0x684   : > { %3281 = vtanh.f32 %v2886_v34  ;;  %v2906_v12 = vadd.f32 %v2905_v18, %v5659_v14 }
 0x686   : > { %v2926_v2 = vadd.f32 %v2925_v0, %v2906_v12 }
 0x688   : > { %v2946_v6 = vadd.f32 %v2945_v30, %v2926_v2 }
 0x68a   : > { %v8780_v5 = vpop.eup %3281  ;;  %v2966_v26 = vadd.f32 %v2965_v7, %v2946_v6 }
 0x68b   : > { %2972 = vst [vmem:[#allocation4 + $0x8] sm:$0xff] %v8780_v5 }
 0x68c   : > { %3283 = vtanh.f32 %v2966_v26 }
 0x68f   : > { %2977 = sbr.rel (%p3208_p5) target bundleno = 1977 (0x7b9), region = 68 }
 0x692   : > { %v8783_v23 = vpop.eup %3283 }
 0x693   : > { %2973 = vst [vmem:[#allocation4] sm:$0xff] %v8783_v23 }
 0x694   : > { %v3009_v14 = vld [vmem:[%s9001_s6 + $0xf8] sm:$0xff]  ;;  %v3007_v37 = vld [vmem:[%s9001_s6 + $0xe8] sm:$0xff]  ;;  %v3008_v29 = vld [vmem:[%s9001_s6 + $0xf0] sm:$0xff]  ;;  %vm3146_vm2 = vcmask 7168  }
 0x695   : > { %v3041_v54 = vld [vmem:[%s9001_s6 + $0x1f8] sm:$0xff]  ;;  %3088 = vmatpush.msra.mxu2 %v3009_v14  ;;  %v3039_v40 = vld [vmem:[%s9001_s6 + $0x1e8] sm:$0xff]  ;;  %3048 = vmatpush.msra.mxu0 %v3008_v29  ;;  %v3006_v21 = vld [vmem:[%s9001_s6 + $0xe0] sm:$0xff] }
 0x696   : > { %3108 = vmatpush.msra.mxu3 %v3041_v54  ;;  %v3005_v3 = vld [vmem:[%s9001_s6 + $0xd8] sm:$0xff]  ;;  %v3003_v8 = vld [vmem:[%s9001_s6 + $0xc8] sm:$0xff]  ;;  %v3040_v58 = vld [vmem:[%s9001_s6 + $0x1f0] sm:$0xff] }
 0x697   : > { %v3037_v25 = vld [vmem:[%s9001_s6 + $0x1d8] sm:$0xff]  ;;  %3089 = vmatpush.msra.mxu2 %v3007_v37  ;;  %3049 = vmatpush.msra.mxu0 %v3006_v21  ;;  %v3035_v63 = vld [vmem:[%s9001_s6 + $0x1c8] sm:$0xff]  ;;  %v3004_v50 = vld [vmem:[%s9001_s6 + $0xd0] sm:$0xff] }
 0x698   : > { %3109 = vmatpush.msra.mxu3 %v3039_v40  ;;  %3068 = vmatpush.msra.mxu1 %v3040_v58  ;;  %v3038_v24 = vld [vmem:[%s9001_s6 + $0x1e0] sm:$0xff]  ;;  %v3036_v13 = vld [vmem:[%s9001_s6 + $0x1d0] sm:$0xff]  ;;  %v3001_v51 = vld [vmem:[%s9001_s6 + $0xb8] sm:$0xff] }
 0x699   : > { %3090 = vmatpush.msra.mxu2 %v3005_v3  ;;  %v3002_v15 = vld [vmem:[%s9001_s6 + $0xc0] sm:$0xff]  ;;  %3050 = vmatpush.msra.mxu0 %v3004_v50  ;;  %v3033_v49 = vld [vmem:[%s9001_s6 + $0x1b8] sm:$0xff]  ;;  %v3000_v9 = vld [vmem:[%s9001_s6 + $0xb0] sm:$0xff] }
 0x69a   : > { %3110 = vmatpush.msra.mxu3 %v3037_v25  ;;  %3069 = vmatpush.msra.mxu1 %v3038_v24  ;;  %v3034_v38 = vld [vmem:[%s9001_s6 + $0x1c0] sm:$0xff]  ;;  %v2999_v59 = vld [vmem:[%s9001_s6 + $0xa8] sm:$0xff]  ;;  %v3032_v62 = vld [vmem:[%s9001_s6 + $0x1b0] sm:$0xff] }
 0x69b   : > { %3091 = vmatpush.msra.mxu2 %v3003_v8  ;;  %3051 = vmatpush.msra.mxu0 %v3002_v15  ;;  %v3031_v55 = vld [vmem:[%s9001_s6 + $0x1a8] sm:$0xff]  ;;  %v2998_v44 = vld [vmem:[%s9001_s6 + $0xa0] sm:$0xff]  ;;  %v2997_v10 = vld [vmem:[%s9001_s6 + $0x98] sm:$0xff] }
 0x69c   : > { %3111 = vmatpush.msra.mxu3 %v3035_v63  ;;  %3070 = vmatpush.msra.mxu1 %v3036_v13  ;;  %v3029_v60 = vld [vmem:[%s9001_s6 + $0x198] sm:$0xff]  ;;  %v2996_v32 = vld [vmem:[%s9001_s6 + $0x90] sm:$0xff]  ;;  %v3030_v35 = vld [vmem:[%s9001_s6 + $0x1a0] sm:$0xff] }
 0x69d   : > { %3092 = vmatpush.msra.mxu2 %v3001_v51  ;;  %3052 = vmatpush.msra.mxu0 %v3000_v9  ;;  %v2995_v39 = vld [vmem:[%s9001_s6 + $0x88] sm:$0xff]  ;;  %v2994_v20 = vld [vmem:[%s9001_s6 + $0x80] sm:$0xff]  ;;  %v3028_v57 = vld [vmem:[%s9001_s6 + $0x190] sm:$0xff] }
 0x69e   : > { %3112 = vmatpush.msra.mxu3 %v3033_v49  ;;  %3071 = vmatpush.msra.mxu1 %v3034_v38  ;;  %v3027_v47 = vld [vmem:[%s9001_s6 + $0x188] sm:$0xff]  ;;  %v2993_v36 = vld [vmem:[%s9001_s6 + $0x78] sm:$0xff]  ;;  %v2992_v41 = vld [vmem:[%s9001_s6 + $0x70] sm:$0xff] }
 0x69f   : > { %3093 = vmatpush.msra.mxu2 %v2999_v59  ;;  %3053 = vmatpush.msra.mxu0 %v2998_v44  ;;  %v3025_v42 = vld [vmem:[%s9001_s6 + $0x178] sm:$0xff]  ;;  %v3026_v61 = vld [vmem:[%s9001_s6 + $0x180] sm:$0xff]  ;;  %v2991_v52 = vld [vmem:[%s9001_s6 + $0x68] sm:$0xff] }
 0x6a0   : > { %3113 = vmatpush.msra.mxu3 %v3031_v55  ;;  %3072 = vmatpush.msra.mxu1 %v3032_v62  ;;  %v3023_v11 = vld [vmem:[%s9001_s6 + $0x168] sm:$0xff]  ;;  %v2990_v53 = vld [vmem:[%s9001_s6 + $0x60] sm:$0xff]  ;;  %v3024_v46 = vld [vmem:[%s9001_s6 + $0x170] sm:$0xff] }
 0x6a1   : > { %3094 = vmatpush.msra.mxu2 %v2997_v10  ;;  %3054 = vmatpush.msra.mxu0 %v2996_v32  ;;  %v2989_v33 = vld [vmem:[%s9001_s6 + $0x58] sm:$0xff]  ;;  %v2988_v45 = vld [vmem:[%s9001_s6 + $0x50] sm:$0xff]  ;;  %v3022_v56 = vld [vmem:[%s9001_s6 + $0x160] sm:$0xff] }
 0x6a2   : > { %3114 = vmatpush.msra.mxu3 %v3029_v60  ;;  %3073 = vmatpush.msra.mxu1 %v3030_v35  ;;  %v3021_v28 = vld [vmem:[%s9001_s6 + $0x158] sm:$0xff]  ;;  %v2987_v27 = vld [vmem:[%s9001_s6 + $0x48] sm:$0xff]  ;;  %v2986_v22 = vld [vmem:[%s9001_s6 + $0x40] sm:$0xff] }
 0x6a3   : > { %3095 = vmatpush.msra.mxu2 %v2995_v39  ;;  %3055 = vmatpush.msra.mxu0 %v2994_v20  ;;  %v3019_v1 = vld [vmem:[%s9001_s6 + $0x148] sm:$0xff]  ;;  %v3020_v17 = vld [vmem:[%s9001_s6 + $0x150] sm:$0xff]  ;;  %v2985_v4 = vld [vmem:[%s9001_s6 + $0x38] sm:$0xff] }
 0x6a4   : > { %3115 = vmatpush.msra.mxu3 %v3027_v47  ;;  %3074 = vmatpush.msra.mxu1 %v3028_v57  ;;  %v3017_v48 = vld [vmem:[%s9001_s6 + $0x138] sm:$0xff]  ;;  %v2984_v43 = vld [vmem:[%s9001_s6 + $0x30] sm:$0xff]  ;;  %v3018_v31 = vld [vmem:[%s9001_s6 + $0x140] sm:$0xff] }
 0x6a5   : > { %3096 = vmatpush.msra.mxu2 %v2993_v36  ;;  %3056 = vmatpush.msra.mxu0 %v2992_v41  ;;  %v2983_v16 = vld [vmem:[%s9001_s6 + $0x28] sm:$0xff]  ;;  %v2982_v34 = vld [vmem:[%s9001_s6 + $0x20] sm:$0xff]  ;;  %v3016_v18 = vld [vmem:[%s9001_s6 + $0x130] sm:$0xff] }
 0x6a6   : > { %3116 = vmatpush.msra.mxu3 %v3025_v42  ;;  %3075 = vmatpush.msra.mxu1 %v3026_v61  ;;  %v3015_v19 = vld [vmem:[%s9001_s6 + $0x128] sm:$0xff]  ;;  %v2981_v12 = vld [vmem:[%s9001_s6 + $0x18] sm:$0xff]  ;;  %v2980_v2 = vld [vmem:[%s9001_s6 + $0x10] sm:$0xff] }
 0x6a7   : > { %3097 = vmatpush.msra.mxu2 %v2991_v52  ;;  %3057 = vmatpush.msra.mxu0 %v2990_v53  ;;  %v3013_v0 = vld [vmem:[%s9001_s6 + $0x118] sm:$0xff]  ;;  %v3014_v30 = vld [vmem:[%s9001_s6 + $0x120] sm:$0xff]  ;;  %v2979_v6 = vld [vmem:[%s9001_s6 + $0x8] sm:$0xff] }
 0x6a8   : > { %3117 = vmatpush.msra.mxu3 %v3023_v11  ;;  %3076 = vmatpush.msra.mxu1 %v3024_v46  ;;  %v3011_v7 = vld [vmem:[%s9001_s6 + $0x108] sm:$0xff]  ;;  %v2978_v26 = vld [vmem:[%s9001_s6] sm:$0xff]  ;;  %v3012_v14 = vld [vmem:[%s9001_s6 + $0x110] sm:$0xff] }
 0x6a9   : > { %3098 = vmatpush.msra.mxu2 %v2989_v33  ;;  %3058 = vmatpush.msra.mxu0 %v2988_v45  ;;  %v3010_v37 = vld [vmem:[%s9001_s6 + $0x100] sm:$0xff] }
 0x6aa   : > { %3118 = vmatpush.msra.mxu3 %v3021_v28  ;;  %3077 = vmatpush.msra.mxu1 %v3022_v56  ;;  %v3042_v54 = vld [vmem:[%s9002_s7] sm:$0x3] }
 0x6ab   : > { %3099 = vmatpush.msra.mxu2 %v2987_v27  ;;  %3059 = vmatpush.msra.mxu0 %v2986_v22  ;;  %v3044_v40 = vperm.slane %v3042_v54, 0  ;;  %v3045_v25 = vperm.slane %v3042_v54, 1  ;;  %v3130_v8 = vld [vmem:[%s9003_s8] sm:$0x3] }
 0x6ac   : > { %3119 = vmatpush.msra.mxu3 %v3019_v1  ;;  %3078 = vmatpush.msra.mxu1 %v3020_v17  ;;  %v3132_v15 = vperm.slane %v3130_v8, 0  ;;  %v3133_v13 = vperm.slane %v3130_v8, 1  ;;  %v3701_v59 = vld [vmem:[#allocation5] ss:$0 sm:$0xff] }
 0x6ad   : > { %3100 = vmatpush.msra.mxu2 %v2985_v4  ;;  %3060 = vmatpush.msra.mxu0 %v2984_v43 }
 0x6ae   : > { %3120 = vmatpush.msra.mxu3 %v3017_v48  ;;  %3079 = vmatpush.msra.mxu1 %v3018_v31 }
 0x6af   : > { %3101 = vmatpush.msra.mxu2 %v2983_v16  ;;  %3061 = vmatpush.msra.mxu0 %v2982_v34 }
 0x6b0   : > { %3121 = vmatpush.msra.mxu3 %v3015_v19  ;;  %3080 = vmatpush.msra.mxu1 %v3016_v18 }
 0x6b1   : > { %3102 = vmatpush.msra.mxu2 %v2981_v12  ;;  %3062 = vmatpush.msra.mxu0 %v2980_v2 }
 0x6b2   : > { %3122 = vmatpush.msra.mxu3 %v3013_v0  ;;  %3081 = vmatpush.msra.mxu1 %v3014_v30 }
 0x6b3   : > { %3103 = vmatpush.msra.mxu2 %v2979_v6  ;;  %3063 = vmatpush.msra.mxu0 %v2978_v26 }
 0x6b4   : > { %3123 = vmatpush.msra.mxu3 %v3011_v7  ;;  %3104 = vmatmul.f32.vlgmr.msra.gmra.mxu2 %v8780_v5 }
 0x6b5   : > { %3124 = vmatmul.f32.vlgmr.msra.gmra.mxu3 %v8783_v23  ;;  %3082 = vmatpush.msra.mxu1 %v3012_v14 }
 0x6b6   : > { %3064 = vmatmul.f32.vlgmr.msra.gmra.mxu0 %v8780_v5 }
 0x6b7   : > { %3083 = vmatpush.msra.mxu1 %v3010_v37 }
 0x6b8   : > { %3084 = vmatmul.f32.vlgmr.msra.gmra.mxu1 %v8783_v23 }
 0x733   : > { %v3065_v29 = vpop.f32.mrf.mxu0 }
 0x734   : > { %v3066_v3 = vadd.f32 %v3065_v29, %v3044_v40 }
 0x735   : > { %v3085_v21 = vpop.f32.mrf.mxu1 }
 0x736   : > { %v3086_v58 = vadd.f32 %v3085_v21, %v3066_v3 }
 0x737   : > { %v3105_v63 = vpop.f32.mrf.mxu2 }
 0x738   : > { %v3125_v50 = vpop.f32.mrf.mxu3  ;;  %v3106_v5 = vadd.f32 %v3105_v63, %v3045_v25  ;;  %v3128_v24 = vmax.f32 %v3086_v58, 0.0 }
 0x73a   : > { %v3126_v23 = vadd.f32 %v3125_v50, %v3106_v5  ;;  %v3136_v49 = vmul.f32 %v3132_v15, %v3128_v24 }
 0x73c   : > { %v3129_v51 = vmax.f32 %v3126_v23, 0.0 }
 0x73e   : > { %v3137_v9 = vmul.f32 %v3133_v13, %v3129_v51 }
 0x740   : > { %v3138_v38 = vadd.f32 %v3137_v9, %v3136_v49 }
 0x742   : > { %3139 = vadd.xlane.f32.xlu0 %v3138_v38 }
 0x7b5   : > { %v3140_v55 = vpop.xlane.xlu0 %3139 }
 0x7b6   : > { %v3145_v44 = vadd.f32 %v3701_v59, %v3140_v55 }
 0x7b8   : > { %3147 = vst.msk [vmem:[%s9005_s10] sm:$0xff] %vm3146_vm2, %v3145_v44 }
 0x7b9 PF: > { %s22_s15 = sadd.s32 1, %s3708_s15  }
 0x7ba   : > { %p19_p6 = scmp.ge.s32.totalorder %s22_s15, 4  }
 0x7bc   :  { %21 = sbr.rel (!%p19_p6) target bundleno = 3 (0x3), region = 102 }

</bundles_post_ra>
